<compile_context>
chip_gen: v7x
topology: tpu7x:2x2x1
jax: 0.10.0
libtpu: 0.0.40
codegen_flags: <defaults>
</compile_context>

<pallas_src>
import jax
import jax.numpy as jnp
from jax.experimental import pallas as pl
from jax.experimental.pallas import tpu as pltpu

# resnet50 conv1 geometry: 64 out-channels, 7x7, stride 2, pad 3.
COUT, KH, KW = 64, 7, 7
LATENT = COUT * KH * KW          # 3136 = VAE latent / template size
LATENT_PAD = 3200                # next multiple of 128 (lane tile) above 3136
ENC_TILE = 640                   # latent lanes per encoder grid step
assert LATENT_PAD % 128 == 0 and LATENT_PAD % ENC_TILE == 0 and ENC_TILE % 128 == 0
assert ENC_TILE >= 512           # amortize the ~0.35 us/step grid overhead

# 32 MiB scoped VMEM: enough for the head kernel's double-buffered resident
# weights (~11 MiB) with headroom, and well under v7x's 64 MiB physical VMEM.
_VMEM_LIMIT = 32 * 1024 * 1024


def _full_spec(shape):
    """BlockSpec covering the whole array (single block)."""
    n = len(shape)
    return pl.BlockSpec(shape, lambda *_: (0,) * n)


# ----------------------------------------------------------------------------
# Kernel 1: fused VAE encoder ([mu|logvar] matmul) + reparametrize epilogue,
#           N-tiled over the latent dimension for DMA/compute overlap.
# ----------------------------------------------------------------------------
def _encoder_reparam_kernel(xo_ref, wcat_ref, bcat_ref, eps_ref, z_ref):
    tn = z_ref.shape[1]                                     # ENC_TILE (static)
    # One fused [mu | logvar] matmul per latent tile (one weight push / DMA
    # stream); split by a 128-aligned lane slice in the epilogue.
    y = jnp.dot(xo_ref[...], wcat_ref[...],
                preferred_element_type=jnp.float32) + bcat_ref[...]
    mu = y[:, :tn]
    logvar = y[:, tn:]
    # reparametrize fused in the epilogue: exp runs on the EUP slot.
    z_ref[...] = mu + jnp.exp(0.5 * logvar) * eps_ref[...]


def encode_reparametrize(xo, w_cat, b_cat, eps):
    """z = mu + exp(0.5*logvar)*eps, tiled over the (padded) latent dimension."""
    B, enc_in = xo.shape
    n_tiles = LATENT_PAD // ENC_TILE
    return pl.pallas_call(
        _encoder_reparam_kernel,
        out_shape=jax.ShapeDtypeStruct((B, LATENT_PAD), jnp.float32),
        grid_spec=pltpu.PrefetchScalarGridSpec(
            num_scalar_prefetch=0,
            grid=(n_tiles,),
            in_specs=[
                pl.BlockSpec((B, enc_in), lambda i: (0, 0)),             # xo (resident)
                pl.BlockSpec((enc_in, 2 * ENC_TILE), lambda i: (0, i)),  # [mu|lv] W tile
                pl.BlockSpec((1, 2 * ENC_TILE), lambda i: (0, i)),       # [mu|lv] b tile
                pl.BlockSpec((B, ENC_TILE), lambda i: (0, i)),           # eps tile
            ],
            out_specs=pl.BlockSpec((B, ENC_TILE), lambda i: (0, i)),
        ),
        compiler_params=pltpu.CompilerParams(
            # Tiles are independent: "parallel" lets v7x's two TensorCores split
            # the HBM weight streaming; harmless no-op on v5e/v6e's single TC.
            dimension_semantics=("parallel",),
            vmem_limit_bytes=_VMEM_LIMIT,
        ),
    )(xo, w_cat, b_cat, eps)


# ----------------------------------------------------------------------------
# Kernel 2: conv1 as ONE im2col MXU matmul + ReLU + global-avg-pool body
#           stand-in + full FC head, all in one pallas_call (weights resident).
# ----------------------------------------------------------------------------
def _make_conv_head_kernel(B, HoWo):
    def kernel(taps_ref, wt_ref,
               wb_ref, bb_ref, w1_ref, b1_ref, w2_ref, b2_ref,
               w3_ref, b3_ref, wo_ref, bo_ref, o_ref):
        # conv1 (7x7 / stride 2 / pad 3) as a single im2col matmul on the MXU.
        conv = jnp.dot(taps_ref[...], wt_ref[...],
                       preferred_element_type=jnp.float32)      # (B*HoWo, 64) f32
        # TODO(synk): resnet bn1 (pretrained BatchNorm stats) omitted; ReLU kept.
        conv = jnp.maximum(conv, 0.0)
        # TODO(synk): pretrained resnet50 bottleneck stack not reproducible
        # in-script; stand-in = global average pool + linear to 2048-d features.
        feat = jnp.mean(conv.reshape(B, HoWo, COUT), axis=1)    # (B, 64) f32

        def dense(h, w_ref, b_ref, relu=True):
            out = jnp.dot(h.astype(jnp.bfloat16), w_ref[...],
                          preferred_element_type=jnp.float32) + b_ref[...]
            return jnp.maximum(out, 0.0) if relu else out

        h = dense(feat, wb_ref, bb_ref)      # 64   -> 2048  (body stand-in)
        # FullyConnectedLayers (eval mode: dropout inactive)
        h = dense(h, w1_ref, b1_ref)         # 2048 -> 1024
        h = dense(h, w2_ref, b2_ref)         # 1024 -> 512
        h = dense(h, w3_ref, b3_ref)         # 512  -> 128
        # Output head.  The single (B, 10) masked vreg store left after fusion
        # is cheaper than lane-padding it (extra slice / wider HBM write).
        o_ref[...] = dense(h, wo_ref, bo_ref, relu=False).astype(o_ref.dtype)

    return kernel


def conv_and_head(taps, w_taps, params, B):
    HoWo = taps.shape[0] // B
    out_size = params["out_w"].shape[1]
    args = (taps, w_taps,
            params["body_w"], params["body_b"],
            params["fc1_w"], params["fc1_b"],
            params["fc2_w"], params["fc2_b"],
            params["fc3_w"], params["fc3_b"],
            params["out_w"], params["out_b"])
    kernel = _make_conv_head_kernel(B, HoWo)
    # grid=(1,): taps (~128 KiB padded) + ~5.6 MiB bf16 head weights fit in one
    # step.  TODO(synk): a v7x 2-TC split of the fc1/fc2 N dims is possible but
    # the fc chain dependency makes the gain marginal at this size.
    return pl.pallas_call(
        kernel,
        out_shape=jax.ShapeDtypeStruct((B, out_size), jnp.float32),
        grid_spec=pltpu.PrefetchScalarGridSpec(
            num_scalar_prefetch=0,
            grid=(1,),
            in_specs=[_full_spec(a.shape) for a in args],
            out_specs=_full_spec((B, out_size)),
        ),
        compiler_params=pltpu.CompilerParams(
            dimension_semantics=("arbitrary",),
            vmem_limit_bytes=_VMEM_LIMIT,
        ),
    )(*args)


# ----------------------------------------------------------------------------
# Parameters (deterministic synthetic init; weights bf16, biases f32)
# ----------------------------------------------------------------------------
def _init_linear(key, fan_in, fan_out):
    kw, kb = jax.random.split(key)
    w = (jax.random.normal(kw, (fan_in, fan_out), jnp.float32)
         / jnp.sqrt(fan_in)).astype(jnp.bfloat16)
    b = 0.01 * jax.random.normal(kb, (1, fan_out), jnp.float32)
    return w, b


def _interleave_tiles(mu, lv, tile):
    """Per-tile [mu_tile | lv_tile] concat so each encoder grid step's block
    carries the mu AND logvar columns for its latent range (one DMA stream)."""
    r, n = mu.shape
    nt = n // tile
    return jnp.concatenate(
        [mu.reshape(r, nt, tile), lv.reshape(r, nt, tile)], axis=2
    ).reshape(r, 2 * n)


def init_params(key, enc_in, output_size=10):
    ks = jax.random.split(key, 7)
    p = {}
    # TODO(synk): ConvVAE encoder stand-in = flatten + mu / logvar linears.
    mu_w, mu_b = _init_linear(ks[0], enc_in, LATENT)
    lv_w, lv_b = _init_linear(ks[1], enc_in, LATENT)
    pad = LATENT_PAD - LATENT        # zero-pad latent to a 128-lane multiple
    mu_w = jnp.pad(mu_w, ((0, 0), (0, pad)))
    lv_w = jnp.pad(lv_w, ((0, 0), (0, pad)))
    mu_b = jnp.pad(mu_b, ((0, 0), (0, pad)))
    lv_b = jnp.pad(lv_b, ((0, 0), (0, pad)))
    p["enc_w_cat"] = _interleave_tiles(mu_w, lv_w, ENC_TILE)  # (enc_in, 2*LATENT_PAD) bf16
    p["enc_b_cat"] = _interleave_tiles(mu_b, lv_b, ENC_TILE)  # (1, 2*LATENT_PAD) f32
    p["body_w"], p["body_b"] = _init_linear(ks[2], COUT, 2048)
    p["fc1_w"], p["fc1_b"] = _init_linear(ks[3], 2048, 1024)
    p["fc2_w"], p["fc2_b"] = _init_linear(ks[4], 1024, 512)
    p["fc3_w"], p["fc3_b"] = _init_linear(ks[5], 512, 128)
    p["out_w"], p["out_b"] = _init_linear(ks[6], 128, output_size)
    return p


# ----------------------------------------------------------------------------
# Wrapper-side im2col (layout plumbing only, ~50 KiB)
# ----------------------------------------------------------------------------
def _im2col_conv1(x):
    """Channel-summed, padded, stride-2 7x7 im2col -> (B*Ho*Wo, 49) bf16.

    conv1 weights are identical across the 3 input channels (repeat(3,1,1,1)),
    so conv1(x, w) == conv1(sum_c x[:, c], w_1ch) exactly; the channel sum is
    folded into this same-size prep.  The 49-tap axis is last (lane axis)."""
    B, _, H, W = x.shape
    Ho = (H + 2 * 3 - KH) // 2 + 1
    Wo = (W + 2 * 3 - KW) // 2 + 1
    xp = jnp.pad(jnp.sum(x, axis=1), ((0, 0), (3, 3), (3, 3)))   # (B, H+6, W+6)
    cols = [xp[:, kh:kh + 2 * Ho:2, kw:kw + 2 * Wo:2]            # (B, Ho, Wo)
            for kh in range(KH) for kw in range(KW)]
    taps = jnp.stack(cols, axis=-1).reshape(B * Ho * Wo, KH * KW)
    return taps.astype(jnp.bfloat16)


# ----------------------------------------------------------------------------
# ETCNet forward (2 pallas_calls + tiny same-size wrapper glue)
# ----------------------------------------------------------------------------
def etcnet_forward(params, x, x_object, eps_key):
    B = x.shape[0]

    # --- VAE encoder + reparametrize, one pipelined kernel ---
    xo = x_object.reshape(B, -1).astype(jnp.bfloat16)
    eps = jax.random.normal(eps_key, (B, LATENT_PAD), jnp.float32)
    z = encode_reparametrize(xo, params["enc_w_cat"], params["enc_b_cat"], eps)

    # template_weights = z[0].repeat(3,1,1,1).permute(1,0,2,3): identical over
    # the 3 input channels.  Per-tap table: row kh*7+kw holds that tap's 64
    # output-channel weights (tiny 64x49 transpose, 25 KiB, wrapper-side).
    w_taps = z[0, :LATENT].reshape(COUT, KH * KW).T.astype(jnp.bfloat16)  # (49, 64)

    # --- conv1 (im2col MXU matmul) + ReLU + pooled body stand-in + FC head ---
    taps = _im2col_conv1(x)                                               # (B*Ho*Wo, 49)
    return conv_and_head(taps, w_taps, params, B)


if __name__ == "__main__":
    key = jax.random.PRNGKey(0)
    k_x, k_obj, k_par, k_eps = jax.random.split(key, 4)

    B = 2
    x = jax.random.normal(k_x, (B, 3, 32, 32), jnp.float32)           # NCHW image
    x_object = jax.random.normal(k_obj, (B, 3, 16, 16), jnp.float32)  # NCHW template

    params = init_params(k_par, enc_in=3 * 16 * 16, output_size=10)

    fwd = jax.jit(etcnet_forward)
    out = jax.block_until_ready(fwd(params, x, x_object, k_eps))
    assert out.shape == (B, 10) and out.dtype == jnp.float32
    assert bool(jnp.all(jnp.isfinite(out)))
    print("KERNEL_OK")
</pallas_src>

<mosaic_0001>
module attributes {stable_mosaic.version = 11 : i64} {
  func.func @_encoder_reparam_kernel(%arg0: i32, %arg1: memref<2x768xbf16, #tpu.memory_space<vmem>>, %arg2: memref<768x1280xbf16, #tpu.memory_space<vmem>>, %arg3: memref<1x1280xf32, #tpu.memory_space<vmem>>, %arg4: memref<2x640xf32, #tpu.memory_space<vmem>>, %arg5: memref<2x640xf32, #tpu.memory_space<vmem>>) attributes {dimension_semantics = [#tpu.dimension_semantics<parallel>], iteration_bounds = array<i64: 5>, scalar_prefetch = 0 : i64, scratch_operands = 0 : i64, tpu.core_type = #tpu.core_type<tc>, window_params = [{pipeline_mode = #tpu.pipeline_mode<synchronous>, transform_indices = @transform_0, window_bounds = array<i64: 2, 768>}, {transform_indices = @transform_1, window_bounds = array<i64: 768, 1280>}, {transform_indices = @transform_2, window_bounds = array<i64: 1, 1280>}, {transform_indices = @transform_3, window_bounds = array<i64: 2, 640>}, {transform_indices = @transform_4, window_bounds = array<i64: 2, 640>}]} {
    %c0 = arith.constant 0 : index
    %c0_0 = arith.constant 0 : index
    %0 = vector.load %arg1[%c0, %c0_0] : memref<2x768xbf16, #tpu.memory_space<vmem>>, vector<2x768xbf16>
    %c0_1 = arith.constant 0 : index
    %c0_2 = arith.constant 0 : index
    %1 = vector.load %arg2[%c0_1, %c0_2] : memref<768x1280xbf16, #tpu.memory_space<vmem>>, vector<768x1280xbf16>
    %cst = arith.constant dense<0.000000e+00> : vector<2x1280xf32>
    %2 = tpu.matmul %0, %1, %cst {dimension_numbers = #tpu.dot_dimension_numbers<[1], [0], [0], [1], [0, 0, 1, 1], [], []>} : vector<2x768xbf16>, vector<768x1280xbf16>, vector<2x1280xf32> -> vector<2x1280xf32>
    %c0_3 = arith.constant 0 : index
    %c0_4 = arith.constant 0 : index
    %3 = vector.load %arg3[%c0_3, %c0_4] : memref<1x1280xf32, #tpu.memory_space<vmem>>, vector<1x1280xf32>
    %4 = vector.broadcast %3 : vector<1x1280xf32> to vector<2x1280xf32>
    %5 = arith.addf %2, %4 : vector<2x1280xf32>
    %6 = vector.extract_strided_slice %5 {offsets = [0, 0], sizes = [2, 640], strides = [1, 1]} : vector<2x1280xf32> to vector<2x640xf32>
    %7 = vector.extract_strided_slice %5 {offsets = [0, 640], sizes = [2, 640], strides = [1, 1]} : vector<2x1280xf32> to vector<2x640xf32>
    %cst_5 = arith.constant 5.000000e-01 : f32
    %8 = vector.broadcast %cst_5 : f32 to vector<2x640xf32>
    %9 = arith.mulf %8, %7 : vector<2x640xf32>
    %10 = math.exp %9 : vector<2x640xf32>
    %c0_6 = arith.constant 0 : index
    %c0_7 = arith.constant 0 : index
    %11 = vector.load %arg4[%c0_6, %c0_7] : memref<2x640xf32, #tpu.memory_space<vmem>>, vector<2x640xf32>
    %12 = arith.mulf %10, %11 : vector<2x640xf32>
    %13 = arith.addf %6, %12 : vector<2x640xf32>
    %c0_8 = arith.constant 0 : index
    %c0_9 = arith.constant 0 : index
    %14 = vector.load %arg5[%c0_8, %c0_9] : memref<2x640xf32, #tpu.memory_space<vmem>>, vector<2x640xf32>
    tpu.vector_store %arg5[%c0_8, %c0_9], %13 {strides = array<i32>} : memref<2x640xf32, #tpu.memory_space<vmem>>, vector<2x640xf32>,
    return
  }
  func.func @transform_0(%arg0: i32) -> (i32, i32) {
    %c0_i32 = arith.constant 0 : i32
    %c0_i32_0 = arith.constant 0 : i32
    %c0_i32_1 = arith.constant 0 : i32
    return %c0_i32, %c0_i32_0 : i32, i32
  }
  func.func @transform_1(%arg0: i32) -> (i32, i32) {
    %c0_i32 = arith.constant 0 : i32
    %c0_i32_0 = arith.constant 0 : i32
    return %c0_i32, %arg0 : i32, i32
  }
  func.func @transform_2(%arg0: i32) -> (i32, i32) {
    %c0_i32 = arith.constant 0 : i32
    %c0_i32_0 = arith.constant 0 : i32
    return %c0_i32, %arg0 : i32, i32
  }
  func.func @transform_3(%arg0: i32) -> (i32, i32) {
    %c0_i32 = arith.constant 0 : i32
    %c0_i32_0 = arith.constant 0 : i32
    return %c0_i32, %arg0 : i32, i32
  }
  func.func @transform_4(%arg0: i32) -> (i32, i32) {
    %c0_i32 = arith.constant 0 : i32
    %c0_i32_0 = arith.constant 0 : i32
    return %c0_i32, %arg0 : i32, i32
  }
}

module attributes {stable_mosaic.version = 11 : i64} {
  func.func @kernel(%arg0: i32, %arg1: memref<512x49xbf16, #tpu.memory_space<vmem>>, %arg2: memref<49x64xbf16, #tpu.memory_space<vmem>>, %arg3: memref<64x2048xbf16, #tpu.memory_space<vmem>>, %arg4: memref<1x2048xf32, #tpu.memory_space<vmem>>, %arg5: memref<2048x1024xbf16, #tpu.memory_space<vmem>>, %arg6: memref<1x1024xf32, #tpu.memory_space<vmem>>, %arg7: memref<1024x512xbf16, #tpu.memory_space<vmem>>, %arg8: memref<1x512xf32, #tpu.memory_space<vmem>>, %arg9: memref<512x128xbf16, #tpu.memory_space<vmem>>, %arg10: memref<1x128xf32, #tpu.memory_space<vmem>>, %arg11: memref<128x10xbf16, #tpu.memory_space<vmem>>, %arg12: memref<1x10xf32, #tpu.memory_space<vmem>>, %arg13: memref<2x10xf32, #tpu.memory_space<vmem>>) attributes {dimension_semantics = [#tpu.dimension_semantics<arbitrary>], iteration_bounds = array<i64: 1>, scalar_prefetch = 0 : i64, scratch_operands = 0 : i64, tpu.core_type = #tpu.core_type<tc>, window_params = [{pipeline_mode = #tpu.pipeline_mode<synchronous>, transform_indices = @transform_0, window_bounds = array<i64: 512, 49>}, {pipeline_mode = #tpu.pipeline_mode<synchronous>, transform_indices = @transform_1, window_bounds = array<i64: 49, 64>}, {pipeline_mode = #tpu.pipeline_mode<synchronous>, transform_indices = @transform_2, window_bounds = array<i64: 64, 2048>}, {pipeline_mode = #tpu.pipeline_mode<synchronous>, transform_indices = @transform_3, window_bounds = array<i64: 1, 2048>}, {pipeline_mode = #tpu.pipeline_mode<synchronous>, transform_indices = @transform_4, window_bounds = array<i64: 2048, 1024>}, {pipeline_mode = #tpu.pipeline_mode<synchronous>, transform_indices = @transform_5, window_bounds = array<i64: 1, 1024>}, {pipeline_mode = #tpu.pipeline_mode<synchronous>, transform_indices = @transform_6, window_bounds = array<i64: 1024, 512>}, {pipeline_mode = #tpu.pipeline_mode<synchronous>, transform_indices = @transform_7, window_bounds = array<i64: 1, 512>}, {pipeline_mode = #tpu.pipeline_mode<synchronous>, transform_indices = @transform_8, window_bounds = array<i64: 512, 128>}, {pipeline_mode = #tpu.pipeline_mode<synchronous>, transform_indices = @transform_9, window_bounds = array<i64: 1, 128>}, {pipeline_mode = #tpu.pipeline_mode<synchronous>, transform_indices = @transform_10, window_bounds = array<i64: 128, 10>}, {pipeline_mode = #tpu.pipeline_mode<synchronous>, transform_indices = @transform_11, window_bounds = array<i64: 1, 10>}, {pipeline_mode = #tpu.pipeline_mode<synchronous>, transform_indices = @transform_12, window_bounds = array<i64: 2, 10>}]} {
    %c0 = arith.constant 0 : index
    %c0_0 = arith.constant 0 : index
    %0 = vector.load %arg1[%c0, %c0_0] : memref<512x49xbf16, #tpu.memory_space<vmem>>, vector<512x49xbf16>
    %c0_1 = arith.constant 0 : index
    %c0_2 = arith.constant 0 : index
    %1 = vector.load %arg2[%c0_1, %c0_2] : memref<49x64xbf16, #tpu.memory_space<vmem>>, vector<49x64xbf16>
    %cst = arith.constant dense<0.000000e+00> : vector<512x64xf32>
    %2 = tpu.matmul %0, %1, %cst {dimension_numbers = #tpu.dot_dimension_numbers<[1], [0], [0], [1], [0, 0, 1, 1], [], []>} : vector<512x49xbf16>, vector<49x64xbf16>, vector<512x64xf32> -> vector<512x64xf32>
    %cst_3 = arith.constant 0.000000e+00 : f32
    %3 = vector.broadcast %cst_3 : f32 to vector<512x64xf32>
    %4 = arith.maximumf %2, %3 : vector<512x64xf32>
    %5 = vector.shape_cast %4 : vector<512x64xf32> to vector<2x256x64xf32>
    %cst_4 = arith.constant dense<0.000000e+00> : vector<2x64xf32>
    %6 = vector.multi_reduction <add>, %5, %cst_4 [1] : vector<2x256x64xf32> to vector<2x64xf32>
    %cst_5 = arith.constant 2.560000e+02 : f32
    %7 = vector.broadcast %cst_5 : f32 to vector<2x64xf32>
    %8 = arith.divf %6, %7 : vector<2x64xf32>
    %9 = arith.truncf %8 : vector<2x64xf32> to vector<2x64xbf16>
    %c0_6 = arith.constant 0 : index
    %c0_7 = arith.constant 0 : index
    %10 = vector.load %arg3[%c0_6, %c0_7] : memref<64x2048xbf16, #tpu.memory_space<vmem>>, vector<64x2048xbf16>
    %cst_8 = arith.constant dense<0.000000e+00> : vector<2x2048xf32>
    %11 = tpu.matmul %9, %10, %cst_8 {dimension_numbers = #tpu.dot_dimension_numbers<[1], [0], [0], [1], [0, 0, 1, 1], [], []>} : vector<2x64xbf16>, vector<64x2048xbf16>, vector<2x2048xf32> -> vector<2x2048xf32>
    %c0_9 = arith.constant 0 : index
    %c0_10 = arith.constant 0 : index
    %12 = vector.load %arg4[%c0_9, %c0_10] : memref<1x2048xf32, #tpu.memory_space<vmem>>, vector<1x2048xf32>
    %13 = vector.broadcast %12 : vector<1x2048xf32> to vector<2x2048xf32>
    %14 = arith.addf %11, %13 : vector<2x2048xf32>
    %cst_11 = arith.constant 0.000000e+00 : f32
    %15 = vector.broadcast %cst_11 : f32 to vector<2x2048xf32>
    %16 = arith.maximumf %14, %15 : vector<2x2048xf32>
    %17 = arith.truncf %16 : vector<2x2048xf32> to vector<2x2048xbf16>
    %c0_12 = arith.constant 0 : index
    %c0_13 = arith.constant 0 : index
    %18 = vector.load %arg5[%c0_12, %c0_13] : memref<2048x1024xbf16, #tpu.memory_space<vmem>>, vector<2048x1024xbf16>
    %cst_14 = arith.constant dense<0.000000e+00> : vector<2x1024xf32>
    %19 = tpu.matmul %17, %18, %cst_14 {dimension_numbers = #tpu.dot_dimension_numbers<[1], [0], [0], [1], [0, 0, 1, 1], [], []>} : vector<2x2048xbf16>, vector<2048x1024xbf16>, vector<2x1024xf32> -> vector<2x1024xf32>
    %c0_15 = arith.constant 0 : index
    %c0_16 = arith.constant 0 : index
    %20 = vector.load %arg6[%c0_15, %c0_16] : memref<1x1024xf32, #tpu.memory_space<vmem>>, vector<1x1024xf32>
    %21 = vector.broadcast %20 : vector<1x1024xf32> to vector<2x1024xf32>
    %22 = arith.addf %19, %21 : vector<2x1024xf32>
    %cst_17 = arith.constant 0.000000e+00 : f32
    %23 = vector.broadcast %cst_17 : f32 to vector<2x1024xf32>
    %24 = arith.maximumf %22, %23 : vector<2x1024xf32>
    %25 = arith.truncf %24 : vector<2x1024xf32> to vector<2x1024xbf16>
    %c0_18 = arith.constant 0 : index
    %c0_19 = arith.constant 0 : index
    %26 = vector.load %arg7[%c0_18, %c0_19] : memref<1024x512xbf16, #tpu.memory_space<vmem>>, vector<1024x512xbf16>
    %cst_20 = arith.constant dense<0.000000e+00> : vector<2x512xf32>
    %27 = tpu.matmul %25, %26, %cst_20 {dimension_numbers = #tpu.dot_dimension_numbers<[1], [0], [0], [1], [0, 0, 1, 1], [], []>} : vector<2x1024xbf16>, vector<1024x512xbf16>, vector<2x512xf32> -> vector<2x512xf32>
    %c0_21 = arith.constant 0 : index
    %c0_22 = arith.constant 0 : index
    %28 = vector.load %arg8[%c0_21, %c0_22] : memref<1x512xf32, #tpu.memory_space<vmem>>, vector<1x512xf32>
    %29 = vector.broadcast %28 : vector<1x512xf32> to vector<2x512xf32>
    %30 = arith.addf %27, %29 : vector<2x512xf32>
    %cst_23 = arith.constant 0.000000e+00 : f32
    %31 = vector.broadcast %cst_23 : f32 to vector<2x512xf32>
    %32 = arith.maximumf %30, %31 : vector<2x512xf32>
    %33 = arith.truncf %32 : vector<2x512xf32> to vector<2x512xbf16>
    %c0_24 = arith.constant 0 : index
    %c0_25 = arith.constant 0 : index
    %34 = vector.load %arg9[%c0_24, %c0_25] : memref<512x128xbf16, #tpu.memory_space<vmem>>, vector<512x128xbf16>
    %cst_26 = arith.constant dense<0.000000e+00> : vector<2x128xf32>
    %35 = tpu.matmul %33, %34, %cst_26 {dimension_numbers = #tpu.dot_dimension_numbers<[1], [0], [0], [1], [0, 0, 1, 1], [], []>} : vector<2x512xbf16>, vector<512x128xbf16>, vector<2x128xf32> -> vector<2x128xf32>
    %c0_27 = arith.constant 0 : index
    %c0_28 = arith.constant 0 : index
    %36 = vector.load %arg10[%c0_27, %c0_28] : memref<1x128xf32, #tpu.memory_space<vmem>>, vector<1x128xf32>
    %37 = vector.broadcast %36 : vector<1x128xf32> to vector<2x128xf32>
    %38 = arith.addf %35, %37 : vector<2x128xf32>
    %cst_29 = arith.constant 0.000000e+00 : f32
    %39 = vector.broadcast %cst_29 : f32 to vector<2x128xf32>
    %40 = arith.maximumf %38, %39 : vector<2x128xf32>
    %41 = arith.truncf %40 : vector<2x128xf32> to vector<2x128xbf16>
    %c0_30 = arith.constant 0 : index
    %c0_31 = arith.constant 0 : index
    %42 = vector.load %arg11[%c0_30, %c0_31] : memref<128x10xbf16, #tpu.memory_space<vmem>>, vector<128x10xbf16>
    %cst_32 = arith.constant dense<0.000000e+00> : vector<2x10xf32>
    %43 = tpu.matmul %41, %42, %cst_32 {dimension_numbers = #tpu.dot_dimension_numbers<[1], [0], [0], [1], [0, 0, 1, 1], [], []>} : vector<2x128xbf16>, vector<128x10xbf16>, vector<2x10xf32> -> vector<2x10xf32>
    %c0_33 = arith.constant 0 : index
    %c0_34 = arith.constant 0 : index
    %44 = vector.load %arg12[%c0_33, %c0_34] : memref<1x10xf32, #tpu.memory_space<vmem>>, vector<1x10xf32>
    %45 = vector.broadcast %44 : vector<1x10xf32> to vector<2x10xf32>
    %46 = arith.addf %43, %45 : vector<2x10xf32>
    %c0_35 = arith.constant 0 : index
    %c0_36 = arith.constant 0 : index
    %47 = vector.load %arg13[%c0_35, %c0_36] : memref<2x10xf32, #tpu.memory_space<vmem>>, vector<2x10xf32>
    tpu.vector_store %arg13[%c0_35, %c0_36], %46 {strides = array<i32>} : memref<2x10xf32, #tpu.memory_space<vmem>>, vector<2x10xf32>,
    return
  }
  func.func @transform_0(%arg0: i32) -> (i32, i32) {
    %c0_i32 = arith.constant 0 : i32
    %c0_i32_0 = arith.constant 0 : i32
    %c0_i32_1 = arith.constant 0 : i32
    return %c0_i32, %c0_i32_0 : i32, i32
  }
  func.func @transform_1(%arg0: i32) -> (i32, i32) {
    %c0_i32 = arith.constant 0 : i32
    %c0_i32_0 = arith.constant 0 : i32
    %c0_i32_1 = arith.constant 0 : i32
    return %c0_i32, %c0_i32_0 : i32, i32
  }
  func.func @transform_2(%arg0: i32) -> (i32, i32) {
    %c0_i32 = arith.constant 0 : i32
    %c0_i32_0 = arith.constant 0 : i32
    %c0_i32_1 = arith.constant 0 : i32
    return %c0_i32, %c0_i32_0 : i32, i32
  }
  func.func @transform_3(%arg0: i32) -> (i32, i32) {
    %c0_i32 = arith.constant 0 : i32
    %c0_i32_0 = arith.constant 0 : i32
    %c0_i32_1 = arith.constant 0 : i32
    return %c0_i32, %c0_i32_0 : i32, i32
  }
  func.func @transform_4(%arg0: i32) -> (i32, i32) {
    %c0_i32 = arith.constant 0 : i32
    %c0_i32_0 = arith.constant 0 : i32
    %c0_i32_1 = arith.constant 0 : i32
    return %c0_i32, %c0_i32_0 : i32, i32
  }
  func.func @transform_5(%arg0: i32) -> (i32, i32) {
    %c0_i32 = arith.constant 0 : i32
    %c0_i32_0 = arith.constant 0 : i32
    %c0_i32_1 = arith.constant 0 : i32
    return %c0_i32, %c0_i32_0 : i32, i32
  }
  func.func @transform_6(%arg0: i32) -> (i32, i32) {
    %c0_i32 = arith.constant 0 : i32
    %c0_i32_0 = arith.constant 0 : i32
    %c0_i32_1 = arith.constant 0 : i32
    return %c0_i32, %c0_i32_0 : i32, i32
  }
  func.func @transform_7(%arg0: i32) -> (i32, i32) {
    %c0_i32 = arith.constant 0 : i32
    %c0_i32_0 = arith.constant 0 : i32
    %c0_i32_1 = arith.constant 0 : i32
    return %c0_i32, %c0_i32_0 : i32, i32
  }
  func.func @transform_8(%arg0: i32) -> (i32, i32) {
    %c0_i32 = arith.constant 0 : i32
    %c0_i32_0 = arith.constant 0 : i32
    %c0_i32_1 = arith.constant 0 : i32
    return %c0_i32, %c0_i32_0 : i32, i32
  }
  func.func @transform_9(%arg0: i32) -> (i32, i32) {
    %c0_i32 = arith.constant 0 : i32
    %c0_i32_0 = arith.constant 0 : i32
    %c0_i32_1 = arith.constant 0 : i32
    return %c0_i32, %c0_i32_0 : i32, i32
  }
  func.func @transform_10(%arg0: i32) -> (i32, i32) {
    %c0_i32 = arith.constant 0 : i32
    %c0_i32_0 = arith.constant 0 : i32
    %c0_i32_1 = arith.constant 0 : i32
    return %c0_i32, %c0_i32_0 : i32, i32
  }
  func.func @transform_11(%arg0: i32) -> (i32, i32) {
    %c0_i32 = arith.constant 0 : i32
    %c0_i32_0 = arith.constant 0 : i32
    %c0_i32_1 = arith.constant 0 : i32
    return %c0_i32, %c0_i32_0 : i32, i32
  }
  func.func @transform_12(%arg0: i32) -> (i32, i32) {
    %c0_i32 = arith.constant 0 : i32
    %c0_i32_0 = arith.constant 0 : i32
    %c0_i32_1 = arith.constant 0 : i32
    return %c0_i32, %c0_i32_0 : i32, i32
  }
}

</mosaic_0001>

<bundles_post_ra>
// kernel: etcnet_forward.2
= control target key start
LH: loop header
LB: loop body
LE: loop exit
PB: predicated region body
PF: predicated region fallthrough
CT: control target
= control target key end

     0   :  { %9 = vsyncpa [#allocation3], 0  ;;  %s6269_s0 = inlined_call_operand.vmem [shape: bf16[2,768], index: 0, kind: input, shape index: {}]   ;;  %s6270_s1 = inlined_call_operand.hbm [shape: bf16[768,6400], index: 1, kind: input, shape index: {}]   ;;  %s6271_s2 = inlined_call_operand.hbm [shape: f32[1,6400], index: 2, kind: input, shape index: {}]   ;;  %s6272_s3 = inlined_call_operand.vmem [shape: f32[2,3200], index: 3, kind: input, shape index: {}]   ;;  %s6273_s4 = inlined_call_operand.vmem [shape: f32[2,3200], index: 4, kind: output, shape index: {}]  }
   0x1   :  { %11 = vsyncpa [#allocation3 + $0x1], 0 }
   0x2   :  { %12 = vsyncpa [#allocation5], 0 }
   0x3   :  { %14 = vsyncpa [#allocation5 + $0x1], 0  ;;  %s5511_s15 = smov 0   ;;  %s5513_s16 = smov 0  }
   0x4   :  { %s5515_s17 = smov 0   ;;  %s5517_s18 = smov 0  }
   0x5 LB: > { %s4078_s19 = sadd.s32 4294967295, %s5477_s18   ;;  %s5531_s20 = sadd.s32 1, %s5477_s18   ;;  %s5477_s18 = sphi %s5517_s18, %s6283_s18   ;;  %s5473_s17 = sphi %s5515_s17, %s6282_s17   ;;  %s5469_s16 = sphi %s5513_s16, %s6281_s16   ;;  %s5465_s15 = sphi %s5511_s15, %s6280_s15  }
   0x6   : > { %s45_s21 = ssub.s32 %s5477_s18, %s5531_s20  ;;  %s48_s22 = sadd.s32 1, %s5473_s17 }
   0x7   : > { %p46_p0 = scmp.eq.s32.totalorder %s45_s21, 0  ;;  %p55_p1 = scmp.ne.s32.totalorder %s5473_s17, %s5469_s16 }
   0x8   : > { %p56_p2 = scmp.eq.s32.totalorder %s5477_s18, 0  ;;  %p61_p3 = scmp.ne.s32.totalorder %s5469_s16, %s5465_s15 }
   0x9   : > { %s5541_s23 = scalar_select %p46_p0, %s5473_s17, %s48_s22  }
   0xa   : > { %p57_p4 = por %p56_p2, %p55_p1  ;;  %p62_p5 = scmp.eq.s32.totalorder %s4078_s19, 0 }
   0xb   : > { %p4608_p6 = scmp.lt.s32.totalorder %s5477_s18, 5  ;;  %s5551_s25 = sand.u32 1, %s5473_s17  }
   0xc   : > { %p5546_p7 = por %p62_p5, %p61_p3  ;;  %s4593_s26 = smul.u32 3840, %s5551_s25 }
   0xd   : > { %s4571_s27 = smul.u32 640, %s5477_s18  ;;  %p5555_p8 = pnand %p4608_p6, %p57_p4 }
   0xe   : > { %s6275_s24 = scalar_select %p5546_p7, 1, 0 }
   0xf   : > { %s5562_s5 = scalar_lea.hbm %s6270_s1, %s4571_s27  ;;  %s170_s6 = scalar_lea.vmem [#allocation2], %s4593_s26 }
  0x10   : > { %s177_s7 = sshll.u32 %s170_s6, 4  ;;  %s167_s8 = scalar_lea.sflag [#allocation3], %s5551_s25  ;;  %s5564_s7 = int_to_ptr.vmem [resolvable:$true] %s177_s7 }
  0x11   : > { %s5379_s9 = scalar_lea.hbm %s5562_s5, 61440  ;;  %p5381_p10 = pneg %p5555_p8 }
  0x12   : > { %p5380_p9 = scmp.ne.s32.totalorder %s5562_s5, %s5379_s9  ;;  %s5384_s12 = scalar_lea.hbm %s6270_s1, 307200 }
  0x13   : > { %p5385_p13 = scmp.lt.u32.totalorder %s5562_s5, %s6270_s1  ;;  %p5386_p0 = scmp.lt.u32.totalorder %s5384_s12, %s5379_s9 }
  0x14   : > { %p5382_p11 = pnand %p5381_p10, %p5380_p9  ;;  %p5388_p2 = scmp.lt.u32.totalorder %s5379_s9, %s5562_s5 }
  0x15   : > { %p5387_p1 = por %p5386_p0, %p5385_p13 }
  0x16   : > { %p5383_p12 = pneg %p5382_p11 }
  0x17   : > { %p5389_p3 = por %p5388_p2, %p5387_p1 }
  0x19   : > { %p5390_p4 = pnand %p5389_p3, %p5383_p12 }
  0x1b   : > { %5393 = shalt.err (!%p5390_p4)
}
  0x1c   : > { %s5394_s15 = scalar_lea.vmem %s5564_s7, 61440  ;;  %s5479_s21 = smov [#allocation2]  }
  0x1d   : > { %p5395_p5 = scmp.ne.s32.totalorder %s5564_s7, %s5394_s15  ;;  %s5399_s22 = sshll.u32 %s5479_s21, 4  ;;  %s5400_s22 = int_to_ptr.vmem [resolvable:$false] %s5399_s22 }
  0x1e   : > { %s5401_s26 = scalar_lea.vmem %s5400_s22, 122880  ;;  %p5402_p11 = scmp.lt.s32.totalorder %s5564_s7, %s5400_s22 }
  0x1f   : > { %p5397_p6 = pnand %p5395_p5, %p5381_p10  ;;  %p5403_p13 = scmp.lt.s32.totalorder %s5401_s26, %s5394_s15 }
  0x21   : > { %p5398_p9 = pneg %p5397_p6  ;;  %p5404_p0 = por %p5403_p13, %p5402_p11 }
  0x23   : > { %p5405_p1 = pnand %p5404_p0, %p5398_p9 }
  0x25   : > { %5408 = shalt.err (!%p5405_p1)
}
  0x26   : > { %s5480_s27 = smov 3200   ;;  %s5481_s29 = smov 640  }
  0x27   : > { %s5482_s30 = smov 40   ;;  %p4084_p12 = scmp.ge.s32.totalorder %s5477_s18, 1 }
  0x28   : > { %4604 = dma.hbm_to_vmem [thread:$0]  (!%p5555_p8), %s5562_s5, 61440, %s5564_s7, %s167_s8, %s5480_s27, %s5481_s29, %s5482_s30  }
  0x29   : > { %p213_p2 = scmp.lt.s32.totalorder %s5477_s18, 6  ;;  %s4594_s6 = smul.u32 10, %s5551_s25 }
  0x2a   : > { %s4572_s10 = smul.u32 160, %s5477_s18  ;;  %s188_s5 = scalar_lea.sflag [#allocation5], %s5551_s25 }
  0x2b   : > { %p5597_p3 = pnand %p4084_p12, %p213_p2  ;;  %s191_s14 = scalar_lea.vmem [#allocation4], %s4594_s6 }
  0x2c   : > { %s5605_s13 = scalar_lea.hbm %s6271_s2, %s4572_s10  ;;  %s199_s15 = sshll.u32 %s191_s14, 4  ;;  %s200_s15 = int_to_ptr.vmem [resolvable:$true] %s199_s15 }
  0x2d   : > { %s6277_s9 = scalar_select %p5597_p3, 1, 0 }
  0x2e   : > { %s5409_s7 = scalar_lea.hbm %s5605_s13, 160  ;;  %s5414_s22 = scalar_lea.hbm %s6271_s2, 800 }
  0x2f   : > { %p5410_p4 = scmp.ne.s32.totalorder %s5605_s13, %s5409_s7  ;;  %p5415_p9 = scmp.lt.u32.totalorder %s5605_s13, %s6271_s2 }
  0x30   : > { %p5416_p11 = scmp.lt.u32.totalorder %s5414_s22, %s5409_s7  ;;  %p5418_p0 = scmp.lt.u32.totalorder %s5409_s7, %s5605_s13 }
  0x31   : > { %p5412_p5 = pnand %p5410_p4, %p5381_p10 }
  0x32   : > { %p5417_p13 = por %p5416_p11, %p5415_p9 }
  0x33   : > { %p5413_p6 = pneg %p5412_p5 }
  0x34   : > { %p5419_p1 = por %p5418_p0, %p5417_p13 }
  0x36   : > { %p5420_p12 = pnand %p5419_p1, %p5413_p6 }
  0x38   : > { %5423 = shalt.err (!%p5420_p12)
}
  0x39   : > { %s5424_s25 = scalar_lea.vmem %s200_s15, 160  ;;  %s5483_s29 = smov [#allocation4]  }
  0x3a   : > { %p5425_p2 = scmp.ne.s32.totalorder %s200_s15, %s5424_s25  ;;  %s5429_s30 = sshll.u32 %s5483_s29, 4  ;;  %s5430_s30 = int_to_ptr.vmem [resolvable:$false] %s5429_s30 }
  0x3b   : > { %s5431_s6 = scalar_lea.vmem %s5430_s30, 320  ;;  %p5432_p7 = scmp.lt.s32.totalorder %s200_s15, %s5430_s30 }
  0x3c   : > { %p5427_p4 = pnand %p5425_p2, %p5381_p10  ;;  %p5433_p3 = scmp.lt.s32.totalorder %s5431_s6, %s5424_s25 }
  0x3e   : > { %p5428_p5 = pneg %p5427_p4  ;;  %p5434_p9 = por %p5433_p3, %p5432_p7 }
  0x40   : > { %p5435_p11 = pnand %p5434_p9, %p5428_p5 }
  0x42   : > { %5438 = shalt.err (!%p5435_p11)
}
  0x43   : > { %4607 = dma.hbm_to_vmem [thread:$0]  (!%p5555_p8), %s5605_s13, 160, %s200_s15, %s188_s5  }
  0x44   : > { %p6278_p6 = scmp.ne.s32.totalorder %s6277_s9, 0 }
  0x45   : > { %s219_s10 = sand.u32 (!%p6278_p6), 1, %s5469_s16   ;;  %p6279_p10 = scmp.ne.s32.totalorder (!%p6278_p6), %s6275_s24, 0 }
  0x46   : > { %217 = sbr.rel (%p6278_p6) target bundleno = 835 (0x343), region = 36  ;;  %s220_s12 = scalar_lea.sflag (!%p6278_p6), [#allocation3], %s219_s10 }
  0x47   : > { %s4595_s11 = smul.u32 (!%p6278_p6), 3840, %s219_s10 }
  0x49   : > { %s5630_s14 = scalar_lea.vmem (!%p6278_p6), [#allocation2], %s4595_s11 }
  0x4d   : > { %5456 = dma.done.wait (%p6279_p10), %s220_s12, 61440  }
  0x4e   : > { %5458 = vsyncadd (%p6279_p10), %s220_s12, 4294905856  ;;  %s4596_s7 = smul.u32 10, %s219_s10  ;;  %s229_s28 = scalar_lea.sflag [#allocation5], %s219_s10 }
  0x50   : > { %s5636_s8 = scalar_lea.vmem [#allocation4], %s4596_s7 }
  0x51   : > { %5460 = dma.done.wait (%p6279_p10), %s229_s28, 160  }
  0x52   : > { %5462 = vsyncadd (%p6279_p10), %s229_s28, 4294967136  ;;  %v4646_v0 = vld [vmem:[%s5630_s14 + $0x4] ss:$40 sps:$4 sm:$0xff]   ;;  %v4650_v2 = vld [vmem:[%s5630_s14] ss:$40 sps:$4 sm:$0xff]   ;;  %v766_v36 = vlaneseq  ;;  %s269_s13 = smul.u32 5, %s4078_s19 }
  0x53   : > { %v4648_v1 = vld [vmem:[%s5630_s14 + $0x504] ss:$40 sps:$4 sm:$0xff]   ;;  %3270 = vmatprep.subr.bf16.mxu0 %v4646_v0  ;;  %v4651_v3 = vld [vmem:[%s5630_s14 + $0x500] ss:$40 sps:$4 sm:$0xff]   ;;  %v4652_v4 = vld [vmem:[%s5630_s14 + $0x54] ss:$40 sps:$4 sm:$0xff]  }
  0x54   : > { %3311 = vmatprep.subr.bf16.mxu1 %v4648_v1  ;;  %3271 = vmatpush1.bf16.msra.mxu0 %v4650_v2  ;;  %v4654_v5 = vld [vmem:[%s5630_s14 + $0x554] ss:$40 sps:$4 sm:$0xff]   ;;  %v4656_v6 = vld [vmem:[%s5630_s14 + $0x50] ss:$40 sps:$4 sm:$0xff]   ;;  %v4658_v8 = vld [vmem:[%s5630_s14 + $0xa4] ss:$40 sps:$4 sm:$0xff]  }
  0x55   : > { %3312 = vmatpush1.bf16.msra.mxu1 %v4651_v3  ;;  %3272 = vmatprep.subr.bf16.mxu0 %v4652_v4  ;;  %v4657_v7 = vld [vmem:[%s5630_s14 + $0x550] ss:$40 sps:$4 sm:$0xff]   ;;  %v4660_v9 = vld [vmem:[%s5630_s14 + $0x5a4] ss:$40 sps:$4 sm:$0xff]   ;;  %v4662_v10 = vld [vmem:[%s5630_s14 + $0xa0] ss:$40 sps:$4 sm:$0xff]  }
  0x56   : > { %3313 = vmatprep.subr.bf16.mxu1 %v4654_v5  ;;  %v4663_v11 = vld [vmem:[%s5630_s14 + $0x5a0] ss:$40 sps:$4 sm:$0xff]   ;;  %v4664_v12 = vld [vmem:[%s5630_s14 + $0xf4] ss:$40 sps:$4 sm:$0xff]   ;;  %v4668_v14 = vld [vmem:[%s5630_s14 + $0xf0] ss:$40 sps:$4 sm:$0xff]  }
  0x57   : > { %v4666_v13 = vld [vmem:[%s5630_s14 + $0x5f4] ss:$40 sps:$4 sm:$0xff]   ;;  %v4669_v15 = vld [vmem:[%s5630_s14 + $0x5f0] ss:$40 sps:$4 sm:$0xff]   ;;  %v4670_v16 = vld [vmem:[%s5630_s14 + $0x144] ss:$40 sps:$4 sm:$0xff]  }
  0x58   : > { %3273 = vmatpush1.bf16.msra.mxu0 %v4656_v6  ;;  %v4672_v17 = vld [vmem:[%s5630_s14 + $0x644] ss:$40 sps:$4 sm:$0xff]   ;;  %v4674_v18 = vld [vmem:[%s5630_s14 + $0x140] ss:$40 sps:$4 sm:$0xff]   ;;  %v4676_v20 = vld [vmem:[%s5630_s14 + $0x194] ss:$40 sps:$4 sm:$0xff]  }
  0x59   : > { %3314 = vmatpush1.bf16.msra.mxu1 %v4657_v7  ;;  %3274 = vmatprep.subr.bf16.mxu0 %v4658_v8  ;;  %v4675_v19 = vld [vmem:[%s5630_s14 + $0x640] ss:$40 sps:$4 sm:$0xff]   ;;  %v4678_v21 = vld [vmem:[%s5630_s14 + $0x694] ss:$40 sps:$4 sm:$0xff]   ;;  %v4680_v22 = vld [vmem:[%s5630_s14 + $0x190] ss:$40 sps:$4 sm:$0xff]  }
  0x5a   : > { %3315 = vmatprep.subr.bf16.mxu1 %v4660_v9  ;;  %v4681_v23 = vld [vmem:[%s5630_s14 + $0x690] ss:$40 sps:$4 sm:$0xff]   ;;  %v4682_v24 = vld [vmem:[%s5630_s14 + $0x1e4] ss:$40 sps:$4 sm:$0xff]   ;;  %v4686_v26 = vld [vmem:[%s5630_s14 + $0x1e0] ss:$40 sps:$4 sm:$0xff]  }
  0x5b   : > { %v4684_v25 = vld [vmem:[%s5630_s14 + $0x6e4] ss:$40 sps:$4 sm:$0xff]   ;;  %v4687_v27 = vld [vmem:[%s5630_s14 + $0x6e0] ss:$40 sps:$4 sm:$0xff]   ;;  %v4688_v28 = vld [vmem:[%s5630_s14 + $0x234] ss:$40 sps:$4 sm:$0xff]  }
  0x5c   : > { %3275 = vmatpush1.bf16.msra.mxu0 %v4662_v10  ;;  %v4690_v29 = vld [vmem:[%s5630_s14 + $0x734] ss:$40 sps:$4 sm:$0xff]   ;;  %v4692_v30 = vld [vmem:[%s5630_s14 + $0x230] ss:$40 sps:$4 sm:$0xff]   ;;  %v4694_v32 = vld [vmem:[%s5630_s14 + $0x284] ss:$40 sps:$4 sm:$0xff]  }
  0x5d   : > { %3316 = vmatpush1.bf16.msra.mxu1 %v4663_v11  ;;  %3276 = vmatprep.subr.bf16.mxu0 %v4664_v12  ;;  %v4693_v31 = vld [vmem:[%s5630_s14 + $0x730] ss:$40 sps:$4 sm:$0xff]   ;;  %v4696_v33 = vld [vmem:[%s5630_s14 + $0x784] ss:$40 sps:$4 sm:$0xff]   ;;  %v4698_v34 = vld [vmem:[%s5630_s14 + $0x280] ss:$40 sps:$4 sm:$0xff]  }
  0x5e   : > { %3317 = vmatprep.subr.bf16.mxu1 %v4666_v13  ;;  %v4699_v35 = vld [vmem:[%s5630_s14 + $0x780] ss:$40 sps:$4 sm:$0xff]   ;;  %v5484_v37 = vmov 1966171168   ;;  %v4700_v39 = vld [vmem:[%s5630_s14 + $0x2d4] ss:$40 sps:$4 sm:$0xff]  }
  0x5f   : > { %v819_v38 = vunpack.c.l.s4 %v5484_v37  ;;  %v4702_v40 = vld [vmem:[%s5630_s14 + $0x7d4] ss:$40 sps:$4 sm:$0xff]   ;;  %v4704_v41 = vld [vmem:[%s5630_s14 + $0x2d0] ss:$40 sps:$4 sm:$0xff]   ;;  %v5681_v42 = vshrl.u32 %v766_v36, 7  ;;  %p270_p7 = scmp.lt.s32.totalorder %s269_s13, 24 }
  0x60   : > { %3277 = vmatpush1.bf16.msra.mxu0 %v4668_v14  ;;  %v4705_v44 = vld [vmem:[%s5630_s14 + $0x7d0] ss:$40 sps:$4 sm:$0xff]   ;;  %v4706_v45 = vld [vmem:[%s5630_s14 + $0x324] ss:$40 sps:$4 sm:$0xff]   ;;  %v4710_v47 = vld [vmem:[%s5630_s14 + $0x320] ss:$40 sps:$4 sm:$0xff]  }
  0x61   : > { %3318 = vmatpush1.bf16.msra.mxu1 %v4669_v15  ;;  %3278 = vmatprep.subr.bf16.mxu0 %v4670_v16  ;;  %v820_v43 = vunpack.c.0.s8 %v819_v38  ;;  %v4708_v46 = vld [vmem:[%s5630_s14 + $0x824] ss:$40 sps:$4 sm:$0xff]   ;;  %v4711_v48 = vld [vmem:[%s5630_s14 + $0x820] ss:$40 sps:$4 sm:$0xff]   ;;  %v4712_v50 = vld [vmem:[%s5630_s14 + $0x374] ss:$40 sps:$4 sm:$0xff]  }
  0x62   : > { %3319 = vmatprep.subr.bf16.mxu1 %v4672_v17  ;;  %v4714_v51 = vld [vmem:[%s5630_s14 + $0x874] ss:$40 sps:$4 sm:$0xff]   ;;  %v281_v52 = vld [vmem:[%s6269_s0] sm:$0x3f]  ;;  %v4716_v53 = vld [vmem:[%s5630_s14 + $0x370] ss:$40 sps:$4 sm:$0xff]  }
  0x63   : > { %v5689_v49 = vsub.s32 %v820_v43, %v5681_v42  ;;  %v817_v55 = vcombine.high %v281_v52, %v281_v52  ;;  %v4717_v56 = vld [vmem:[%s5630_s14 + $0x870] ss:$40 sps:$4 sm:$0xff]   ;;  %v4718_v57 = vld [vmem:[%s5630_s14 + $0x3c4] ss:$40 sps:$4 sm:$0xff]   ;;  %v4722_v61 = vld [vmem:[%s5630_s14 + $0x3c0] ss:$40 sps:$4 sm:$0xff]  }
  0x64   : > { %3279 = vmatpush1.bf16.msra.mxu0 %v4674_v18  ;;  %v4720_v58 = vld [vmem:[%s5630_s14 + $0x8c4] ss:$40 sps:$4 sm:$0xff]   ;;  %v4723_v0 = vld [vmem:[%s5630_s14 + $0x8c0] ss:$40 sps:$4 sm:$0xff]   ;;  %v4724_v1 = vld [vmem:[%s5630_s14 + $0x414] ss:$40 sps:$4 sm:$0xff]  }
  0x65   : > { %3320 = vmatpush1.bf16.msra.mxu1 %v4675_v19  ;;  %3280 = vmatprep.subr.bf16.mxu0 %v4676_v20  ;;  %v824_v54 = vrot.slane %v281_v52, %v5689_v49  ;;  %v831_v60 = vrot.slane %v817_v55, %v5689_v49  ;;  %v4726_v2 = vld [vmem:[%s5630_s14 + $0x914] ss:$40 sps:$4 sm:$0xff]   ;;  %v4728_v4 = vld [vmem:[%s5630_s14 + $0x410] ss:$40 sps:$4 sm:$0xff]   ;;  %v4730_v6 = vld [vmem:[%s5630_s14 + $0x464] ss:$40 sps:$4 sm:$0xff]  }
  0x66   : > { %3321 = vmatprep.subr.bf16.mxu1 %v4678_v21  ;;  %v4729_v5 = vld [vmem:[%s5630_s14 + $0x910] ss:$40 sps:$4 sm:$0xff]   ;;  %v4732_v7 = vld [vmem:[%s5630_s14 + $0x964] ss:$40 sps:$4 sm:$0xff]   ;;  %v4734_v8 = vld [vmem:[%s5630_s14 + $0x460] ss:$40 sps:$4 sm:$0xff]  }
  0x67   : > { %v832_v59 = vcombine.high %v824_v54, %v824_v54  ;;  %v5707_v63 = vrot.slane %v831_v60, %v5689_v49  ;;  %v4735_v9 = vld [vmem:[%s5630_s14 + $0x960] ss:$40 sps:$4 sm:$0xff]   ;;  %v4736_v10 = vld [vmem:[%s5630_s14 + $0x4b4] ss:$40 sps:$4 sm:$0xff]   ;;  %v4740_v12 = vld [vmem:[%s5630_s14 + $0x4b0] ss:$40 sps:$4 sm:$0xff]   ;;  %v5728_v13 = vrot.slane %v824_v54, %v5689_v49  ;;  %v833_v17 = vcombine.high %v831_v60, %v831_v60 }
  0x68   : > { %3281 = vmatpush1.bf16.msra.mxu0 %v4680_v22  ;;  %v4738_v11 = vld [vmem:[%s5630_s14 + $0x9b4] ss:$40 sps:$4 sm:$0xff]   ;;  %v4741_v14 = vld [vmem:[%s5630_s14 + $0x9b0] ss:$40 sps:$4 sm:$0xff]   ;;  %v4744_v15 = vld [vmem:[%s5630_s14 + $0xa04] ss:$40 sps:$4 sm:$0xff]  }
  0x69   : > { %3322 = vmatpush1.bf16.msra.mxu1 %v4681_v23  ;;  %3282 = vmatprep.subr.bf16.mxu0 %v4682_v24  ;;  %v5704_v62 = vrot.slane %v832_v59, %v5689_v49  ;;  %v4747_v16 = vld [vmem:[%s5630_s14 + $0xc] ss:$40 sps:$4 sm:$0xff]   ;;  %v4742_v18 = vld [vmem:[%s5630_s14 + $0xa00] ss:$40 sps:$4 sm:$0xff]   ;;  %v5736_v19 = vcombine.high %v5728_v13, %v5728_v13  ;;  %v4753_v22 = vld [vmem:[%s5630_s14 + $0x5c] ss:$40 sps:$4 sm:$0xff]   ;;  %v5742_v23 = vrot.slane %v833_v17, %v5689_v49 }
  0x6a   : > { %3323 = vmatprep.subr.bf16.mxu1 %v4684_v25  ;;  %v4745_v20 = vld [vmem:[%s5630_s14 + $0x8] ss:$40 sps:$4 sm:$0xff]   ;;  %v4750_v21 = vld [vmem:[%s5630_s14 + $0xa54] ss:$40 sps:$4 sm:$0xff]   ;;  %v4751_v25 = vld [vmem:[%s5630_s14 + $0x58] ss:$40 sps:$4 sm:$0xff]  }
  0x6b   : > { %v5714_v3 = vcombine.high %v5704_v62, %v5704_v62  ;;  %3302 = vmatprep.mubr.bf16.mxu0 %v5704_v62  ;;  %v4748_v24 = vld [vmem:[%s5630_s14 + $0xa50] ss:$40 sps:$4 sm:$0xff]   ;;  %v4766_v36 = vld [vmem:[%s5630_s14 + $0xb40] ss:$40 sps:$4 sm:$0xff]   ;;  %v4774_v38 = vld [vmem:[%s5630_s14 + $0xb94] ss:$40 sps:$4 sm:$0xff]  }
  0x6c   : > { %3283 = vmatpush1.bf16.msra.mxu0 %v4686_v26  ;;  %v4756_v26 = vld [vmem:[%s5630_s14 + $0xaa4] ss:$40 sps:$4 sm:$0xff]   ;;  %v4769_v37 = vld [vmem:[%s5630_s14 + $0x148] ss:$40 sps:$4 sm:$0xff]   ;;  %v4798_v55 = vld [vmem:[%s5630_s14 + $0xcd4] ss:$40 sps:$4 sm:$0xff]  }
  0x6d   : > { %3324 = vmatpush1.bf16.msra.mxu1 %v4687_v27  ;;  %3284 = vmatprep.subr.bf16.mxu0 %v4688_v28  ;;  %v4759_v27 = vld [vmem:[%s5630_s14 + $0xac] ss:$40 sps:$4 sm:$0xff]   ;;  %v4754_v28 = vld [vmem:[%s5630_s14 + $0xaa0] ss:$40 sps:$4 sm:$0xff]   ;;  %v4784_v49 = vld [vmem:[%s5630_s14 + $0xc30] ss:$40 sps:$4 sm:$0xff]  }
  0x6e   : > { %3325 = vmatprep.subr.bf16.mxu1 %v4690_v29  ;;  %3343 = vmatprep.mubr.bf16.mxu1 %v5714_v3  ;;  %v4757_v29 = vld [vmem:[%s5630_s14 + $0xa8] ss:$40 sps:$4 sm:$0xff]   ;;  %v4780_v43 = vld [vmem:[%s5630_s14 + $0xbe4] ss:$40 sps:$4 sm:$0xff]   ;;  %s6285_s13 = smov (!%p270_p7, %s269_s13), 24 }
  0x6f   : > { %v4795_v52 = vld [vmem:[%s5630_s14 + $0x28c] ss:$40 sps:$4 sm:$0xff]   ;;  %v4793_v54 = vld [vmem:[%s5630_s14 + $0x288] ss:$40 sps:$4 sm:$0xff]   ;;  %s4085_s15 = sshll.u32 %s6285_s13, 1 }
  0x70   : > { %3285 = vmatpush1.bf16.msra.mxu0 %v4692_v30  ;;  %v4762_v30 = vld [vmem:[%s5630_s14 + $0xaf4] ss:$40 sps:$4 sm:$0xff]   ;;  %v4804_v59 = vld [vmem:[%s5630_s14 + $0xd24] ss:$40 sps:$4 sm:$0xff]   ;;  %v4826_v17 = vld [vmem:[%s5630_s14 + $0xe60] ss:$40 sps:$4 sm:$0xff]   ;;  %s6233_s5 = scalar_lea.vmem %s6272_s3, %s4085_s15  ;;  %s279_s26 = scalar_lea.vmem %s6273_s4, %s4085_s15 }
  0x71   : > { %3326 = vmatpush1.bf16.msra.mxu1 %v4693_v31  ;;  %3286 = vmatprep.subr.bf16.mxu0 %v4694_v32  ;;  %v4765_v31 = vld [vmem:[%s5630_s14 + $0xfc] ss:$40 sps:$4 sm:$0xff]   ;;  %v4760_v32 = vld [vmem:[%s5630_s14 + $0xaf0] ss:$40 sps:$4 sm:$0xff]   ;;  %v4807_v60 = vld [vmem:[%s5630_s14 + $0x32c] ss:$40 sps:$4 sm:$0xff]  }
  0x72   : > { %3327 = vmatprep.subr.bf16.mxu1 %v4696_v33  ;;  %v4763_v33 = vld [vmem:[%s5630_s14 + $0xf8] ss:$40 sps:$4 sm:$0xff]  }
  0x74   : > { %3287 = vmatpush1.bf16.msra.mxu0 %v4698_v34  ;;  %v4768_v34 = vld [vmem:[%s5630_s14 + $0xb44] ss:$40 sps:$4 sm:$0xff]  }
  0x75   : > { %3328 = vmatpush1.bf16.msra.mxu1 %v4699_v35  ;;  %3288 = vmatprep.subr.bf16.mxu0 %v4700_v39  ;;  %v4771_v35 = vld [vmem:[%s5630_s14 + $0x14c] ss:$40 sps:$4 sm:$0xff]   ;;  %v4777_v39 = vld [vmem:[%s5630_s14 + $0x19c] ss:$40 sps:$4 sm:$0xff]  }
  0x76   : > { %3329 = vmatprep.subr.bf16.mxu1 %v4702_v40  ;;  %v4772_v40 = vld [vmem:[%s5630_s14 + $0xb90] ss:$40 sps:$4 sm:$0xff]  }
  0x78   : > { %3289 = vmatpush1.bf16.msra.mxu0 %v4704_v41  ;;  %v4775_v41 = vld [vmem:[%s5630_s14 + $0x198] ss:$40 sps:$4 sm:$0xff]  }
  0x79   : > { %3330 = vmatpush1.bf16.msra.mxu1 %v4705_v44  ;;  %3290 = vmatprep.subr.bf16.mxu0 %v4706_v45  ;;  %v4783_v44 = vld [vmem:[%s5630_s14 + $0x1ec] ss:$40 sps:$4 sm:$0xff]   ;;  %v4778_v45 = vld [vmem:[%s5630_s14 + $0xbe0] ss:$40 sps:$4 sm:$0xff]  }
  0x7a   : > { %3331 = vmatprep.subr.bf16.mxu1 %v4708_v46  ;;  %v4781_v46 = vld [vmem:[%s5630_s14 + $0x1e8] ss:$40 sps:$4 sm:$0xff]  }
  0x7c   : > { %3291 = vmatpush1.bf16.msra.mxu0 %v4710_v47  ;;  %v4786_v47 = vld [vmem:[%s5630_s14 + $0xc34] ss:$40 sps:$4 sm:$0xff]  }
  0x7d   : > { %3332 = vmatpush1.bf16.msra.mxu1 %v4711_v48  ;;  %3292 = vmatprep.subr.bf16.mxu0 %v4712_v50  ;;  %v4789_v48 = vld [vmem:[%s5630_s14 + $0x23c] ss:$40 sps:$4 sm:$0xff]   ;;  %v4787_v50 = vld [vmem:[%s5630_s14 + $0x238] ss:$40 sps:$4 sm:$0xff]  }
  0x7e   : > { %3333 = vmatprep.subr.bf16.mxu1 %v4714_v51  ;;  %v4792_v51 = vld [vmem:[%s5630_s14 + $0xc84] ss:$40 sps:$4 sm:$0xff]  }
  0x80   : > { %3293 = vmatpush1.bf16.msra.mxu0 %v4716_v53  ;;  %v4790_v53 = vld [vmem:[%s5630_s14 + $0xc80] ss:$40 sps:$4 sm:$0xff]  }
  0x81   : > { %3334 = vmatpush1.bf16.msra.mxu1 %v4717_v56  ;;  %3294 = vmatprep.subr.bf16.mxu0 %v4718_v57  ;;  %v4801_v56 = vld [vmem:[%s5630_s14 + $0x2dc] ss:$40 sps:$4 sm:$0xff]   ;;  %v4796_v57 = vld [vmem:[%s5630_s14 + $0xcd0] ss:$40 sps:$4 sm:$0xff]  }
  0x82   : > { %3335 = vmatprep.subr.bf16.mxu1 %v4720_v58  ;;  %v4799_v58 = vld [vmem:[%s5630_s14 + $0x2d8] ss:$40 sps:$4 sm:$0xff]  }
  0x84   : > { %3295 = vmatpush1.bf16.msra.mxu0 %v4722_v61  ;;  %v4802_v61 = vld [vmem:[%s5630_s14 + $0xd20] ss:$40 sps:$4 sm:$0xff]  }
  0x85   : > { %3336 = vmatpush1.bf16.msra.mxu1 %v4723_v0  ;;  %3296 = vmatprep.subr.bf16.mxu0 %v4724_v1  ;;  %v4805_v0 = vld [vmem:[%s5630_s14 + $0x328] ss:$40 sps:$4 sm:$0xff]   ;;  %v4810_v1 = vld [vmem:[%s5630_s14 + $0xd74] ss:$40 sps:$4 sm:$0xff]  }
  0x86   : > { %3337 = vmatprep.subr.bf16.mxu1 %v4726_v2  ;;  %v4813_v2 = vld [vmem:[%s5630_s14 + $0x37c] ss:$40 sps:$4 sm:$0xff]  }
  0x88   : > { %3297 = vmatpush1.bf16.msra.mxu0 %v4728_v4  ;;  %v4808_v4 = vld [vmem:[%s5630_s14 + $0xd70] ss:$40 sps:$4 sm:$0xff]  }
  0x89   : > { %3338 = vmatpush1.bf16.msra.mxu1 %v4729_v5  ;;  %3298 = vmatprep.subr.bf16.mxu0 %v4730_v6  ;;  %v4811_v5 = vld [vmem:[%s5630_s14 + $0x378] ss:$40 sps:$4 sm:$0xff]   ;;  %v4816_v6 = vld [vmem:[%s5630_s14 + $0xdc4] ss:$40 sps:$4 sm:$0xff]  }
  0x8a   : > { %3339 = vmatprep.subr.bf16.mxu1 %v4732_v7  ;;  %v4819_v7 = vld [vmem:[%s5630_s14 + $0x3cc] ss:$40 sps:$4 sm:$0xff]  }
  0x8c   : > { %3299 = vmatpush1.bf16.msra.mxu0 %v4734_v8  ;;  %v4814_v8 = vld [vmem:[%s5630_s14 + $0xdc0] ss:$40 sps:$4 sm:$0xff]  }
  0x8d   : > { %3340 = vmatpush1.bf16.msra.mxu1 %v4735_v9  ;;  %3300 = vmatprep.subr.bf16.mxu0 %v4736_v10  ;;  %v4817_v9 = vld [vmem:[%s5630_s14 + $0x3c8] ss:$40 sps:$4 sm:$0xff]   ;;  %v4822_v10 = vld [vmem:[%s5630_s14 + $0xe14] ss:$40 sps:$4 sm:$0xff]  }
  0x8e   : > { %3341 = vmatprep.subr.bf16.mxu1 %v4738_v11  ;;  %v4825_v11 = vld [vmem:[%s5630_s14 + $0x41c] ss:$40 sps:$4 sm:$0xff]  }
  0x90   : > { %3301 = vmatpush1.bf16.msra.mxu0 %v4740_v12  ;;  %v4820_v12 = vld [vmem:[%s5630_s14 + $0xe10] ss:$40 sps:$4 sm:$0xff]  }
  0x91   : > { %3342 = vmatpush1.bf16.msra.mxu1 %v4741_v14  ;;  %3352 = vmatprep.subr.bf16.mxu0 %v4744_v15  ;;  %v4823_v14 = vld [vmem:[%s5630_s14 + $0x418] ss:$40 sps:$4 sm:$0xff]   ;;  %v4828_v15 = vld [vmem:[%s5630_s14 + $0xe64] ss:$40 sps:$4 sm:$0xff]  }
  0x92   : > { %3393 = vmatprep.subr.bf16.mxu1 %v4747_v16  ;;  %v4831_v16 = vld [vmem:[%s5630_s14 + $0x46c] ss:$40 sps:$4 sm:$0xff]  }
  0x93   : > { %3303 = vmatmul.mubr.bf16.vlgmr.msra.gmra.mrb[0].mxu0 %v5728_v13 }
  0x94   : > { %3344 = vmatmul.mubr.bf16.vlgmr.msra.gmra.mrb[0].mxu1 %v5736_v19  ;;  %3353 = vmatpush1.bf16.msra.mxu0 %v4742_v18  ;;  %v4829_v18 = vld [vmem:[%s5630_s14 + $0x468] ss:$40 sps:$4 sm:$0xff]  }
  0x95   : > { %3394 = vmatpush1.bf16.msra.mxu1 %v4745_v20  ;;  %3354 = vmatprep.subr.bf16.mxu0 %v4750_v21  ;;  %v4834_v20 = vld [vmem:[%s5630_s14 + $0xeb4] ss:$40 sps:$4 sm:$0xff]  }
  0x96   : > { %3395 = vmatprep.subr.bf16.mxu1 %v4753_v22  ;;  %3384 = vmatprep.mubr.bf16.mxu0 %v5742_v23  ;;  %v4837_v21 = vld [vmem:[%s5630_s14 + $0x4bc] ss:$40 sps:$4 sm:$0xff]   ;;  %v4832_v22 = vld [vmem:[%s5630_s14 + $0xeb0] ss:$40 sps:$4 sm:$0xff]  }
  0x97   : > { %3425 = vmatprep.mubr.bf16.mxu1 %v5704_v62 }
  0x98   : > { %3355 = vmatpush1.bf16.msra.mxu0 %v4748_v24  ;;  %v4835_v24 = vld [vmem:[%s5630_s14 + $0x4b8] ss:$40 sps:$4 sm:$0xff]  }
  0x99   : > { %3396 = vmatpush1.bf16.msra.mxu1 %v4751_v25  ;;  %3356 = vmatprep.subr.bf16.mxu0 %v4756_v26  ;;  %v4841_v25 = vld [vmem:[%s5630_s14 + $0x50c] ss:$40 sps:$4 sm:$0xff]  }
  0x9a   : > { %3397 = vmatprep.subr.bf16.mxu1 %v4759_v27  ;;  %v4844_v26 = vld [vmem:[%s5630_s14 + $0xa0c] ss:$40 sps:$4 sm:$0xff]   ;;  %v4839_v27 = vld [vmem:[%s5630_s14 + $0x508] ss:$40 sps:$4 sm:$0xff]  }
  0x9c   : > { %3357 = vmatpush1.bf16.msra.mxu0 %v4754_v28  ;;  %v4842_v28 = vld [vmem:[%s5630_s14 + $0xa08] ss:$40 sps:$4 sm:$0xff]  }
  0x9d   : > { %3398 = vmatpush1.bf16.msra.mxu1 %v4757_v29  ;;  %3358 = vmatprep.subr.bf16.mxu0 %v4762_v30  ;;  %v4847_v29 = vld [vmem:[%s5630_s14 + $0x55c] ss:$40 sps:$4 sm:$0xff]  }
  0x9e   : > { %3399 = vmatprep.subr.bf16.mxu1 %v4765_v31  ;;  %v4850_v30 = vld [vmem:[%s5630_s14 + $0xa5c] ss:$40 sps:$4 sm:$0xff]   ;;  %v4845_v31 = vld [vmem:[%s5630_s14 + $0x558] ss:$40 sps:$4 sm:$0xff]  }
  0xa0   : > { %3359 = vmatpush1.bf16.msra.mxu0 %v4760_v32  ;;  %v4848_v32 = vld [vmem:[%s5630_s14 + $0xa58] ss:$40 sps:$4 sm:$0xff]  }
  0xa1   : > { %3400 = vmatpush1.bf16.msra.mxu1 %v4763_v33  ;;  %3360 = vmatprep.subr.bf16.mxu0 %v4768_v34  ;;  %v4853_v33 = vld [vmem:[%s5630_s14 + $0x5ac] ss:$40 sps:$4 sm:$0xff]  }
  0xa2   : > { %3401 = vmatprep.subr.bf16.mxu1 %v4771_v35  ;;  %v4856_v34 = vld [vmem:[%s5630_s14 + $0xaac] ss:$40 sps:$4 sm:$0xff]   ;;  %v4851_v35 = vld [vmem:[%s5630_s14 + $0x5a8] ss:$40 sps:$4 sm:$0xff]  }
  0xa4   : > { %3361 = vmatpush1.bf16.msra.mxu0 %v4766_v36  ;;  %v4854_v36 = vld [vmem:[%s5630_s14 + $0xaa8] ss:$40 sps:$4 sm:$0xff]  }
  0xa5   : > { %3402 = vmatpush1.bf16.msra.mxu1 %v4769_v37  ;;  %3362 = vmatprep.subr.bf16.mxu0 %v4774_v38  ;;  %v4859_v37 = vld [vmem:[%s5630_s14 + $0x5fc] ss:$40 sps:$4 sm:$0xff]  }
  0xa6   : > { %3403 = vmatprep.subr.bf16.mxu1 %v4777_v39  ;;  %v4862_v38 = vld [vmem:[%s5630_s14 + $0xafc] ss:$40 sps:$4 sm:$0xff]   ;;  %v4857_v39 = vld [vmem:[%s5630_s14 + $0x5f8] ss:$40 sps:$4 sm:$0xff]  }
  0xa8   : > { %3363 = vmatpush1.bf16.msra.mxu0 %v4772_v40  ;;  %v4860_v40 = vld [vmem:[%s5630_s14 + $0xaf8] ss:$40 sps:$4 sm:$0xff]  }
  0xa9   : > { %3404 = vmatpush1.bf16.msra.mxu1 %v4775_v41  ;;  %3364 = vmatprep.subr.bf16.mxu0 %v4780_v43  ;;  %v4865_v41 = vld [vmem:[%s5630_s14 + $0x64c] ss:$40 sps:$4 sm:$0xff]  }
  0xaa   : > { %3405 = vmatprep.subr.bf16.mxu1 %v4783_v44  ;;  %v4868_v43 = vld [vmem:[%s5630_s14 + $0xb4c] ss:$40 sps:$4 sm:$0xff]   ;;  %v4863_v44 = vld [vmem:[%s5630_s14 + $0x648] ss:$40 sps:$4 sm:$0xff]  }
  0xac   : > { %3365 = vmatpush1.bf16.msra.mxu0 %v4778_v45  ;;  %v4866_v45 = vld [vmem:[%s5630_s14 + $0xb48] ss:$40 sps:$4 sm:$0xff]  }
  0xad   : > { %3406 = vmatpush1.bf16.msra.mxu1 %v4781_v46  ;;  %3366 = vmatprep.subr.bf16.mxu0 %v4786_v47  ;;  %v4871_v46 = vld [vmem:[%s5630_s14 + $0x69c] ss:$40 sps:$4 sm:$0xff]  }
  0xae   : > { %3407 = vmatprep.subr.bf16.mxu1 %v4789_v48  ;;  %v4874_v47 = vld [vmem:[%s5630_s14 + $0xb9c] ss:$40 sps:$4 sm:$0xff]   ;;  %v4869_v48 = vld [vmem:[%s5630_s14 + $0x698] ss:$40 sps:$4 sm:$0xff]  }
  0xb0   : > { %3367 = vmatpush1.bf16.msra.mxu0 %v4784_v49  ;;  %v4872_v49 = vld [vmem:[%s5630_s14 + $0xb98] ss:$40 sps:$4 sm:$0xff]  }
  0xb1   : > { %3408 = vmatpush1.bf16.msra.mxu1 %v4787_v50  ;;  %3368 = vmatprep.subr.bf16.mxu0 %v4792_v51  ;;  %v4877_v50 = vld [vmem:[%s5630_s14 + $0x6ec] ss:$40 sps:$4 sm:$0xff]  }
  0xb2   : > { %3409 = vmatprep.subr.bf16.mxu1 %v4795_v52  ;;  %v4880_v51 = vld [vmem:[%s5630_s14 + $0xbec] ss:$40 sps:$4 sm:$0xff]   ;;  %v4875_v52 = vld [vmem:[%s5630_s14 + $0x6e8] ss:$40 sps:$4 sm:$0xff]  }
  0xb4   : > { %3369 = vmatpush1.bf16.msra.mxu0 %v4790_v53  ;;  %v4878_v53 = vld [vmem:[%s5630_s14 + $0xbe8] ss:$40 sps:$4 sm:$0xff]  }
  0xb5   : > { %3410 = vmatpush1.bf16.msra.mxu1 %v4793_v54  ;;  %3370 = vmatprep.subr.bf16.mxu0 %v4798_v55  ;;  %v4883_v54 = vld [vmem:[%s5630_s14 + $0x73c] ss:$40 sps:$4 sm:$0xff]  }
  0xb6   : > { %3411 = vmatprep.subr.bf16.mxu1 %v4801_v56  ;;  %v4886_v55 = vld [vmem:[%s5630_s14 + $0xc3c] ss:$40 sps:$4 sm:$0xff]   ;;  %v4881_v56 = vld [vmem:[%s5630_s14 + $0x738] ss:$40 sps:$4 sm:$0xff]  }
  0xb8   : > { %3371 = vmatpush1.bf16.msra.mxu0 %v4796_v57  ;;  %v4884_v57 = vld [vmem:[%s5630_s14 + $0xc38] ss:$40 sps:$4 sm:$0xff]  }
  0xb9   : > { %3412 = vmatpush1.bf16.msra.mxu1 %v4799_v58  ;;  %3372 = vmatprep.subr.bf16.mxu0 %v4804_v59  ;;  %v4889_v58 = vld [vmem:[%s5630_s14 + $0x78c] ss:$40 sps:$4 sm:$0xff]  }
  0xba   : > { %3413 = vmatprep.subr.bf16.mxu1 %v4807_v60  ;;  %v4892_v59 = vld [vmem:[%s5630_s14 + $0xc8c] ss:$40 sps:$4 sm:$0xff]   ;;  %v4887_v60 = vld [vmem:[%s5630_s14 + $0x788] ss:$40 sps:$4 sm:$0xff]  }
  0xbc   : > { %3373 = vmatpush1.bf16.msra.mxu0 %v4802_v61  ;;  %v4890_v61 = vld [vmem:[%s5630_s14 + $0xc88] ss:$40 sps:$4 sm:$0xff]  }
  0xbd   : > { %3414 = vmatpush1.bf16.msra.mxu1 %v4805_v0  ;;  %3374 = vmatprep.subr.bf16.mxu0 %v4810_v1  ;;  %v4895_v0 = vld [vmem:[%s5630_s14 + $0x7dc] ss:$40 sps:$4 sm:$0xff]  }
  0xbe   : > { %3415 = vmatprep.subr.bf16.mxu1 %v4813_v2  ;;  %v4898_v1 = vld [vmem:[%s5630_s14 + $0xcdc] ss:$40 sps:$4 sm:$0xff]   ;;  %v4893_v2 = vld [vmem:[%s5630_s14 + $0x7d8] ss:$40 sps:$4 sm:$0xff]  }
  0xc0   : > { %3375 = vmatpush1.bf16.msra.mxu0 %v4808_v4  ;;  %v4896_v4 = vld [vmem:[%s5630_s14 + $0xcd8] ss:$40 sps:$4 sm:$0xff]  }
  0xc1   : > { %3416 = vmatpush1.bf16.msra.mxu1 %v4811_v5  ;;  %3376 = vmatprep.subr.bf16.mxu0 %v4816_v6  ;;  %v4901_v5 = vld [vmem:[%s5630_s14 + $0x82c] ss:$40 sps:$4 sm:$0xff]  }
  0xc2   : > { %3417 = vmatprep.subr.bf16.mxu1 %v4819_v7  ;;  %v4904_v6 = vld [vmem:[%s5630_s14 + $0xd2c] ss:$40 sps:$4 sm:$0xff]   ;;  %v4899_v7 = vld [vmem:[%s5630_s14 + $0x828] ss:$40 sps:$4 sm:$0xff]  }
  0xc4   : > { %3377 = vmatpush1.bf16.msra.mxu0 %v4814_v8  ;;  %v4902_v8 = vld [vmem:[%s5630_s14 + $0xd28] ss:$40 sps:$4 sm:$0xff]  }
  0xc5   : > { %3418 = vmatpush1.bf16.msra.mxu1 %v4817_v9  ;;  %3378 = vmatprep.subr.bf16.mxu0 %v4822_v10  ;;  %v4907_v9 = vld [vmem:[%s5630_s14 + $0x87c] ss:$40 sps:$4 sm:$0xff]  }
  0xc6   : > { %3419 = vmatprep.subr.bf16.mxu1 %v4825_v11  ;;  %v4910_v10 = vld [vmem:[%s5630_s14 + $0xd7c] ss:$40 sps:$4 sm:$0xff]   ;;  %v4905_v11 = vld [vmem:[%s5630_s14 + $0x878] ss:$40 sps:$4 sm:$0xff]  }
  0xc8   : > { %3379 = vmatpush1.bf16.msra.mxu0 %v4820_v12  ;;  %v4908_v12 = vld [vmem:[%s5630_s14 + $0xd78] ss:$40 sps:$4 sm:$0xff]  }
  0xc9   : > { %3420 = vmatpush1.bf16.msra.mxu1 %v4823_v14  ;;  %3380 = vmatprep.subr.bf16.mxu0 %v4828_v15  ;;  %v4913_v14 = vld [vmem:[%s5630_s14 + $0x8cc] ss:$40 sps:$4 sm:$0xff]  }
  0xca   : > { %3421 = vmatprep.subr.bf16.mxu1 %v4831_v16  ;;  %v4916_v15 = vld [vmem:[%s5630_s14 + $0xdcc] ss:$40 sps:$4 sm:$0xff]   ;;  %v4911_v16 = vld [vmem:[%s5630_s14 + $0x8c8] ss:$40 sps:$4 sm:$0xff]  }
  0xcc   : > { %3381 = vmatpush1.bf16.msra.mxu0 %v4826_v17  ;;  %v4914_v17 = vld [vmem:[%s5630_s14 + $0xdc8] ss:$40 sps:$4 sm:$0xff]  }
  0xcd   : > { %3422 = vmatpush1.bf16.msra.mxu1 %v4829_v18  ;;  %3382 = vmatprep.subr.bf16.mxu0 %v4834_v20  ;;  %v4919_v18 = vld [vmem:[%s5630_s14 + $0x91c] ss:$40 sps:$4 sm:$0xff]  }
  0xce   : > { %3423 = vmatprep.subr.bf16.mxu1 %v4837_v21  ;;  %v4922_v20 = vld [vmem:[%s5630_s14 + $0xe1c] ss:$40 sps:$4 sm:$0xff]   ;;  %v4917_v21 = vld [vmem:[%s5630_s14 + $0x918] ss:$40 sps:$4 sm:$0xff]  }
  0xd0   : > { %3383 = vmatpush1.bf16.msra.mxu0 %v4832_v22  ;;  %v4920_v22 = vld [vmem:[%s5630_s14 + $0xe18] ss:$40 sps:$4 sm:$0xff]  }
  0xd1   : > { %3424 = vmatpush1.bf16.msra.mxu1 %v4835_v24  ;;  %3434 = vmatprep.subr.bf16.mxu0 %v4841_v25  ;;  %v4925_v24 = vld [vmem:[%s5630_s14 + $0x96c] ss:$40 sps:$4 sm:$0xff]  }
  0xd2   : > { %3475 = vmatprep.subr.bf16.mxu1 %v4844_v26  ;;  %v4928_v25 = vld [vmem:[%s5630_s14 + $0xe6c] ss:$40 sps:$4 sm:$0xff]   ;;  %v4923_v26 = vld [vmem:[%s5630_s14 + $0x968] ss:$40 sps:$4 sm:$0xff]  }
  0xd3   : > { %3385 = vmatmul.mubr.bf16.vlgmr.msra.gmra.mrb[4].mxu0 %v5707_v63 }
  0xd4   : > { %3426 = vmatmul.mubr.bf16.vlgmr.msra.gmra.mrb[4].mxu1 %v5728_v13  ;;  %3435 = vmatpush1.bf16.msra.mxu0 %v4839_v27  ;;  %v4926_v27 = vld [vmem:[%s5630_s14 + $0xe68] ss:$40 sps:$4 sm:$0xff]  }
  0xd5   : > { %3476 = vmatpush1.bf16.msra.mxu1 %v4842_v28  ;;  %3436 = vmatprep.subr.bf16.mxu0 %v4847_v29  ;;  %v4931_v28 = vld [vmem:[%s5630_s14 + $0x9bc] ss:$40 sps:$4 sm:$0xff]  }
  0xd6   : > { %3477 = vmatprep.subr.bf16.mxu1 %v4850_v30  ;;  %3466 = vmatprep.mubr.bf16.mxu0 %v5714_v3  ;;  %v4934_v29 = vld [vmem:[%s5630_s14 + $0xebc] ss:$40 sps:$4 sm:$0xff]   ;;  %v4929_v30 = vld [vmem:[%s5630_s14 + $0x9b8] ss:$40 sps:$4 sm:$0xff]  }
  0xd7   : > { %3507 = vmatprep.mubr.bf16.mxu1 %v5742_v23 }
  0xd8   : > { %3437 = vmatpush1.bf16.msra.mxu0 %v4845_v31  ;;  %v4932_v31 = vld [vmem:[%s5630_s14 + $0xeb8] ss:$40 sps:$4 sm:$0xff]  }
  0xd9   : > { %3478 = vmatpush1.bf16.msra.mxu1 %v4848_v32  ;;  %3438 = vmatprep.subr.bf16.mxu0 %v4853_v33  ;;  %v4937_v32 = vld [vmem:[%s5630_s14 + $0x14] ss:$40 sps:$4 sm:$0xff]  }
  0xda   : > { %3479 = vmatprep.subr.bf16.mxu1 %v4856_v34  ;;  %v4940_v33 = vld [vmem:[%s5630_s14 + $0x514] ss:$40 sps:$4 sm:$0xff]   ;;  %v4935_v34 = vld [vmem:[%s5630_s14 + $0x10] ss:$40 sps:$4 sm:$0xff]  }
  0xdc   : > { %3439 = vmatpush1.bf16.msra.mxu0 %v4851_v35  ;;  %v4938_v35 = vld [vmem:[%s5630_s14 + $0x510] ss:$40 sps:$4 sm:$0xff]  }
  0xdd   : > { %3480 = vmatpush1.bf16.msra.mxu1 %v4854_v36  ;;  %3440 = vmatprep.subr.bf16.mxu0 %v4859_v37  ;;  %v4943_v36 = vld [vmem:[%s5630_s14 + $0x64] ss:$40 sps:$4 sm:$0xff]  }
  0xde   : > { %3481 = vmatprep.subr.bf16.mxu1 %v4862_v38  ;;  %v4946_v37 = vld [vmem:[%s5630_s14 + $0x564] ss:$40 sps:$4 sm:$0xff]   ;;  %v4941_v38 = vld [vmem:[%s5630_s14 + $0x60] ss:$40 sps:$4 sm:$0xff]  }
  0xe0   : > { %3441 = vmatpush1.bf16.msra.mxu0 %v4857_v39  ;;  %v4944_v39 = vld [vmem:[%s5630_s14 + $0x560] ss:$40 sps:$4 sm:$0xff]  }
  0xe1   : > { %3482 = vmatpush1.bf16.msra.mxu1 %v4860_v40  ;;  %3442 = vmatprep.subr.bf16.mxu0 %v4865_v41  ;;  %v4949_v40 = vld [vmem:[%s5630_s14 + $0xb4] ss:$40 sps:$4 sm:$0xff]  }
  0xe2   : > { %3483 = vmatprep.subr.bf16.mxu1 %v4868_v43  ;;  %v4952_v41 = vld [vmem:[%s5630_s14 + $0x5b4] ss:$40 sps:$4 sm:$0xff]   ;;  %v4947_v43 = vld [vmem:[%s5630_s14 + $0xb0] ss:$40 sps:$4 sm:$0xff]  }
  0xe4   : > { %3443 = vmatpush1.bf16.msra.mxu0 %v4863_v44  ;;  %v4950_v44 = vld [vmem:[%s5630_s14 + $0x5b0] ss:$40 sps:$4 sm:$0xff]  }
  0xe5   : > { %3484 = vmatpush1.bf16.msra.mxu1 %v4866_v45  ;;  %3444 = vmatprep.subr.bf16.mxu0 %v4871_v46  ;;  %v4955_v45 = vld [vmem:[%s5630_s14 + $0x104] ss:$40 sps:$4 sm:$0xff]  }
  0xe6   : > { %3485 = vmatprep.subr.bf16.mxu1 %v4874_v47  ;;  %v4958_v46 = vld [vmem:[%s5630_s14 + $0x604] ss:$40 sps:$4 sm:$0xff]   ;;  %v4953_v47 = vld [vmem:[%s5630_s14 + $0x100] ss:$40 sps:$4 sm:$0xff]  }
  0xe8   : > { %3445 = vmatpush1.bf16.msra.mxu0 %v4869_v48  ;;  %v4956_v48 = vld [vmem:[%s5630_s14 + $0x600] ss:$40 sps:$4 sm:$0xff]  }
  0xe9   : > { %3486 = vmatpush1.bf16.msra.mxu1 %v4872_v49  ;;  %3446 = vmatprep.subr.bf16.mxu0 %v4877_v50  ;;  %v4961_v49 = vld [vmem:[%s5630_s14 + $0x154] ss:$40 sps:$4 sm:$0xff]  }
  0xea   : > { %3487 = vmatprep.subr.bf16.mxu1 %v4880_v51  ;;  %v4964_v50 = vld [vmem:[%s5630_s14 + $0x654] ss:$40 sps:$4 sm:$0xff]   ;;  %v4959_v51 = vld [vmem:[%s5630_s14 + $0x150] ss:$40 sps:$4 sm:$0xff]  }
  0xec   : > { %3447 = vmatpush1.bf16.msra.mxu0 %v4875_v52  ;;  %v4962_v52 = vld [vmem:[%s5630_s14 + $0x650] ss:$40 sps:$4 sm:$0xff]  }
  0xed   : > { %3488 = vmatpush1.bf16.msra.mxu1 %v4878_v53  ;;  %3448 = vmatprep.subr.bf16.mxu0 %v4883_v54  ;;  %v4967_v53 = vld [vmem:[%s5630_s14 + $0x1a4] ss:$40 sps:$4 sm:$0xff]  }
  0xee   : > { %3489 = vmatprep.subr.bf16.mxu1 %v4886_v55  ;;  %v4970_v54 = vld [vmem:[%s5630_s14 + $0x6a4] ss:$40 sps:$4 sm:$0xff]   ;;  %v4965_v55 = vld [vmem:[%s5630_s14 + $0x1a0] ss:$40 sps:$4 sm:$0xff]  }
  0xf0   : > { %3449 = vmatpush1.bf16.msra.mxu0 %v4881_v56  ;;  %v4968_v56 = vld [vmem:[%s5630_s14 + $0x6a0] ss:$40 sps:$4 sm:$0xff]  }
  0xf1   : > { %3490 = vmatpush1.bf16.msra.mxu1 %v4884_v57  ;;  %3450 = vmatprep.subr.bf16.mxu0 %v4889_v58  ;;  %v4973_v57 = vld [vmem:[%s5630_s14 + $0x1f4] ss:$40 sps:$4 sm:$0xff]  }
  0xf2   : > { %3491 = vmatprep.subr.bf16.mxu1 %v4892_v59  ;;  %v4976_v58 = vld [vmem:[%s5630_s14 + $0x6f4] ss:$40 sps:$4 sm:$0xff]   ;;  %v4971_v59 = vld [vmem:[%s5630_s14 + $0x1f0] ss:$40 sps:$4 sm:$0xff]  }
  0xf4   : > { %3451 = vmatpush1.bf16.msra.mxu0 %v4887_v60  ;;  %v4974_v60 = vld [vmem:[%s5630_s14 + $0x6f0] ss:$40 sps:$4 sm:$0xff]  }
  0xf5   : > { %3492 = vmatpush1.bf16.msra.mxu1 %v4890_v61  ;;  %3452 = vmatprep.subr.bf16.mxu0 %v4895_v0  ;;  %v4979_v61 = vld [vmem:[%s5630_s14 + $0x244] ss:$40 sps:$4 sm:$0xff]  }
  0xf6   : > { %3493 = vmatprep.subr.bf16.mxu1 %v4898_v1  ;;  %v4982_v0 = vld [vmem:[%s5630_s14 + $0x744] ss:$40 sps:$4 sm:$0xff]   ;;  %v4977_v1 = vld [vmem:[%s5630_s14 + $0x240] ss:$40 sps:$4 sm:$0xff]  }
  0xf8   : > { %3453 = vmatpush1.bf16.msra.mxu0 %v4893_v2  ;;  %v4980_v2 = vld [vmem:[%s5630_s14 + $0x740] ss:$40 sps:$4 sm:$0xff]  }
  0xf9   : > { %3494 = vmatpush1.bf16.msra.mxu1 %v4896_v4  ;;  %3454 = vmatprep.subr.bf16.mxu0 %v4901_v5  ;;  %v4985_v4 = vld [vmem:[%s5630_s14 + $0x294] ss:$40 sps:$4 sm:$0xff]  }
  0xfa   : > { %3495 = vmatprep.subr.bf16.mxu1 %v4904_v6  ;;  %v4988_v5 = vld [vmem:[%s5630_s14 + $0x794] ss:$40 sps:$4 sm:$0xff]   ;;  %v4983_v6 = vld [vmem:[%s5630_s14 + $0x290] ss:$40 sps:$4 sm:$0xff]  }
  0xfc   : > { %3455 = vmatpush1.bf16.msra.mxu0 %v4899_v7  ;;  %v4986_v7 = vld [vmem:[%s5630_s14 + $0x790] ss:$40 sps:$4 sm:$0xff]  }
  0xfd   : > { %3496 = vmatpush1.bf16.msra.mxu1 %v4902_v8  ;;  %3456 = vmatprep.subr.bf16.mxu0 %v4907_v9  ;;  %v4991_v8 = vld [vmem:[%s5630_s14 + $0x2e4] ss:$40 sps:$4 sm:$0xff]  }
  0xfe   : > { %3497 = vmatprep.subr.bf16.mxu1 %v4910_v10  ;;  %v4994_v9 = vld [vmem:[%s5630_s14 + $0x7e4] ss:$40 sps:$4 sm:$0xff]   ;;  %v4989_v10 = vld [vmem:[%s5630_s14 + $0x2e0] ss:$40 sps:$4 sm:$0xff]  }
 0x100   : > { %3457 = vmatpush1.bf16.msra.mxu0 %v4905_v11  ;;  %v4992_v11 = vld [vmem:[%s5630_s14 + $0x7e0] ss:$40 sps:$4 sm:$0xff]  }
 0x101   : > { %3498 = vmatpush1.bf16.msra.mxu1 %v4908_v12  ;;  %3458 = vmatprep.subr.bf16.mxu0 %v4913_v14  ;;  %v4997_v12 = vld [vmem:[%s5630_s14 + $0x334] ss:$40 sps:$4 sm:$0xff]  }
 0x102   : > { %3499 = vmatprep.subr.bf16.mxu1 %v4916_v15  ;;  %v5000_v14 = vld [vmem:[%s5630_s14 + $0x834] ss:$40 sps:$4 sm:$0xff]   ;;  %v4995_v15 = vld [vmem:[%s5630_s14 + $0x330] ss:$40 sps:$4 sm:$0xff]  }
 0x104   : > { %3459 = vmatpush1.bf16.msra.mxu0 %v4911_v16  ;;  %v4998_v16 = vld [vmem:[%s5630_s14 + $0x830] ss:$40 sps:$4 sm:$0xff]  }
 0x105   : > { %3500 = vmatpush1.bf16.msra.mxu1 %v4914_v17  ;;  %3460 = vmatprep.subr.bf16.mxu0 %v4919_v18  ;;  %v5003_v17 = vld [vmem:[%s5630_s14 + $0x384] ss:$40 sps:$4 sm:$0xff]  }
 0x106   : > { %3501 = vmatprep.subr.bf16.mxu1 %v4922_v20  ;;  %v5006_v18 = vld [vmem:[%s5630_s14 + $0x884] ss:$40 sps:$4 sm:$0xff]   ;;  %v5001_v20 = vld [vmem:[%s5630_s14 + $0x380] ss:$40 sps:$4 sm:$0xff]  }
 0x108   : > { %3461 = vmatpush1.bf16.msra.mxu0 %v4917_v21  ;;  %v5004_v21 = vld [vmem:[%s5630_s14 + $0x880] ss:$40 sps:$4 sm:$0xff]  }
 0x109   : > { %3502 = vmatpush1.bf16.msra.mxu1 %v4920_v22  ;;  %3462 = vmatprep.subr.bf16.mxu0 %v4925_v24  ;;  %v5009_v22 = vld [vmem:[%s5630_s14 + $0x3d4] ss:$40 sps:$4 sm:$0xff]  }
 0x10a   : > { %3503 = vmatprep.subr.bf16.mxu1 %v4928_v25  ;;  %v5012_v24 = vld [vmem:[%s5630_s14 + $0x8d4] ss:$40 sps:$4 sm:$0xff]   ;;  %v5007_v25 = vld [vmem:[%s5630_s14 + $0x3d0] ss:$40 sps:$4 sm:$0xff]  }
 0x10c   : > { %3463 = vmatpush1.bf16.msra.mxu0 %v4923_v26  ;;  %v5010_v26 = vld [vmem:[%s5630_s14 + $0x8d0] ss:$40 sps:$4 sm:$0xff]  }
 0x10d   : > { %3504 = vmatpush1.bf16.msra.mxu1 %v4926_v27  ;;  %3464 = vmatprep.subr.bf16.mxu0 %v4931_v28  ;;  %v5015_v27 = vld [vmem:[%s5630_s14 + $0x424] ss:$40 sps:$4 sm:$0xff]  }
 0x10e   : > { %3505 = vmatprep.subr.bf16.mxu1 %v4934_v29  ;;  %v5018_v28 = vld [vmem:[%s5630_s14 + $0x924] ss:$40 sps:$4 sm:$0xff]   ;;  %v5013_v29 = vld [vmem:[%s5630_s14 + $0x420] ss:$40 sps:$4 sm:$0xff]  }
 0x110   : > { %3465 = vmatpush1.bf16.msra.mxu0 %v4929_v30  ;;  %v5016_v30 = vld [vmem:[%s5630_s14 + $0x920] ss:$40 sps:$4 sm:$0xff]  }
 0x111   : > { %3506 = vmatpush1.bf16.msra.mxu1 %v4932_v31  ;;  %3516 = vmatprep.subr.bf16.mxu0 %v4937_v32  ;;  %v5021_v31 = vld [vmem:[%s5630_s14 + $0x474] ss:$40 sps:$4 sm:$0xff]  }
 0x112   : > { %3557 = vmatprep.subr.bf16.mxu1 %v4940_v33  ;;  %v5024_v32 = vld [vmem:[%s5630_s14 + $0x974] ss:$40 sps:$4 sm:$0xff]   ;;  %v5019_v33 = vld [vmem:[%s5630_s14 + $0x470] ss:$40 sps:$4 sm:$0xff]  }
 0x113   : > { %3467 = vmatmul.mubr.bf16.vlgmr.msra.gmra.mrb[8].mxu0 %v5736_v19 }
 0x114   : > { %3508 = vmatmul.mubr.bf16.vlgmr.msra.gmra.mrb[8].mxu1 %v5707_v63  ;;  %3517 = vmatpush1.bf16.msra.mxu0 %v4935_v34  ;;  %v5022_v34 = vld [vmem:[%s5630_s14 + $0x970] ss:$40 sps:$4 sm:$0xff]  }
 0x115   : > { %3558 = vmatpush1.bf16.msra.mxu1 %v4938_v35  ;;  %3518 = vmatprep.subr.bf16.mxu0 %v4943_v36  ;;  %v5027_v35 = vld [vmem:[%s5630_s14 + $0x4c4] ss:$40 sps:$4 sm:$0xff]  }
 0x116   : > { %3559 = vmatprep.subr.bf16.mxu1 %v4946_v37  ;;  %3548 = vmatprep.mubr.bf16.mxu0 %v5704_v62  ;;  %v5030_v36 = vld [vmem:[%s5630_s14 + $0x9c4] ss:$40 sps:$4 sm:$0xff]   ;;  %v5025_v37 = vld [vmem:[%s5630_s14 + $0x4c0] ss:$40 sps:$4 sm:$0xff]  }
 0x117   : > { %3589 = vmatprep.mubr.bf16.mxu1 %v5714_v3 }
 0x118   : > { %3519 = vmatpush1.bf16.msra.mxu0 %v4941_v38  ;;  %v5028_v38 = vld [vmem:[%s5630_s14 + $0x9c0] ss:$40 sps:$4 sm:$0xff]  }
 0x119   : > { %3560 = vmatpush1.bf16.msra.mxu1 %v4944_v39  ;;  %3520 = vmatprep.subr.bf16.mxu0 %v4949_v40  ;;  %v5033_v39 = vld [vmem:[%s5630_s14 + $0xa14] ss:$40 sps:$4 sm:$0xff]  }
 0x11a   : > { %3561 = vmatprep.subr.bf16.mxu1 %v4952_v41  ;;  %v5036_v40 = vld [vmem:[%s5630_s14 + $0x1c] ss:$40 sps:$4 sm:$0xff]   ;;  %v5031_v41 = vld [vmem:[%s5630_s14 + $0xa10] ss:$40 sps:$4 sm:$0xff]  }
 0x11c   : > { %3521 = vmatpush1.bf16.msra.mxu0 %v4947_v43  ;;  %v5034_v43 = vld [vmem:[%s5630_s14 + $0x18] ss:$40 sps:$4 sm:$0xff]  }
 0x11d   : > { %3562 = vmatpush1.bf16.msra.mxu1 %v4950_v44  ;;  %3522 = vmatprep.subr.bf16.mxu0 %v4955_v45  ;;  %v5039_v44 = vld [vmem:[%s5630_s14 + $0xa64] ss:$40 sps:$4 sm:$0xff]  }
 0x11e   : > { %3563 = vmatprep.subr.bf16.mxu1 %v4958_v46  ;;  %v5042_v45 = vld [vmem:[%s5630_s14 + $0x6c] ss:$40 sps:$4 sm:$0xff]   ;;  %v5037_v46 = vld [vmem:[%s5630_s14 + $0xa60] ss:$40 sps:$4 sm:$0xff]  }
 0x120   : > { %3523 = vmatpush1.bf16.msra.mxu0 %v4953_v47  ;;  %v5040_v47 = vld [vmem:[%s5630_s14 + $0x68] ss:$40 sps:$4 sm:$0xff]  }
 0x121   : > { %3564 = vmatpush1.bf16.msra.mxu1 %v4956_v48  ;;  %3524 = vmatprep.subr.bf16.mxu0 %v4961_v49  ;;  %v5045_v48 = vld [vmem:[%s5630_s14 + $0xab4] ss:$40 sps:$4 sm:$0xff]  }
 0x122   : > { %3565 = vmatprep.subr.bf16.mxu1 %v4964_v50  ;;  %v5048_v49 = vld [vmem:[%s5630_s14 + $0xbc] ss:$40 sps:$4 sm:$0xff]   ;;  %v5043_v50 = vld [vmem:[%s5630_s14 + $0xab0] ss:$40 sps:$4 sm:$0xff]  }
 0x124   : > { %3525 = vmatpush1.bf16.msra.mxu0 %v4959_v51  ;;  %v5046_v51 = vld [vmem:[%s5630_s14 + $0xb8] ss:$40 sps:$4 sm:$0xff]  }
 0x125   : > { %3566 = vmatpush1.bf16.msra.mxu1 %v4962_v52  ;;  %3526 = vmatprep.subr.bf16.mxu0 %v4967_v53  ;;  %v5051_v52 = vld [vmem:[%s5630_s14 + $0xb04] ss:$40 sps:$4 sm:$0xff]  }
 0x126   : > { %3567 = vmatprep.subr.bf16.mxu1 %v4970_v54  ;;  %v5054_v53 = vld [vmem:[%s5630_s14 + $0x10c] ss:$40 sps:$4 sm:$0xff]   ;;  %v5049_v54 = vld [vmem:[%s5630_s14 + $0xb00] ss:$40 sps:$4 sm:$0xff]  }
 0x128   : > { %3527 = vmatpush1.bf16.msra.mxu0 %v4965_v55  ;;  %v5052_v55 = vld [vmem:[%s5630_s14 + $0x108] ss:$40 sps:$4 sm:$0xff]  }
 0x129   : > { %3568 = vmatpush1.bf16.msra.mxu1 %v4968_v56  ;;  %3528 = vmatprep.subr.bf16.mxu0 %v4973_v57  ;;  %v5057_v56 = vld [vmem:[%s5630_s14 + $0xb54] ss:$40 sps:$4 sm:$0xff]  }
 0x12a   : > { %3569 = vmatprep.subr.bf16.mxu1 %v4976_v58  ;;  %v5060_v57 = vld [vmem:[%s5630_s14 + $0x15c] ss:$40 sps:$4 sm:$0xff]   ;;  %v5055_v58 = vld [vmem:[%s5630_s14 + $0xb50] ss:$40 sps:$4 sm:$0xff]  }
 0x12c   : > { %3529 = vmatpush1.bf16.msra.mxu0 %v4971_v59  ;;  %v768_v59 = vsub.s32 0, %v5681_v42 }
 0x12d   : > { %3570 = vmatpush1.bf16.msra.mxu1 %v4974_v60  ;;  %3530 = vmatprep.subr.bf16.mxu0 %v4979_v61  ;;  %v5058_v60 = vld [vmem:[%s5630_s14 + $0x158] ss:$40 sps:$4 sm:$0xff]  }
 0x12e   : > { %3571 = vmatprep.subr.bf16.mxu1 %v4982_v0  ;;  %v5968_v61 = vld [vmem:[%s5636_s8] sm:$0xff]  ;;  %v772_v0 = vsub.s32 1, %v5681_v42 }
 0x130   : > { %3531 = vmatpush1.bf16.msra.mxu0 %v4977_v1  ;;  %v5063_v1 = vld [vmem:[%s5630_s14 + $0xba4] ss:$40 sps:$4 sm:$0xff]  }
 0x131   : > { %3572 = vmatpush1.bf16.msra.mxu1 %v4980_v2  ;;  %3532 = vmatprep.subr.bf16.mxu0 %v4985_v4  ;;  %v5066_v2 = vld [vmem:[%s5630_s14 + $0x1ac] ss:$40 sps:$4 sm:$0xff]   ;;  %v5061_v4 = vld [vmem:[%s5630_s14 + $0xba0] ss:$40 sps:$4 sm:$0xff]  }
 0x132   : > { %3573 = vmatprep.subr.bf16.mxu1 %v4988_v5  ;;  %v5064_v5 = vld [vmem:[%s5630_s14 + $0x1a8] ss:$40 sps:$4 sm:$0xff]  }
 0x134   : > { %3533 = vmatpush1.bf16.msra.mxu0 %v4983_v6  ;;  %v769_v6 = vrot.slane %v5968_v61, %v768_v59 }
 0x135   : > { %3574 = vmatpush1.bf16.msra.mxu1 %v4986_v7  ;;  %3534 = vmatprep.subr.bf16.mxu0 %v4991_v8  ;;  %v773_v7 = vrot.slane %v5968_v61, %v772_v0  ;;  %v5069_v8 = vld [vmem:[%s5630_s14 + $0xbf4] ss:$40 sps:$4 sm:$0xff]  }
 0x136   : > { %3575 = vmatprep.subr.bf16.mxu1 %v4994_v9  ;;  %v5072_v9 = vld [vmem:[%s5630_s14 + $0x1fc] ss:$40 sps:$4 sm:$0xff]  }
 0x138   : > { %3535 = vmatpush1.bf16.msra.mxu0 %v4989_v10 }
 0x139   : > { %3576 = vmatpush1.bf16.msra.mxu1 %v4992_v11  ;;  %3536 = vmatprep.subr.bf16.mxu0 %v4997_v12  ;;  %v5067_v12 = vld [vmem:[%s5630_s14 + $0xbf0] ss:$40 sps:$4 sm:$0xff]  }
 0x13a   : > { %3577 = vmatprep.subr.bf16.mxu1 %v5000_v14  ;;  %v5070_v14 = vld [vmem:[%s5630_s14 + $0x1f8] ss:$40 sps:$4 sm:$0xff]  }
 0x13c   : > { %3537 = vmatpush1.bf16.msra.mxu0 %v4995_v15 }
 0x13d   : > { %3578 = vmatpush1.bf16.msra.mxu1 %v4998_v16  ;;  %3538 = vmatprep.subr.bf16.mxu0 %v5003_v17 }
 0x13e   : > { %3579 = vmatprep.subr.bf16.mxu1 %v5006_v18 }
 0x140   : > { %3539 = vmatpush1.bf16.msra.mxu0 %v5001_v20 }
 0x141   : > { %3580 = vmatpush1.bf16.msra.mxu1 %v5004_v21  ;;  %3540 = vmatprep.subr.bf16.mxu0 %v5009_v22 }
 0x142   : > { %3581 = vmatprep.subr.bf16.mxu1 %v5012_v24 }
 0x144   : > { %3541 = vmatpush1.bf16.msra.mxu0 %v5007_v25  ;;  %v5075_v25 = vld [vmem:[%s5630_s14 + $0xc44] ss:$40 sps:$4 sm:$0xff]  }
 0x145   : > { %3582 = vmatpush1.bf16.msra.mxu1 %v5010_v26  ;;  %3542 = vmatprep.subr.bf16.mxu0 %v5015_v27  ;;  %v5078_v26 = vld [vmem:[%s5630_s14 + $0x24c] ss:$40 sps:$4 sm:$0xff]  }
 0x146   : > { %3583 = vmatprep.subr.bf16.mxu1 %v5018_v28 }
 0x148   : > { %3543 = vmatpush1.bf16.msra.mxu0 %v5013_v29  ;;  %v5073_v29 = vld [vmem:[%s5630_s14 + $0xc40] ss:$40 sps:$4 sm:$0xff]  }
 0x149   : > { %3584 = vmatpush1.bf16.msra.mxu1 %v5016_v30  ;;  %3544 = vmatprep.subr.bf16.mxu0 %v5021_v31  ;;  %v5076_v30 = vld [vmem:[%s5630_s14 + $0x248] ss:$40 sps:$4 sm:$0xff]   ;;  %v5081_v31 = vld [vmem:[%s5630_s14 + $0xc94] ss:$40 sps:$4 sm:$0xff]  }
 0x14a   : > { %3585 = vmatprep.subr.bf16.mxu1 %v5024_v32  ;;  %v5084_v32 = vld [vmem:[%s5630_s14 + $0x29c] ss:$40 sps:$4 sm:$0xff]  }
 0x14c   : > { %3545 = vmatpush1.bf16.msra.mxu0 %v5019_v33  ;;  %v5079_v33 = vld [vmem:[%s5630_s14 + $0xc90] ss:$40 sps:$4 sm:$0xff]  }
 0x14d   : > { %3586 = vmatpush1.bf16.msra.mxu1 %v5022_v34  ;;  %3546 = vmatprep.subr.bf16.mxu0 %v5027_v35  ;;  %v5082_v34 = vld [vmem:[%s5630_s14 + $0x298] ss:$40 sps:$4 sm:$0xff]   ;;  %v5087_v35 = vld [vmem:[%s5630_s14 + $0xce4] ss:$40 sps:$4 sm:$0xff]  }
 0x14e   : > { %3587 = vmatprep.subr.bf16.mxu1 %v5030_v36  ;;  %v5090_v36 = vld [vmem:[%s5630_s14 + $0x2ec] ss:$40 sps:$4 sm:$0xff]  }
 0x150   : > { %3547 = vmatpush1.bf16.msra.mxu0 %v5025_v37  ;;  %v5085_v37 = vld [vmem:[%s5630_s14 + $0xce0] ss:$40 sps:$4 sm:$0xff]  }
 0x151   : > { %3588 = vmatpush1.bf16.msra.mxu1 %v5028_v38  ;;  %3598 = vmatprep.subr.bf16.mxu0 %v5033_v39  ;;  %v5088_v38 = vld [vmem:[%s5630_s14 + $0x2e8] ss:$40 sps:$4 sm:$0xff]   ;;  %v5093_v39 = vld [vmem:[%s5630_s14 + $0xd34] ss:$40 sps:$4 sm:$0xff]  }
 0x152   : > { %3639 = vmatprep.subr.bf16.mxu1 %v5036_v40  ;;  %v5096_v40 = vld [vmem:[%s5630_s14 + $0x33c] ss:$40 sps:$4 sm:$0xff]  }
 0x153   : > { %3549 = vmatmul.mubr.bf16.vlgmr.msra.gmra.mrb[12].mxu0 %v5728_v13 }
 0x154   : > { %3590 = vmatmul.mubr.bf16.vlgmr.msra.gmra.mrb[12].mxu1 %v5736_v19  ;;  %3599 = vmatpush1.bf16.msra.mxu0 %v5031_v41  ;;  %v5091_v41 = vld [vmem:[%s5630_s14 + $0xd30] ss:$40 sps:$4 sm:$0xff]  }
 0x155   : > { %3640 = vmatpush1.bf16.msra.mxu1 %v5034_v43  ;;  %3600 = vmatprep.subr.bf16.mxu0 %v5039_v44  ;;  %v5094_v43 = vld [vmem:[%s5630_s14 + $0x338] ss:$40 sps:$4 sm:$0xff]   ;;  %v5099_v44 = vld [vmem:[%s5630_s14 + $0xd84] ss:$40 sps:$4 sm:$0xff]  }
 0x156   : > { %3641 = vmatprep.subr.bf16.mxu1 %v5042_v45  ;;  %3630 = vmatprep.mubr.bf16.mxu0 %v5742_v23  ;;  %v5102_v45 = vld [vmem:[%s5630_s14 + $0x38c] ss:$40 sps:$4 sm:$0xff]  }
 0x157   : > { %3671 = vmatprep.mubr.bf16.mxu1 %v5704_v62 }
 0x158   : > { %3601 = vmatpush1.bf16.msra.mxu0 %v5037_v46  ;;  %v5097_v46 = vld [vmem:[%s5630_s14 + $0xd80] ss:$40 sps:$4 sm:$0xff]  }
 0x159   : > { %3642 = vmatpush1.bf16.msra.mxu1 %v5040_v47  ;;  %3602 = vmatprep.subr.bf16.mxu0 %v5045_v48  ;;  %v5100_v47 = vld [vmem:[%s5630_s14 + $0x388] ss:$40 sps:$4 sm:$0xff]   ;;  %v5105_v48 = vld [vmem:[%s5630_s14 + $0xdd4] ss:$40 sps:$4 sm:$0xff]  }
 0x15a   : > { %3643 = vmatprep.subr.bf16.mxu1 %v5048_v49  ;;  %v5108_v49 = vld [vmem:[%s5630_s14 + $0x3dc] ss:$40 sps:$4 sm:$0xff]  }
 0x15c   : > { %3603 = vmatpush1.bf16.msra.mxu0 %v5043_v50  ;;  %v5103_v50 = vld [vmem:[%s5630_s14 + $0xdd0] ss:$40 sps:$4 sm:$0xff]  }
 0x15d   : > { %3644 = vmatpush1.bf16.msra.mxu1 %v5046_v51  ;;  %3604 = vmatprep.subr.bf16.mxu0 %v5051_v52  ;;  %v5106_v51 = vld [vmem:[%s5630_s14 + $0x3d8] ss:$40 sps:$4 sm:$0xff]   ;;  %v5111_v52 = vld [vmem:[%s5630_s14 + $0xe24] ss:$40 sps:$4 sm:$0xff]  }
 0x15e   : > { %3645 = vmatprep.subr.bf16.mxu1 %v5054_v53  ;;  %v5114_v53 = vld [vmem:[%s5630_s14 + $0x42c] ss:$40 sps:$4 sm:$0xff]  }
 0x160   : > { %3605 = vmatpush1.bf16.msra.mxu0 %v5049_v54  ;;  %v5109_v54 = vld [vmem:[%s5630_s14 + $0xe20] ss:$40 sps:$4 sm:$0xff]  }
 0x161   : > { %3646 = vmatpush1.bf16.msra.mxu1 %v5052_v55  ;;  %3606 = vmatprep.subr.bf16.mxu0 %v5057_v56  ;;  %v5112_v55 = vld [vmem:[%s5630_s14 + $0x428] ss:$40 sps:$4 sm:$0xff]   ;;  %v5117_v56 = vld [vmem:[%s5630_s14 + $0xe74] ss:$40 sps:$4 sm:$0xff]  }
 0x162   : > { %3647 = vmatprep.subr.bf16.mxu1 %v5060_v57  ;;  %v5120_v57 = vld [vmem:[%s5630_s14 + $0x47c] ss:$40 sps:$4 sm:$0xff]  }
 0x164   : > { %3607 = vmatpush1.bf16.msra.mxu0 %v5055_v58  ;;  %v5115_v58 = vld [vmem:[%s5630_s14 + $0xe70] ss:$40 sps:$4 sm:$0xff]  }
 0x165   : > { %3648 = vmatpush1.bf16.msra.mxu1 %v5058_v60  ;;  %3608 = vmatprep.subr.bf16.mxu0 %v5063_v1  ;;  %v5118_v60 = vld [vmem:[%s5630_s14 + $0x478] ss:$40 sps:$4 sm:$0xff]   ;;  %v5123_v1 = vld [vmem:[%s5630_s14 + $0xec4] ss:$40 sps:$4 sm:$0xff]  }
 0x166   : > { %3649 = vmatprep.subr.bf16.mxu1 %v5066_v2  ;;  %v3304_v10 = vpop.f32.mrb[0].mxu0  ;;  %v5126_v2 = vld [vmem:[%s5630_s14 + $0x4cc] ss:$40 sps:$4 sm:$0xff]  }
 0x167   : > { %v3345_v11 = vpop.f32.mrb[0].mxu1  ;;  %v3305_v15 = vadd.f32 %v3304_v10, %v769_v6  ;;  %v3306_v16 = vpop.f32.mrb[1].mxu0  ;;  %v5129_v6 = vld [vmem:[%s5630_s14 + $0x51c] ss:$40 sps:$4 sm:$0xff]   ;;  %v5135_v10 = vld [vmem:[%s5630_s14 + $0x56c] ss:$40 sps:$4 sm:$0xff]  }
 0x168   : > { %v3347_v17 = vpop.f32.mrb[1].mxu1  ;;  %v3307_v18 = vadd.f32 %v3306_v16, %v773_v7  ;;  %v3308_v20 = vpop.f32.mrb[2].mxu0  ;;  %3609 = vmatpush1.bf16.msra.mxu0 %v5061_v4  ;;  %v5121_v4 = vld [vmem:[%s5630_s14 + $0xec0] ss:$40 sps:$4 sm:$0xff]   ;;  %v5132_v7 = vld [vmem:[%s5630_s14 + $0x24] ss:$40 sps:$4 sm:$0xff]  }
 0x169   : > { %3650 = vmatpush1.bf16.msra.mxu1 %v5064_v5  ;;  %v3349_v21 = vpop.f32.mrb[2].mxu1  ;;  %v5985_v22 = vadd.f32 %v3345_v11, %v3305_v15  ;;  %v3309_v24 = vpop.f32.mrb[3].mxu0  ;;  %3610 = vmatprep.subr.bf16.mxu0 %v5069_v8  ;;  %v5124_v5 = vld [vmem:[%s5630_s14 + $0x4c8] ss:$40 sps:$4 sm:$0xff]   ;;  %v5127_v8 = vld [vmem:[%s5630_s14 + $0x518] ss:$40 sps:$4 sm:$0xff]  }
 0x16a   : > { %3651 = vmatprep.subr.bf16.mxu1 %v5072_v9  ;;  %v3350_v27 = vpop.f32.mrb[3].mxu1  ;;  %v5989_v28 = vadd.f32 %v3347_v17, %v3307_v18  ;;  %v5130_v9 = vld [vmem:[%s5630_s14 + $0x20] ss:$40 sps:$4 sm:$0xff]   ;;  %v5138_v11 = vld [vmem:[%s5630_s14 + $0x74] ss:$40 sps:$4 sm:$0xff]  }
 0x16b   : > { %v5141_v15 = vld [vmem:[%s5630_s14 + $0x5bc] ss:$40 sps:$4 sm:$0xff]   ;;  %v5139_v17 = vld [vmem:[%s5630_s14 + $0x5b8] ss:$40 sps:$4 sm:$0xff]   ;;  %v5147_v20 = vld [vmem:[%s5630_s14 + $0x60c] ss:$40 sps:$4 sm:$0xff]  }
 0x16c   : > { %3611 = vmatpush1.bf16.msra.mxu0 %v5067_v12  ;;  %v5133_v12 = vld [vmem:[%s5630_s14 + $0x568] ss:$40 sps:$4 sm:$0xff]   ;;  %v5144_v16 = vld [vmem:[%s5630_s14 + $0xc4] ss:$40 sps:$4 sm:$0xff]   ;;  %v5150_v21 = vld [vmem:[%s5630_s14 + $0x114] ss:$40 sps:$4 sm:$0xff]  }
 0x16d   : > { %3652 = vmatpush1.bf16.msra.mxu1 %v5070_v14  ;;  %3612 = vmatprep.subr.bf16.mxu0 %v5075_v25  ;;  %v5136_v14 = vld [vmem:[%s5630_s14 + $0x70] ss:$40 sps:$4 sm:$0xff]   ;;  %v5142_v18 = vld [vmem:[%s5630_s14 + $0xc0] ss:$40 sps:$4 sm:$0xff]  }
 0x16e   : > { %3653 = vmatprep.subr.bf16.mxu1 %v5078_v26  ;;  %v5145_v24 = vld [vmem:[%s5630_s14 + $0x608] ss:$40 sps:$4 sm:$0xff]   ;;  %v5156_v26 = vld [vmem:[%s5630_s14 + $0x164] ss:$40 sps:$4 sm:$0xff]   ;;  %v5151_v27 = vld [vmem:[%s5630_s14 + $0x658] ss:$40 sps:$4 sm:$0xff]  }
 0x16f   : > { %v5148_v25 = vld [vmem:[%s5630_s14 + $0x110] ss:$40 sps:$4 sm:$0xff]  }
 0x170   : > { %3613 = vmatpush1.bf16.msra.mxu0 %v5073_v29  ;;  %v5154_v29 = vld [vmem:[%s5630_s14 + $0x160] ss:$40 sps:$4 sm:$0xff]  }
 0x171   : > { %3654 = vmatpush1.bf16.msra.mxu1 %v5076_v30  ;;  %3614 = vmatprep.subr.bf16.mxu0 %v5081_v31  ;;  %v5159_v30 = vld [vmem:[%s5630_s14 + $0x6ac] ss:$40 sps:$4 sm:$0xff]  }
 0x172   : > { %3655 = vmatprep.subr.bf16.mxu1 %v5084_v32  ;;  %v5162_v31 = vld [vmem:[%s5630_s14 + $0x1b4] ss:$40 sps:$4 sm:$0xff]   ;;  %v5157_v32 = vld [vmem:[%s5630_s14 + $0x6a8] ss:$40 sps:$4 sm:$0xff]  }
 0x174   : > { %3615 = vmatpush1.bf16.msra.mxu0 %v5079_v33  ;;  %v5160_v33 = vld [vmem:[%s5630_s14 + $0x1b0] ss:$40 sps:$4 sm:$0xff]  }
 0x175   : > { %3656 = vmatpush1.bf16.msra.mxu1 %v5082_v34  ;;  %3616 = vmatprep.subr.bf16.mxu0 %v5087_v35  ;;  %v5165_v34 = vld [vmem:[%s5630_s14 + $0x6fc] ss:$40 sps:$4 sm:$0xff]  }
 0x176   : > { %3657 = vmatprep.subr.bf16.mxu1 %v5090_v36  ;;  %v5168_v35 = vld [vmem:[%s5630_s14 + $0x204] ss:$40 sps:$4 sm:$0xff]  }
 0x178   : > { %3617 = vmatpush1.bf16.msra.mxu0 %v5085_v37 }
 0x179   : > { %3658 = vmatpush1.bf16.msra.mxu1 %v5088_v38  ;;  %3618 = vmatprep.subr.bf16.mxu0 %v5093_v39 }
 0x17a   : > { %3659 = vmatprep.subr.bf16.mxu1 %v5096_v40 }
 0x17c   : > { %3619 = vmatpush1.bf16.msra.mxu0 %v5091_v41 }
 0x17d   : > { %3660 = vmatpush1.bf16.msra.mxu1 %v5094_v43  ;;  %3620 = vmatprep.subr.bf16.mxu0 %v5099_v44  ;;  %v5163_v44 = vld [vmem:[%s5630_s14 + $0x6f8] ss:$40 sps:$4 sm:$0xff]  }
 0x17e   : > { %3661 = vmatprep.subr.bf16.mxu1 %v5102_v45  ;;  %v5166_v45 = vld [vmem:[%s5630_s14 + $0x200] ss:$40 sps:$4 sm:$0xff]  }
 0x180   : > { %3621 = vmatpush1.bf16.msra.mxu0 %v5097_v46 }
 0x181   : > { %3662 = vmatpush1.bf16.msra.mxu1 %v5100_v47  ;;  %3622 = vmatprep.subr.bf16.mxu0 %v5105_v48  ;;  %v5174_v48 = vld [vmem:[%s5630_s14 + $0x254] ss:$40 sps:$4 sm:$0xff]  }
 0x182   : > { %3663 = vmatprep.subr.bf16.mxu1 %v5108_v49 }
 0x184   : > { %3623 = vmatpush1.bf16.msra.mxu0 %v5103_v50  ;;  %v5172_v50 = vld [vmem:[%s5630_s14 + $0x250] ss:$40 sps:$4 sm:$0xff]  }
 0x185   : > { %3664 = vmatpush1.bf16.msra.mxu1 %v5106_v51  ;;  %3624 = vmatprep.subr.bf16.mxu0 %v5111_v52  ;;  %v5177_v51 = vld [vmem:[%s5630_s14 + $0x79c] ss:$40 sps:$4 sm:$0xff]  }
 0x186   : > { %3665 = vmatprep.subr.bf16.mxu1 %v5114_v53  ;;  %v5180_v52 = vld [vmem:[%s5630_s14 + $0x2a4] ss:$40 sps:$4 sm:$0xff]   ;;  %v5175_v53 = vld [vmem:[%s5630_s14 + $0x798] ss:$40 sps:$4 sm:$0xff]  }
 0x188   : > { %3625 = vmatpush1.bf16.msra.mxu0 %v5109_v54  ;;  %v5178_v54 = vld [vmem:[%s5630_s14 + $0x2a0] ss:$40 sps:$4 sm:$0xff]  }
 0x189   : > { %3666 = vmatpush1.bf16.msra.mxu1 %v5112_v55  ;;  %3626 = vmatprep.subr.bf16.mxu0 %v5117_v56  ;;  %v5183_v55 = vld [vmem:[%s5630_s14 + $0x7ec] ss:$40 sps:$4 sm:$0xff]  }
 0x18a   : > { %3667 = vmatprep.subr.bf16.mxu1 %v5120_v57  ;;  %v5186_v56 = vld [vmem:[%s5630_s14 + $0x2f4] ss:$40 sps:$4 sm:$0xff]   ;;  %v5181_v57 = vld [vmem:[%s5630_s14 + $0x7e8] ss:$40 sps:$4 sm:$0xff]  }
 0x18c   : > { %3627 = vmatpush1.bf16.msra.mxu0 %v5115_v58  ;;  %v5184_v58 = vld [vmem:[%s5630_s14 + $0x2f0] ss:$40 sps:$4 sm:$0xff]  }
 0x18d   : > { %3668 = vmatpush1.bf16.msra.mxu1 %v5118_v60  ;;  %3628 = vmatprep.subr.bf16.mxu0 %v5123_v1  ;;  %v5189_v60 = vld [vmem:[%s5630_s14 + $0x83c] ss:$40 sps:$4 sm:$0xff]  }
 0x18e   : > { %3669 = vmatprep.subr.bf16.mxu1 %v5126_v2  ;;  %v5192_v1 = vld [vmem:[%s5630_s14 + $0x344] ss:$40 sps:$4 sm:$0xff]   ;;  %v5187_v2 = vld [vmem:[%s5630_s14 + $0x838] ss:$40 sps:$4 sm:$0xff]  }
 0x190   : > { %3629 = vmatpush1.bf16.msra.mxu0 %v5121_v4  ;;  %v5190_v4 = vld [vmem:[%s5630_s14 + $0x340] ss:$40 sps:$4 sm:$0xff]  }
 0x191   : > { %3670 = vmatpush1.bf16.msra.mxu1 %v5124_v5  ;;  %3762 = vmatprep.subr.bf16.mxu0 %v5132_v7  ;;  %v5195_v5 = vld [vmem:[%s5630_s14 + $0x88c] ss:$40 sps:$4 sm:$0xff]   ;;  %v5193_v7 = vld [vmem:[%s5630_s14 + $0x888] ss:$40 sps:$4 sm:$0xff]  }
 0x192   : > { %3680 = vmatprep.subr.bf16.mxu1 %v5129_v6  ;;  %v5198_v6 = vld [vmem:[%s5630_s14 + $0x394] ss:$40 sps:$4 sm:$0xff]  }
 0x193   : > { %3631 = vmatmul.mubr.bf16.vlgmr.msra.gmra.mrb[16].mxu0 %v5707_v63 }
 0x194   : > { %3672 = vmatmul.mubr.bf16.vlgmr.msra.gmra.mrb[16].mxu1 %v5728_v13  ;;  %3763 = vmatpush1.bf16.msra.mxu0 %v5130_v9  ;;  %v5201_v9 = vld [vmem:[%s5630_s14 + $0x8dc] ss:$40 sps:$4 sm:$0xff]  }
 0x195   : > { %3681 = vmatpush1.bf16.msra.mxu1 %v5127_v8  ;;  %3764 = vmatprep.subr.bf16.mxu0 %v5138_v11  ;;  %v5196_v8 = vld [vmem:[%s5630_s14 + $0x390] ss:$40 sps:$4 sm:$0xff]  }
 0x196   : > { %3682 = vmatprep.subr.bf16.mxu1 %v5135_v10  ;;  %3712 = vmatprep.mubr.bf16.mxu1 %v5714_v3  ;;  %v5204_v10 = vld [vmem:[%s5630_s14 + $0x3e4] ss:$40 sps:$4 sm:$0xff]   ;;  %v5199_v11 = vld [vmem:[%s5630_s14 + $0x8d8] ss:$40 sps:$4 sm:$0xff]  }
 0x197   : > { %3794 = vmatprep.mubr.bf16.mxu0 %v5704_v62  ;;  %v5153_v62 = vld [vmem:[%s5630_s14 + $0x65c] ss:$40 sps:$4 sm:$0xff]  }
 0x198   : > { %3765 = vmatpush1.bf16.msra.mxu0 %v5136_v14  ;;  %v5207_v14 = vld [vmem:[%s5630_s14 + $0x92c] ss:$40 sps:$4 sm:$0xff]  }
 0x199   : > { %3683 = vmatpush1.bf16.msra.mxu1 %v5133_v12  ;;  %3766 = vmatprep.subr.bf16.mxu0 %v5144_v16  ;;  %v5202_v12 = vld [vmem:[%s5630_s14 + $0x3e0] ss:$40 sps:$4 sm:$0xff]  }
 0x19a   : > { %3684 = vmatprep.subr.bf16.mxu1 %v5141_v15  ;;  %v5210_v15 = vld [vmem:[%s5630_s14 + $0x434] ss:$40 sps:$4 sm:$0xff]   ;;  %v5205_v16 = vld [vmem:[%s5630_s14 + $0x928] ss:$40 sps:$4 sm:$0xff]  }
 0x19c   : > { %3767 = vmatpush1.bf16.msra.mxu0 %v5142_v18  ;;  %v5213_v18 = vld [vmem:[%s5630_s14 + $0x97c] ss:$40 sps:$4 sm:$0xff]  }
 0x19d   : > { %3685 = vmatpush1.bf16.msra.mxu1 %v5139_v17  ;;  %3768 = vmatprep.subr.bf16.mxu0 %v5150_v21  ;;  %v5208_v17 = vld [vmem:[%s5630_s14 + $0x430] ss:$40 sps:$4 sm:$0xff]  }
 0x19e   : > { %3686 = vmatprep.subr.bf16.mxu1 %v5147_v20  ;;  %v5216_v20 = vld [vmem:[%s5630_s14 + $0x484] ss:$40 sps:$4 sm:$0xff]   ;;  %v5211_v21 = vld [vmem:[%s5630_s14 + $0x978] ss:$40 sps:$4 sm:$0xff]  }
 0x1a0   : > { %3769 = vmatpush1.bf16.msra.mxu0 %v5148_v25  ;;  %v5219_v25 = vld [vmem:[%s5630_s14 + $0x9cc] ss:$40 sps:$4 sm:$0xff]  }
 0x1a1   : > { %3687 = vmatpush1.bf16.msra.mxu1 %v5145_v24  ;;  %3770 = vmatprep.subr.bf16.mxu0 %v5156_v26  ;;  %v5214_v24 = vld [vmem:[%s5630_s14 + $0x480] ss:$40 sps:$4 sm:$0xff]  }
 0x1a2   : > { %3688 = vmatprep.subr.bf16.mxu1 %v5153_v62  ;;  %v5222_v62 = vld [vmem:[%s5630_s14 + $0x4d4] ss:$40 sps:$4 sm:$0xff]   ;;  %v5217_v26 = vld [vmem:[%s5630_s14 + $0x9c8] ss:$40 sps:$4 sm:$0xff]  }
 0x1a4   : > { %3771 = vmatpush1.bf16.msra.mxu0 %v5154_v29  ;;  %v5225_v29 = vld [vmem:[%s5630_s14 + $0xa1c] ss:$40 sps:$4 sm:$0xff]  }
 0x1a5   : > { %3689 = vmatpush1.bf16.msra.mxu1 %v5151_v27  ;;  %3772 = vmatprep.subr.bf16.mxu0 %v5162_v31  ;;  %v5220_v27 = vld [vmem:[%s5630_s14 + $0x4d0] ss:$40 sps:$4 sm:$0xff]  }
 0x1a6   : > { %3690 = vmatprep.subr.bf16.mxu1 %v5159_v30  ;;  %v3386_v36 = vpop.f32.mrb[4].mxu0  ;;  %v5228_v30 = vld [vmem:[%s5630_s14 + $0x524] ss:$40 sps:$4 sm:$0xff]   ;;  %v5223_v31 = vld [vmem:[%s5630_s14 + $0xa18] ss:$40 sps:$4 sm:$0xff]  }
 0x1a7   : > { %v6055_v37 = vpop.f32.mrb[4].mxu1  ;;  %v6058_v38 = vadd.f32 %v3386_v36, %v5985_v22  ;;  %v3388_v39 = vpop.f32.mrb[5].mxu0  ;;  %v5171_v22 = vld [vmem:[%s5630_s14 + $0x74c] ss:$40 sps:$4 sm:$0xff]   ;;  %v5232_v36 = vld [vmem:[%s5630_s14 + $0x570] ss:$40 sps:$4 sm:$0xff]  }
 0x1a8   : > { %v6060_v40 = vpop.f32.mrb[5].mxu1  ;;  %v6063_v41 = vadd.f32 %v3388_v39, %v5989_v28  ;;  %v3390_v43 = vpop.f32.mrb[6].mxu0  ;;  %3773 = vmatpush1.bf16.msra.mxu0 %v5160_v33  ;;  %v5169_v28 = vld [vmem:[%s5630_s14 + $0x748] ss:$40 sps:$4 sm:$0xff]   ;;  %v5231_v33 = vld [vmem:[%s5630_s14 + $0xa6c] ss:$40 sps:$4 sm:$0xff]  }
 0x1a9   : > { %3691 = vmatpush1.bf16.msra.mxu1 %v5157_v32  ;;  %v3431_v46 = vpop.f32.mrb[6].mxu1  ;;  %v3391_v47 = vpop.f32.mrb[7].mxu0  ;;  %3774 = vmatprep.subr.bf16.mxu0 %v5168_v35  ;;  %v5226_v32 = vld [vmem:[%s5630_s14 + $0x520] ss:$40 sps:$4 sm:$0xff]   ;;  %v5237_v39 = vld [vmem:[%s5630_s14 + $0xabc] ss:$40 sps:$4 sm:$0xff]  }
 0x1aa   : > { %3692 = vmatprep.subr.bf16.mxu1 %v5165_v34  ;;  %v3432_v49 = vpop.f32.mrb[7].mxu1  ;;  %v5234_v34 = vld [vmem:[%s5630_s14 + $0x574] ss:$40 sps:$4 sm:$0xff]   ;;  %v5229_v35 = vld [vmem:[%s5630_s14 + $0xa68] ss:$40 sps:$4 sm:$0xff]   ;;  %v776_v47 = vsub.s32 2, %v5681_v42 }
 0x1ab   : > { %v5240_v43 = vld [vmem:[%s5630_s14 + $0x5c4] ss:$40 sps:$4 sm:$0xff]   ;;  %v5246_v46 = vld [vmem:[%s5630_s14 + $0x614] ss:$40 sps:$4 sm:$0xff]  }
 0x1ac   : > { %3775 = vmatpush1.bf16.msra.mxu0 %v5166_v45  ;;  %v5243_v45 = vld [vmem:[%s5630_s14 + $0xb0c] ss:$40 sps:$4 sm:$0xff]   ;;  %v5249_v49 = vld [vmem:[%s5630_s14 + $0xb5c] ss:$40 sps:$4 sm:$0xff]  }
 0x1ad   : > { %3693 = vmatpush1.bf16.msra.mxu1 %v5163_v44  ;;  %3776 = vmatprep.subr.bf16.mxu0 %v5174_v48  ;;  %v5238_v44 = vld [vmem:[%s5630_s14 + $0x5c0] ss:$40 sps:$4 sm:$0xff]   ;;  %v780_v48 = vsub.s32 3, %v5681_v42 }
 0x1ae   : > { %3694 = vmatprep.subr.bf16.mxu1 %v5171_v22  ;;  %v5241_v22 = vld [vmem:[%s5630_s14 + $0xb08] ss:$40 sps:$4 sm:$0xff]  }
 0x1b0   : > { %3777 = vmatpush1.bf16.msra.mxu0 %v5172_v50  ;;  %v777_v50 = vrot.slane %v5968_v61, %v776_v47  ;;  %v5298_v47 = vld [vmem:[%s5630_s14 + $0x8e0] ss:$40 sps:$4 sm:$0xff]  }
 0x1b1   : > { %3695 = vmatpush1.bf16.msra.mxu1 %v5169_v28  ;;  %3778 = vmatprep.subr.bf16.mxu0 %v5180_v52  ;;  %v5252_v28 = vld [vmem:[%s5630_s14 + $0x664] ss:$40 sps:$4 sm:$0xff]   ;;  %v5250_v52 = vld [vmem:[%s5630_s14 + $0x660] ss:$40 sps:$4 sm:$0xff]  }
 0x1b2   : > { %3696 = vmatprep.subr.bf16.mxu1 %v5177_v51  ;;  %v5247_v51 = vld [vmem:[%s5630_s14 + $0xb58] ss:$40 sps:$4 sm:$0xff]  }
 0x1b4   : > { %3779 = vmatpush1.bf16.msra.mxu0 %v5178_v54  ;;  %v5255_v54 = vld [vmem:[%s5630_s14 + $0xbac] ss:$40 sps:$4 sm:$0xff]  }
 0x1b5   : > { %3697 = vmatpush1.bf16.msra.mxu1 %v5175_v53  ;;  %3780 = vmatprep.subr.bf16.mxu0 %v5186_v56  ;;  %v781_v53 = vrot.slane %v5968_v61, %v780_v48  ;;  %v3428_v56 = vadd.f32 %v6055_v37, %v777_v50  ;;  %v5301_v48 = vld [vmem:[%s5630_s14 + $0xe28] ss:$40 sps:$4 sm:$0xff]   ;;  %v5312_v50 = vld [vmem:[%s5630_s14 + $0x984] ss:$40 sps:$4 sm:$0xff]  }
 0x1b6   : > { %3698 = vmatprep.subr.bf16.mxu1 %v5183_v55  ;;  %v5258_v55 = vld [vmem:[%s5630_s14 + $0x6b4] ss:$40 sps:$4 sm:$0xff]  }
 0x1b8   : > { %3781 = vmatpush1.bf16.msra.mxu0 %v5184_v58  ;;  %v5253_v58 = vld [vmem:[%s5630_s14 + $0xba8] ss:$40 sps:$4 sm:$0xff]  }
 0x1b9   : > { %3699 = vmatpush1.bf16.msra.mxu1 %v5181_v57  ;;  %3782 = vmatprep.subr.bf16.mxu0 %v5192_v1  ;;  %v3430_v57 = vadd.f32 %v6060_v40, %v781_v53  ;;  %v5261_v1 = vld [vmem:[%s5630_s14 + $0xbfc] ss:$40 sps:$4 sm:$0xff]   ;;  %v5259_v40 = vld [vmem:[%s5630_s14 + $0xbf8] ss:$40 sps:$4 sm:$0xff]   ;;  %v5315_v53 = vld [vmem:[%s5630_s14 + $0xecc] ss:$40 sps:$4 sm:$0xff]  }
 0x1ba   : > { %3700 = vmatprep.subr.bf16.mxu1 %v5189_v60  ;;  %v5256_v60 = vld [vmem:[%s5630_s14 + $0x6b0] ss:$40 sps:$4 sm:$0xff]  }
 0x1bc   : > { %3783 = vmatpush1.bf16.msra.mxu0 %v5190_v4 }
 0x1bd   : > { %3701 = vmatpush1.bf16.msra.mxu1 %v5187_v2  ;;  %3784 = vmatprep.subr.bf16.mxu0 %v5198_v6  ;;  %v5264_v2 = vld [vmem:[%s5630_s14 + $0x704] ss:$40 sps:$4 sm:$0xff]  }
 0x1be   : > { %3702 = vmatprep.subr.bf16.mxu1 %v5195_v5 }
 0x1c0   : > { %3785 = vmatpush1.bf16.msra.mxu0 %v5196_v8 }
 0x1c1   : > { %3703 = vmatpush1.bf16.msra.mxu1 %v5193_v7  ;;  %3786 = vmatprep.subr.bf16.mxu0 %v5204_v10  ;;  %v5262_v10 = vld [vmem:[%s5630_s14 + $0x700] ss:$40 sps:$4 sm:$0xff]  }
 0x1c2   : > { %3704 = vmatprep.subr.bf16.mxu1 %v5201_v9 }
 0x1c4   : > { %3787 = vmatpush1.bf16.msra.mxu0 %v5202_v12 }
 0x1c5   : > { %3705 = vmatpush1.bf16.msra.mxu1 %v5199_v11  ;;  %3788 = vmatprep.subr.bf16.mxu0 %v5210_v15  ;;  %v5267_v15 = vld [vmem:[%s5630_s14 + $0xc4c] ss:$40 sps:$4 sm:$0xff]  }
 0x1c6   : > { %3706 = vmatprep.subr.bf16.mxu1 %v5207_v14 }
 0x1c8   : > { %3789 = vmatpush1.bf16.msra.mxu0 %v5208_v17 }
 0x1c9   : > { %3707 = vmatpush1.bf16.msra.mxu1 %v5205_v16  ;;  %3790 = vmatprep.subr.bf16.mxu0 %v5216_v20  ;;  %v5270_v16 = vld [vmem:[%s5630_s14 + $0x754] ss:$40 sps:$4 sm:$0xff]   ;;  %v5265_v20 = vld [vmem:[%s5630_s14 + $0xc48] ss:$40 sps:$4 sm:$0xff]  }
 0x1ca   : > { %3708 = vmatprep.subr.bf16.mxu1 %v5213_v18 }
 0x1cc   : > { %3791 = vmatpush1.bf16.msra.mxu0 %v5214_v24  ;;  %v5273_v24 = vld [vmem:[%s5630_s14 + $0xc9c] ss:$40 sps:$4 sm:$0xff]  }
 0x1cd   : > { %3709 = vmatpush1.bf16.msra.mxu1 %v5211_v21  ;;  %3792 = vmatprep.subr.bf16.mxu0 %v5222_v62  ;;  %v5268_v21 = vld [vmem:[%s5630_s14 + $0x750] ss:$40 sps:$4 sm:$0xff]  }
 0x1ce   : > { %3710 = vmatprep.subr.bf16.mxu1 %v5219_v25  ;;  %v5276_v25 = vld [vmem:[%s5630_s14 + $0x7a4] ss:$40 sps:$4 sm:$0xff]   ;;  %v5271_v62 = vld [vmem:[%s5630_s14 + $0xc98] ss:$40 sps:$4 sm:$0xff]  }
 0x1d0   : > { %3793 = vmatpush1.bf16.msra.mxu0 %v5220_v27  ;;  %v5279_v27 = vld [vmem:[%s5630_s14 + $0xcec] ss:$40 sps:$4 sm:$0xff]  }
 0x1d1   : > { %3711 = vmatpush1.bf16.msra.mxu1 %v5217_v26  ;;  %3803 = vmatprep.subr.bf16.mxu0 %v5228_v30  ;;  %v5274_v26 = vld [vmem:[%s5630_s14 + $0x7a0] ss:$40 sps:$4 sm:$0xff]  }
 0x1d2   : > { %3721 = vmatprep.subr.bf16.mxu1 %v5225_v29  ;;  %v5282_v29 = vld [vmem:[%s5630_s14 + $0x7f4] ss:$40 sps:$4 sm:$0xff]   ;;  %v5277_v30 = vld [vmem:[%s5630_s14 + $0xce8] ss:$40 sps:$4 sm:$0xff]  }
 0x1d3   : > { %3795 = vmatmul.mubr.bf16.vlgmr.msra.gmra.mrb[20].mxu0 %v5728_v13  ;;  %v5235_v13 = vld [vmem:[%s5630_s14 + $0xab8] ss:$40 sps:$4 sm:$0xff]  }
 0x1d4   : > { %3713 = vmatmul.mubr.bf16.vlgmr.msra.gmra.mrb[16].mxu1 %v5736_v19  ;;  %3804 = vmatpush1.bf16.msra.mxu0 %v5226_v32  ;;  %v5285_v32 = vld [vmem:[%s5630_s14 + $0xd3c] ss:$40 sps:$4 sm:$0xff]  }
 0x1d5   : > { %3722 = vmatpush1.bf16.msra.mxu1 %v5223_v31  ;;  %3805 = vmatprep.subr.bf16.mxu0 %v5234_v34  ;;  %v5280_v31 = vld [vmem:[%s5630_s14 + $0x7f0] ss:$40 sps:$4 sm:$0xff]  }
 0x1d6   : > { %3723 = vmatprep.subr.bf16.mxu1 %v5231_v33  ;;  %3753 = vmatprep.mubr.bf16.mxu1 %v5742_v23  ;;  %v5288_v33 = vld [vmem:[%s5630_s14 + $0x844] ss:$40 sps:$4 sm:$0xff]   ;;  %v5283_v34 = vld [vmem:[%s5630_s14 + $0xd38] ss:$40 sps:$4 sm:$0xff]  }
 0x1d7   : > { %3835 = vmatprep.mubr.bf16.mxu0 %v5714_v3  ;;  %v5244_v3 = vld [vmem:[%s5630_s14 + $0x610] ss:$40 sps:$4 sm:$0xff]  }
 0x1d8   : > { %3806 = vmatpush1.bf16.msra.mxu0 %v5232_v36  ;;  %v5291_v36 = vld [vmem:[%s5630_s14 + $0xd8c] ss:$40 sps:$4 sm:$0xff]  }
 0x1d9   : > { %3724 = vmatpush1.bf16.msra.mxu1 %v5229_v35  ;;  %3807 = vmatprep.subr.bf16.mxu0 %v5240_v43  ;;  %v5286_v35 = vld [vmem:[%s5630_s14 + $0x840] ss:$40 sps:$4 sm:$0xff]  }
 0x1da   : > { %3725 = vmatprep.subr.bf16.mxu1 %v5237_v39  ;;  %v5294_v39 = vld [vmem:[%s5630_s14 + $0x894] ss:$40 sps:$4 sm:$0xff]   ;;  %v5289_v43 = vld [vmem:[%s5630_s14 + $0xd88] ss:$40 sps:$4 sm:$0xff]  }
 0x1dc   : > { %3808 = vmatpush1.bf16.msra.mxu0 %v5238_v44  ;;  %v5297_v44 = vld [vmem:[%s5630_s14 + $0xddc] ss:$40 sps:$4 sm:$0xff]  }
 0x1dd   : > { %3726 = vmatpush1.bf16.msra.mxu1 %v5235_v13  ;;  %3809 = vmatprep.subr.bf16.mxu0 %v5246_v46  ;;  %v5292_v13 = vld [vmem:[%s5630_s14 + $0x890] ss:$40 sps:$4 sm:$0xff]  }
 0x1de   : > { %3727 = vmatprep.subr.bf16.mxu1 %v5243_v45  ;;  %v5300_v45 = vld [vmem:[%s5630_s14 + $0x8e4] ss:$40 sps:$4 sm:$0xff]   ;;  %v5295_v46 = vld [vmem:[%s5630_s14 + $0xdd8] ss:$40 sps:$4 sm:$0xff]  }
 0x1e0   : > { %3810 = vmatpush1.bf16.msra.mxu0 %v5244_v3  ;;  %v5306_v3 = vld [vmem:[%s5630_s14 + $0x934] ss:$40 sps:$4 sm:$0xff]  }
 0x1e1   : > { %3728 = vmatpush1.bf16.msra.mxu1 %v5241_v22  ;;  %3811 = vmatprep.subr.bf16.mxu0 %v5252_v28  ;;  %v5303_v22 = vld [vmem:[%s5630_s14 + $0xe2c] ss:$40 sps:$4 sm:$0xff]   ;;  %v5309_v28 = vld [vmem:[%s5630_s14 + $0xe7c] ss:$40 sps:$4 sm:$0xff]  }
 0x1e2   : > { %3729 = vmatprep.subr.bf16.mxu1 %v5249_v49  ;;  %v5304_v49 = vld [vmem:[%s5630_s14 + $0x930] ss:$40 sps:$4 sm:$0xff]  }
 0x1e4   : > { %3812 = vmatpush1.bf16.msra.mxu0 %v5250_v52  ;;  %v5310_v52 = vld [vmem:[%s5630_s14 + $0x980] ss:$40 sps:$4 sm:$0xff]  }
 0x1e5   : > { %3730 = vmatpush1.bf16.msra.mxu1 %v5247_v51  ;;  %3813 = vmatprep.subr.bf16.mxu0 %v5258_v55  ;;  %v5307_v51 = vld [vmem:[%s5630_s14 + $0xe78] ss:$40 sps:$4 sm:$0xff]   ;;  %v5313_v55 = vld [vmem:[%s5630_s14 + $0xec8] ss:$40 sps:$4 sm:$0xff]  }
 0x1e6   : > { %3731 = vmatprep.subr.bf16.mxu1 %v5255_v54  ;;  %v3468_v4 = vpop.f32.mrb[8].mxu0  ;;  %v5318_v54 = vld [vmem:[%s5630_s14 + $0x9d4] ss:$40 sps:$4 sm:$0xff]  }
 0x1e7   : > { %v3509_v5 = vpop.f32.mrb[8].mxu1  ;;  %v3469_v6 = vadd.f32 %v3468_v4, %v3428_v56  ;;  %v3470_v7 = vpop.f32.mrb[9].mxu0  ;;  %v5316_v56 = vld [vmem:[%s5630_s14 + $0x9d0] ss:$40 sps:$4 sm:$0xff]   ;;  %v5325_v4 = vld [vmem:[%s5630_s14 + $0xac0] ss:$40 sps:$4 sm:$0xff]  }
 0x1e8   : > { %v3511_v8 = vpop.f32.mrb[9].mxu1  ;;  %v3471_v37 = vadd.f32 %v3470_v7, %v3430_v57  ;;  %v3472_v9 = vpop.f32.mrb[10].mxu0  ;;  %3814 = vmatpush1.bf16.msra.mxu0 %v5256_v60  ;;  %v5321_v57 = vld [vmem:[%s5630_s14 + $0xa24] ss:$40 sps:$4 sm:$0xff]   ;;  %v5324_v60 = vld [vmem:[%s5630_s14 + $0xa74] ss:$40 sps:$4 sm:$0xff]  }
 0x1e9   : > { %3732 = vmatpush1.bf16.msra.mxu1 %v5253_v58  ;;  %v3513_v11 = vpop.f32.mrb[10].mxu1  ;;  %v6141_v12 = vadd.f32 %v3509_v5, %v3469_v6  ;;  %v3473_v14 = vpop.f32.mrb[11].mxu0  ;;  %3815 = vmatprep.subr.bf16.mxu0 %v5264_v2  ;;  %v5319_v58 = vld [vmem:[%s5630_s14 + $0xa20] ss:$40 sps:$4 sm:$0xff]   ;;  %v5327_v2 = vld [vmem:[%s5630_s14 + $0xac4] ss:$40 sps:$4 sm:$0xff]  }
 0x1ea   : > { %3733 = vmatprep.subr.bf16.mxu1 %v5261_v1  ;;  %v3514_v17 = vpop.f32.mrb[11].mxu1  ;;  %v6145_v18 = vadd.f32 %v3511_v8, %v3471_v37  ;;  %v5322_v1 = vld [vmem:[%s5630_s14 + $0xa70] ss:$40 sps:$4 sm:$0xff]   ;;  %v5330_v5 = vld [vmem:[%s5630_s14 + $0xb14] ss:$40 sps:$4 sm:$0xff]   ;;  %v788_v37 = vsub.s32 5, %v5681_v42 }
 0x1eb   : > { %v5328_v6 = vld [vmem:[%s5630_s14 + $0xb10] ss:$40 sps:$4 sm:$0xff]   ;;  %v5333_v7 = vld [vmem:[%s5630_s14 + $0xb64] ss:$40 sps:$4 sm:$0xff]   ;;  %v5331_v8 = vld [vmem:[%s5630_s14 + $0xb60] ss:$40 sps:$4 sm:$0xff]  }
 0x1ec   : > { %3816 = vmatpush1.bf16.msra.mxu0 %v5262_v10  ;;  %v5334_v10 = vld [vmem:[%s5630_s14 + $0xbb0] ss:$40 sps:$4 sm:$0xff]   ;;  %v5339_v11 = vld [vmem:[%s5630_s14 + $0xc04] ss:$40 sps:$4 sm:$0xff]  }
 0x1ed   : > { %3734 = vmatpush1.bf16.msra.mxu1 %v5259_v40  ;;  %3817 = vmatprep.subr.bf16.mxu0 %v5270_v16  ;;  %v789_v40 = vrot.slane %v5968_v61, %v788_v37 }
 0x1ee   : > { %3735 = vmatprep.subr.bf16.mxu1 %v5267_v15 }
 0x1f0   : > { %3818 = vmatpush1.bf16.msra.mxu0 %v5268_v21 }
 0x1f1   : > { %3736 = vmatpush1.bf16.msra.mxu1 %v5265_v20  ;;  %3819 = vmatprep.subr.bf16.mxu0 %v5276_v25  ;;  %v5337_v25 = vld [vmem:[%s5630_s14 + $0xc00] ss:$40 sps:$4 sm:$0xff]  }
 0x1f2   : > { %3737 = vmatprep.subr.bf16.mxu1 %v5273_v24 }
 0x1f4   : > { %3820 = vmatpush1.bf16.msra.mxu0 %v5274_v26 }
 0x1f5   : > { %3738 = vmatpush1.bf16.msra.mxu1 %v5271_v62  ;;  %3821 = vmatprep.subr.bf16.mxu0 %v5282_v29 }
 0x1f6   : > { %3739 = vmatprep.subr.bf16.mxu1 %v5279_v27  ;;  %v5342_v27 = vld [vmem:[%s5630_s14 + $0xc54] ss:$40 sps:$4 sm:$0xff]  }
 0x1f8   : > { %3822 = vmatpush1.bf16.msra.mxu0 %v5280_v31  ;;  %v5340_v31 = vld [vmem:[%s5630_s14 + $0xc50] ss:$40 sps:$4 sm:$0xff]  }
 0x1f9   : > { %3740 = vmatpush1.bf16.msra.mxu1 %v5277_v30  ;;  %3823 = vmatprep.subr.bf16.mxu0 %v5288_v33  ;;  %v5343_v33 = vld [vmem:[%s5630_s14 + $0xca0] ss:$40 sps:$4 sm:$0xff]  }
 0x1fa   : > { %3741 = vmatprep.subr.bf16.mxu1 %v5285_v32  ;;  %v5345_v32 = vld [vmem:[%s5630_s14 + $0xca4] ss:$40 sps:$4 sm:$0xff]  }
 0x1fc   : > { %3824 = vmatpush1.bf16.msra.mxu0 %v5286_v35  ;;  %v5346_v35 = vld [vmem:[%s5630_s14 + $0xcf0] ss:$40 sps:$4 sm:$0xff]  }
 0x1fd   : > { %3742 = vmatpush1.bf16.msra.mxu1 %v5283_v34  ;;  %3825 = vmatprep.subr.bf16.mxu0 %v5294_v39  ;;  %v5348_v34 = vld [vmem:[%s5630_s14 + $0xcf4] ss:$40 sps:$4 sm:$0xff]   ;;  %v5349_v39 = vld [vmem:[%s5630_s14 + $0xd40] ss:$40 sps:$4 sm:$0xff]  }
 0x1fe   : > { %3743 = vmatprep.subr.bf16.mxu1 %v5291_v36  ;;  %v5351_v36 = vld [vmem:[%s5630_s14 + $0xd44] ss:$40 sps:$4 sm:$0xff]  }
 0x200   : > { %3826 = vmatpush1.bf16.msra.mxu0 %v5292_v13  ;;  %v5352_v13 = vld [vmem:[%s5630_s14 + $0xd90] ss:$40 sps:$4 sm:$0xff]  }
 0x201   : > { %3744 = vmatpush1.bf16.msra.mxu1 %v5289_v43  ;;  %3827 = vmatprep.subr.bf16.mxu0 %v5300_v45  ;;  %v5354_v43 = vld [vmem:[%s5630_s14 + $0xd94] ss:$40 sps:$4 sm:$0xff]   ;;  %v5355_v45 = vld [vmem:[%s5630_s14 + $0xde0] ss:$40 sps:$4 sm:$0xff]  }
 0x202   : > { %3745 = vmatprep.subr.bf16.mxu1 %v5297_v44  ;;  %v5357_v44 = vld [vmem:[%s5630_s14 + $0xde4] ss:$40 sps:$4 sm:$0xff]  }
 0x204   : > { %3828 = vmatpush1.bf16.msra.mxu0 %v5298_v47  ;;  %v5358_v47 = vld [vmem:[%s5630_s14 + $0xe30] ss:$40 sps:$4 sm:$0xff]  }
 0x205   : > { %3746 = vmatpush1.bf16.msra.mxu1 %v5295_v46  ;;  %3829 = vmatprep.subr.bf16.mxu0 %v5306_v3  ;;  %v5360_v46 = vld [vmem:[%s5630_s14 + $0xe34] ss:$40 sps:$4 sm:$0xff]   ;;  %v5361_v3 = vld [vmem:[%s5630_s14 + $0xe80] ss:$40 sps:$4 sm:$0xff]  }
 0x206   : > { %3747 = vmatprep.subr.bf16.mxu1 %v5303_v22  ;;  %v5363_v22 = vld [vmem:[%s5630_s14 + $0xe84] ss:$40 sps:$4 sm:$0xff]  }
 0x208   : > { %3830 = vmatpush1.bf16.msra.mxu0 %v5304_v49  ;;  %v5364_v49 = vld [vmem:[%s5630_s14 + $0xed0] ss:$40 sps:$4 sm:$0xff]  }
 0x209   : > { %3748 = vmatpush1.bf16.msra.mxu1 %v5301_v48  ;;  %3831 = vmatprep.subr.bf16.mxu0 %v5312_v50  ;;  %v5366_v48 = vld [vmem:[%s5630_s14 + $0xed4] ss:$40 sps:$4 sm:$0xff]  }
 0x20a   : > { %3749 = vmatprep.subr.bf16.mxu1 %v5309_v28 }
 0x20c   : > { %3832 = vmatpush1.bf16.msra.mxu0 %v5310_v52 }
 0x20d   : > { %3750 = vmatpush1.bf16.msra.mxu1 %v5307_v51  ;;  %3833 = vmatprep.subr.bf16.mxu0 %v5318_v54  ;;  %v5485_v54 = vmov 1983009808  }
 0x20e   : > { %3751 = vmatprep.subr.bf16.mxu1 %v5315_v53 }
 0x210   : > { %3834 = vmatpush1.bf16.msra.mxu0 %v5316_v56 }
 0x211   : > { %3752 = vmatpush1.bf16.msra.mxu1 %v5313_v55  ;;  %3844 = vmatprep.subr.bf16.mxu0 %v5321_v57  ;;  %v3906_v55 = vunpack.c.l.s4 %v5485_v54 }
 0x213   : > { %3836 = vmatmul.mubr.bf16.vlgmr.msra.gmra.mrb[20].mxu0 %v5736_v19  ;;  %v784_v19 = vsub.s32 4, %v5681_v42 }
 0x214   : > { %3754 = vmatmul.mubr.bf16.vlgmr.msra.gmra.mrb[16].mxu1 %v5707_v63  ;;  %3845 = vmatpush1.bf16.msra.mxu0 %v5319_v58  ;;  %v3907_v58 = vunpack.c.0.s8 %v3906_v55 }
 0x215   : > { %3876 = vmatprep.mubr.bf16.mxu0 %v5742_v23  ;;  %3846 = vmatprep.subr.bf16.mxu0 %v5324_v60  ;;  %v5336_v23 = vld [vmem:[%s5630_s14 + $0xbb4] ss:$40 sps:$4 sm:$0xff]   ;;  %v785_v9 = vrot.slane %v5968_v61, %v784_v19  ;;  %v796_v19 = vsub.s32 7, %v5681_v42 }
 0x216   : > { %v3910_v60 = vsub.s32 %v3907_v58, %v5681_v42 }
 0x218   : > { %3847 = vmatpush1.bf16.msra.mxu0 %v5322_v1  ;;  %v3900_v1 = vld [vmem:[%s6233_s5] sm:$0xff] }
 0x219   : > { %3848 = vmatprep.subr.bf16.mxu0 %v5327_v2  ;;  %v3911_v2 = vrot.slane %v3900_v1, %v3910_v60 }
 0x21c   : > { %3849 = vmatpush1.bf16.msra.mxu0 %v5325_v4 }
 0x21d   : > { %3850 = vmatprep.subr.bf16.mxu0 %v5330_v5 }
 0x220   : > { %3851 = vmatpush1.bf16.msra.mxu0 %v5328_v6 }
 0x221   : > { %3852 = vmatprep.subr.bf16.mxu0 %v5333_v7  ;;  %v792_v7 = vsub.s32 6, %v5681_v42 }
 0x224   : > { %3853 = vmatpush1.bf16.msra.mxu0 %v5331_v8  ;;  %v5378_v8 = vld [vmem:[%s5636_s8] sm:$0xff] }
 0x225   : > { %3854 = vmatprep.subr.bf16.mxu0 %v5336_v23  ;;  %v793_v37 = vrot.slane %v5378_v8, %v792_v7  ;;  %v797_v23 = vrot.slane %v5378_v8, %v796_v19 }
 0x226   : > { %v3550_v14 = vpop.f32.mrb[12].mxu0 }
 0x227   : > { %v3591_v15 = vpop.f32.mrb[12].mxu1  ;;  %v3551_v16 = vadd.f32 %v3550_v14, %v785_v9  ;;  %v3552_v17 = vpop.f32.mrb[13].mxu0 }
 0x228   : > { %v3593_v20 = vpop.f32.mrb[13].mxu1  ;;  %v3553_v21 = vadd.f32 %v3552_v17, %v789_v40  ;;  %v3554_v24 = vpop.f32.mrb[14].mxu0  ;;  %3855 = vmatpush1.bf16.msra.mxu0 %v5334_v10 }
 0x229   : > { %v3595_v62 = vpop.f32.mrb[14].mxu1  ;;  %v3592_v61 = vadd.f32 %v3591_v15, %v3551_v16  ;;  %v3555_v26 = vpop.f32.mrb[15].mxu0  ;;  %3856 = vmatprep.subr.bf16.mxu0 %v5339_v11  ;;  %v3919_v24 = vcombine.high %v3911_v2, %v3911_v2 }
 0x22a   : > { %v3596_v29 = vpop.f32.mrb[15].mxu1  ;;  %v3594_v30 = vadd.f32 %v3593_v20, %v3553_v21 }
 0x22c   : > { %3857 = vmatpush1.bf16.msra.mxu0 %v5337_v25 }
 0x22d   : > { %3858 = vmatprep.subr.bf16.mxu0 %v5342_v27 }
 0x230   : > { %3859 = vmatpush1.bf16.msra.mxu0 %v5340_v31 }
 0x231   : > { %3860 = vmatprep.subr.bf16.mxu0 %v5345_v32  ;;  %v763_v32 = vld [vmem:[%s5636_s8 + $0x8] sm:$0x3] }
 0x234   : > { %3861 = vmatpush1.bf16.msra.mxu0 %v5343_v33  ;;  %v801_v33 = vrot.slane %v763_v32, %v768_v59 }
 0x235   : > { %3862 = vmatprep.subr.bf16.mxu0 %v5348_v34  ;;  %v805_v34 = vrot.slane %v763_v32, %v772_v0 }
 0x238   : > { %3863 = vmatpush1.bf16.msra.mxu0 %v5346_v35 }
 0x239   : > { %3864 = vmatprep.subr.bf16.mxu0 %v5351_v36 }
 0x23c   : > { %3865 = vmatpush1.bf16.msra.mxu0 %v5349_v39 }
 0x23d   : > { %3866 = vmatprep.subr.bf16.mxu0 %v5354_v43 }
 0x240   : > { %3867 = vmatpush1.bf16.msra.mxu0 %v5352_v13 }
 0x241   : > { %3868 = vmatprep.subr.bf16.mxu0 %v5357_v44 }
 0x244   : > { %3869 = vmatpush1.bf16.msra.mxu0 %v5355_v45 }
 0x245   : > { %3870 = vmatprep.subr.bf16.mxu0 %v5360_v46 }
 0x248   : > { %3871 = vmatpush1.bf16.msra.mxu0 %v5358_v47 }
 0x249   : > { %3872 = vmatprep.subr.bf16.mxu0 %v5363_v22  ;;  %v4567_v22 = vld.sshfl [vmem:[%s6233_s5 + $0x8] sm:$0x3 pattern:$0x76325410] }
 0x24c   : > { %3873 = vmatpush1.bf16.msra.mxu0 %v5361_v3 }
 0x24d   : > { %3874 = vmatprep.subr.bf16.mxu0 %v5366_v48 }
 0x250   : > { %3875 = vmatpush1.bf16.msra.mxu0 %v5364_v49 }
 0x253   : > { %3877 = vmatmul.mubr.bf16.vlgmr.msra.gmra.mrb[20].mxu0 %v5707_v63 }
 0x266   : > { %v3632_v28 = vpop.f32.mrb[16].mxu0 }
 0x267   : > { %v6223_v50 = vadd.f32 %v3632_v28, %v3592_v61  ;;  %v3634_v51 = vpop.f32.mrb[17].mxu0 }
 0x268   : > { %v3635_v52 = vadd.f32 %v3634_v51, %v3594_v30  ;;  %v3636_v53 = vpop.f32.mrb[18].mxu0 }
 0x269   : > { %v3637_v56 = vpop.f32.mrb[19].mxu0 }
 0x26a   : > { %v3885_v57 = vmul.f32 0.5, %v3635_v52 }
 0x26c   : > { %v3890_v63 = vmul.f32 1.442695, %v3885_v57 }
 0x26e   : > { %5368 = vpow2.f32 %v3890_v63 }
 0x278   : > { %v5369_v4 = vpop.eup %5368 }
 0x279   : > { %v3933_v5 = vmul.f32 %v5369_v4, %v3911_v2 }
 0x27b   : > { %v3938_v6 = vadd.f32 %v3933_v5, %v6058_v38  ;;  %v3904_v38 = vcombine.high %v3900_v1, %v3900_v1 }
 0x27d   : > { %v3918_v25 = vrot.slane %v3904_v38, %v3910_v60 }
 0x27f   : > { %v3920_v47 = vcombine.high %v3918_v25, %v3918_v25 }
 0x2e7   : > { %v3755_v9 = vpop.f32.mrb[16].mxu1 }
 0x2e8   : > { %v4573_v40 = vadd.f32 %v3755_v9, %v793_v37  ;;  %v3757_v10 = vpop.f32.mrb[17].mxu1 }
 0x2e9   : > { %v4574_v11 = vadd.f32 %v3757_v10, %v797_v23  ;;  %v3759_v14 = vpop.f32.mrb[18].mxu1 }
 0x2ea   : > { %v3886_v15 = vmul.f32 0.5, %v4573_v40  ;;  %v3760_v16 = vpop.f32.mrb[19].mxu1 }
 0x2eb   : > { %v3887_v17 = vmul.f32 0.5, %v4574_v11 }
 0x2ec   : > { %v3892_v20 = vmul.f32 1.442695, %v3886_v15 }
 0x2ed   : > { %v3894_v21 = vmul.f32 1.442695, %v3887_v17 }
 0x2ee   : > { %5370 = vpow2.f32 %v3892_v20 }
 0x2ef   : > { %5372 = vpow2.f32 %v3894_v21 }
 0x2f8   : > { %v5371_v62 = vpop.eup %5370 }
 0x2f9   : > { %v5373_v61 = vpop.eup %5372  ;;  %v3934_v26 = vmul.f32 %v5371_v62, %v3919_v24 }
 0x2fa   : > { %v3935_v27 = vmul.f32 %v5373_v61, %v3918_v25 }
 0x2fb   : > { %v3939_v29 = vadd.f32 %v3934_v26, %v6063_v41 }
 0x2fc   : > { %v3940_v30 = vadd.f32 %v3935_v27, %v6141_v12 }
 0x2fd   : > { %v3948_v31 = vcombine.low %v3938_v6, %v3939_v29 }
 0x2ff   : > { %v3956_v51 = vrot.slane %v3948_v31, %v3910_v60 }
 0x326   : > { %v3878_v35 = vpop.f32.mrb[20].mxu0 }
 0x327   : > { %v4575_v36 = vadd.f32 %v3878_v35, %v801_v33  ;;  %v3880_v39 = vpop.f32.mrb[21].mxu0 }
 0x328   : > { %v4576_v43 = vadd.f32 %v3880_v39, %v805_v34  ;;  %v3882_v13 = vpop.f32.mrb[22].mxu0 }
 0x329   : > { %v3888_v44 = vmul.f32 0.5, %v4575_v36  ;;  %v3883_v45 = vpop.f32.mrb[23].mxu0 }
 0x32a   : > { %v3889_v41 = vmul.f32 0.5, %v4576_v43 }
 0x32b   : > { %v3896_v46 = vmul.f32 1.442695, %v3888_v44 }
 0x32c   : > { %v3898_v12 = vmul.f32 1.442695, %v3889_v41 }
 0x32d   : > { %5374 = vpow2.f32 %v3896_v46 }
 0x32e   : > { %5376 = vpow2.f32 %v3898_v12 }
 0x337   : > { %v5375_v3 = vpop.eup %5374 }
 0x338   : > { %v5377_v59 = vpop.eup %5376  ;;  %v3936_v48 = vmul.f32 %v5375_v3, %v3920_v47 }
 0x339   : > { %v3937_v42 = vmul.f32 %v5377_v59, %v4567_v22 }
 0x33a   : > { %v3941_v0 = vadd.f32 %v3936_v48, %v6145_v18 }
 0x33b   : > { %v3942_v49 = vadd.f32 %v3937_v42, %v6223_v50 }
 0x33c   : > { %v3949_v28 = vcombine.low %v3940_v30, %v3941_v0 }
 0x33d   : > { %4568 = vst.sshfl [vmem:[%s279_s26 + $0x8] sm:$0x3 pattern:$0x76325410] %v3942_v49 }
 0x33e   : > { %v3963_v52 = vrot.slane %v3949_v28, %v3910_v60 }
 0x340   : > { %v3964_v53 = vcombine.low %v3956_v51, %v3963_v52 }
 0x342   : > { %3974 = vst [vmem:[%s279_s26] sm:$0xff] %v3964_v53 }
 0x343 PF: > { %p17_p8 = scmp.ge.s32.totalorder %s5531_s20, 7   ;;  %s6280_s15 = smov %s5469_s16 }
 0x344   : > { %s6281_s16 = smov %s5473_s17  ;;  %s6282_s17 = smov %s5541_s23 }
 0x345   : > { %s6283_s18 = smov %s5531_s20  ;;  %19 = sbr.rel (!%p17_p8) target bundleno = 5 (0x5), region = 92 }
 0x34c   :  { %3998 = vsyncpa [#allocation3], 1 }
 0x34d   :  { %4000 = vsyncpa [#allocation3 + $0x1], 1 }
 0x34e   :  { %4001 = vsyncpa [#allocation5], 1 }
 0x34f   :  { %4003 = vsyncpa [#allocation5 + $0x1], 1 }

// kernel: etcnet_forward.3
= control target key start
LH: loop header
LB: loop body
LE: loop exit
PB: predicated region body
PF: predicated region fallthrough
CT: control target
= control target key end

     0   :  { %vm392_vm0 = vcmask 1040384   ;;  %v13895_v3 = vmov 0   ;;  %vm295_vm1 = vcmask 400384   ;;  %s18643_s0 = inlined_call_operand.vmem [shape: bf16[512,49], index: 0, kind: input, shape index: {}]   ;;  %s18644_s1 = inlined_call_operand.vmem [shape: bf16[49,64], index: 1, kind: input, shape index: {}]   ;;  %s18645_s2 = inlined_call_operand.vmem [shape: bf16[64,2048], index: 2, kind: input, shape index: {}]   ;;  %s18646_s3 = inlined_call_operand.vmem [shape: f32[1,2048], index: 3, kind: input, shape index: {}]   ;;  %s18647_s4 = inlined_call_operand.vmem [shape: bf16[2048,1024], index: 4, kind: input, shape index: {}]   ;;  %s18648_s5 = inlined_call_operand.vmem [shape: f32[1,1024], index: 5, kind: input, shape index: {}]   ;;  %s18649_s6 = inlined_call_operand.vmem [shape: bf16[1024,512], index: 6, kind: input, shape index: {}]   ;;  %s18650_s7 = inlined_call_operand.vmem [shape: f32[1,512], index: 7, kind: input, shape index: {}]   ;;  %s18651_s8 = inlined_call_operand.vmem [shape: bf16[512,128], index: 8, kind: input, shape index: {}]   ;;  %s18652_s9 = inlined_call_operand.vmem [shape: f32[1,128], index: 9, kind: input, shape index: {}]   ;;  %s18653_s10 = inlined_call_operand.vmem [shape: bf16[128,10], index: 10, kind: input, shape index: {}]   ;;  %s18654_s11 = inlined_call_operand.vmem [shape: f32[1,10], index: 11, kind: input, shape index: {}]   ;;  %s18655_s12 = inlined_call_operand.hbm [shape: f32[2,10], index: 12, kind: output, shape index: {}]  }
   0x1   :  { %v13408_v0 = vld [vmem:[%s18644_s1] sm:$0xff]   ;;  %v13409_v1 = vld [vmem:[%s18644_s1 + $0x8] sm:$0xff]   ;;  %v13410_v2 = vld [vmem:[%s18644_s1 + $0x10] sm:$0xff]   ;;  %1405 = vmatprep.mubr.bf16.mxu1 %v13895_v3  ;;  %v394_v6 = vsel %vm392_vm0, 65535, %v13895_v3 }
   0x2   :  { %13164 = vmatprep.subr.bf16.mxu0 %v13408_v0  ;;  %v13411_v4 = vld [vmem:[%s18644_s1 + $0x18] ss:$0 sps:$4 sm:$0x11]   ;;  %v13412_v5 = vld [vmem:[%s18643_s0] sm:$0xff]   ;;  %v13413_v8 = vld [vmem:[%s18643_s0 + $0x8] sm:$0xff]  }
   0x3   :  { %13165 = vmatpush3.bf16.msra.mxu0 %v13408_v0  ;;  %13172 = vmatprep.mubr.msk.bf16.mxu0 %vm295_vm1, %v13412_v5  ;;  %v396_v7 = vand.u32 %v13411_v4, %v394_v6  ;;  %v13414_v9 = vld [vmem:[%s18643_s0 + $0x10] sm:$0xff]   ;;  %v13415_v10 = vld [vmem:[%s18643_s0 + $0x18] sm:$0xff]   ;;  %v13416_v11 = vld [vmem:[%s18643_s0 + $0x20] sm:$0xff]  }
   0x4   :  { %13166 = vmatprep.subr.bf16.mxu0 %v13409_v1  ;;  %v13417_v12 = vld [vmem:[%s18643_s0 + $0x28] sm:$0xff]   ;;  %v13418_v13 = vld [vmem:[%s18643_s0 + $0x30] sm:$0xff]   ;;  %v13419_v14 = vld [vmem:[%s18643_s0 + $0x38] sm:$0xff]  }
   0x5   :  { %v13420_v15 = vld [vmem:[%s18643_s0 + $0x40] sm:$0xff]   ;;  %v13421_v16 = vld [vmem:[%s18643_s0 + $0x48] sm:$0xff]   ;;  %v13422_v17 = vld [vmem:[%s18643_s0 + $0x50] sm:$0xff]  }
   0x6   :  { %v13423_v18 = vld [vmem:[%s18643_s0 + $0x58] sm:$0xff]   ;;  %v13424_v19 = vld [vmem:[%s18643_s0 + $0x60] sm:$0xff]   ;;  %v13425_v20 = vld [vmem:[%s18643_s0 + $0x68] sm:$0xff]  }
   0x7   :  { %13167 = vmatpush3.bf16.msra.mxu0 %v13409_v1  ;;  %v13426_v21 = vld [vmem:[%s18643_s0 + $0x70] sm:$0xff]   ;;  %v13427_v22 = vld [vmem:[%s18643_s0 + $0x78] sm:$0xff]   ;;  %v13428_v23 = vld [vmem:[%s18643_s0 + $0x80] sm:$0xff]  }
   0x8   :  { %13168 = vmatprep.subr.bf16.mxu0 %v13410_v2  ;;  %v13429_v24 = vld [vmem:[%s18643_s0 + $0x88] sm:$0xff]   ;;  %v13430_v25 = vld [vmem:[%s18643_s0 + $0x90] sm:$0xff]   ;;  %v13431_v26 = vld [vmem:[%s18643_s0 + $0x98] sm:$0xff]  }
   0x9   :  { %v13432_v27 = vld [vmem:[%s18643_s0 + $0xa0] sm:$0xff]   ;;  %v13433_v28 = vld [vmem:[%s18643_s0 + $0xa8] sm:$0xff]   ;;  %v13434_v29 = vld [vmem:[%s18643_s0 + $0xb0] sm:$0xff]  }
   0xa   :  { %v13435_v30 = vld [vmem:[%s18643_s0 + $0xb8] sm:$0xff]   ;;  %v13436_v31 = vld [vmem:[%s18643_s0 + $0xc0] sm:$0xff]   ;;  %v13437_v32 = vld [vmem:[%s18643_s0 + $0xc8] sm:$0xff]  }
   0xb   :  { %13169 = vmatpush3.bf16.msra.mxu0 %v13410_v2  ;;  %v13438_v33 = vld [vmem:[%s18643_s0 + $0xd0] sm:$0xff]   ;;  %v13439_v34 = vld [vmem:[%s18643_s0 + $0xd8] sm:$0xff]   ;;  %v13440_v35 = vld [vmem:[%s18643_s0 + $0xe0] sm:$0xff]  }
   0xc   :  { %13170 = vmatprep.subr.bf16.mxu0 %v396_v7  ;;  %v13441_v36 = vld [vmem:[%s18643_s0 + $0xe8] sm:$0xff]   ;;  %v13442_v37 = vld [vmem:[%s18643_s0 + $0xf0] sm:$0xff]   ;;  %v13443_v38 = vld [vmem:[%s18643_s0 + $0xf8] sm:$0xff]  }
   0xf   :  { %13171 = vmatpush3.bf16.msra.mxu0 %v396_v7 }
  0x12   :  { %13173 = vmatmul.mubr.msk.bf16.vlgmr.msra.gmra.mrb[0].mxu0 %vm295_vm1, %v13413_v8 }
  0x13   :  { %13176 = vmatprep.mubr.msk.bf16.mxu0 %vm295_vm1, %v13414_v9 }
  0x1a   :  { %13177 = vmatmul.mubr.msk.bf16.gmra.mrb[4].mxu0 %vm295_vm1, %v13415_v10 }
  0x1b   :  { %13180 = vmatprep.mubr.msk.bf16.mxu0 %vm295_vm1, %v13416_v11 }
  0x22   :  { %13181 = vmatmul.mubr.msk.bf16.gmra.mrb[8].mxu0 %vm295_vm1, %v13417_v12 }
  0x23   :  { %13184 = vmatprep.mubr.msk.bf16.mxu0 %vm295_vm1, %v13418_v13 }
  0x2a   :  { %13185 = vmatmul.mubr.msk.bf16.gmra.mrb[12].mxu0 %vm295_vm1, %v13419_v14 }
  0x2b   :  { %13188 = vmatprep.mubr.msk.bf16.mxu0 %vm295_vm1, %v13420_v15 }
  0x32   :  { %13189 = vmatmul.mubr.msk.bf16.gmra.mrb[16].mxu0 %vm295_vm1, %v13421_v16 }
  0x33   :  { %13192 = vmatprep.mubr.msk.bf16.mxu0 %vm295_vm1, %v13422_v17 }
  0x3a   :  { %13193 = vmatmul.mubr.msk.bf16.gmra.mrb[20].mxu0 %vm295_vm1, %v13423_v18 }
  0x3b   :  { %13196 = vmatprep.mubr.msk.bf16.mxu0 %vm295_vm1, %v13424_v19 }
  0x42   :  { %13197 = vmatmul.mubr.msk.bf16.gmra.mrb[24].mxu0 %vm295_vm1, %v13425_v20 }
  0x43   :  { %13200 = vmatprep.mubr.msk.bf16.mxu0 %vm295_vm1, %v13426_v21 }
  0x4a   :  { %13201 = vmatmul.mubr.msk.bf16.gmra.mrb[28].mxu0 %vm295_vm1, %v13427_v22 }
  0x4b   :  { %13204 = vmatprep.mubr.msk.bf16.mxu0 %vm295_vm1, %v13428_v23 }
  0x52   :  { %13205 = vmatmul.mubr.msk.bf16.gmra.mrb[32].mxu0 %vm295_vm1, %v13429_v24 }
  0x53   :  { %13208 = vmatprep.mubr.msk.bf16.mxu0 %vm295_vm1, %v13430_v25 }
  0x5a   :  { %13209 = vmatmul.mubr.msk.bf16.gmra.mrb[36].mxu0 %vm295_vm1, %v13431_v26 }
  0x5b   :  { %13212 = vmatprep.mubr.msk.bf16.mxu0 %vm295_vm1, %v13432_v27 }
  0x62   :  { %13213 = vmatmul.mubr.msk.bf16.gmra.mrb[40].mxu0 %vm295_vm1, %v13433_v28 }
  0x63   :  { %13216 = vmatprep.mubr.msk.bf16.mxu0 %vm295_vm1, %v13434_v29 }
  0x6a   :  { %13217 = vmatmul.mubr.msk.bf16.gmra.mrb[44].mxu0 %vm295_vm1, %v13435_v30 }
  0x6b   :  { %13220 = vmatprep.mubr.msk.bf16.mxu0 %vm295_vm1, %v13436_v31 }
  0x72   :  { %13221 = vmatmul.mubr.msk.bf16.gmra.mrb[48].mxu0 %vm295_vm1, %v13437_v32 }
  0x73   :  { %13224 = vmatprep.mubr.msk.bf16.mxu0 %vm295_vm1, %v13438_v33 }
  0x7a   :  { %13225 = vmatmul.mubr.msk.bf16.gmra.mrb[52].mxu0 %vm295_vm1, %v13439_v34 }
  0x7b   :  { %13228 = vmatprep.mubr.msk.bf16.mxu0 %vm295_vm1, %v13440_v35 }
  0x82   :  { %13229 = vmatmul.mubr.msk.bf16.gmra.mrb[56].mxu0 %vm295_vm1, %v13441_v36 }
  0x83   :  { %13232 = vmatprep.mubr.msk.bf16.mxu0 %vm295_vm1, %v13442_v37 }
  0x8a   :  { %13233 = vmatmul.mubr.msk.bf16.gmra.mrb[60].mxu0 %vm295_vm1, %v13443_v38 }
  0x8b   :  { %17 = vsyncpa [#allocation3], 0  ;;  %vm751_vm2 = vcmask 523264   ;;  %v895_v49 = vld [vmem:[%s18645_s2] sm:$0xff]  ;;  %v14143_v34 = vld [vmem:[%s18645_s2 + $0x8] sm:$0xff]  ;;  %vm1047_vm3 = vcmask 1041409  }
  0x8c   :  { %v903_v50 = vld [vmem:[%s18645_s2 + $0x40] sm:$0xff]  ;;  %v14148_v35 = vld [vmem:[%s18645_s2 + $0x48] sm:$0xff]  ;;  %vm13897_vm4 = vmmov 0   ;;  %s13898_s18 = smov [#allocation2]   ;;  %vm11597_vm5 = vcmask 74752  }
  0x8d   :  { %v11682_v52 = vcombine.high %v895_v49, %v903_v50  ;;  %v11681_v55 = vcombine.low %v895_v49, %v903_v50  ;;  %v911_v61 = vld [vmem:[%s18645_s2 + $0x80] sm:$0xff]  ;;  %v11684_v37 = vcombine.high %v14143_v34, %v14148_v35 }
  0x8e   :  { %v919_v62 = vld [vmem:[%s18645_s2 + $0xc0] sm:$0xff] }
  0x8f   :  { %1373 = vmatprep.subr.bf16.mxu1 %v11682_v52  ;;  %v11698_v1 = vcombine.high %v911_v61, %v919_v62  ;;  %v11697_v6 = vcombine.low %v911_v61, %v919_v62  ;;  %v927_v10 = vld [vmem:[%s18645_s2 + $0x100] sm:$0xff] }
  0x90   :  { %1374 = vmatpush1.bf16.msra.mxu1 %v11681_v55  ;;  %v935_v11 = vld [vmem:[%s18645_s2 + $0x140] sm:$0xff] }
  0x91   :  { %1375 = vmatprep.subr.bf16.mxu1 %v11698_v1  ;;  %v11714_v13 = vcombine.high %v927_v10, %v935_v11  ;;  %v11713_v16 = vcombine.low %v927_v10, %v935_v11  ;;  %v943_v22 = vld [vmem:[%s18645_s2 + $0x180] sm:$0xff] }
  0x92   :  { %v951_v23 = vld [vmem:[%s18645_s2 + $0x1c0] sm:$0xff] }
  0x93   :  { %v11730_v26 = vcombine.high %v943_v22, %v951_v23  ;;  %v11729_v30 = vcombine.low %v943_v22, %v951_v23 }
  0x94   :  { %1376 = vmatpush1.bf16.msra.mxu1 %v11697_v6 }
  0x95   :  { %1377 = vmatprep.subr.bf16.mxu1 %v11714_v13 }
  0x98   :  { %1378 = vmatpush1.bf16.msra.mxu1 %v11713_v16 }
  0x99   :  { %1379 = vmatprep.subr.bf16.mxu1 %v11730_v26 }
  0x9c   :  { %1380 = vmatpush1.bf16.msra.mxu1 %v11729_v30 }
  0x9d   :  { %1414 = vmatprep.subr.bf16.mxu1 %v11684_v37 }
  0xe5   :  { %v13174_v39 = vpop.f32.mrb[0].mxu0 }
  0xe6   :  { %v432_v40 = vpop.f32.mrb[1].mxu0  ;;  %v689_v44 = vmax.f32 %v13174_v39, 0.0 }
  0xe7   :  { %v687_v41 = vmax.f32 %v432_v40, 0.0  ;;  %v13175_v42 = vpop.f32.mrb[2].mxu0  ;;  %v11683_v40 = vcombine.low %v14143_v34, %v14148_v35  ;;  %v944_v34 = vld [vmem:[%s18645_s2 + $0x188] sm:$0xff] }
  0xe8   :  { %v435_v43 = vpop.f32.mrb[3].mxu0  ;;  %v690_v47 = vmax.f32 %v13175_v42, 0.0  ;;  %v755_v53 = vsel %vm751_vm2, %v689_v44, 0.0  ;;  %v952_v35 = vld [vmem:[%s18645_s2 + $0x1c8] sm:$0xff] }
  0xe9   :  { %v688_v45 = vmax.f32 %v435_v43, 0.0  ;;  %v752_v46 = vsel %vm751_vm2, %v687_v41, 0.0 }
  0xea   :  { %v757_v58 = vsel %vm751_vm2, %v690_v47, 0.0 }
  0xeb   :  { %v753_v48 = vsel %vm751_vm2, %v688_v45, 0.0 }
  0xec   :  { %v754_v51 = vadd.f32 %v753_v48, %v752_v46 }
  0xed   :  { %v13178_v54 = vpop.f32.mrb[4].mxu0 }
  0xee   :  { %v756_v56 = vadd.f32 %v755_v53, %v754_v51  ;;  %v448_v57 = vpop.f32.mrb[5].mxu0  ;;  %v693_v2 = vmax.f32 %v13178_v54, 0.0 }
  0xef   :  { %v691_v59 = vmax.f32 %v448_v57, 0.0  ;;  %v13179_v60 = vpop.f32.mrb[6].mxu0 }
  0xf0   :  { %v758_v63 = vadd.f32 %v757_v58, %v756_v56  ;;  %v451_v0 = vpop.f32.mrb[7].mxu0  ;;  %v694_v8 = vmax.f32 %v13179_v60, 0.0  ;;  %v763_v14 = vsel %vm751_vm2, %v693_v2, 0.0 }
  0xf1   :  { %v759_v4 = vsel %vm751_vm2, %v691_v59, 0.0  ;;  %v692_v5 = vmax.f32 %v451_v0, 0.0 }
  0xf2   :  { %v760_v7 = vadd.f32 %v759_v4, %v758_v63  ;;  %v765_v19 = vsel %vm751_vm2, %v694_v8, 0.0 }
  0xf3   :  { %v761_v9 = vsel %vm751_vm2, %v692_v5, 0.0 }
  0xf4   :  { %v762_v12 = vadd.f32 %v761_v9, %v760_v7 }
  0xf5   :  { %v13182_v15 = vpop.f32.mrb[8].mxu0 }
  0xf6   :  { %v764_v17 = vadd.f32 %v763_v14, %v762_v12  ;;  %v464_v18 = vpop.f32.mrb[9].mxu0  ;;  %v697_v27 = vmax.f32 %v13182_v15, 0.0 }
  0xf7   :  { %v695_v20 = vmax.f32 %v464_v18, 0.0  ;;  %v13183_v21 = vpop.f32.mrb[10].mxu0 }
  0xf8   :  { %v766_v24 = vadd.f32 %v765_v19, %v764_v17  ;;  %v467_v25 = vpop.f32.mrb[11].mxu0  ;;  %v698_v32 = vmax.f32 %v13183_v21, 0.0  ;;  %v771_v38 = vsel %vm751_vm2, %v697_v27, 0.0 }
  0xf9   :  { %v767_v28 = vsel %vm751_vm2, %v695_v20, 0.0  ;;  %v696_v29 = vmax.f32 %v467_v25, 0.0 }
  0xfa   :  { %v768_v31 = vadd.f32 %v767_v28, %v766_v24  ;;  %v773_v43 = vsel %vm751_vm2, %v698_v32, 0.0 }
  0xfb   :  { %v769_v33 = vsel %vm751_vm2, %v696_v29, 0.0 }
  0xfc   :  { %v770_v36 = vadd.f32 %v769_v33, %v768_v31 }
  0xfd   :  { %v13186_v39 = vpop.f32.mrb[12].mxu0 }
  0xfe   :  { %v772_v41 = vadd.f32 %v771_v38, %v770_v36  ;;  %v480_v42 = vpop.f32.mrb[13].mxu0  ;;  %v701_v48 = vmax.f32 %v13186_v39, 0.0 }
  0xff   :  { %v699_v44 = vmax.f32 %v480_v42, 0.0  ;;  %v13187_v45 = vpop.f32.mrb[14].mxu0 }
 0x100   :  { %v774_v46 = vadd.f32 %v773_v43, %v772_v41  ;;  %v483_v47 = vpop.f32.mrb[15].mxu0  ;;  %v702_v52 = vmax.f32 %v13187_v45, 0.0  ;;  %v779_v55 = vsel %vm751_vm2, %v701_v48, 0.0 }
 0x101   :  { %v775_v49 = vsel %vm751_vm2, %v699_v44, 0.0  ;;  %v700_v50 = vmax.f32 %v483_v47, 0.0 }
 0x102   :  { %v776_v51 = vadd.f32 %v775_v49, %v774_v46  ;;  %v781_v59 = vsel %vm751_vm2, %v702_v52, 0.0 }
 0x103   :  { %v777_v53 = vsel %vm751_vm2, %v700_v50, 0.0 }
 0x104   :  { %v778_v54 = vadd.f32 %v777_v53, %v776_v51 }
 0x105   :  { %v13190_v56 = vpop.f32.mrb[16].mxu0 }
 0x106   :  { %v780_v57 = vadd.f32 %v779_v55, %v778_v54  ;;  %v496_v58 = vpop.f32.mrb[17].mxu0  ;;  %v705_v0 = vmax.f32 %v13190_v56, 0.0 }
 0x107   :  { %v703_v60 = vmax.f32 %v496_v58, 0.0  ;;  %v13191_v61 = vpop.f32.mrb[18].mxu0 }
 0x108   :  { %v782_v62 = vadd.f32 %v781_v59, %v780_v57  ;;  %v499_v63 = vpop.f32.mrb[19].mxu0  ;;  %v706_v5 = vmax.f32 %v13191_v61, 0.0  ;;  %v787_v8 = vsel %vm751_vm2, %v705_v0, 0.0 }
 0x109   :  { %v783_v1 = vsel %vm751_vm2, %v703_v60, 0.0  ;;  %v704_v2 = vmax.f32 %v499_v63, 0.0 }
 0x10a   :  { %v784_v4 = vadd.f32 %v783_v1, %v782_v62  ;;  %v789_v12 = vsel %vm751_vm2, %v706_v5, 0.0 }
 0x10b   :  { %v785_v6 = vsel %vm751_vm2, %v704_v2, 0.0 }
 0x10c   :  { %v786_v7 = vadd.f32 %v785_v6, %v784_v4 }
 0x10d   :  { %v13194_v9 = vpop.f32.mrb[20].mxu0 }
 0x10e   :  { %v788_v10 = vadd.f32 %v787_v8, %v786_v7  ;;  %v512_v11 = vpop.f32.mrb[21].mxu0  ;;  %v709_v17 = vmax.f32 %v13194_v9, 0.0 }
 0x10f   :  { %v707_v13 = vmax.f32 %v512_v11, 0.0  ;;  %v13195_v14 = vpop.f32.mrb[22].mxu0 }
 0x110   :  { %v790_v15 = vadd.f32 %v789_v12, %v788_v10  ;;  %v515_v16 = vpop.f32.mrb[23].mxu0  ;;  %v710_v21 = vmax.f32 %v13195_v14, 0.0  ;;  %v795_v24 = vsel %vm751_vm2, %v709_v17, 0.0 }
 0x111   :  { %v791_v18 = vsel %vm751_vm2, %v707_v13, 0.0  ;;  %v708_v19 = vmax.f32 %v515_v16, 0.0 }
 0x112   :  { %v792_v20 = vadd.f32 %v791_v18, %v790_v15  ;;  %v797_v28 = vsel %vm751_vm2, %v710_v21, 0.0 }
 0x113   :  { %v793_v22 = vsel %vm751_vm2, %v708_v19, 0.0 }
 0x114   :  { %v794_v23 = vadd.f32 %v793_v22, %v792_v20 }
 0x115   :  { %v13198_v25 = vpop.f32.mrb[24].mxu0 }
 0x116   :  { %v796_v26 = vadd.f32 %v795_v24, %v794_v23  ;;  %v528_v27 = vpop.f32.mrb[25].mxu0  ;;  %v713_v33 = vmax.f32 %v13198_v25, 0.0 }
 0x117   :  { %v711_v29 = vmax.f32 %v528_v27, 0.0  ;;  %v13199_v30 = vpop.f32.mrb[26].mxu0 }
 0x118   :  { %v798_v31 = vadd.f32 %v797_v28, %v796_v26  ;;  %v531_v32 = vpop.f32.mrb[27].mxu0  ;;  %v714_v39 = vmax.f32 %v13199_v30, 0.0  ;;  %v803_v43 = vsel %vm751_vm2, %v713_v33, 0.0 }
 0x119   :  { %v799_v36 = vsel %vm751_vm2, %v711_v29, 0.0  ;;  %v712_v37 = vmax.f32 %v531_v32, 0.0 }
 0x11a   :  { %v800_v38 = vadd.f32 %v799_v36, %v798_v31  ;;  %v805_v47 = vsel %vm751_vm2, %v714_v39, 0.0 }
 0x11b   :  { %v801_v41 = vsel %vm751_vm2, %v712_v37, 0.0 }
 0x11c   :  { %v802_v42 = vadd.f32 %v801_v41, %v800_v38 }
 0x11d   :  { %v13202_v44 = vpop.f32.mrb[28].mxu0 }
 0x11e   :  { %v804_v45 = vadd.f32 %v803_v43, %v802_v42  ;;  %v544_v46 = vpop.f32.mrb[29].mxu0  ;;  %v717_v52 = vmax.f32 %v13202_v44, 0.0 }
 0x11f   :  { %v715_v48 = vmax.f32 %v544_v46, 0.0  ;;  %v13203_v49 = vpop.f32.mrb[30].mxu0 }
 0x120   :  { %v806_v50 = vadd.f32 %v805_v47, %v804_v45  ;;  %v547_v51 = vpop.f32.mrb[31].mxu0  ;;  %v718_v56 = vmax.f32 %v13203_v49, 0.0  ;;  %v811_v59 = vsel %vm751_vm2, %v717_v52, 0.0 }
 0x121   :  { %v807_v53 = vsel %vm751_vm2, %v715_v48, 0.0  ;;  %v716_v54 = vmax.f32 %v547_v51, 0.0 }
 0x122   :  { %v808_v55 = vadd.f32 %v807_v53, %v806_v50  ;;  %v813_v63 = vsel %vm751_vm2, %v718_v56, 0.0 }
 0x123   :  { %v809_v57 = vsel %vm751_vm2, %v716_v54, 0.0 }
 0x124   :  { %v810_v58 = vadd.f32 %v809_v57, %v808_v55 }
 0x125   :  { %v13206_v60 = vpop.f32.mrb[32].mxu0 }
 0x126   :  { %v812_v61 = vadd.f32 %v811_v59, %v810_v58  ;;  %v560_v62 = vpop.f32.mrb[33].mxu0  ;;  %v721_v5 = vmax.f32 %v13206_v60, 0.0 }
 0x127   :  { %v719_v0 = vmax.f32 %v560_v62, 0.0  ;;  %v13207_v1 = vpop.f32.mrb[34].mxu0 }
 0x128   :  { %v14176_v2 = vadd.f32 %v813_v63, %v812_v61  ;;  %v563_v4 = vpop.f32.mrb[35].mxu0  ;;  %v722_v8 = vmax.f32 %v13207_v1, 0.0  ;;  %v824_v11 = vsel %vm751_vm2, %v721_v5, 0.0 }
 0x129   :  { %v720_v6 = vmax.f32 %v563_v4, 0.0  ;;  %v821_v7 = vsel %vm751_vm2, %v719_v0, 0.0 }
 0x12a   :  { %v826_v15 = vsel %vm751_vm2, %v722_v8, 0.0 }
 0x12b   :  { %v822_v9 = vsel %vm751_vm2, %v720_v6, 0.0 }
 0x12c   :  { %v823_v10 = vadd.f32 %v822_v9, %v821_v7 }
 0x12d   :  { %v13210_v12 = vpop.f32.mrb[36].mxu0 }
 0x12e   :  { %v825_v13 = vadd.f32 %v824_v11, %v823_v10  ;;  %v576_v14 = vpop.f32.mrb[37].mxu0  ;;  %v725_v20 = vmax.f32 %v13210_v12, 0.0 }
 0x12f   :  { %v723_v16 = vmax.f32 %v576_v14, 0.0  ;;  %v13211_v17 = vpop.f32.mrb[38].mxu0 }
 0x130   :  { %v827_v18 = vadd.f32 %v826_v15, %v825_v13  ;;  %v579_v19 = vpop.f32.mrb[39].mxu0  ;;  %v726_v24 = vmax.f32 %v13211_v17, 0.0  ;;  %v832_v27 = vsel %vm751_vm2, %v725_v20, 0.0 }
 0x131   :  { %v828_v21 = vsel %vm751_vm2, %v723_v16, 0.0  ;;  %v724_v22 = vmax.f32 %v579_v19, 0.0 }
 0x132   :  { %v829_v23 = vadd.f32 %v828_v21, %v827_v18  ;;  %v834_v31 = vsel %vm751_vm2, %v726_v24, 0.0 }
 0x133   :  { %v830_v25 = vsel %vm751_vm2, %v724_v22, 0.0 }
 0x134   :  { %v831_v26 = vadd.f32 %v830_v25, %v829_v23 }
 0x135   :  { %v13214_v28 = vpop.f32.mrb[40].mxu0 }
 0x136   :  { %v833_v29 = vadd.f32 %v832_v27, %v831_v26  ;;  %v592_v30 = vpop.f32.mrb[41].mxu0  ;;  %v729_v38 = vmax.f32 %v13214_v28, 0.0 }
 0x137   :  { %v727_v32 = vmax.f32 %v592_v30, 0.0  ;;  %v13215_v33 = vpop.f32.mrb[42].mxu0 }
 0x138   :  { %v835_v36 = vadd.f32 %v834_v31, %v833_v29  ;;  %v595_v37 = vpop.f32.mrb[43].mxu0  ;;  %v730_v43 = vmax.f32 %v13215_v33, 0.0  ;;  %v840_v46 = vsel %vm751_vm2, %v729_v38, 0.0 }
 0x139   :  { %v836_v39 = vsel %vm751_vm2, %v727_v32, 0.0  ;;  %v728_v41 = vmax.f32 %v595_v37, 0.0 }
 0x13a   :  { %v837_v42 = vadd.f32 %v836_v39, %v835_v36  ;;  %v842_v50 = vsel %vm751_vm2, %v730_v43, 0.0 }
 0x13b   :  { %v838_v44 = vsel %vm751_vm2, %v728_v41, 0.0 }
 0x13c   :  { %v839_v45 = vadd.f32 %v838_v44, %v837_v42 }
 0x13d   :  { %v13218_v47 = vpop.f32.mrb[44].mxu0 }
 0x13e   :  { %v841_v48 = vadd.f32 %v840_v46, %v839_v45  ;;  %v608_v49 = vpop.f32.mrb[45].mxu0  ;;  %v733_v55 = vmax.f32 %v13218_v47, 0.0  ;;  %v1733_v47 = vld [vmem:[%s18647_s4] sm:$0xff] }
 0x13f   :  { %v731_v51 = vmax.f32 %v608_v49, 0.0  ;;  %v13219_v52 = vpop.f32.mrb[46].mxu0  ;;  %v815_v49 = vrot.slane %v14176_v2, 4 }
 0x140   :  { %v843_v53 = vadd.f32 %v842_v50, %v841_v48  ;;  %v611_v54 = vpop.f32.mrb[47].mxu0  ;;  %v734_v59 = vmax.f32 %v13219_v52, 0.0  ;;  %v848_v62 = vsel %vm751_vm2, %v733_v55, 0.0  ;;  %v1737_v48 = vld [vmem:[%s18647_s4 + $0x20] sm:$0xff] }
 0x141   :  { %v844_v56 = vsel %vm751_vm2, %v731_v51, 0.0  ;;  %v732_v57 = vmax.f32 %v611_v54, 0.0  ;;  %v11753_v51 = vcombine.low %v1733_v47, %v1737_v48  ;;  %v11754_v52 = vcombine.high %v1733_v47, %v1737_v48  ;;  %v1781_v47 = vld [vmem:[%s18647_s4 + $0x180] sm:$0xff] }
 0x142   :  { %v845_v58 = vadd.f32 %v844_v56, %v843_v53  ;;  %v850_v4 = vsel %vm751_vm2, %v734_v59, 0.0  ;;  %v1785_v48 = vld [vmem:[%s18647_s4 + $0x1a0] sm:$0xff] }
 0x143   :  { %v846_v60 = vsel %vm751_vm2, %v732_v57, 0.0  ;;  %7919 = vmatprep.subr.bf16.mxu0 %v11754_v52 }
 0x144   :  { %v847_v61 = vadd.f32 %v846_v60, %v845_v58  ;;  %7920 = vmatpush1.bf16.msra.mxu0 %v11753_v51  ;;  %v816_v58 = vadd.f32 %v815_v49, %v14176_v2  ;;  %v1745_v2 = vld [vmem:[%s18647_s4 + $0x60] sm:$0xff] }
 0x145   :  { %v13222_v63 = vpop.f32.mrb[48].mxu0 }
 0x146   :  { %v849_v0 = vadd.f32 %v848_v62, %v847_v61  ;;  %v624_v1 = vpop.f32.mrb[49].mxu0  ;;  %v737_v9 = vmax.f32 %v13222_v63, 0.0 }
 0x147   :  { %v735_v5 = vmax.f32 %v624_v1, 0.0  ;;  %v13223_v6 = vpop.f32.mrb[50].mxu0 }
 0x148   :  { %v851_v7 = vadd.f32 %v850_v4, %v849_v0  ;;  %v627_v8 = vpop.f32.mrb[51].mxu0  ;;  %v738_v13 = vmax.f32 %v13223_v6, 0.0  ;;  %v856_v16 = vsel %vm751_vm2, %v737_v9, 0.0 }
 0x149   :  { %v852_v10 = vsel %vm751_vm2, %v735_v5, 0.0  ;;  %v736_v11 = vmax.f32 %v627_v8, 0.0  ;;  %v817_v8 = vrot.slane %v816_v58, 2 }
 0x14a   :  { %v853_v12 = vadd.f32 %v852_v10, %v851_v7  ;;  %v858_v20 = vsel %vm751_vm2, %v738_v13, 0.0  ;;  %v1741_v7 = vld [vmem:[%s18647_s4 + $0x40] sm:$0xff] }
 0x14b   :  { %v854_v14 = vsel %vm751_vm2, %v736_v11, 0.0  ;;  %v11761_v10 = vcombine.low %v1741_v7, %v1745_v2  ;;  %v11762_v11 = vcombine.high %v1741_v7, %v1745_v2 }
 0x14c   :  { %v855_v15 = vadd.f32 %v854_v14, %v853_v12 }
 0x14d   :  { %v13226_v17 = vpop.f32.mrb[52].mxu0  ;;  %7921 = vmatprep.subr.bf16.mxu0 %v11762_v11  ;;  %v1809_v11 = vld [vmem:[%s18647_s4 + $0x260] sm:$0xff] }
 0x14e   :  { %v857_v18 = vadd.f32 %v856_v16, %v855_v15  ;;  %v640_v19 = vpop.f32.mrb[53].mxu0  ;;  %v741_v25 = vmax.f32 %v13226_v17, 0.0  ;;  %7922 = vmatpush1.bf16.msra.mxu0 %v11761_v10  ;;  %v818_v16 = vadd.f32 %v817_v8, %v816_v58  ;;  %v1789_v58 = vld [vmem:[%s18647_s4 + $0x1c0] sm:$0xff] }
 0x14f   :  { %v739_v21 = vmax.f32 %v640_v19, 0.0  ;;  %v13227_v22 = vpop.f32.mrb[54].mxu0  ;;  %v1805_v10 = vld [vmem:[%s18647_s4 + $0x240] sm:$0xff] }
 0x150   :  { %v859_v23 = vadd.f32 %v858_v20, %v857_v18  ;;  %v643_v24 = vpop.f32.mrb[55].mxu0  ;;  %v742_v29 = vmax.f32 %v13227_v22, 0.0  ;;  %v864_v32 = vsel %vm751_vm2, %v741_v25, 0.0  ;;  %v1749_v20 = vld [vmem:[%s18647_s4 + $0x80] sm:$0xff]  ;;  %v819_v22 = vrot.slane %v818_v16, 1 }
 0x151   :  { %v860_v26 = vsel %vm751_vm2, %v739_v21, 0.0  ;;  %v740_v27 = vmax.f32 %v643_v24, 0.0  ;;  %v1753_v21 = vld [vmem:[%s18647_s4 + $0xa0] sm:$0xff] }
 0x152   :  { %v861_v28 = vadd.f32 %v860_v26, %v859_v23  ;;  %v866_v38 = vsel %vm751_vm2, %v742_v29, 0.0  ;;  %v11769_v24 = vcombine.low %v1749_v20, %v1753_v21  ;;  %v11770_v25 = vcombine.high %v1749_v20, %v1753_v21  ;;  %v1757_v29 = vld [vmem:[%s18647_s4 + $0xc0] sm:$0xff] }
 0x153   :  { %v862_v30 = vsel %vm751_vm2, %v740_v27, 0.0  ;;  %v820_v27 = vadd.f32 %v819_v22, %v818_v16  ;;  %v1817_v16 = vld [vmem:[%s18647_s4 + $0x2a0] sm:$0xff]  ;;  %v11731_v20 = vcombine.low %v944_v34, %v952_v35 }
 0x154   :  { %v863_v31 = vadd.f32 %v862_v30, %v861_v28  ;;  %7923 = vmatprep.subr.bf16.mxu0 %v11770_v25  ;;  %v1761_v30 = vld [vmem:[%s18647_s4 + $0xe0] sm:$0xff] }
 0x155   :  { %v13230_v33 = vpop.f32.mrb[56].mxu0  ;;  %7924 = vmatpush1.bf16.msra.mxu0 %v11769_v24  ;;  %v921_v24 = vld [vmem:[%s18645_s2 + $0xd0] sm:$0xff]  ;;  %v1821_v25 = vld [vmem:[%s18647_s4 + $0x2c0] sm:$0xff] }
 0x156   :  { %v865_v36 = vadd.f32 %v864_v32, %v863_v31  ;;  %v656_v37 = vpop.f32.mrb[57].mxu0  ;;  %v745_v44 = vmax.f32 %v13230_v33, 0.0  ;;  %v1765_v31 = vld [vmem:[%s18647_s4 + $0x100] sm:$0xff]  ;;  %v11777_v33 = vcombine.low %v1757_v29, %v1761_v30 }
 0x157   :  { %v743_v39 = vmax.f32 %v656_v37, 0.0  ;;  %v13231_v41 = vpop.f32.mrb[58].mxu0  ;;  %v1769_v37 = vld [vmem:[%s18647_s4 + $0x120] sm:$0xff] }
 0x158   :  { %v867_v42 = vadd.f32 %v866_v38, %v865_v36  ;;  %v659_v43 = vpop.f32.mrb[59].mxu0  ;;  %v746_v53 = vmax.f32 %v13231_v41, 0.0  ;;  %v872_v56 = vsel %vm751_vm2, %v745_v44, 0.0  ;;  %v11778_v36 = vcombine.high %v1757_v29, %v1761_v30  ;;  %v1777_v41 = vld [vmem:[%s18647_s4 + $0x160] sm:$0xff] }
 0x159   :  { %v868_v45 = vsel %vm751_vm2, %v743_v39, 0.0  ;;  %v744_v46 = vmax.f32 %v659_v43, 0.0  ;;  %v11786_v38 = vcombine.high %v1765_v31, %v1769_v37  ;;  %v1773_v39 = vld [vmem:[%s18647_s4 + $0x140] sm:$0xff]  ;;  %v11785_v44 = vcombine.low %v1765_v31, %v1769_v37 }
 0x15a   :  { %v869_v50 = vadd.f32 %v868_v45, %v867_v42  ;;  %v874_v61 = vsel %vm751_vm2, %v746_v53, 0.0  ;;  %v891_v42 = vmul.f32 0.00390625, %v820_v27  ;;  %7925 = vmatprep.subr.bf16.mxu0 %v11778_v36  ;;  %v11793_v51 = vcombine.low %v1773_v39, %v1777_v41  ;;  %v1829_v31 = vld [vmem:[%s18647_s4 + $0x300] sm:$0xff]  ;;  %v937_v36 = vld [vmem:[%s18645_s2 + $0x150] sm:$0xff] }
 0x15b   :  { %v870_v54 = vsel %vm751_vm2, %v744_v46, 0.0  ;;  %7926 = vmatpush1.bf16.msra.mxu0 %v11777_v33  ;;  %v11794_v46 = vcombine.high %v1773_v39, %v1777_v41  ;;  %v11802_v53 = vcombine.high %v1781_v47, %v1785_v48  ;;  %v929_v33 = vld [vmem:[%s18645_s2 + $0x110] sm:$0xff] }
 0x15c   :  { %v871_v55 = vadd.f32 %v870_v54, %v869_v50  ;;  %7927 = vmatprep.subr.bf16.mxu0 %v11786_v38  ;;  %v893_v49 = vpack.c.bf16 %v891_v42, %v891_v42  ;;  %v912_v54 = vld [vmem:[%s18645_s2 + $0x88] sm:$0xff]  ;;  %v11718_v41 = vcombine.high %v929_v33, %v937_v36  ;;  %v945_v42 = vld [vmem:[%s18645_s2 + $0x190] sm:$0xff] }
 0x15d   :  { %v13234_v57 = vpop.f32.mrb[60].mxu0 }
 0x15e   :  { %v873_v59 = vadd.f32 %v872_v56, %v871_v55  ;;  %v672_v60 = vpop.f32.mrb[61].mxu0  ;;  %v749_v4 = vmax.f32 %v13234_v57, 0.0  ;;  %v1045_v55 = vunpack.c.l.b16 %v893_v49  ;;  %v920_v57 = vld [vmem:[%s18645_s2 + $0xc8] sm:$0xff] }
 0x15f   :  { %v747_v62 = vmax.f32 %v672_v60, 0.0  ;;  %v13235_v63 = vpop.f32.mrb[62].mxu0  ;;  %7928 = vmatpush1.bf16.msra.mxu0 %v11785_v44  ;;  %v11801_v60 = vcombine.low %v1781_v47, %v1785_v48  ;;  %v11699_v2 = vcombine.low %v912_v54, %v920_v57  ;;  %v1841_v47 = vld [vmem:[%s18647_s4 + $0x360] sm:$0xff] }
 0x160   :  { %v875_v0 = vadd.f32 %v874_v61, %v873_v59  ;;  %v675_v1 = vpop.f32.mrb[63].mxu0  ;;  %v750_v12 = vmax.f32 %v13235_v63, 0.0  ;;  %v880_v15 = vsel %vm751_vm2, %v749_v4, 0.0  ;;  %7929 = vmatprep.subr.bf16.mxu0 %v11794_v46  ;;  %v1793_v59 = vld [vmem:[%s18647_s4 + $0x1e0] sm:$0xff]  ;;  %v11700_v63 = vcombine.high %v912_v54, %v920_v57 }
 0x161   :  { %v876_v5 = vsel %vm751_vm2, %v747_v62, 0.0  ;;  %v748_v6 = vmax.f32 %v675_v1, 0.0  ;;  %v1797_v1 = vld [vmem:[%s18647_s4 + $0x200] sm:$0xff]  ;;  %v11809_v7 = vcombine.low %v1789_v58, %v1793_v59 }
 0x162   :  { %v877_v9 = vadd.f32 %v876_v5, %v875_v0  ;;  %v882_v18 = vsel %vm751_vm2, %v750_v12, 0.0  ;;  %v11810_v0 = vcombine.high %v1789_v58, %v1793_v59  ;;  %v1801_v4 = vld [vmem:[%s18647_s4 + $0x220] sm:$0xff]  ;;  %v928_v5 = vld [vmem:[%s18645_s2 + $0x108] sm:$0xff] }
 0x163   :  { %v878_v13 = vsel %vm751_vm2, %v748_v6, 0.0  ;;  %7930 = vmatpush1.bf16.msra.mxu0 %v11793_v51  ;;  %v936_v6 = vld [vmem:[%s18645_s2 + $0x148] sm:$0xff]  ;;  %v11818_v8 = vcombine.high %v1797_v1, %v1801_v4  ;;  %v1837_v46 = vld [vmem:[%s18647_s4 + $0x340] sm:$0xff]  ;;  %v906_v51 = vld [vmem:[%s18645_s2 + $0x58] sm:$0xff] }
 0x164   :  { %v879_v14 = vadd.f32 %v878_v13, %v877_v9  ;;  %7931 = vmatprep.subr.bf16.mxu0 %v11802_v53  ;;  %v11716_v9 = vcombine.high %v928_v5, %v936_v6  ;;  %v11715_v12 = vcombine.low %v928_v5, %v936_v6  ;;  %v11826_v13 = vcombine.high %v1805_v10, %v1809_v11  ;;  %v1845_v58 = vld [vmem:[%s18647_s4 + $0x380] sm:$0xff]  ;;  %v946_v6 = vld [vmem:[%s18645_s2 + $0x198] sm:$0xff] }
 0x165   :  { %v11858_v49 = vcombine.high %v1837_v46, %v1841_v47  ;;  %v1849_v59 = vld [vmem:[%s18647_s4 + $0x3a0] sm:$0xff] }
 0x166   :  { %v881_v17 = vadd.f32 %v880_v15, %v879_v14  ;;  %v11732_v14 = vcombine.high %v944_v34, %v952_v35  ;;  %v1813_v15 = vld [vmem:[%s18647_s4 + $0x280] sm:$0xff] }
 0x167   :  { %7932 = vmatpush1.bf16.msra.mxu0 %v11801_v60  ;;  %v11834_v21 = vcombine.high %v1813_v15, %v1817_v16  ;;  %v11833_v27 = vcombine.low %v1813_v15, %v1817_v16  ;;  %v915_v35 = vld [vmem:[%s18645_s2 + $0xa0] sm:$0xff] }
 0x168   :  { %v883_v19 = vadd.f32 %v882_v18, %v881_v17  ;;  %7933 = vmatprep.subr.bf16.mxu0 %v11810_v0  ;;  %v897_v17 = vld [vmem:[%s18645_s2 + $0x10] sm:$0xff]  ;;  %v930_v0 = vld [vmem:[%s18645_s2 + $0x118] sm:$0xff]  ;;  %v939_v15 = vld [vmem:[%s18645_s2 + $0x160] sm:$0xff] }
 0x169   :  { %v905_v18 = vld [vmem:[%s18645_s2 + $0x50] sm:$0xff] }
 0x16a   :  { %v884_v23 = vrot.slane %v883_v19, 4  ;;  %v11686_v22 = vcombine.high %v897_v17, %v905_v18 }
 0x16b   :  { %7934 = vmatpush1.bf16.msra.mxu0 %v11809_v7  ;;  %v954_v7 = vld [vmem:[%s18645_s2 + $0x1d8] sm:$0xff] }
 0x16c   :  { %v885_v26 = vadd.f32 %v884_v23, %v883_v19  ;;  %7935 = vmatprep.subr.bf16.mxu0 %v11818_v8  ;;  %v11825_v19 = vcombine.low %v1805_v10, %v1809_v11  ;;  %v913_v23 = vld [vmem:[%s18645_s2 + $0x90] sm:$0xff]  ;;  %v11736_v8 = vcombine.high %v946_v6, %v954_v7  ;;  %v907_v10 = vld [vmem:[%s18645_s2 + $0x60] sm:$0xff]  ;;  %v11735_v11 = vcombine.low %v946_v6, %v954_v7  ;;  %v918_v7 = vld [vmem:[%s18645_s2 + $0xb8] sm:$0xff] }
 0x16d   :  { %v11702_v29 = vcombine.high %v913_v23, %v921_v24  ;;  %v11701_v38 = vcombine.low %v913_v23, %v921_v24  ;;  %v908_v23 = vld [vmem:[%s18645_s2 + $0x68] sm:$0xff] }
 0x16e   :  { %v886_v28 = vrot.slane %v885_v26, 2 }
 0x170   :  { %v887_v32 = vadd.f32 %v886_v28, %v885_v26  ;;  %v1825_v26 = vld [vmem:[%s18647_s4 + $0x2e0] sm:$0xff]  ;;  %v11685_v28 = vcombine.low %v897_v17, %v905_v18 }
 0x171   :  { %v11842_v30 = vcombine.high %v1821_v25, %v1825_v26  ;;  %v11841_v37 = vcombine.low %v1821_v25, %v1825_v26  ;;  %v947_v18 = vld [vmem:[%s18645_s2 + $0x1a0] sm:$0xff]  ;;  %v916_v26 = vld [vmem:[%s18645_s2 + $0xa8] sm:$0xff] }
 0x172   :  { %v888_v43 = vrot.slane %v887_v32, 1 }
 0x174   :  { %v889_v45 = vadd.f32 %v888_v43, %v887_v32  ;;  %v1833_v32 = vld [vmem:[%s18647_s4 + $0x320] sm:$0xff]  ;;  %v953_v43 = vld [vmem:[%s18645_s2 + $0x1d0] sm:$0xff] }
 0x175   :  { %v11850_v39 = vcombine.high %v1829_v31, %v1833_v32  ;;  %v11849_v44 = vcombine.low %v1829_v31, %v1833_v32  ;;  %v11734_v48 = vcombine.high %v945_v42, %v953_v43  ;;  %v11733_v53 = vcombine.low %v945_v42, %v953_v43  ;;  %v940_v31 = vld [vmem:[%s18645_s2 + $0x168] sm:$0xff]  ;;  %v909_v42 = vld [vmem:[%s18645_s2 + $0x70] sm:$0xff] }
 0x176   :  { %v892_v50 = vmul.f32 0.00390625, %v889_v45  ;;  %v11717_v45 = vcombine.low %v929_v33, %v937_v36  ;;  %v948_v36 = vld [vmem:[%s18645_s2 + $0x1a8] sm:$0xff] }
 0x178   :  { %v894_v52 = vpack.c.bf16 %v892_v50, %v892_v50  ;;  %v898_v50 = vld [vmem:[%s18645_s2 + $0x18] sm:$0xff] }
 0x179   :  { %v11688_v54 = vcombine.high %v898_v50, %v906_v51  ;;  %v11687_v57 = vcombine.low %v898_v50, %v906_v51  ;;  %v941_v50 = vld [vmem:[%s18645_s2 + $0x170] sm:$0xff] }
 0x17a   :  { %v1046_v56 = vunpack.c.l.b16 %v894_v52  ;;  %v11857_v52 = vcombine.low %v1837_v46, %v1841_v47  ;;  %v925_v46 = vld [vmem:[%s18645_s2 + $0xf0] sm:$0xff] }
 0x17c   :  { %v1048_v61 = vsel %vm1047_vm3, %v1046_v56, %v1045_v55  ;;  %v914_v55 = vld [vmem:[%s18645_s2 + $0x98] sm:$0xff] }
 0x17d   :  { %v14266_v62 = vpack.c.b16 %v1048_v61, %v1048_v61  ;;  %v922_v56 = vld [vmem:[%s18645_s2 + $0xd8] sm:$0xff]  ;;  %v11865_v61 = vcombine.low %v1845_v58, %v1849_v59 }
 0x17e   :  { %v11704_v60 = vcombine.high %v914_v55, %v922_v56 }
 0x17f   :  { %11745 = vmatmul.mubr.msk.bf16.vlgmr.msra.gmra.mrb[0].mxu1 %vm751_vm2, %v14266_v62 }
 0x180   :  { %1415 = vmatpush1.bf16.msra.mxu1 %v11683_v40  ;;  %1446 = vmatprep.mubr.bf16.mxu1 %v13895_v3  ;;  %v11817_v40 = vcombine.low %v1797_v1, %v1801_v4  ;;  %v938_v1 = vld [vmem:[%s18645_s2 + $0x158] sm:$0xff]  ;;  %v11703_v4 = vcombine.low %v914_v55, %v922_v56  ;;  %v1853_v56 = vld [vmem:[%s18647_s4 + $0x3c0] sm:$0xff] }
 0x181   :  { %1416 = vmatprep.subr.bf16.mxu1 %v11700_v63  ;;  %v11866_v63 = vcombine.high %v1845_v58, %v1849_v59  ;;  %v11720_v5 = vcombine.high %v930_v0, %v938_v1 }
 0x182   :  { %7936 = vmatpush1.bf16.msra.mxu0 %v11817_v40  ;;  %v923_v40 = vld [vmem:[%s18645_s2 + $0xe0] sm:$0xff] }
 0x183   :  { %7937 = vmatprep.subr.bf16.mxu0 %v11826_v13  ;;  %v11706_v13 = vcombine.high %v915_v35, %v923_v40  ;;  %v11705_v16 = vcombine.low %v915_v35, %v923_v40 }
 0x184   :  { %1417 = vmatpush1.bf16.msra.mxu1 %v11699_v2  ;;  %v11719_v2 = vcombine.low %v930_v0, %v938_v1  ;;  %v14478_v1 = vld [vmem:[%s18647_s4 + $0x400] sm:$0xff] }
 0x185   :  { %1418 = vmatprep.subr.bf16.mxu1 %v11716_v9  ;;  %v899_v9 = vld [vmem:[%s18645_s2 + $0x20] sm:$0xff] }
 0x186   :  { %7938 = vmatpush1.bf16.msra.mxu0 %v11825_v19  ;;  %v11690_v34 = vcombine.high %v899_v9, %v907_v10  ;;  %v955_v19 = vld [vmem:[%s18645_s2 + $0x1e0] sm:$0xff] }
 0x187   :  { %7939 = vmatprep.subr.bf16.mxu0 %v11834_v21  ;;  %v11738_v21 = vcombine.high %v947_v18, %v955_v19  ;;  %v11737_v24 = vcombine.low %v947_v18, %v955_v19  ;;  %v1742_v19 = vld [vmem:[%s18647_s4 + $0x48] sm:$0xff] }
 0x188   :  { %1419 = vmatpush1.bf16.msra.mxu1 %v11715_v12  ;;  %v11689_v12 = vcombine.low %v899_v9, %v907_v10 }
 0x189   :  { %1420 = vmatprep.subr.bf16.mxu1 %v11732_v14  ;;  %v931_v14 = vld [vmem:[%s18645_s2 + $0x120] sm:$0xff] }
 0x18a   :  { %7940 = vmatpush1.bf16.msra.mxu0 %v11833_v27  ;;  %v11722_v17 = vcombine.high %v931_v14, %v939_v15  ;;  %v924_v27 = vld [vmem:[%s18645_s2 + $0xe8] sm:$0xff] }
 0x18b   :  { %7941 = vmatprep.subr.bf16.mxu0 %v11842_v30  ;;  %v932_v30 = vld [vmem:[%s18645_s2 + $0x128] sm:$0xff]  ;;  %v11707_v32 = vcombine.low %v916_v26, %v924_v27 }
 0x18c   :  { %1421 = vmatpush1.bf16.msra.mxu1 %v11731_v20  ;;  %v11721_v20 = vcombine.low %v931_v14, %v939_v15  ;;  %v11724_v33 = vcombine.high %v932_v30, %v940_v31 }
 0x18d   :  { %1455 = vmatprep.subr.bf16.mxu1 %v11686_v22  ;;  %v900_v22 = vld [vmem:[%s18645_s2 + $0x28] sm:$0xff] }
 0x18e   :  { %7942 = vmatpush1.bf16.msra.mxu0 %v11841_v37  ;;  %v11692_v25 = vcombine.high %v900_v22, %v908_v23  ;;  %v956_v37 = vld [vmem:[%s18645_s2 + $0x1e8] sm:$0xff] }
 0x18f   :  { %11746 = vmatmul.mubr.msk.bf16.vlgmr.msra.gmra.mrb[4].mxu1 %vm751_vm2, %v14266_v62  ;;  %7943 = vmatprep.subr.bf16.mxu0 %v11850_v39  ;;  %v11740_v39 = vcombine.high %v948_v36, %v956_v37  ;;  %v11739_v43 = vcombine.low %v948_v36, %v956_v37  ;;  %v1774_v36 = vld [vmem:[%s18647_s4 + $0x148] sm:$0xff] }
 0x190   :  { %1456 = vmatpush1.bf16.msra.mxu1 %v11685_v28  ;;  %1487 = vmatprep.mubr.bf16.mxu1 %v13895_v3  ;;  %v11691_v28 = vcombine.low %v900_v22, %v908_v23  ;;  %v1750_v23 = vld [vmem:[%s18647_s4 + $0x88] sm:$0xff] }
 0x191   :  { %1457 = vmatprep.subr.bf16.mxu1 %v11702_v29  ;;  %v11708_v29 = vcombine.high %v916_v26, %v924_v27  ;;  %v1758_v27 = vld [vmem:[%s18647_s4 + $0xc8] sm:$0xff] }
 0x192   :  { %7944 = vmatpush1.bf16.msra.mxu0 %v11849_v44  ;;  %v1778_v37 = vld [vmem:[%s18647_s4 + $0x168] sm:$0xff] }
 0x193   :  { %7945 = vmatprep.subr.bf16.mxu0 %v11858_v49  ;;  %v933_v49 = vld [vmem:[%s18645_s2 + $0x130] sm:$0xff] }
 0x194   :  { %1458 = vmatpush1.bf16.msra.mxu1 %v11701_v38  ;;  %v11723_v38 = vcombine.low %v932_v30, %v940_v31  ;;  %v11725_v55 = vcombine.low %v933_v49, %v941_v50  ;;  %v1770_v31 = vld [vmem:[%s18647_s4 + $0x128] sm:$0xff] }
 0x195   :  { %1459 = vmatprep.subr.bf16.mxu1 %v11718_v41  ;;  %v901_v41 = vld [vmem:[%s18645_s2 + $0x30] sm:$0xff] }
 0x196   :  { %7946 = vmatpush1.bf16.msra.mxu0 %v11857_v52  ;;  %v11694_v44 = vcombine.high %v901_v41, %v909_v42  ;;  %v11693_v47 = vcombine.low %v901_v41, %v909_v42  ;;  %v11726_v52 = vcombine.high %v933_v49, %v941_v50  ;;  %v1782_v41 = vld [vmem:[%s18647_s4 + $0x188] sm:$0xff] }
 0x197   :  { %7947 = vmatprep.subr.bf16.mxu0 %v11866_v63  ;;  %v1786_v42 = vld [vmem:[%s18647_s4 + $0x1a8] sm:$0xff] }
 0x198   :  { %1460 = vmatpush1.bf16.msra.mxu1 %v11717_v45  ;;  %v917_v45 = vld [vmem:[%s18645_s2 + $0xb0] sm:$0xff]  ;;  %v1798_v49 = vld [vmem:[%s18647_s4 + $0x208] sm:$0xff] }
 0x199   :  { %1461 = vmatprep.subr.bf16.mxu1 %v11734_v48  ;;  %v11710_v48 = vcombine.high %v917_v45, %v925_v46  ;;  %v11709_v51 = vcombine.low %v917_v45, %v925_v46  ;;  %v1790_v45 = vld [vmem:[%s18647_s4 + $0x1c8] sm:$0xff] }
 0x19a   :  { %7948 = vmatpush1.bf16.msra.mxu0 %v11865_v61  ;;  %v910_v61 = vld [vmem:[%s18645_s2 + $0x78] sm:$0xff]  ;;  %v1794_v46 = vld [vmem:[%s18647_s4 + $0x1e8] sm:$0xff] }
 0x19b   :  { %v1802_v50 = vld [vmem:[%s18647_s4 + $0x228] sm:$0xff] }
 0x19c   :  { %1462 = vmatpush1.bf16.msra.mxu1 %v11733_v53  ;;  %v949_v53 = vld [vmem:[%s18645_s2 + $0x1b0] sm:$0xff] }
 0x19d   :  { %1496 = vmatprep.subr.bf16.mxu1 %v11688_v54  ;;  %v957_v54 = vld [vmem:[%s18645_s2 + $0x1f0] sm:$0xff] }
 0x19e   :  { %v11742_v58 = vcombine.high %v949_v53, %v957_v54  ;;  %v11741_v0 = vcombine.low %v949_v53, %v957_v54  ;;  %v1806_v53 = vld [vmem:[%s18647_s4 + $0x248] sm:$0xff] }
 0x19f   :  { %11747 = vmatmul.mubr.msk.bf16.vlgmr.msra.gmra.mrb[8].mxu1 %vm751_vm2, %v14266_v62  ;;  %v1810_v54 = vld [vmem:[%s18647_s4 + $0x268] sm:$0xff] }
 0x1a0   :  { %1497 = vmatpush1.bf16.msra.mxu1 %v11687_v57  ;;  %1528 = vmatprep.mubr.bf16.mxu1 %v13895_v3  ;;  %v1857_v57 = vld [vmem:[%s18647_s4 + $0x3e0] sm:$0xff] }
 0x1a1   :  { %1498 = vmatprep.subr.bf16.mxu1 %v11704_v60  ;;  %v11874_v59 = vcombine.high %v1853_v56, %v1857_v57  ;;  %v902_v60 = vld [vmem:[%s18645_s2 + $0x38] sm:$0xff]  ;;  %v11873_v63 = vcombine.low %v1853_v56, %v1857_v57  ;;  %v11828_v56 = vcombine.high %v1806_v53, %v1810_v54  ;;  %v1814_v57 = vld [vmem:[%s18647_s4 + $0x288] sm:$0xff] }
 0x1a2   :  { %v11695_v9 = vcombine.low %v902_v60, %v910_v61 }
 0x1a3   :  { %7949 = vmatprep.subr.bf16.mxu0 %v11874_v59  ;;  %v11827_v59 = vcombine.low %v1806_v53, %v1810_v54 }
 0x1a4   :  { %1499 = vmatpush1.bf16.msra.mxu1 %v11703_v4  ;;  %7950 = vmatpush1.bf16.msra.mxu0 %v11873_v63  ;;  %v14483_v4 = vld [vmem:[%s18647_s4 + $0x420] sm:$0xff]  ;;  %v1826_v63 = vld [vmem:[%s18647_s4 + $0x2e8] sm:$0xff] }
 0x1a5   :  { %1500 = vmatprep.subr.bf16.mxu1 %v11720_v5  ;;  %v11696_v5 = vcombine.high %v902_v60, %v910_v61  ;;  %v11882_v6 = vcombine.high %v14478_v1, %v14483_v4  ;;  %v1822_v61 = vld [vmem:[%s18647_s4 + $0x2c8] sm:$0xff] }
 0x1a7   :  { %7960 = vmatprep.subr.bf16.mxu0 %v11882_v6  ;;  %v1830_v6 = vld [vmem:[%s18647_s4 + $0x308] sm:$0xff] }
 0x1a8   :  { %1501 = vmatpush1.bf16.msra.mxu1 %v11719_v2  ;;  %v926_v2 = vld [vmem:[%s18645_s2 + $0xf8] sm:$0xff] }
 0x1a9   :  { %1502 = vmatprep.subr.bf16.mxu1 %v11736_v8  ;;  %v11881_v8 = vcombine.low %v14478_v1, %v14483_v4  ;;  %v11712_v10 = vcombine.high %v918_v7, %v926_v2  ;;  %v11711_v35 = vcombine.low %v918_v7, %v926_v2  ;;  %v1834_v7 = vld [vmem:[%s18647_s4 + $0x328] sm:$0xff]  ;;  %v11843_v2 = vcombine.low %v1822_v61, %v1826_v63 }
 0x1aa   :  { %v1886_v1 = vld [vmem:[%s18647_s4 + $0x4c8] sm:$0xff] }
 0x1ab   :  { %v1890_v4 = vld [vmem:[%s18647_s4 + $0x4e8] sm:$0xff] }
 0x1ac   :  { %1503 = vmatpush1.bf16.msra.mxu1 %v11735_v11  ;;  %v934_v11 = vld [vmem:[%s18645_s2 + $0x138] sm:$0xff] }
 0x1ad   :  { %1537 = vmatprep.subr.bf16.mxu1 %v11690_v34  ;;  %v942_v34 = vld [vmem:[%s18645_s2 + $0x178] sm:$0xff] }
 0x1ae   :  { %v11728_v40 = vcombine.high %v934_v11, %v942_v34  ;;  %v11727_v14 = vcombine.low %v934_v11, %v942_v34  ;;  %v1842_v11 = vld [vmem:[%s18647_s4 + $0x368] sm:$0xff]  ;;  %v11851_v34 = vcombine.low %v1830_v6, %v1834_v7 }
 0x1af   :  { %11748 = vmatmul.mubr.msk.bf16.vlgmr.msra.gmra.mrb[12].mxu1 %vm751_vm2, %v14266_v62 }
 0x1b0   :  { %1538 = vmatpush1.bf16.msra.mxu1 %v11689_v12  ;;  %1569 = vmatprep.mubr.bf16.mxu1 %v13895_v3  ;;  %v950_v12 = vld [vmem:[%s18645_s2 + $0x1b8] sm:$0xff] }
 0x1b1   :  { %1539 = vmatprep.subr.bf16.mxu1 %v11706_v13  ;;  %v958_v13 = vld [vmem:[%s18645_s2 + $0x1f8] sm:$0xff]  ;;  %s11605_s2 = sshll.u32 %s13898_s18, 4  ;;  %s11606_s2 = int_to_ptr.vmem [resolvable:$true] %s11605_s2 }
 0x1b2   :  { %v11744_v15 = vcombine.high %v950_v12, %v958_v13  ;;  %p13876_p1 = scmp.lt.s32.totalorder %s11606_s2, %s11606_s2 }
 0x1b4   :  { %1540 = vmatpush1.bf16.msra.mxu1 %v11705_v16  ;;  %v1734_v16 = vld [vmem:[%s18647_s4 + $0x8] sm:$0xff] }
 0x1b5   :  { %1541 = vmatprep.subr.bf16.mxu1 %v11722_v17  ;;  %v11743_v17 = vcombine.low %v950_v12, %v958_v13  ;;  %v1850_v12 = vld [vmem:[%s18647_s4 + $0x3a8] sm:$0xff] }
 0x1b8   :  { %1542 = vmatpush1.bf16.msra.mxu1 %v11721_v20  ;;  %v1746_v20 = vld [vmem:[%s18647_s4 + $0x68] sm:$0xff] }
 0x1b9   :  { %1543 = vmatprep.subr.bf16.mxu1 %v11738_v21  ;;  %v11764_v22 = vcombine.high %v1742_v19, %v1746_v20 }
 0x1bc   :  { %1544 = vmatpush1.bf16.msra.mxu1 %v11737_v24  ;;  %v1754_v24 = vld [vmem:[%s18647_s4 + $0xa8] sm:$0xff] }
 0x1bd   :  { %1578 = vmatprep.subr.bf16.mxu1 %v11692_v25  ;;  %v11763_v25 = vcombine.low %v1742_v19, %v1746_v20  ;;  %v11772_v26 = vcombine.high %v1750_v23, %v1754_v24  ;;  %v1866_v19 = vld [vmem:[%s18647_s4 + $0x428] sm:$0xff] }
 0x1bf   :  { %11749 = vmatmul.mubr.msk.bf16.vlgmr.msra.gmra.mrb[16].mxu1 %vm751_vm2, %v14266_v62 }
 0x1c0   :  { %1579 = vmatpush1.bf16.msra.mxu1 %v11691_v28  ;;  %1610 = vmatprep.mubr.bf16.mxu1 %v13895_v3  ;;  %v1762_v28 = vld [vmem:[%s18647_s4 + $0xe8] sm:$0xff] }
 0x1c1   :  { %1580 = vmatprep.subr.bf16.mxu1 %v11708_v29  ;;  %v11771_v29 = vcombine.low %v1750_v23, %v1754_v24  ;;  %v11780_v30 = vcombine.high %v1758_v27, %v1762_v28 }
 0x1c4   :  { %1581 = vmatpush1.bf16.msra.mxu1 %v11707_v32  ;;  %v11779_v32 = vcombine.low %v1758_v27, %v1762_v28 }
 0x1c5   :  { %1582 = vmatprep.subr.bf16.mxu1 %v11724_v33 }
 0x1c8   :  { %1583 = vmatpush1.bf16.msra.mxu1 %v11723_v38 }
 0x1c9   :  { %1584 = vmatprep.subr.bf16.mxu1 %v11740_v39  ;;  %v11796_v39 = vcombine.high %v1774_v36, %v1778_v37 }
 0x1cc   :  { %1585 = vmatpush1.bf16.msra.mxu1 %v11739_v43  ;;  %v11795_v43 = vcombine.low %v1774_v36, %v1778_v37  ;;  %v1869_v37 = vld [vmem:[%s18647_s4 + $0x440] sm:$0xff] }
 0x1cd   :  { %1619 = vmatprep.subr.bf16.mxu1 %v11694_v44  ;;  %v11804_v44 = vcombine.high %v1782_v41, %v1786_v42 }
 0x1cf   :  { %11750 = vmatmul.mubr.msk.bf16.vlgmr.msra.gmra.mrb[20].mxu1 %vm751_vm2, %v14266_v62 }
 0x1d0   :  { %1620 = vmatpush1.bf16.msra.mxu1 %v11693_v47  ;;  %1651 = vmatprep.mubr.bf16.mxu1 %v13895_v3  ;;  %v11803_v47 = vcombine.low %v1782_v41, %v1786_v42  ;;  %v1870_v41 = vld [vmem:[%s18647_s4 + $0x448] sm:$0xff] }
 0x1d1   :  { %1621 = vmatprep.subr.bf16.mxu1 %v11710_v48  ;;  %v11812_v48 = vcombine.high %v1790_v45, %v1794_v46  ;;  %v1874_v42 = vld [vmem:[%s18647_s4 + $0x468] sm:$0xff] }
 0x1d2   :  { %v11891_v53 = vcombine.low %v1870_v41, %v1874_v42 }
 0x1d4   :  { %1622 = vmatpush1.bf16.msra.mxu1 %v11709_v51  ;;  %v11811_v51 = vcombine.low %v1790_v45, %v1794_v46 }
 0x1d5   :  { %1623 = vmatprep.subr.bf16.mxu1 %v11726_v52  ;;  %v11820_v52 = vcombine.high %v1798_v49, %v1802_v50 }
 0x1d8   :  { %1624 = vmatpush1.bf16.msra.mxu1 %v11725_v55  ;;  %v11819_v55 = vcombine.low %v1798_v49, %v1802_v50  ;;  %v1881_v49 = vld [vmem:[%s18647_s4 + $0x4a0] sm:$0xff]  ;;  %v1878_v50 = vld [vmem:[%s18647_s4 + $0x488] sm:$0xff] }
 0x1d9   :  { %1625 = vmatprep.subr.bf16.mxu1 %v11742_v58  ;;  %v1818_v58 = vld [vmem:[%s18647_s4 + $0x2a8] sm:$0xff] }
 0x1da   :  { %v11836_v60 = vcombine.high %v1814_v57, %v1818_v58 }
 0x1dc   :  { %1626 = vmatpush1.bf16.msra.mxu1 %v11741_v0  ;;  %v11835_v0 = vcombine.low %v1814_v57, %v1818_v58  ;;  %v1885_v57 = vld [vmem:[%s18647_s4 + $0x4c0] sm:$0xff] }
 0x1dd   :  { %1660 = vmatprep.subr.bf16.mxu1 %v11696_v5  ;;  %v11844_v5 = vcombine.high %v1822_v61, %v1826_v63  ;;  %v1889_v58 = vld [vmem:[%s18647_s4 + $0x4e0] sm:$0xff]  ;;  %v11908_v63 = vcombine.high %v1886_v1, %v1890_v4 }
 0x1de   :  { %v11906_v61 = vcombine.high %v1885_v57, %v1889_v58 }
 0x1df   :  { %11751 = vmatmul.mubr.msk.bf16.vlgmr.msra.gmra.mrb[24].mxu1 %vm751_vm2, %v14266_v62 }
 0x1e0   :  { %1661 = vmatpush1.bf16.msra.mxu1 %v11695_v9  ;;  %1692 = vmatprep.mubr.bf16.mxu1 %v13895_v3  ;;  %v1738_v3 = vld [vmem:[%s18647_s4 + $0x28] sm:$0xff]  ;;  %v11852_v9 = vcombine.high %v1830_v6, %v1834_v7  ;;  %v1897_v6 = vld [vmem:[%s18647_s4 + $0x520] sm:$0xff] }
 0x1e1   :  { %1662 = vmatprep.subr.bf16.mxu1 %v11712_v10  ;;  %v11756_v18 = vcombine.high %v1734_v16, %v1738_v3  ;;  %v11755_v21 = vcombine.low %v1734_v16, %v1738_v3  ;;  %v1838_v10 = vld [vmem:[%s18647_s4 + $0x348] sm:$0xff] }
 0x1e2   :  { %v11859_v13 = vcombine.low %v1838_v10, %v1842_v11  ;;  %v1858_v16 = vld [vmem:[%s18647_s4 + $0x3e8] sm:$0xff] }
 0x1e3   :  { %v1894_v7 = vld [vmem:[%s18647_s4 + $0x508] sm:$0xff] }
 0x1e4   :  { %1663 = vmatpush1.bf16.msra.mxu1 %v11711_v35  ;;  %v11860_v35 = vcombine.high %v1838_v10, %v1842_v11 }
 0x1e5   :  { %1664 = vmatprep.subr.bf16.mxu1 %v11728_v40  ;;  %v1846_v40 = vld [vmem:[%s18647_s4 + $0x388] sm:$0xff] }
 0x1e6   :  { %v11867_v3 = vcombine.low %v1846_v40, %v1850_v12 }
 0x1e8   :  { %1665 = vmatpush1.bf16.msra.mxu1 %v11727_v14  ;;  %v11868_v14 = vcombine.high %v1846_v40, %v1850_v12 }
 0x1e9   :  { %1666 = vmatprep.subr.bf16.mxu1 %v11744_v15  ;;  %v1854_v15 = vld [vmem:[%s18647_s4 + $0x3c8] sm:$0xff] }
 0x1ea   :  { %v11875_v20 = vcombine.low %v1854_v15, %v1858_v16 }
 0x1ec   :  { %1667 = vmatpush1.bf16.msra.mxu1 %v11743_v17  ;;  %v11876_v17 = vcombine.high %v1854_v15, %v1858_v16  ;;  %v1905_v16 = vld [vmem:[%s18647_s4 + $0x560] sm:$0xff] }
 0x1ed   :  { %8247 = vmatprep.subr.bf16.mxu1 %v11756_v18  ;;  %v1862_v18 = vld [vmem:[%s18647_s4 + $0x408] sm:$0xff] }
 0x1ef   :  { %11752 = vmatmul.mubr.msk.bf16.vlgmr.msra.gmra.mrb[28].mxu1 %vm751_vm2, %v14266_v62  ;;  %v1766_v62 = vld [vmem:[%s18647_s4 + $0x108] sm:$0xff] }
 0x1f0   :  { %8248 = vmatpush1.bf16.msra.mxu1 %v11755_v21  ;;  %v11788_v33 = vcombine.high %v1766_v62, %v1770_v31  ;;  %v11787_v38 = vcombine.low %v1766_v62, %v1770_v31  ;;  %v11884_v21 = vcombine.high %v1862_v18, %v1866_v19 }
 0x1f1   :  { %8249 = vmatprep.subr.bf16.mxu1 %v11764_v22  ;;  %v963_v22 = vlaneseq }
 0x1f3   :  { %v14614_v23 = vshrl.u32 %v963_v22, 7 }
 0x1f4   :  { %8250 = vmatpush1.bf16.msra.mxu1 %v11763_v25  ;;  %v14622_v25 = vld [vmem:[%s18646_s3] sm:$0xff] }
 0x1f5   :  { %8251 = vmatprep.subr.bf16.mxu1 %v11772_v26  ;;  %v14617_v24 = vsub.s32 0, %v14614_v23  ;;  %v14625_v26 = vsub.s32 1, %v14614_v23  ;;  %v14667_v54 = vsub.s32 3, %v14614_v23 }
 0x1f7   :  { %v966_v27 = vrot.slane %v14622_v25, %v14617_v24  ;;  %v970_v28 = vrot.slane %v14622_v25, %v14625_v26 }
 0x1f8   :  { %8252 = vmatpush1.bf16.msra.mxu1 %v11771_v29 }
 0x1f9   :  { %8253 = vmatprep.subr.bf16.mxu1 %v11780_v30 }
 0x1fc   :  { %8254 = vmatpush1.bf16.msra.mxu1 %v11779_v32 }
 0x1fd   :  { %8255 = vmatprep.subr.bf16.mxu1 %v11788_v33 }
 0x200   :  { %8256 = vmatpush1.bf16.msra.mxu1 %v11787_v38 }
 0x201   :  { %8257 = vmatprep.subr.bf16.mxu1 %v11796_v39  ;;  %v1873_v39 = vld [vmem:[%s18647_s4 + $0x460] sm:$0xff] }
 0x202   :  { %v11890_v46 = vcombine.high %v1869_v37, %v1873_v39 }
 0x204   :  { %8258 = vmatpush1.bf16.msra.mxu1 %v11795_v43 }
 0x205   :  { %8259 = vmatprep.subr.bf16.mxu1 %v11804_v44  ;;  %v11883_v44 = vcombine.low %v1862_v18, %v1866_v19 }
 0x208   :  { %8260 = vmatpush1.bf16.msra.mxu1 %v11803_v47  ;;  %v11892_v47 = vcombine.high %v1870_v41, %v1874_v42 }
 0x209   :  { %8261 = vmatprep.subr.bf16.mxu1 %v11812_v48  ;;  %v1877_v48 = vld [vmem:[%s18647_s4 + $0x480] sm:$0xff] }
 0x20c   :  { %8262 = vmatpush1.bf16.msra.mxu1 %v11811_v51  ;;  %v1882_v51 = vld [vmem:[%s18647_s4 + $0x4a8] sm:$0xff] }
 0x20d   :  { %8263 = vmatprep.subr.bf16.mxu1 %v11820_v52  ;;  %v11889_v52 = vcombine.low %v1869_v37, %v1873_v39  ;;  %v1921_v37 = vld [vmem:[%s18647_s4 + $0x5e0] sm:$0xff]  ;;  %v1922_v39 = vld [vmem:[%s18647_s4 + $0x5e8] sm:$0xff] }
 0x210   :  { %8264 = vmatpush1.bf16.msra.mxu1 %v11819_v55  ;;  %v11898_v55 = vcombine.high %v1877_v48, %v1881_v49 }
 0x211   :  { %8265 = vmatprep.subr.bf16.mxu1 %v11828_v56  ;;  %v11900_v56 = vcombine.high %v1878_v50, %v1882_v51 }
 0x214   :  { %8266 = vmatpush1.bf16.msra.mxu1 %v11827_v59  ;;  %v11897_v59 = vcombine.low %v1877_v48, %v1881_v49  ;;  %v1929_v49 = vld [vmem:[%s18647_s4 + $0x620] sm:$0xff] }
 0x215   :  { %8267 = vmatprep.subr.bf16.mxu1 %v11836_v60  ;;  %v11899_v60 = vcombine.low %v1878_v50, %v1882_v51  ;;  %v1926_v50 = vld [vmem:[%s18647_s4 + $0x608] sm:$0xff] }
 0x216   :  { %v1930_v51 = vld [vmem:[%s18647_s4 + $0x628] sm:$0xff] }
 0x218   :  { %8268 = vmatpush1.bf16.msra.mxu1 %v11835_v0  ;;  %v1893_v0 = vld [vmem:[%s18647_s4 + $0x500] sm:$0xff] }
 0x219   :  { %8269 = vmatprep.subr.bf16.mxu1 %v11844_v5  ;;  %v11914_v12 = vcombine.high %v1893_v0, %v1897_v6  ;;  %v11913_v19 = vcombine.low %v1893_v0, %v1897_v6 }
 0x21c   :  { %8270 = vmatpush1.bf16.msra.mxu1 %v11843_v2  ;;  %v1898_v2 = vld [vmem:[%s18647_s4 + $0x528] sm:$0xff] }
 0x21d   :  { %8271 = vmatprep.subr.bf16.mxu1 %v11852_v9 }
 0x220   :  { %8272 = vmatpush1.bf16.msra.mxu1 %v11851_v34  ;;  %v11905_v34 = vcombine.low %v1885_v57, %v1889_v58 }
 0x221   :  { %8273 = vmatprep.subr.bf16.mxu1 %v11860_v35  ;;  %v11907_v35 = vcombine.low %v1886_v1, %v1890_v4  ;;  %v11948_v1 = vcombine.high %v1926_v50, %v1930_v51  ;;  %v1933_v4 = vld [vmem:[%s18647_s4 + $0x640] sm:$0xff] }
 0x224   :  { %8274 = vmatpush1.bf16.msra.mxu1 %v11859_v13  ;;  %v11916_v13 = vcombine.high %v1894_v7, %v1898_v2 }
 0x225   :  { %8275 = vmatprep.subr.bf16.mxu1 %v11868_v14  ;;  %v1901_v14 = vld [vmem:[%s18647_s4 + $0x540] sm:$0xff] }
 0x228   :  { %8276 = vmatpush1.bf16.msra.mxu1 %v11867_v3  ;;  %v1902_v3 = vld [vmem:[%s18647_s4 + $0x548] sm:$0xff] }
 0x229   :  { %8277 = vmatprep.subr.bf16.mxu1 %v11876_v17  ;;  %v1906_v17 = vld [vmem:[%s18647_s4 + $0x568] sm:$0xff] }
 0x22a   :  { %v11924_v22 = vcombine.high %v1902_v3, %v1906_v17 }
 0x22c   :  { %8278 = vmatpush1.bf16.msra.mxu1 %v11875_v20  ;;  %v11915_v20 = vcombine.low %v1894_v7, %v1898_v2  ;;  %v1941_v7 = vld [vmem:[%s18647_s4 + $0x680] sm:$0xff] }
 0x22d   :  { %8288 = vmatprep.subr.bf16.mxu1 %v11884_v21  ;;  %v11922_v21 = vcombine.high %v1901_v14, %v1905_v16  ;;  %v1945_v2 = vld [vmem:[%s18647_s4 + $0x6a0] sm:$0xff] }
 0x252   :  { %v1407_v29 = vpop.f32.mrb[0].mxu1 }
 0x253   :  { %v1408_v30 = vadd.f32 %v1407_v29, %v966_v27  ;;  %v1409_v62 = vpop.f32.mrb[1].mxu1  ;;  %v1909_v27 = vld [vmem:[%s18647_s4 + $0x580] sm:$0xff]  ;;  %v1910_v29 = vld [vmem:[%s18647_s4 + $0x588] sm:$0xff] }
 0x254   :  { %v1410_v31 = vadd.f32 %v1409_v62, %v970_v28  ;;  %v1411_v32 = vpop.f32.mrb[2].mxu1  ;;  %v1913_v28 = vld [vmem:[%s18647_s4 + $0x5a0] sm:$0xff]  ;;  %v11921_v62 = vcombine.low %v1901_v14, %v1905_v16  ;;  %v1950_v14 = vld [vmem:[%s18647_s4 + $0x6c8] sm:$0xff]  ;;  %v11961_v16 = vcombine.low %v1941_v7, %v1945_v2 }
 0x255   :  { %v1701_v33 = vmax.f32 %v1408_v30, 0.0  ;;  %v1412_v36 = vpop.f32.mrb[3].mxu1  ;;  %v1914_v30 = vld [vmem:[%s18647_s4 + $0x5a8] sm:$0xff]  ;;  %v11930_v32 = vcombine.high %v1909_v27, %v1913_v28  ;;  %v11929_v41 = vcombine.low %v1909_v27, %v1913_v28 }
 0x256   :  { %v1702_v38 = vmax.f32 %v1410_v31, 0.0  ;;  %v11923_v31 = vcombine.low %v1902_v3, %v1906_v17  ;;  %v1917_v36 = vld [vmem:[%s18647_s4 + $0x5c0] sm:$0xff]  ;;  %v11931_v42 = vcombine.low %v1910_v29, %v1914_v30  ;;  %v1958_v27 = vld [vmem:[%s18647_s4 + $0x708] sm:$0xff] }
 0x257   :  { %v14645_v45 = vpack.c.bf16 %v1701_v33, %v1701_v33  ;;  %v11932_v33 = vcombine.high %v1910_v29, %v1914_v30  ;;  %v1962_v28 = vld [vmem:[%s18647_s4 + $0x728] sm:$0xff] }
 0x258   :  { %v14643_v43 = vpack.c.bf16 %v1702_v38, %v1702_v38  ;;  %v1918_v38 = vld [vmem:[%s18647_s4 + $0x5c8] sm:$0xff] }
 0x25a   :  { %7951 = vmatprep.mubr.bf16.mxu0 %v14643_v43  ;;  %8279 = vmatprep.mubr.bf16.mxu1 %v14643_v43 }
 0x25b   :  { %7952 = vmatmul.mubr.bf16.vlgmr.msra.gmra.mrb[64].mxu0 %v14645_v45  ;;  %8280 = vmatmul.mubr.bf16.vlgmr.msra.gmra.mrb[32].mxu1 %v14645_v45 }
 0x25c   :  { %7961 = vmatpush1.bf16.msra.mxu0 %v11881_v8  ;;  %8289 = vmatpush1.bf16.msra.mxu1 %v11883_v44  ;;  %v978_v8 = vrot.slane %v14622_v25, %v14667_v54  ;;  %v11938_v44 = vcombine.high %v1917_v36, %v1921_v37 }
 0x25d   :  { %7962 = vmatprep.subr.bf16.mxu0 %v11890_v46  ;;  %8290 = vmatprep.subr.bf16.mxu1 %v11892_v47  ;;  %v11940_v46 = vcombine.high %v1918_v38, %v1922_v39  ;;  %v1925_v47 = vld [vmem:[%s18647_s4 + $0x600] sm:$0xff] }
 0x25e   :  { %v11946_v58 = vcombine.high %v1925_v47, %v1929_v49 }
 0x260   :  { %7963 = vmatpush1.bf16.msra.mxu0 %v11889_v52  ;;  %8291 = vmatpush1.bf16.msra.mxu1 %v11891_v53 }
 0x261   :  { %7964 = vmatprep.subr.bf16.mxu0 %v11898_v55  ;;  %8292 = vmatprep.subr.bf16.mxu1 %v11900_v56  ;;  %v11937_v55 = vcombine.low %v1917_v36, %v1921_v37  ;;  %v11939_v56 = vcombine.low %v1918_v38, %v1922_v39  ;;  %v11980_v36 = vcombine.high %v1958_v27, %v1962_v28  ;;  %v1965_v37 = vld [vmem:[%s18647_s4 + $0x740] sm:$0xff]  ;;  %v1966_v39 = vld [vmem:[%s18647_s4 + $0x748] sm:$0xff] }
 0x262   :  { %v14686_v5 = vpop.f32.mrb[4].mxu1  ;;  %v1969_v38 = vld [vmem:[%s18647_s4 + $0x760] sm:$0xff] }
 0x263   :  { %v1450_v9 = vpop.f32.mrb[5].mxu1 }
 0x264   :  { %v1451_v10 = vadd.f32 %v1450_v9, %v978_v8  ;;  %v1452_v11 = vpop.f32.mrb[6].mxu1  ;;  %7965 = vmatpush1.bf16.msra.mxu0 %v11897_v59  ;;  %8293 = vmatpush1.bf16.msra.mxu1 %v11899_v60  ;;  %v1937_v8 = vld [vmem:[%s18647_s4 + $0x660] sm:$0xff]  ;;  %v1934_v59 = vld [vmem:[%s18647_s4 + $0x648] sm:$0xff] }
 0x265   :  { %v1453_v40 = vpop.f32.mrb[7].mxu1  ;;  %7966 = vmatprep.subr.bf16.mxu0 %v11906_v61  ;;  %8294 = vmatprep.subr.bf16.mxu1 %v11908_v63  ;;  %v1938_v60 = vld [vmem:[%s18647_s4 + $0x668] sm:$0xff]  ;;  %v11945_v61 = vcombine.low %v1925_v47, %v1929_v49  ;;  %v11947_v63 = vcombine.low %v1926_v50, %v1930_v51  ;;  %v11954_v0 = vcombine.high %v1933_v4, %v1937_v8  ;;  %v1973_v50 = vld [vmem:[%s18647_s4 + $0x780] sm:$0xff]  ;;  %v14824_v51 = vsub.s32 5, %v14614_v23 }
 0x266   :  { %v1704_v15 = vmax.f32 %v1451_v10, 0.0  ;;  %v11956_v6 = vcombine.high %v1934_v59, %v1938_v60  ;;  %v1942_v9 = vld [vmem:[%s18647_s4 + $0x688] sm:$0xff]  ;;  %v11953_v11 = vcombine.low %v1933_v4, %v1937_v8  ;;  %v11986_v47 = vcombine.high %v1965_v37, %v1969_v38 }
 0x267   :  { %v1946_v10 = vld [vmem:[%s18647_s4 + $0x6a8] sm:$0xff] }
 0x268   :  { %v14709_v18 = vpack.c.bf16 %v1704_v15, %v1704_v15  ;;  %7967 = vmatpush1.bf16.msra.mxu0 %v11905_v34  ;;  %8295 = vmatpush1.bf16.msra.mxu1 %v11907_v35  ;;  %v11955_v34 = vcombine.low %v1934_v59, %v1938_v60  ;;  %v11962_v35 = vcombine.high %v1941_v7, %v1945_v2  ;;  %v1954_v15 = vld [vmem:[%s18647_s4 + $0x6e8] sm:$0xff]  ;;  %v1981_v59 = vld [vmem:[%s18647_s4 + $0x7c0] sm:$0xff] }
 0x269   :  { %7968 = vmatprep.subr.bf16.mxu0 %v11914_v12  ;;  %8296 = vmatprep.subr.bf16.mxu1 %v11916_v13  ;;  %v11964_v40 = vcombine.high %v1942_v9, %v1946_v10  ;;  %v1949_v12 = vld [vmem:[%s18647_s4 + $0x6c0] sm:$0xff]  ;;  %v11963_v3 = vcombine.low %v1942_v9, %v1946_v10  ;;  %v986_v60 = vrot.slane %v14622_v25, %v14824_v51 }
 0x26a   :  { %7992 = vmatprep.mubr.bf16.mxu0 %v14709_v18  ;;  %8320 = vmatprep.mubr.bf16.mxu1 %v14709_v18  ;;  %v1953_v13 = vld [vmem:[%s18647_s4 + $0x6e0] sm:$0xff] }
 0x26b   :  { %v11970_v17 = vcombine.high %v1949_v12, %v1953_v13 }
 0x26c   :  { %7969 = vmatpush1.bf16.msra.mxu0 %v11913_v19  ;;  %8297 = vmatpush1.bf16.msra.mxu1 %v11915_v20  ;;  %v11972_v19 = vcombine.high %v1950_v14, %v1954_v15  ;;  %v1957_v20 = vld [vmem:[%s18647_s4 + $0x700] sm:$0xff] }
 0x26d   :  { %7970 = vmatprep.subr.bf16.mxu0 %v11922_v21  ;;  %8298 = vmatprep.subr.bf16.mxu1 %v11924_v22  ;;  %v1961_v22 = vld [vmem:[%s18647_s4 + $0x720] sm:$0xff] }
 0x270   :  { %7971 = vmatpush1.bf16.msra.mxu0 %v11921_v62  ;;  %8299 = vmatpush1.bf16.msra.mxu1 %v11923_v31  ;;  %v11969_v62 = vcombine.low %v1949_v12, %v1953_v13  ;;  %v11971_v31 = vcombine.low %v1950_v14, %v1954_v15  ;;  %v1994_v12 = vld [vmem:[%s18647_s4 + $0x828] sm:$0xff] }
 0x271   :  { %7972 = vmatprep.subr.bf16.mxu0 %v11930_v32  ;;  %8300 = vmatprep.subr.bf16.mxu1 %v11932_v33  ;;  %v11978_v33 = vcombine.high %v1957_v20, %v1961_v22 }
 0x272   :  { %v14740_v48 = vpop.f32.mrb[8].mxu1 }
 0x273   :  { %v14751_v52 = vpop.f32.mrb[9].mxu1 }
 0x274   :  { %v1493_v53 = vpop.f32.mrb[10].mxu1  ;;  %7973 = vmatpush1.bf16.msra.mxu0 %v11929_v41  ;;  %8301 = vmatpush1.bf16.msra.mxu1 %v11931_v42  ;;  %v1970_v41 = vld [vmem:[%s18647_s4 + $0x768] sm:$0xff]  ;;  %v11977_v42 = vcombine.low %v1957_v20, %v1961_v22  ;;  %v1997_v22 = vld [vmem:[%s18647_s4 + $0x840] sm:$0xff] }
 0x275   :  { %v1494_v57 = vpop.f32.mrb[11].mxu1  ;;  %7974 = vmatprep.subr.bf16.mxu0 %v11938_v44  ;;  %8302 = vmatprep.subr.bf16.mxu1 %v11940_v46  ;;  %v11979_v44 = vcombine.low %v1958_v27, %v1962_v28  ;;  %v14818_v46 = vsub.s32 2, %v14614_v23  ;;  %v11988_v49 = vcombine.high %v1966_v39, %v1970_v41  ;;  %v1977_v53 = vld [vmem:[%s18647_s4 + $0x7a0] sm:$0xff]  ;;  %v1998_v28 = vld [vmem:[%s18647_s4 + $0x848] sm:$0xff] }
 0x276   :  { %v11985_v57 = vcombine.low %v1965_v37, %v1969_v38  ;;  %v11994_v4 = vcombine.high %v1973_v50, %v1977_v53  ;;  %v2001_v27 = vld [vmem:[%s18647_s4 + $0x860] sm:$0xff] }
 0x277   :  { %v2005_v38 = vld [vmem:[%s18647_s4 + $0x880] sm:$0xff] }
 0x278   :  { %7975 = vmatpush1.bf16.msra.mxu0 %v11937_v55  ;;  %8303 = vmatpush1.bf16.msra.mxu1 %v11939_v56  ;;  %v1974_v55 = vld [vmem:[%s18647_s4 + $0x788] sm:$0xff] }
 0x279   :  { %7976 = vmatprep.subr.bf16.mxu0 %v11946_v58  ;;  %8304 = vmatprep.subr.bf16.mxu1 %v11948_v1  ;;  %v1978_v56 = vld [vmem:[%s18647_s4 + $0x7a8] sm:$0xff]  ;;  %v11987_v58 = vcombine.low %v1966_v39, %v1970_v41  ;;  %v974_v1 = vrot.slane %v14622_v25, %v14818_v46  ;;  %v2009_v39 = vld [vmem:[%s18647_s4 + $0x8a0] sm:$0xff] }
 0x27a   :  { %v11996_v8 = vcombine.high %v1974_v55, %v1978_v56  ;;  %v11995_v7 = vcombine.low %v1974_v55, %v1978_v56  ;;  %v2006_v41 = vld [vmem:[%s18647_s4 + $0x888] sm:$0xff]  ;;  %v2013_v55 = vld [vmem:[%s18647_s4 + $0x8c0] sm:$0xff] }
 0x27b   :  { %v1449_v2 = vadd.f32 %v14686_v5, %v974_v1  ;;  %v1990_v5 = vld [vmem:[%s18647_s4 + $0x808] sm:$0xff]  ;;  %v2017_v56 = vld [vmem:[%s18647_s4 + $0x8e0] sm:$0xff] }
 0x27c   :  { %7977 = vmatpush1.bf16.msra.mxu0 %v11945_v61  ;;  %8305 = vmatpush1.bf16.msra.mxu1 %v11947_v63  ;;  %v1985_v61 = vld [vmem:[%s18647_s4 + $0x7e0] sm:$0xff]  ;;  %v1982_v63 = vld [vmem:[%s18647_s4 + $0x7c8] sm:$0xff] }
 0x27d   :  { %7978 = vmatprep.subr.bf16.mxu0 %v11954_v0  ;;  %8306 = vmatprep.subr.bf16.mxu1 %v11956_v6  ;;  %v1986_v0 = vld [vmem:[%s18647_s4 + $0x7e8] sm:$0xff]  ;;  %v11993_v6 = vcombine.low %v1973_v50, %v1977_v53  ;;  %v12002_v9 = vcombine.high %v1981_v59, %v1985_v61 }
 0x27e   :  { %v12004_v10 = vcombine.high %v1982_v63, %v1986_v0  ;;  %v12003_v15 = vcombine.low %v1982_v63, %v1986_v0  ;;  %v14904_v50 = vld [vmem:[%s18646_s3 + $0x8] sm:$0xff]  ;;  %v2021_v0 = vld [vmem:[%s18647_s4 + $0x900] sm:$0xff] }
 0x27f   :  { %v2018_v1 = vld [vmem:[%s18647_s4 + $0x8e8] sm:$0xff] }
 0x280   :  { %7979 = vmatpush1.bf16.msra.mxu0 %v11953_v11  ;;  %8307 = vmatpush1.bf16.msra.mxu1 %v11955_v34  ;;  %v1989_v11 = vld [vmem:[%s18647_s4 + $0x800] sm:$0xff]  ;;  %v1492_v34 = vadd.f32 %v14751_v52, %v986_v60  ;;  %v12001_v52 = vcombine.low %v1981_v59, %v1985_v61  ;;  %v12034_v60 = vcombine.high %v2013_v55, %v2017_v56 }
 0x281   :  { %7980 = vmatprep.subr.bf16.mxu0 %v11962_v35  ;;  %8308 = vmatprep.subr.bf16.mxu1 %v11964_v40  ;;  %v1993_v40 = vld [vmem:[%s18647_s4 + $0x820] sm:$0xff] }
 0x282   :  { %v14792_v21 = vpop.f32.mrb[12].mxu1  ;;  %v1706_v20 = vmax.f32 %v1492_v34, 0.0 }
 0x283   :  { %v14803_v29 = vpop.f32.mrb[13].mxu1 }
 0x284   :  { %v1534_v30 = vpop.f32.mrb[14].mxu1  ;;  %7981 = vmatpush1.bf16.msra.mxu0 %v11961_v16  ;;  %8309 = vmatpush1.bf16.msra.mxu1 %v11963_v3  ;;  %v1703_v16 = vmax.f32 %v1449_v2, 0.0 }
 0x285   :  { %v1535_v32 = vpop.f32.mrb[15].mxu1  ;;  %7982 = vmatprep.subr.bf16.mxu0 %v11970_v17  ;;  %8310 = vmatprep.subr.bf16.mxu1 %v11972_v19  ;;  %v12010_v17 = vcombine.high %v1989_v11, %v1993_v40  ;;  %v12012_v19 = vcombine.high %v1990_v5, %v1994_v12  ;;  %v2002_v30 = vld [vmem:[%s18647_s4 + $0x868] sm:$0xff] }
 0x286   :  { %v12011_v32 = vcombine.low %v1990_v5, %v1994_v12  ;;  %v12020_v37 = vcombine.high %v1998_v28, %v2002_v30 }
 0x288   :  { %7983 = vmatpush1.bf16.msra.mxu0 %v11969_v62  ;;  %8311 = vmatpush1.bf16.msra.mxu1 %v11971_v31  ;;  %v12009_v62 = vcombine.low %v1989_v11, %v1993_v40  ;;  %v14881_v31 = vpack.c.bf16 %v1703_v16, %v1703_v16  ;;  %v12033_v40 = vcombine.low %v2013_v55, %v2017_v56  ;;  %v2033_v16 = vld [vmem:[%s18647_s4 + $0x960] sm:$0xff] }
 0x289   :  { %7984 = vmatprep.subr.bf16.mxu0 %v11978_v33  ;;  %8312 = vmatprep.subr.bf16.mxu1 %v11980_v36  ;;  %v14883_v33 = vpack.c.bf16 %v1706_v20, %v1706_v20  ;;  %v12018_v36 = vcombine.high %v1997_v22, %v2001_v27  ;;  %v1018_v55 = vrot.slane %v14904_v50, %v14824_v51 }
 0x28c   :  { %7985 = vmatpush1.bf16.msra.mxu0 %v11977_v42  ;;  %8313 = vmatpush1.bf16.msra.mxu1 %v11979_v44  ;;  %v2010_v42 = vld [vmem:[%s18647_s4 + $0x8a8] sm:$0xff]  ;;  %v12017_v44 = vcombine.low %v1997_v22, %v2001_v27 }
 0x28d   :  { %7986 = vmatprep.subr.bf16.mxu0 %v11986_v47  ;;  %8314 = vmatprep.subr.bf16.mxu1 %v11988_v49  ;;  %v12019_v47 = vcombine.low %v1998_v28, %v2002_v30  ;;  %v12026_v49 = vcombine.high %v2005_v38, %v2009_v39  ;;  %v12028_v53 = vcombine.high %v2006_v41, %v2010_v42  ;;  %v2037_v28 = vld [vmem:[%s18647_s4 + $0x980] sm:$0xff] }
 0x28e   :  { %v12027_v59 = vcombine.low %v2006_v41, %v2010_v42  ;;  %v2041_v30 = vld [vmem:[%s18647_s4 + $0x9a0] sm:$0xff] }
 0x28f   :  { %v2045_v42 = vld [vmem:[%s18647_s4 + $0x9c0] sm:$0xff]  ;;  %v12057_v56 = vcombine.low %v2037_v28, %v2041_v30 }
 0x290   :  { %7987 = vmatpush1.bf16.msra.mxu0 %v11985_v57  ;;  %8315 = vmatpush1.bf16.msra.mxu1 %v11987_v58  ;;  %v1006_v57 = vrot.slane %v14904_v50, %v14818_v46  ;;  %v2014_v58 = vld [vmem:[%s18647_s4 + $0x8c8] sm:$0xff] }
 0x291   :  { %7988 = vmatprep.subr.bf16.mxu0 %v11994_v4  ;;  %8316 = vmatprep.subr.bf16.mxu1 %v11996_v8  ;;  %v1010_v4 = vrot.slane %v14904_v50, %v14667_v54  ;;  %v12025_v8 = vcombine.low %v2005_v38, %v2009_v39  ;;  %v12036_v63 = vcombine.high %v2014_v58, %v2018_v1 }
 0x292   :  { %v14856_v35 = vpop.f32.mrb[16].mxu1  ;;  %v12035_v12 = vcombine.low %v2014_v58, %v2018_v1  ;;  %v12058_v39 = vcombine.high %v2037_v28, %v2041_v30  ;;  %v2074_v28 = vld [vmem:[%s18647_s4 + $0xaa8] sm:$0xff] }
 0x293   :  { %v14867_v13 = vpop.f32.mrb[17].mxu1 }
 0x294   :  { %v1575_v14 = vpop.f32.mrb[18].mxu1  ;;  %7989 = vmatpush1.bf16.msra.mxu0 %v11993_v6  ;;  %8317 = vmatpush1.bf16.msra.mxu1 %v11995_v7  ;;  %v2025_v6 = vld [vmem:[%s18647_s4 + $0x920] sm:$0xff] }
 0x295   :  { %v1576_v3 = vpop.f32.mrb[19].mxu1  ;;  %7990 = vmatprep.subr.bf16.mxu0 %v12002_v9  ;;  %8318 = vmatprep.subr.bf16.mxu1 %v12004_v10  ;;  %v2022_v9 = vld [vmem:[%s18647_s4 + $0x908] sm:$0xff]  ;;  %v12042_v14 = vcombine.high %v2021_v0, %v2025_v6 }
 0x296   :  { %v2026_v10 = vld [vmem:[%s18647_s4 + $0x928] sm:$0xff] }
 0x297   :  { %v2030_v3 = vld [vmem:[%s18647_s4 + $0x948] sm:$0xff]  ;;  %v12043_v20 = vcombine.low %v2022_v9, %v2026_v10 }
 0x298   :  { %7991 = vmatpush1.bf16.msra.mxu0 %v12001_v52  ;;  %8319 = vmatpush1.bf16.msra.mxu1 %v12003_v15  ;;  %v12044_v52 = vcombine.high %v2022_v9, %v2026_v10  ;;  %v2029_v15 = vld [vmem:[%s18647_s4 + $0x940] sm:$0xff] }
 0x299   :  { %8001 = vmatprep.subr.bf16.mxu0 %v12010_v17  ;;  %8329 = vmatprep.subr.bf16.mxu1 %v12012_v19  ;;  %v2034_v17 = vld [vmem:[%s18647_s4 + $0x968] sm:$0xff]  ;;  %v12041_v19 = vcombine.low %v2021_v0, %v2025_v6  ;;  %v12050_v22 = vcombine.high %v2029_v15, %v2033_v16 }
 0x29a   :  { %v12052_v27 = vcombine.high %v2030_v3, %v2034_v17  ;;  %v12051_v38 = vcombine.low %v2030_v3, %v2034_v17  ;;  %v2058_v0 = vld [vmem:[%s18647_s4 + $0xa28] sm:$0xff] }
 0x29b   :  { %7993 = vmatmul.mubr.bf16.vlgmr.msra.gmra.mrb[64].mxu0 %v14881_v31  ;;  %8321 = vmatmul.mubr.bf16.vlgmr.msra.gmra.mrb[32].mxu1 %v14881_v31 }
 0x29c   :  { %8002 = vmatpush1.bf16.msra.mxu0 %v12009_v62  ;;  %8033 = vmatprep.mubr.bf16.mxu0 %v14883_v33  ;;  %v2038_v62 = vld [vmem:[%s18647_s4 + $0x988] sm:$0xff] }
 0x29d   :  { %8330 = vmatpush1.bf16.msra.mxu1 %v12011_v32  ;;  %8361 = vmatprep.mubr.bf16.mxu1 %v14883_v33  ;;  %v2042_v32 = vld [vmem:[%s18647_s4 + $0x9a8] sm:$0xff] }
 0x29e   :  { %8003 = vmatprep.subr.bf16.mxu0 %v12018_v36  ;;  %8331 = vmatprep.subr.bf16.mxu1 %v12020_v37  ;;  %v12049_v36 = vcombine.low %v2029_v15, %v2033_v16  ;;  %v14963_v37 = vsub.s32 4, %v14614_v23  ;;  %v12060_v41 = vcombine.high %v2038_v62, %v2042_v32  ;;  %v2066_v15 = vld [vmem:[%s18647_s4 + $0xa68] sm:$0xff] }
 0x2a0   :  { %8004 = vmatpush1.bf16.msra.mxu0 %v12017_v44  ;;  %v2049_v44 = vld [vmem:[%s18647_s4 + $0x9e0] sm:$0xff] }
 0x2a1   :  { %8332 = vmatpush1.bf16.msra.mxu1 %v12019_v47  ;;  %8005 = vmatprep.subr.bf16.mxu0 %v12026_v49  ;;  %v1014_v47 = vrot.slane %v14904_v50, %v14963_v37  ;;  %v2046_v49 = vld [vmem:[%s18647_s4 + $0x9c8] sm:$0xff]  ;;  %v12066_v58 = vcombine.high %v2045_v42, %v2049_v44  ;;  %v12065_v9 = vcombine.low %v2045_v42, %v2049_v44  ;;  %v2081_v42 = vld [vmem:[%s18647_s4 + $0xae0] sm:$0xff] }
 0x2a2   :  { %v1612_v61 = vpop.f32.mrb[20].mxu1  ;;  %8333 = vmatprep.subr.bf16.mxu1 %v12028_v53  ;;  %v2050_v53 = vld [vmem:[%s18647_s4 + $0x9e8] sm:$0xff] }
 0x2a3   :  { %v14928_v7 = vadd.f32 %v1612_v61, %v1006_v57  ;;  %v1614_v2 = vpop.f32.mrb[21].mxu1  ;;  %v12059_v57 = vcombine.low %v2038_v62, %v2042_v32  ;;  %v15022_v62 = vsub.s32 6, %v14614_v23 }
 0x2a4   :  { %v14936_v11 = vadd.f32 %v1614_v2, %v1010_v4  ;;  %v1616_v34 = vpop.f32.mrb[22].mxu1  ;;  %8006 = vmatpush1.bf16.msra.mxu0 %v12025_v8  ;;  %v12068_v4 = vcombine.high %v2046_v49, %v2050_v53  ;;  %v2053_v8 = vld [vmem:[%s18647_s4 + $0xa00] sm:$0xff] }
 0x2a5   :  { %8334 = vmatpush1.bf16.msra.mxu1 %v12027_v59  ;;  %v1617_v5 = vpop.f32.mrb[23].mxu1  ;;  %8007 = vmatprep.subr.bf16.mxu0 %v12034_v60  ;;  %v2057_v59 = vld [vmem:[%s18647_s4 + $0xa20] sm:$0xff]  ;;  %v12067_v34 = vcombine.low %v2046_v49, %v2050_v53  ;;  %v1022_v44 = vrot.slane %v14904_v50, %v15022_v62 }
 0x2a6   :  { %8335 = vmatprep.subr.bf16.mxu1 %v12036_v63  ;;  %v2054_v63 = vld [vmem:[%s18647_s4 + $0xa08] sm:$0xff]  ;;  %v12073_v16 = vcombine.low %v2053_v8, %v2057_v59 }
 0x2a7   :  { %v12076_v5 = vcombine.high %v2054_v63, %v2058_v0  ;;  %v12075_v3 = vcombine.low %v2054_v63, %v2058_v0  ;;  %v2090_v63 = vld [vmem:[%s18647_s4 + $0xb28] sm:$0xff] }
 0x2a8   :  { %8008 = vmatpush1.bf16.msra.mxu0 %v12033_v40  ;;  %v12074_v40 = vcombine.high %v2053_v8, %v2057_v59 }
 0x2a9   :  { %8336 = vmatpush1.bf16.msra.mxu1 %v12035_v12  ;;  %8009 = vmatprep.subr.bf16.mxu0 %v12042_v14  ;;  %v2061_v12 = vld [vmem:[%s18647_s4 + $0xa40] sm:$0xff] }
 0x2aa   :  { %8337 = vmatprep.subr.bf16.mxu1 %v12044_v52  ;;  %v2065_v14 = vld [vmem:[%s18647_s4 + $0xa60] sm:$0xff]  ;;  %v2062_v52 = vld [vmem:[%s18647_s4 + $0xa48] sm:$0xff] }
 0x2ab   :  { %v12082_v17 = vcombine.high %v2061_v12, %v2065_v14  ;;  %v12081_v30 = vcombine.low %v2061_v12, %v2065_v14  ;;  %v12083_v32 = vcombine.low %v2062_v52, %v2066_v15  ;;  %v2093_v12 = vld [vmem:[%s18647_s4 + $0xb40] sm:$0xff] }
 0x2ac   :  { %8010 = vmatpush1.bf16.msra.mxu0 %v12041_v19  ;;  %v12084_v19 = vcombine.high %v2062_v52, %v2066_v15  ;;  %v2097_v14 = vld [vmem:[%s18647_s4 + $0xb60] sm:$0xff]  ;;  %v2094_v52 = vld [vmem:[%s18647_s4 + $0xb48] sm:$0xff] }
 0x2ad   :  { %8338 = vmatpush1.bf16.msra.mxu1 %v12043_v20  ;;  %8011 = vmatprep.subr.bf16.mxu0 %v12050_v22  ;;  %v2069_v20 = vld [vmem:[%s18647_s4 + $0xa80] sm:$0xff]  ;;  %v2098_v15 = vld [vmem:[%s18647_s4 + $0xb68] sm:$0xff] }
 0x2ae   :  { %8339 = vmatprep.subr.bf16.mxu1 %v12052_v27  ;;  %v2073_v22 = vld [vmem:[%s18647_s4 + $0xaa0] sm:$0xff]  ;;  %v2070_v27 = vld [vmem:[%s18647_s4 + $0xa88] sm:$0xff] }
 0x2af   :  { %v12089_v53 = vcombine.low %v2069_v20, %v2073_v22 }
 0x2b0   :  { %8012 = vmatpush1.bf16.msra.mxu0 %v12049_v36  ;;  %v12090_v36 = vcombine.high %v2069_v20, %v2073_v22  ;;  %v2101_v20 = vld [vmem:[%s18647_s4 + $0xb80] sm:$0xff] }
 0x2b1   :  { %8340 = vmatpush1.bf16.msra.mxu1 %v12051_v38  ;;  %8013 = vmatprep.subr.bf16.mxu0 %v12058_v39  ;;  %v15025_v38 = vsub.s32 7, %v14614_v23  ;;  %v12092_v39 = vcombine.high %v2070_v27, %v2074_v28  ;;  %v2082_v23 = vld [vmem:[%s18647_s4 + $0xae8] sm:$0xff]  ;;  %v2105_v22 = vld [vmem:[%s18647_s4 + $0xba0] sm:$0xff] }
 0x2b2   :  { %v1653_v1 = vpop.f32.mrb[24].mxu1  ;;  %8341 = vmatprep.subr.bf16.mxu1 %v12060_v41  ;;  %v2077_v41 = vld [vmem:[%s18647_s4 + $0xac0] sm:$0xff] }
 0x2b3   :  { %v14987_v60 = vadd.f32 %v1653_v1, %v1014_v47  ;;  %v1655_v61 = vpop.f32.mrb[25].mxu1  ;;  %v2078_v47 = vld [vmem:[%s18647_s4 + $0xac8] sm:$0xff]  ;;  %v1026_v49 = vrot.slane %v14904_v50, %v15025_v38  ;;  %v2085_v1 = vld [vmem:[%s18647_s4 + $0xb00] sm:$0xff] }
 0x2b4   :  { %v14995_v6 = vadd.f32 %v1655_v61, %v1018_v55  ;;  %v1657_v2 = vpop.f32.mrb[26].mxu1  ;;  %8014 = vmatpush1.bf16.msra.mxu0 %v12057_v56  ;;  %v12091_v55 = vcombine.low %v2070_v27, %v2074_v28  ;;  %v12098_v56 = vcombine.high %v2077_v41, %v2081_v42  ;;  %v2086_v61 = vld [vmem:[%s18647_s4 + $0xb08] sm:$0xff] }
 0x2b5   :  { %8342 = vmatpush1.bf16.msra.mxu1 %v12059_v57  ;;  %v1658_v10 = vpop.f32.mrb[27].mxu1  ;;  %8015 = vmatprep.subr.bf16.mxu0 %v12066_v58  ;;  %v12100_v58 = vcombine.high %v2078_v47, %v2082_v23  ;;  %v2102_v27 = vld [vmem:[%s18647_s4 + $0xb88] sm:$0xff] }
 0x2b6   :  { %8343 = vmatprep.subr.bf16.mxu1 %v12068_v4  ;;  %v2089_v4 = vld [vmem:[%s18647_s4 + $0xb20] sm:$0xff]  ;;  %v2106_v28 = vld [vmem:[%s18647_s4 + $0xba8] sm:$0xff] }
 0x2b8   :  { %8016 = vmatpush1.bf16.msra.mxu0 %v12065_v9  ;;  %v12097_v9 = vcombine.low %v2077_v41, %v2081_v42  ;;  %v12124_v41 = vcombine.high %v2102_v27, %v2106_v28  ;;  %v2109_v42 = vld [vmem:[%s18647_s4 + $0xbc0] sm:$0xff] }
 0x2b9   :  { %8344 = vmatpush1.bf16.msra.mxu1 %v12067_v34  ;;  %8017 = vmatprep.subr.bf16.mxu0 %v12074_v40  ;;  %v12099_v34 = vcombine.low %v2078_v47, %v2082_v23  ;;  %v12106_v40 = vcombine.high %v2085_v1, %v2089_v4  ;;  %v994_v47 = vrot.slane %v14622_v25, %v15025_v38  ;;  %v2110_v23 = vld [vmem:[%s18647_s4 + $0xbc8] sm:$0xff] }
 0x2ba   :  { %8345 = vmatprep.subr.bf16.mxu1 %v12076_v5  ;;  %v12108_v5 = vcombine.high %v2086_v61, %v2090_v63 }
 0x2bc   :  { %8018 = vmatpush1.bf16.msra.mxu0 %v12073_v16  ;;  %v12105_v16 = vcombine.low %v2085_v1, %v2089_v4  ;;  %v2121_v1 = vld [vmem:[%s18647_s4 + $0xc20] sm:$0xff]  ;;  %v1533_v4 = vadd.f32 %v14803_v29, %v994_v47 }
 0x2bd   :  { %8346 = vmatpush1.bf16.msra.mxu1 %v12075_v3  ;;  %8019 = vmatprep.subr.bf16.mxu0 %v12082_v17  ;;  %v12107_v3 = vcombine.low %v2086_v61, %v2090_v63  ;;  %v12114_v17 = vcombine.high %v2093_v12, %v2097_v14  ;;  %v2125_v29 = vld [vmem:[%s18647_s4 + $0xc40] sm:$0xff] }
 0x2be   :  { %8347 = vmatprep.subr.bf16.mxu1 %v12084_v19  ;;  %v12116_v19 = vcombine.high %v2094_v52, %v2098_v15 }
 0x2c0   :  { %8020 = vmatpush1.bf16.msra.mxu0 %v12081_v30  ;;  %v12113_v30 = vcombine.low %v2093_v12, %v2097_v14  ;;  %v2126_v12 = vld [vmem:[%s18647_s4 + $0xc48] sm:$0xff] }
 0x2c1   :  { %8348 = vmatpush1.bf16.msra.mxu1 %v12083_v32  ;;  %8021 = vmatprep.subr.bf16.mxu0 %v12090_v36  ;;  %v982_v32 = vrot.slane %v14622_v25, %v14963_v37  ;;  %v12115_v36 = vcombine.low %v2094_v52, %v2098_v15  ;;  %v2117_v25 = vld [vmem:[%s18647_s4 + $0xc00] sm:$0xff]  ;;  %v2130_v14 = vld [vmem:[%s18647_s4 + $0xc68] sm:$0xff] }
 0x2c2   :  { %v1694_v57 = vpop.f32.mrb[28].mxu1  ;;  %8349 = vmatprep.subr.bf16.mxu1 %v12092_v39  ;;  %v12122_v39 = vcombine.high %v2101_v20, %v2105_v22 }
 0x2c3   :  { %v15049_v8 = vadd.f32 %v1694_v57, %v1022_v44  ;;  %v1696_v59 = vpop.f32.mrb[29].mxu1  ;;  %v2113_v44 = vld [vmem:[%s18647_s4 + $0xbe0] sm:$0xff] }
 0x2c4   :  { %v15057_v0 = vadd.f32 %v1696_v59, %v1026_v49  ;;  %v1698_v2 = vpop.f32.mrb[30].mxu1  ;;  %8022 = vmatpush1.bf16.msra.mxu0 %v12089_v53  ;;  %v2114_v49 = vld [vmem:[%s18647_s4 + $0xbe8] sm:$0xff]  ;;  %v12121_v53 = vcombine.low %v2101_v20, %v2105_v22  ;;  %v12130_v57 = vcombine.high %v2109_v42, %v2113_v44  ;;  %v12129_v61 = vcombine.low %v2109_v42, %v2113_v44 }
 0x2c5   :  { %8350 = vmatpush1.bf16.msra.mxu1 %v12091_v55  ;;  %v1699_v10 = vpop.f32.mrb[31].mxu1  ;;  %8023 = vmatprep.subr.bf16.mxu0 %v12098_v56  ;;  %v1490_v55 = vadd.f32 %v14740_v48, %v982_v32  ;;  %v12123_v56 = vcombine.low %v2102_v27, %v2106_v28  ;;  %v2118_v48 = vld [vmem:[%s18647_s4 + $0xc08] sm:$0xff]  ;;  %v12131_v2 = vcombine.low %v2110_v23, %v2114_v49 }
 0x2c6   :  { %8351 = vmatprep.subr.bf16.mxu1 %v12100_v58  ;;  %v12132_v58 = vcombine.high %v2110_v23, %v2114_v49  ;;  %v2122_v59 = vld [vmem:[%s18647_s4 + $0xc28] sm:$0xff]  ;;  %v12148_v20 = vcombine.high %v2126_v12, %v2130_v14 }
 0x2c7   :  { %v1705_v63 = vmax.f32 %v1490_v55, 0.0  ;;  %v12140_v10 = vcombine.high %v2118_v48, %v2122_v59  ;;  %v12139_v15 = vcombine.low %v2118_v48, %v2122_v59  ;;  %v2134_v22 = vld [vmem:[%s18647_s4 + $0xc88] sm:$0xff]  ;;  %v2149_v55 = vld [vmem:[%s18647_s4 + $0xd00] sm:$0xff] }
 0x2c8   :  { %8024 = vmatpush1.bf16.msra.mxu0 %v12097_v9  ;;  %v12138_v9 = vcombine.high %v2117_v25, %v2121_v1  ;;  %v2138_v27 = vld [vmem:[%s18647_s4 + $0xca8] sm:$0xff]  ;;  %v2157_v59 = vld [vmem:[%s18647_s4 + $0xd40] sm:$0xff] }
 0x2c9   :  { %8352 = vmatpush1.bf16.msra.mxu1 %v12099_v34  ;;  %8025 = vmatprep.subr.bf16.mxu0 %v12106_v40  ;;  %v1708_v34 = vmax.f32 %v1533_v4, 0.0  ;;  %v2129_v40 = vld [vmem:[%s18647_s4 + $0xc60] sm:$0xff]  ;;  %v15125_v52 = vpack.c.bf16 %v1705_v63, %v1705_v63  ;;  %v2142_v42 = vld [vmem:[%s18647_s4 + $0xcc8] sm:$0xff]  ;;  %v12155_v23 = vcombine.low %v2134_v22, %v2138_v27 }
 0x2ca   :  { %8353 = vmatprep.subr.bf16.mxu1 %v12108_v5  ;;  %v12137_v5 = vcombine.low %v2117_v25, %v2121_v1  ;;  %v12145_v28 = vcombine.low %v2125_v29, %v2129_v40  ;;  %v2146_v44 = vld [vmem:[%s18647_s4 + $0xce8] sm:$0xff] }
 0x2cb   :  { %v12163_v1 = vcombine.low %v2142_v42, %v2146_v44  ;;  %v2158_v63 = vld [vmem:[%s18647_s4 + $0xd48] sm:$0xff] }
 0x2cc   :  { %8026 = vmatpush1.bf16.msra.mxu0 %v12105_v16  ;;  %v12146_v16 = vcombine.high %v2125_v29, %v2129_v40  ;;  %v2165_v40 = vld [vmem:[%s18647_s4 + $0xd80] sm:$0xff] }
 0x2cd   :  { %8354 = vmatpush1.bf16.msra.mxu1 %v12107_v3  ;;  %8027 = vmatprep.subr.bf16.mxu0 %v12114_v17  ;;  %v2133_v3 = vld [vmem:[%s18647_s4 + $0xc80] sm:$0xff] }
 0x2ce   :  { %8355 = vmatprep.subr.bf16.mxu1 %v12116_v19  ;;  %v2137_v17 = vld [vmem:[%s18647_s4 + $0xca0] sm:$0xff]  ;;  %v15133_v19 = vpack.c.bf16 %v1708_v34, %v1708_v34 }
 0x2cf   :  { %v12154_v32 = vcombine.high %v2133_v3, %v2137_v17  ;;  %v12153_v47 = vcombine.low %v2133_v3, %v2137_v17 }
 0x2d0   :  { %8028 = vmatpush1.bf16.msra.mxu0 %v12113_v30  ;;  %v12147_v30 = vcombine.low %v2126_v12, %v2130_v14  ;;  %v2166_v12 = vld [vmem:[%s18647_s4 + $0xd88] sm:$0xff] }
 0x2d1   :  { %8356 = vmatpush1.bf16.msra.mxu1 %v12115_v36  ;;  %8029 = vmatprep.subr.bf16.mxu0 %v12122_v39  ;;  %v12156_v36 = vcombine.high %v2134_v22, %v2138_v27  ;;  %v2141_v39 = vld [vmem:[%s18647_s4 + $0xcc0] sm:$0xff]  ;;  %v2170_v14 = vld [vmem:[%s18647_s4 + $0xda8] sm:$0xff] }
 0x2d2   :  { %8357 = vmatprep.subr.bf16.mxu1 %v12124_v41  ;;  %v2145_v41 = vld [vmem:[%s18647_s4 + $0xce0] sm:$0xff]  ;;  %v12188_v17 = vcombine.high %v2166_v12, %v2170_v14  ;;  %v2174_v27 = vld [vmem:[%s18647_s4 + $0xdc8] sm:$0xff] }
 0x2d3   :  { %v12162_v49 = vcombine.high %v2141_v39, %v2145_v41  ;;  %v12161_v25 = vcombine.low %v2141_v39, %v2145_v41  ;;  %v2177_v22 = vld [vmem:[%s18647_s4 + $0xde0] sm:$0xff] }
 0x2d4   :  { %8030 = vmatpush1.bf16.msra.mxu0 %v12121_v53  ;;  %v12164_v53 = vcombine.high %v2142_v42, %v2146_v44  ;;  %v2181_v41 = vld [vmem:[%s18647_s4 + $0xe00] sm:$0xff]  ;;  %v2182_v44 = vld [vmem:[%s18647_s4 + $0xe08] sm:$0xff] }
 0x2d5   :  { %8358 = vmatpush1.bf16.msra.mxu1 %v12123_v56  ;;  %8031 = vmatprep.subr.bf16.mxu0 %v12130_v57  ;;  %v2153_v56 = vld [vmem:[%s18647_s4 + $0xd20] sm:$0xff]  ;;  %v2150_v57 = vld [vmem:[%s18647_s4 + $0xd08] sm:$0xff] }
 0x2d6   :  { %8359 = vmatprep.subr.bf16.mxu1 %v12132_v58  ;;  %v2154_v58 = vld [vmem:[%s18647_s4 + $0xd28] sm:$0xff]  ;;  %v12170_v4 = vcombine.high %v2149_v55, %v2153_v56  ;;  %v2185_v42 = vld [vmem:[%s18647_s4 + $0xe20] sm:$0xff] }
 0x2d7   :  { %v12172_v48 = vcombine.high %v2150_v57, %v2154_v58 }
 0x2d8   :  { %8032 = vmatpush1.bf16.msra.mxu0 %v12129_v61  ;;  %v2161_v61 = vld [vmem:[%s18647_s4 + $0xd60] sm:$0xff] }
 0x2d9   :  { %8360 = vmatpush1.bf16.msra.mxu1 %v12131_v2  ;;  %8042 = vmatprep.subr.bf16.mxu0 %v12138_v9  ;;  %v2162_v2 = vld [vmem:[%s18647_s4 + $0xd68] sm:$0xff]  ;;  %v12169_v9 = vcombine.low %v2149_v55, %v2153_v56  ;;  %v12178_v34 = vcombine.high %v2157_v59, %v2161_v61  ;;  %v2189_v56 = vld [vmem:[%s18647_s4 + $0xe40] sm:$0xff] }
 0x2da   :  { %8370 = vmatprep.subr.bf16.mxu1 %v12140_v10  ;;  %v12171_v10 = vcombine.low %v2150_v57, %v2154_v58  ;;  %v12180_v29 = vcombine.high %v2158_v63, %v2162_v2  ;;  %v2193_v57 = vld [vmem:[%s18647_s4 + $0xe60] sm:$0xff]  ;;  %v2190_v58 = vld [vmem:[%s18647_s4 + $0xe48] sm:$0xff] }
 0x2db   :  { %8034 = vmatmul.mubr.bf16.vlgmr.msra.gmra.mrb[64].mxu0 %v15125_v52 }
 0x2dc   :  { %8362 = vmatmul.mubr.bf16.vlgmr.msra.gmra.mrb[32].mxu1 %v15125_v52  ;;  %8043 = vmatpush1.bf16.msra.mxu0 %v12137_v5  ;;  %v2169_v5 = vld [vmem:[%s18647_s4 + $0xda0] sm:$0xff] }
 0x2dd   :  { %8074 = vmatprep.mubr.bf16.mxu0 %v15133_v19  ;;  %8371 = vmatpush1.bf16.msra.mxu1 %v12139_v15  ;;  %v12177_v15 = vcombine.low %v2157_v59, %v2161_v61  ;;  %v12186_v3 = vcombine.high %v2165_v40, %v2169_v5  ;;  %v2197_v61 = vld [vmem:[%s18647_s4 + $0xe80] sm:$0xff] }
 0x2de   :  { %8402 = vmatprep.mubr.bf16.mxu1 %v15133_v19  ;;  %8044 = vmatprep.subr.bf16.mxu0 %v12146_v16  ;;  %v12179_v16 = vcombine.low %v2158_v63, %v2162_v2  ;;  %v2201_v63 = vld [vmem:[%s18647_s4 + $0xea0] sm:$0xff]  ;;  %v2198_v2 = vld [vmem:[%s18647_s4 + $0xe88] sm:$0xff] }
 0x2df   :  { %8372 = vmatprep.subr.bf16.mxu1 %v12148_v20  ;;  %v2173_v20 = vld [vmem:[%s18647_s4 + $0xdc0] sm:$0xff] }
 0x2e0   :  { %8045 = vmatpush1.bf16.msra.mxu0 %v12145_v28  ;;  %v2178_v28 = vld [vmem:[%s18647_s4 + $0xde8] sm:$0xff] }
 0x2e1   :  { %8373 = vmatpush1.bf16.msra.mxu1 %v12147_v30  ;;  %8046 = vmatprep.subr.bf16.mxu0 %v12154_v32  ;;  %v12185_v30 = vcombine.low %v2165_v40, %v2169_v5  ;;  %v12187_v32 = vcombine.low %v2166_v12, %v2170_v14  ;;  %v12196_v39 = vcombine.high %v2174_v27, %v2178_v28  ;;  %v2205_v5 = vld [vmem:[%s18647_s4 + $0xec0] sm:$0xff]  ;;  %v2206_v14 = vld [vmem:[%s18647_s4 + $0xec8] sm:$0xff] }
 0x2e2   :  { %8374 = vmatprep.subr.bf16.mxu1 %v12156_v36  ;;  %v12194_v36 = vcombine.high %v2173_v20, %v2177_v22  ;;  %v2209_v12 = vld [vmem:[%s18647_s4 + $0xee0] sm:$0xff] }
 0x2e4   :  { %8047 = vmatpush1.bf16.msra.mxu0 %v12153_v47  ;;  %v2186_v47 = vld [vmem:[%s18647_s4 + $0xe28] sm:$0xff] }
 0x2e5   :  { %8375 = vmatpush1.bf16.msra.mxu1 %v12155_v23  ;;  %8048 = vmatprep.subr.bf16.mxu0 %v12162_v49  ;;  %v12193_v23 = vcombine.low %v2173_v20, %v2177_v22  ;;  %v12195_v49 = vcombine.low %v2174_v27, %v2178_v28  ;;  %v12204_v55 = vcombine.high %v2182_v44, %v2186_v47  ;;  %v2213_v22 = vld [vmem:[%s18647_s4 + $0xf00] sm:$0xff]  ;;  %v2214_v28 = vld [vmem:[%s18647_s4 + $0xf08] sm:$0xff] }
 0x2e6   :  { %8376 = vmatprep.subr.bf16.mxu1 %v12164_v53  ;;  %v12202_v53 = vcombine.high %v2181_v41, %v2185_v42  ;;  %v2217_v27 = vld [vmem:[%s18647_s4 + $0xf20] sm:$0xff] }
 0x2e8   :  { %8049 = vmatpush1.bf16.msra.mxu0 %v12161_v25  ;;  %v2194_v25 = vld [vmem:[%s18647_s4 + $0xe68] sm:$0xff] }
 0x2e9   :  { %8377 = vmatpush1.bf16.msra.mxu1 %v12163_v1  ;;  %8050 = vmatprep.subr.bf16.mxu0 %v12170_v4  ;;  %v12201_v1 = vcombine.low %v2181_v41, %v2185_v42  ;;  %v12203_v4 = vcombine.low %v2182_v44, %v2186_v47  ;;  %v12212_v59 = vcombine.high %v2190_v58, %v2194_v25  ;;  %v2221_v42 = vld [vmem:[%s18647_s4 + $0xf40] sm:$0xff]  ;;  %v2222_v47 = vld [vmem:[%s18647_s4 + $0xf48] sm:$0xff] }
 0x2ea   :  { %8378 = vmatprep.subr.bf16.mxu1 %v12172_v48  ;;  %v12210_v48 = vcombine.high %v2189_v56, %v2193_v57  ;;  %v2225_v44 = vld [vmem:[%s18647_s4 + $0xf60] sm:$0xff] }
 0x2ec   :  { %8051 = vmatpush1.bf16.msra.mxu0 %v12169_v9  ;;  %v2202_v9 = vld [vmem:[%s18647_s4 + $0xea8] sm:$0xff] }
 0x2ed   :  { %8379 = vmatpush1.bf16.msra.mxu1 %v12171_v10  ;;  %8052 = vmatprep.subr.bf16.mxu0 %v12178_v34  ;;  %v12209_v10 = vcombine.low %v2189_v56, %v2193_v57  ;;  %v12211_v34 = vcombine.low %v2190_v58, %v2194_v25  ;;  %v12220_v40 = vcombine.high %v2198_v2, %v2202_v9  ;;  %v2229_v57 = vld [vmem:[%s18647_s4 + $0xf80] sm:$0xff]  ;;  %v2230_v25 = vld [vmem:[%s18647_s4 + $0xf88] sm:$0xff] }
 0x2ee   :  { %8380 = vmatprep.subr.bf16.mxu1 %v12180_v29  ;;  %v12218_v29 = vcombine.high %v2197_v61, %v2201_v63  ;;  %v2233_v58 = vld [vmem:[%s18647_s4 + $0xfa0] sm:$0xff] }
 0x2f0   :  { %8053 = vmatpush1.bf16.msra.mxu0 %v12177_v15  ;;  %v2210_v15 = vld [vmem:[%s18647_s4 + $0xee8] sm:$0xff] }
 0x2f1   :  { %8381 = vmatpush1.bf16.msra.mxu1 %v12179_v16  ;;  %8054 = vmatprep.subr.bf16.mxu0 %v12186_v3  ;;  %v12217_v16 = vcombine.low %v2197_v61, %v2201_v63  ;;  %v12219_v3 = vcombine.low %v2198_v2, %v2202_v9  ;;  %v12228_v20 = vcombine.high %v2206_v14, %v2210_v15  ;;  %v2237_v9 = vld [vmem:[%s18647_s4 + $0xfc0] sm:$0xff] }
 0x2f2   :  { %8382 = vmatprep.subr.bf16.mxu1 %v12188_v17  ;;  %v12226_v17 = vcombine.high %v2205_v5, %v2209_v12  ;;  %v12250_v63 = vcombine.high %v2229_v57, %v2233_v58 }
 0x2f4   :  { %8055 = vmatpush1.bf16.msra.mxu0 %v12185_v30  ;;  %v2218_v30 = vld [vmem:[%s18647_s4 + $0xf28] sm:$0xff] }
 0x2f5   :  { %8383 = vmatpush1.bf16.msra.mxu1 %v12187_v32  ;;  %8056 = vmatprep.subr.bf16.mxu0 %v12194_v36  ;;  %v12225_v32 = vcombine.low %v2205_v5, %v2209_v12  ;;  %v12227_v36 = vcombine.low %v2206_v14, %v2210_v15  ;;  %v12236_v41 = vcombine.high %v2214_v28, %v2218_v30 }
 0x2f6   :  { %8384 = vmatprep.subr.bf16.mxu1 %v12196_v39  ;;  %v12234_v39 = vcombine.high %v2213_v22, %v2217_v27  ;;  %v12249_v5 = vcombine.low %v2229_v57, %v2233_v58  ;;  %v2262_v58 = vld [vmem:[%s18647_s4 + $0x1088] sm:$0xff] }
 0x2f8   :  { %8057 = vmatpush1.bf16.msra.mxu0 %v12193_v23  ;;  %v2226_v23 = vld [vmem:[%s18647_s4 + $0xf68] sm:$0xff] }
 0x2f9   :  { %8385 = vmatpush1.bf16.msra.mxu1 %v12195_v49  ;;  %8058 = vmatprep.subr.bf16.mxu0 %v12202_v53  ;;  %v12233_v49 = vcombine.low %v2213_v22, %v2217_v27  ;;  %v12235_v53 = vcombine.low %v2214_v28, %v2218_v30  ;;  %v12244_v56 = vcombine.high %v2222_v47, %v2226_v23 }
 0x2fa   :  { %8386 = vmatprep.subr.bf16.mxu1 %v12204_v55  ;;  %v12242_v55 = vcombine.high %v2221_v42, %v2225_v44  ;;  %v12243_v61 = vcombine.low %v2222_v47, %v2226_v23 }
 0x2fc   :  { %8059 = vmatpush1.bf16.msra.mxu0 %v12201_v1  ;;  %v2234_v1 = vld [vmem:[%s18647_s4 + $0xfa8] sm:$0xff] }
 0x2fd   :  { %8387 = vmatpush1.bf16.msra.mxu1 %v12203_v4  ;;  %8060 = vmatprep.subr.bf16.mxu0 %v12210_v48  ;;  %v12241_v4 = vcombine.low %v2221_v42, %v2225_v44  ;;  %v13868_v48 = vld [vmem:[%s18646_s3] sm:$0xff]  ;;  %v12252_v2 = vcombine.high %v2230_v25, %v2234_v1  ;;  %v12251_v14 = vcombine.low %v2230_v25, %v2234_v1  ;;  %v2254_v42 = vld [vmem:[%s18647_s4 + $0x1048] sm:$0xff] }
 0x2fe   :  { %8388 = vmatprep.subr.bf16.mxu1 %v12212_v59  ;;  %v990_v59 = vrot.slane %v13868_v48, %v15022_v62  ;;  %v2258_v44 = vld [vmem:[%s18647_s4 + $0x1068] sm:$0xff] }
 0x2ff   :  { %v12276_v57 = vcombine.high %v2254_v42, %v2258_v44  ;;  %v2266_v25 = vld [vmem:[%s18647_s4 + $0x10a8] sm:$0xff] }
 0x300   :  { %8061 = vmatpush1.bf16.msra.mxu0 %v12209_v10  ;;  %v2241_v10 = vld [vmem:[%s18647_s4 + $0xfe0] sm:$0xff]  ;;  %v1531_v12 = vadd.f32 %v14792_v21, %v990_v59  ;;  %v2246_v21 = vld [vmem:[%s18647_s4 + $0x1008] sm:$0xff]  ;;  %v12284_v59 = vcombine.high %v2262_v58, %v2266_v25 }
 0x301   :  { %8389 = vmatpush1.bf16.msra.mxu1 %v12211_v34  ;;  %8062 = vmatprep.subr.bf16.mxu0 %v12218_v29  ;;  %v1002_v34 = vrot.slane %v14904_v50, %v14625_v26  ;;  %v2238_v29 = vld [vmem:[%s18647_s4 + $0xfc8] sm:$0xff]  ;;  %v12258_v15 = vcombine.high %v2237_v9, %v2241_v10  ;;  %v2245_v50 = vld [vmem:[%s18647_s4 + $0x1000] sm:$0xff]  ;;  %v12257_v22 = vcombine.low %v2237_v9, %v2241_v10 }
 0x302   :  { %8390 = vmatprep.subr.bf16.mxu1 %v12220_v40  ;;  %v2242_v40 = vld [vmem:[%s18647_s4 + $0xfe8] sm:$0xff]  ;;  %v1707_v27 = vmax.f32 %v1531_v12, 0.0  ;;  %v2281_v12 = vld [vmem:[%s18647_s4 + $0x1120] sm:$0xff] }
 0x303   :  { %v12259_v28 = vcombine.low %v2238_v29, %v2242_v40  ;;  %v2274_v9 = vld [vmem:[%s18647_s4 + $0x10e8] sm:$0xff] }
 0x304   :  { %8063 = vmatpush1.bf16.msra.mxu0 %v12217_v16  ;;  %v12260_v16 = vcombine.high %v2238_v29, %v2242_v40  ;;  %v15333_v47 = vpack.c.bf16 %v1707_v27, %v1707_v27  ;;  %v2290_v27 = vld [vmem:[%s18647_s4 + $0x1168] sm:$0xff] }
 0x305   :  { %8391 = vmatpush1.bf16.msra.mxu1 %v12219_v3  ;;  %8064 = vmatprep.subr.bf16.mxu0 %v12226_v17  ;;  %v2249_v3 = vld [vmem:[%s18647_s4 + $0x1020] sm:$0xff]  ;;  %v1574_v17 = vadd.f32 %v14867_v13, %v1002_v34  ;;  %v12283_v34 = vcombine.low %v2262_v58, %v2266_v25  ;;  %v2302_v58 = vld [vmem:[%s18647_s4 + $0x11c8] sm:$0xff] }
 0x306   :  { %8392 = vmatprep.subr.bf16.mxu1 %v12228_v20  ;;  %v2250_v20 = vld [vmem:[%s18647_s4 + $0x1028] sm:$0xff]  ;;  %v12266_v30 = vcombine.high %v2245_v50, %v2249_v3  ;;  %v2253_v13 = vld [vmem:[%s18647_s4 + $0x1040] sm:$0xff] }
 0x307   :  { %v12267_v23 = vcombine.low %v2246_v21, %v2250_v20  ;;  %v2306_v25 = vld [vmem:[%s18647_s4 + $0x11e8] sm:$0xff] }
 0x308   :  { %8065 = vmatpush1.bf16.msra.mxu0 %v12225_v32  ;;  %v12268_v32 = vcombine.high %v2246_v21, %v2250_v20  ;;  %v2285_v21 = vld [vmem:[%s18647_s4 + $0x1140] sm:$0xff] }
 0x309   :  { %8393 = vmatpush1.bf16.msra.mxu1 %v12227_v36  ;;  %8066 = vmatprep.subr.bf16.mxu0 %v12234_v39  ;;  %v1710_v36 = vmax.f32 %v1574_v17, 0.0  ;;  %v2257_v39 = vld [vmem:[%s18647_s4 + $0x1060] sm:$0xff] }
 0x30a   :  { %8394 = vmatprep.subr.bf16.mxu1 %v12236_v41  ;;  %v12265_v41 = vcombine.low %v2245_v50, %v2249_v3  ;;  %v12273_v1 = vcombine.low %v2253_v13, %v2257_v39  ;;  %v2289_v20 = vld [vmem:[%s18647_s4 + $0x1160] sm:$0xff] }
 0x30c   :  { %8067 = vmatpush1.bf16.msra.mxu0 %v12233_v49  ;;  %v12274_v49 = vcombine.high %v2253_v13, %v2257_v39  ;;  %v2293_v13 = vld [vmem:[%s18647_s4 + $0x1180] sm:$0xff] }
 0x30d   :  { %8395 = vmatpush1.bf16.msra.mxu1 %v12235_v53  ;;  %8068 = vmatprep.subr.bf16.mxu0 %v12242_v55  ;;  %v2261_v53 = vld [vmem:[%s18647_s4 + $0x1080] sm:$0xff] }
 0x30e   :  { %8396 = vmatprep.subr.bf16.mxu1 %v12244_v56  ;;  %v2265_v55 = vld [vmem:[%s18647_s4 + $0x10a0] sm:$0xff]  ;;  %v15341_v56 = vpack.c.bf16 %v1710_v36, %v1710_v36 }
 0x30f   :  { %v12282_v48 = vcombine.high %v2261_v53, %v2265_v55  ;;  %v12281_v10 = vcombine.low %v2261_v53, %v2265_v55  ;;  %v2297_v39 = vld [vmem:[%s18647_s4 + $0x11a0] sm:$0xff] }
 0x310   :  { %8069 = vmatpush1.bf16.msra.mxu0 %v12241_v4  ;;  %v12275_v4 = vcombine.low %v2254_v42, %v2258_v44  ;;  %v2298_v42 = vld [vmem:[%s18647_s4 + $0x11a8] sm:$0xff]  ;;  %v12305_v44 = vcombine.low %v2285_v21, %v2289_v20  ;;  %v2301_v55 = vld [vmem:[%s18647_s4 + $0x11c0] sm:$0xff] }
 0x311   :  { %8397 = vmatpush1.bf16.msra.mxu1 %v12243_v61  ;;  %8070 = vmatprep.subr.bf16.mxu0 %v12250_v63  ;;  %v2269_v61 = vld [vmem:[%s18647_s4 + $0x10c0] sm:$0xff] }
 0x312   :  { %8398 = vmatprep.subr.bf16.mxu1 %v12252_v2  ;;  %v2273_v63 = vld [vmem:[%s18647_s4 + $0x10e0] sm:$0xff]  ;;  %v2270_v2 = vld [vmem:[%s18647_s4 + $0x10c8] sm:$0xff] }
 0x313   :  { %v12290_v29 = vcombine.high %v2269_v61, %v2273_v63  ;;  %v12292_v40 = vcombine.high %v2270_v2, %v2274_v9  ;;  %v12291_v50 = vcombine.low %v2270_v2, %v2274_v9  ;;  %v2310_v2 = vld [vmem:[%s18647_s4 + $0x1208] sm:$0xff] }
 0x314   :  { %8071 = vmatpush1.bf16.msra.mxu0 %v12249_v5  ;;  %v2277_v5 = vld [vmem:[%s18647_s4 + $0x1100] sm:$0xff]  ;;  %v2314_v9 = vld [vmem:[%s18647_s4 + $0x1228] sm:$0xff] }
 0x315   :  { %8399 = vmatpush1.bf16.msra.mxu1 %v12251_v14  ;;  %8072 = vmatprep.subr.bf16.mxu0 %v12258_v15  ;;  %v2278_v14 = vld [vmem:[%s18647_s4 + $0x1108] sm:$0xff]  ;;  %v12298_v3 = vcombine.high %v2277_v5, %v2281_v12 }
 0x316   :  { %8400 = vmatprep.subr.bf16.mxu1 %v12260_v16  ;;  %v2282_v15 = vld [vmem:[%s18647_s4 + $0x1128] sm:$0xff]  ;;  %v12289_v16 = vcombine.low %v2269_v61, %v2273_v63  ;;  %v2309_v61 = vld [vmem:[%s18647_s4 + $0x1200] sm:$0xff] }
 0x317   :  { %v12300_v17 = vcombine.high %v2278_v14, %v2282_v15  ;;  %v2313_v63 = vld [vmem:[%s18647_s4 + $0x1220] sm:$0xff] }
 0x318   :  { %8073 = vmatpush1.bf16.msra.mxu0 %v12257_v22  ;;  %v2286_v22 = vld [vmem:[%s18647_s4 + $0x1148] sm:$0xff] }
 0x319   :  { %8401 = vmatpush1.bf16.msra.mxu1 %v12259_v28  ;;  %8083 = vmatprep.subr.bf16.mxu0 %v12266_v30  ;;  %v12297_v28 = vcombine.low %v2277_v5, %v2281_v12  ;;  %v12299_v30 = vcombine.low %v2278_v14, %v2282_v15  ;;  %v12308_v36 = vcombine.high %v2286_v22, %v2290_v27  ;;  %v2317_v5 = vld [vmem:[%s18647_s4 + $0x1240] sm:$0xff]  ;;  %v2318_v14 = vld [vmem:[%s18647_s4 + $0x1248] sm:$0xff] }
 0x31a   :  { %8411 = vmatprep.subr.bf16.mxu1 %v12268_v32  ;;  %v12306_v32 = vcombine.high %v2285_v21, %v2289_v20  ;;  %v2321_v12 = vld [vmem:[%s18647_s4 + $0x1260] sm:$0xff]  ;;  %v2322_v15 = vld [vmem:[%s18647_s4 + $0x1268] sm:$0xff] }
 0x31b   :  { %8075 = vmatmul.mubr.bf16.vlgmr.msra.gmra.mrb[64].mxu0 %v15333_v47  ;;  %v2325_v21 = vld [vmem:[%s18647_s4 + $0x1280] sm:$0xff] }
 0x31c   :  { %8403 = vmatmul.mubr.bf16.vlgmr.msra.gmra.mrb[32].mxu1 %v15333_v47  ;;  %8084 = vmatpush1.bf16.msra.mxu0 %v12265_v41  ;;  %v2294_v41 = vld [vmem:[%s18647_s4 + $0x1188] sm:$0xff]  ;;  %v2329_v20 = vld [vmem:[%s18647_s4 + $0x12a0] sm:$0xff] }
 0x31d   :  { %8115 = vmatprep.mubr.bf16.mxu0 %v15341_v56  ;;  %8412 = vmatpush1.bf16.msra.mxu1 %v12267_v23  ;;  %v12307_v23 = vcombine.low %v2286_v22, %v2290_v27  ;;  %v12316_v53 = vcombine.high %v2294_v41, %v2298_v42  ;;  %v2326_v22 = vld [vmem:[%s18647_s4 + $0x1288] sm:$0xff] }
 0x31e   :  { %8443 = vmatprep.mubr.bf16.mxu1 %v15341_v56  ;;  %8085 = vmatprep.subr.bf16.mxu0 %v12274_v49  ;;  %v12314_v49 = vcombine.high %v2293_v13, %v2297_v39  ;;  %v2330_v27 = vld [vmem:[%s18647_s4 + $0x12a8] sm:$0xff] }
 0x31f   :  { %8413 = vmatprep.subr.bf16.mxu1 %v12276_v57  ;;  %v2305_v57 = vld [vmem:[%s18647_s4 + $0x11e0] sm:$0xff] }
 0x320   :  { %8086 = vmatpush1.bf16.msra.mxu0 %v12273_v1  ;;  %v12313_v1 = vcombine.low %v2293_v13, %v2297_v39  ;;  %v2333_v13 = vld [vmem:[%s18647_s4 + $0x12c0] sm:$0xff] }
 0x321   :  { %8414 = vmatpush1.bf16.msra.mxu1 %v12275_v4  ;;  %8087 = vmatprep.subr.bf16.mxu0 %v12282_v48  ;;  %v12315_v4 = vcombine.low %v2294_v41, %v2298_v42  ;;  %v12322_v48 = vcombine.high %v2301_v55, %v2305_v57  ;;  %v2337_v39 = vld [vmem:[%s18647_s4 + $0x12e0] sm:$0xff]  ;;  %v2334_v41 = vld [vmem:[%s18647_s4 + $0x12c8] sm:$0xff] }
 0x322   :  { %8415 = vmatprep.subr.bf16.mxu1 %v12284_v59  ;;  %v12324_v59 = vcombine.high %v2302_v58, %v2306_v25  ;;  %v2338_v42 = vld [vmem:[%s18647_s4 + $0x12e8] sm:$0xff] }
 0x324   :  { %8088 = vmatpush1.bf16.msra.mxu0 %v12281_v10  ;;  %v12321_v10 = vcombine.low %v2301_v55, %v2305_v57  ;;  %v2341_v55 = vld [vmem:[%s18647_s4 + $0x1300] sm:$0xff] }
 0x325   :  { %8416 = vmatpush1.bf16.msra.mxu1 %v12283_v34  ;;  %8089 = vmatprep.subr.bf16.mxu0 %v12290_v29  ;;  %v12323_v34 = vcombine.low %v2302_v58, %v2306_v25  ;;  %v12330_v29 = vcombine.high %v2309_v61, %v2313_v63  ;;  %v2345_v57 = vld [vmem:[%s18647_s4 + $0x1320] sm:$0xff]  ;;  %v2342_v58 = vld [vmem:[%s18647_s4 + $0x1308] sm:$0xff] }
 0x326   :  { %8417 = vmatprep.subr.bf16.mxu1 %v12292_v40  ;;  %v12332_v40 = vcombine.high %v2310_v2, %v2314_v9  ;;  %v2346_v25 = vld [vmem:[%s18647_s4 + $0x1328] sm:$0xff] }
 0x328   :  { %8090 = vmatpush1.bf16.msra.mxu0 %v12289_v16  ;;  %v12329_v16 = vcombine.low %v2309_v61, %v2313_v63  ;;  %v2349_v61 = vld [vmem:[%s18647_s4 + $0x1340] sm:$0xff] }
 0x329   :  { %8418 = vmatpush1.bf16.msra.mxu1 %v12291_v50  ;;  %8091 = vmatprep.subr.bf16.mxu0 %v12298_v3  ;;  %v12331_v50 = vcombine.low %v2310_v2, %v2314_v9  ;;  %v12338_v3 = vcombine.high %v2317_v5, %v2321_v12  ;;  %v2353_v63 = vld [vmem:[%s18647_s4 + $0x1360] sm:$0xff]  ;;  %v2350_v2 = vld [vmem:[%s18647_s4 + $0x1348] sm:$0xff] }
 0x32a   :  { %8419 = vmatprep.subr.bf16.mxu1 %v12300_v17  ;;  %v12340_v17 = vcombine.high %v2318_v14, %v2322_v15  ;;  %v2354_v9 = vld [vmem:[%s18647_s4 + $0x1368] sm:$0xff] }
 0x32c   :  { %8092 = vmatpush1.bf16.msra.mxu0 %v12297_v28  ;;  %v12337_v28 = vcombine.low %v2317_v5, %v2321_v12  ;;  %v2357_v5 = vld [vmem:[%s18647_s4 + $0x1380] sm:$0xff] }
 0x32d   :  { %8420 = vmatpush1.bf16.msra.mxu1 %v12299_v30  ;;  %8093 = vmatprep.subr.bf16.mxu0 %v12306_v32  ;;  %v12339_v30 = vcombine.low %v2318_v14, %v2322_v15  ;;  %v12346_v32 = vcombine.high %v2325_v21, %v2329_v20  ;;  %v2361_v12 = vld [vmem:[%s18647_s4 + $0x13a0] sm:$0xff]  ;;  %v2358_v14 = vld [vmem:[%s18647_s4 + $0x1388] sm:$0xff] }
 0x32e   :  { %8421 = vmatprep.subr.bf16.mxu1 %v12308_v36  ;;  %v12348_v36 = vcombine.high %v2326_v22, %v2330_v27  ;;  %v2362_v15 = vld [vmem:[%s18647_s4 + $0x13a8] sm:$0xff] }
 0x330   :  { %8094 = vmatpush1.bf16.msra.mxu0 %v12305_v44  ;;  %v12345_v44 = vcombine.low %v2325_v21, %v2329_v20  ;;  %v12378_v21 = vcombine.high %v2357_v5, %v2361_v12  ;;  %v12380_v20 = vcombine.high %v2358_v14, %v2362_v15 }
 0x331   :  { %8422 = vmatpush1.bf16.msra.mxu1 %v12307_v23  ;;  %8095 = vmatprep.subr.bf16.mxu0 %v12314_v49  ;;  %v12347_v23 = vcombine.low %v2326_v22, %v2330_v27  ;;  %v12354_v49 = vcombine.high %v2333_v13, %v2337_v39  ;;  %v2365_v22 = vld [vmem:[%s18647_s4 + $0x13c0] sm:$0xff] }
 0x332   :  { %8423 = vmatprep.subr.bf16.mxu1 %v12316_v53  ;;  %v12356_v53 = vcombine.high %v2334_v41, %v2338_v42  ;;  %v2369_v27 = vld [vmem:[%s18647_s4 + $0x13e0] sm:$0xff] }
 0x334   :  { %8096 = vmatpush1.bf16.msra.mxu0 %v12313_v1  ;;  %v12353_v1 = vcombine.low %v2333_v13, %v2337_v39  ;;  %v12379_v13 = vcombine.low %v2358_v14, %v2362_v15  ;;  %v12386_v39 = vcombine.high %v2365_v22, %v2369_v27 }
 0x335   :  { %8424 = vmatpush1.bf16.msra.mxu1 %v12315_v4  ;;  %8097 = vmatprep.subr.bf16.mxu0 %v12322_v48  ;;  %v12355_v4 = vcombine.low %v2334_v41, %v2338_v42  ;;  %v12362_v48 = vcombine.high %v2341_v55, %v2345_v57  ;;  %v2373_v42 = vld [vmem:[%s18647_s4 + $0x1400] sm:$0xff] }
 0x336   :  { %8425 = vmatprep.subr.bf16.mxu1 %v12324_v59  ;;  %v12364_v59 = vcombine.high %v2342_v58, %v2346_v25 }
 0x338   :  { %8098 = vmatpush1.bf16.msra.mxu0 %v12321_v10  ;;  %v12361_v10 = vcombine.low %v2341_v55, %v2345_v57 }
 0x339   :  { %8426 = vmatpush1.bf16.msra.mxu1 %v12323_v34  ;;  %8099 = vmatprep.subr.bf16.mxu0 %v12330_v29  ;;  %v12363_v34 = vcombine.low %v2342_v58, %v2346_v25  ;;  %v12370_v29 = vcombine.high %v2349_v61, %v2353_v63  ;;  %v1712_v25 = vmax.f32 %v14936_v11, 0.0 }
 0x33a   :  { %8427 = vmatprep.subr.bf16.mxu1 %v12332_v40  ;;  %v12372_v40 = vcombine.high %v2350_v2, %v2354_v9 }
 0x33c   :  { %8100 = vmatpush1.bf16.msra.mxu0 %v12329_v16  ;;  %v12369_v16 = vcombine.low %v2349_v61, %v2353_v63  ;;  %v2386_v61 = vld [vmem:[%s18647_s4 + $0x1468] sm:$0xff] }
 0x33d   :  { %8428 = vmatpush1.bf16.msra.mxu1 %v12331_v50  ;;  %8101 = vmatprep.subr.bf16.mxu0 %v12338_v3  ;;  %v13869_v50 = vld [vmem:[%s18646_s3 + $0x8] sm:$0xff] }
 0x33e   :  { %8429 = vmatprep.subr.bf16.mxu1 %v12340_v17  ;;  %v998_v3 = vrot.slane %v13869_v50, %v14617_v24  ;;  %v12371_v17 = vcombine.low %v2350_v2, %v2354_v9  ;;  %v2389_v9 = vld [vmem:[%s18647_s4 + $0x1480] sm:$0xff] }
 0x33f   :  { %v2397_v50 = vld [vmem:[%s18647_s4 + $0x14c0] sm:$0xff] }
 0x340   :  { %8102 = vmatpush1.bf16.msra.mxu0 %v12337_v28  ;;  %v2366_v28 = vld [vmem:[%s18647_s4 + $0x13c8] sm:$0xff] }
 0x341   :  { %8430 = vmatpush1.bf16.msra.mxu1 %v12339_v30  ;;  %8103 = vmatprep.subr.bf16.mxu0 %v12346_v32  ;;  %v2370_v30 = vld [vmem:[%s18647_s4 + $0x13e8] sm:$0xff]  ;;  %v12377_v32 = vcombine.low %v2357_v5, %v2361_v12 }
 0x342   :  { %8431 = vmatprep.subr.bf16.mxu1 %v12348_v36  ;;  %v1572_v36 = vadd.f32 %v14856_v35, %v998_v3  ;;  %v12388_v41 = vcombine.high %v2366_v28, %v2370_v30  ;;  %v2378_v35 = vld [vmem:[%s18647_s4 + $0x1428] sm:$0xff]  ;;  %v12387_v55 = vcombine.low %v2366_v28, %v2370_v30  ;;  %v2401_v3 = vld [vmem:[%s18647_s4 + $0x14e0] sm:$0xff] }
 0x343   :  { %v2394_v5 = vld [vmem:[%s18647_s4 + $0x14a8] sm:$0xff]  ;;  %v2405_v30 = vld [vmem:[%s18647_s4 + $0x1500] sm:$0xff] }
 0x344   :  { %8104 = vmatpush1.bf16.msra.mxu0 %v12345_v44  ;;  %v2377_v44 = vld [vmem:[%s18647_s4 + $0x1420] sm:$0xff] }
 0x345   :  { %8432 = vmatpush1.bf16.msra.mxu1 %v12347_v23  ;;  %8105 = vmatprep.subr.bf16.mxu0 %v12354_v49  ;;  %v2374_v23 = vld [vmem:[%s18647_s4 + $0x1408] sm:$0xff]  ;;  %v12385_v49 = vcombine.low %v2365_v22, %v2369_v27  ;;  %v12394_v57 = vcombine.high %v2373_v42, %v2377_v44  ;;  %v12418_v27 = vcombine.high %v2397_v50, %v2401_v3 }
 0x346   :  { %8433 = vmatprep.subr.bf16.mxu1 %v12356_v53  ;;  %v1709_v53 = vmax.f32 %v1572_v36, 0.0  ;;  %v12396_v58 = vcombine.high %v2374_v23, %v2378_v35  ;;  %v12395_v11 = vcombine.low %v2374_v23, %v2378_v35  ;;  %v2406_v36 = vld [vmem:[%s18647_s4 + $0x1508] sm:$0xff]  ;;  %v2413_v23 = vld [vmem:[%s18647_s4 + $0x1540] sm:$0xff] }
 0x347   :  { %v2417_v35 = vld [vmem:[%s18647_s4 + $0x1560] sm:$0xff] }
 0x348   :  { %8106 = vmatpush1.bf16.msra.mxu0 %v12353_v1  ;;  %v2381_v1 = vld [vmem:[%s18647_s4 + $0x1440] sm:$0xff]  ;;  %v15539_v63 = vpack.c.bf16 %v1709_v53, %v1709_v53  ;;  %v2418_v53 = vld [vmem:[%s18647_s4 + $0x1568] sm:$0xff] }
 0x349   :  { %8434 = vmatpush1.bf16.msra.mxu1 %v12355_v4  ;;  %8107 = vmatprep.subr.bf16.mxu0 %v12362_v48  ;;  %v2385_v4 = vld [vmem:[%s18647_s4 + $0x1460] sm:$0xff]  ;;  %v12393_v48 = vcombine.low %v2373_v42, %v2377_v44 }
 0x34a   :  { %8435 = vmatprep.subr.bf16.mxu1 %v12364_v59  ;;  %v2382_v59 = vld [vmem:[%s18647_s4 + $0x1448] sm:$0xff]  ;;  %v12402_v2 = vcombine.high %v2381_v1, %v2385_v4  ;;  %v12401_v12 = vcombine.low %v2381_v1, %v2385_v4  ;;  %v2421_v1 = vld [vmem:[%s18647_s4 + $0x1580] sm:$0xff] }
 0x34b   :  { %v12403_v14 = vcombine.low %v2382_v59, %v2386_v61  ;;  %v2425_v4 = vld [vmem:[%s18647_s4 + $0x15a0] sm:$0xff] }
 0x34c   :  { %8108 = vmatpush1.bf16.msra.mxu0 %v12361_v10  ;;  %v2393_v10 = vld [vmem:[%s18647_s4 + $0x14a0] sm:$0xff] }
 0x34d   :  { %8436 = vmatpush1.bf16.msra.mxu1 %v12363_v34  ;;  %8109 = vmatprep.subr.bf16.mxu0 %v12370_v29  ;;  %v15547_v34 = vpack.c.bf16 %v1712_v25, %v1712_v25  ;;  %v12404_v29 = vcombine.high %v2382_v59, %v2386_v61  ;;  %v12410_v15 = vcombine.high %v2389_v9, %v2393_v10  ;;  %v2426_v59 = vld [vmem:[%s18647_s4 + $0x15a8] sm:$0xff] }
 0x34e   :  { %8437 = vmatprep.subr.bf16.mxu1 %v12372_v40  ;;  %v2390_v40 = vld [vmem:[%s18647_s4 + $0x1488] sm:$0xff]  ;;  %v12433_v61 = vcombine.low %v2413_v23, %v2417_v35 }
 0x34f   :  { %v12411_v22 = vcombine.low %v2390_v40, %v2394_v5 }
 0x350   :  { %8110 = vmatpush1.bf16.msra.mxu0 %v12369_v16  ;;  %v12412_v16 = vcombine.high %v2390_v40, %v2394_v5  ;;  %v2430_v40 = vld [vmem:[%s18647_s4 + $0x15c8] sm:$0xff] }
 0x351   :  { %8438 = vmatpush1.bf16.msra.mxu1 %v12371_v17  ;;  %8111 = vmatprep.subr.bf16.mxu0 %v12378_v21  ;;  %v2398_v17 = vld [vmem:[%s18647_s4 + $0x14c8] sm:$0xff] }
 0x352   :  { %8439 = vmatprep.subr.bf16.mxu1 %v12380_v20  ;;  %v2402_v21 = vld [vmem:[%s18647_s4 + $0x14e8] sm:$0xff]  ;;  %v12409_v20 = vcombine.low %v2389_v9, %v2393_v10  ;;  %v2429_v10 = vld [vmem:[%s18647_s4 + $0x15c0] sm:$0xff] }
 0x353   :  { %v12420_v28 = vcombine.high %v2398_v17, %v2402_v21  ;;  %v2434_v5 = vld [vmem:[%s18647_s4 + $0x15e8] sm:$0xff] }
 0x354   :  { %8112 = vmatpush1.bf16.msra.mxu0 %v12377_v32  ;;  %v2409_v32 = vld [vmem:[%s18647_s4 + $0x1520] sm:$0xff] }
 0x355   :  { %8440 = vmatpush1.bf16.msra.mxu1 %v12379_v13  ;;  %8113 = vmatprep.subr.bf16.mxu0 %v12386_v39  ;;  %v2410_v13 = vld [vmem:[%s18647_s4 + $0x1528] sm:$0xff]  ;;  %v12417_v39 = vcombine.low %v2397_v50, %v2401_v3  ;;  %v12426_v42 = vcombine.high %v2405_v30, %v2409_v32  ;;  %v2437_v50 = vld [vmem:[%s18647_s4 + $0x1600] sm:$0xff] }
 0x356   :  { %8441 = vmatprep.subr.bf16.mxu1 %v12388_v41  ;;  %v12419_v41 = vcombine.low %v2398_v17, %v2402_v21  ;;  %v12428_v44 = vcombine.high %v2406_v36, %v2410_v13  ;;  %v2441_v3 = vld [vmem:[%s18647_s4 + $0x1620] sm:$0xff]  ;;  %v2438_v17 = vld [vmem:[%s18647_s4 + $0x1608] sm:$0xff] }
 0x357   :  { %v2442_v21 = vld [vmem:[%s18647_s4 + $0x1628] sm:$0xff] }
 0x358   :  { %8114 = vmatpush1.bf16.msra.mxu0 %v12385_v49  ;;  %v2414_v49 = vld [vmem:[%s18647_s4 + $0x1548] sm:$0xff] }
 0x359   :  { %8442 = vmatpush1.bf16.msra.mxu1 %v12387_v55  ;;  %8124 = vmatprep.subr.bf16.mxu0 %v12394_v57  ;;  %v12425_v55 = vcombine.low %v2405_v30, %v2409_v32  ;;  %v12427_v57 = vcombine.low %v2406_v36, %v2410_v13  ;;  %v12436_v25 = vcombine.high %v2414_v49, %v2418_v53  ;;  %v2445_v30 = vld [vmem:[%s18647_s4 + $0x1640] sm:$0xff]  ;;  %v2446_v36 = vld [vmem:[%s18647_s4 + $0x1648] sm:$0xff] }
 0x35a   :  { %8452 = vmatprep.subr.bf16.mxu1 %v12396_v58  ;;  %v12434_v58 = vcombine.high %v2413_v23, %v2417_v35  ;;  %v2449_v32 = vld [vmem:[%s18647_s4 + $0x1660] sm:$0xff]  ;;  %v2450_v13 = vld [vmem:[%s18647_s4 + $0x1668] sm:$0xff] }
 0x35b   :  { %8116 = vmatmul.mubr.bf16.vlgmr.msra.gmra.mrb[64].mxu0 %v15539_v63  ;;  %v2453_v23 = vld [vmem:[%s18647_s4 + $0x1680] sm:$0xff] }
 0x35c   :  { %8444 = vmatmul.mubr.bf16.vlgmr.msra.gmra.mrb[32].mxu1 %v15539_v63  ;;  %8125 = vmatpush1.bf16.msra.mxu0 %v12393_v48  ;;  %v2422_v48 = vld [vmem:[%s18647_s4 + $0x1588] sm:$0xff]  ;;  %v2457_v35 = vld [vmem:[%s18647_s4 + $0x16a0] sm:$0xff] }
 0x35d   :  { %8156 = vmatprep.mubr.bf16.mxu0 %v15547_v34  ;;  %8453 = vmatpush1.bf16.msra.mxu1 %v12395_v11  ;;  %v12435_v11 = vcombine.low %v2414_v49, %v2418_v53  ;;  %v12444_v9 = vcombine.high %v2422_v48, %v2426_v59  ;;  %v2454_v49 = vld [vmem:[%s18647_s4 + $0x1688] sm:$0xff] }
 0x35e   :  { %8484 = vmatprep.mubr.bf16.mxu1 %v15547_v34  ;;  %8126 = vmatprep.subr.bf16.mxu0 %v12402_v2  ;;  %v12442_v2 = vcombine.high %v2421_v1, %v2425_v4  ;;  %v2458_v53 = vld [vmem:[%s18647_s4 + $0x16a8] sm:$0xff] }
 0x35f   :  { %8454 = vmatprep.subr.bf16.mxu1 %v12404_v29  ;;  %v2433_v29 = vld [vmem:[%s18647_s4 + $0x15e0] sm:$0xff] }
 0x360   :  { %8127 = vmatpush1.bf16.msra.mxu0 %v12401_v12  ;;  %v12441_v12 = vcombine.low %v2421_v1, %v2425_v4  ;;  %v2461_v1 = vld [vmem:[%s18647_s4 + $0x16c0] sm:$0xff] }
 0x361   :  { %8455 = vmatpush1.bf16.msra.mxu1 %v12403_v14  ;;  %8128 = vmatprep.subr.bf16.mxu0 %v12410_v15  ;;  %v12443_v14 = vcombine.low %v2422_v48, %v2426_v59  ;;  %v12450_v15 = vcombine.high %v2429_v10, %v2433_v29  ;;  %v2465_v4 = vld [vmem:[%s18647_s4 + $0x16e0] sm:$0xff]  ;;  %v2462_v48 = vld [vmem:[%s18647_s4 + $0x16c8] sm:$0xff] }
 0x362   :  { %8456 = vmatprep.subr.bf16.mxu1 %v12412_v16  ;;  %v12452_v16 = vcombine.high %v2430_v40, %v2434_v5  ;;  %v2466_v59 = vld [vmem:[%s18647_s4 + $0x16e8] sm:$0xff] }
 0x364   :  { %8129 = vmatpush1.bf16.msra.mxu0 %v12409_v20  ;;  %v12449_v20 = vcombine.low %v2429_v10, %v2433_v29  ;;  %v2469_v10 = vld [vmem:[%s18647_s4 + $0x1700] sm:$0xff] }
 0x365   :  { %8457 = vmatpush1.bf16.msra.mxu1 %v12411_v22  ;;  %8130 = vmatprep.subr.bf16.mxu0 %v12418_v27  ;;  %v12451_v22 = vcombine.low %v2430_v40, %v2434_v5  ;;  %v12458_v27 = vcombine.high %v2437_v50, %v2441_v3  ;;  %v2473_v29 = vld [vmem:[%s18647_s4 + $0x1720] sm:$0xff]  ;;  %v2470_v40 = vld [vmem:[%s18647_s4 + $0x1708] sm:$0xff] }
 0x366   :  { %8458 = vmatprep.subr.bf16.mxu1 %v12420_v28  ;;  %v12460_v28 = vcombine.high %v2438_v17, %v2442_v21  ;;  %v2474_v5 = vld [vmem:[%s18647_s4 + $0x1728] sm:$0xff] }
 0x368   :  { %8131 = vmatpush1.bf16.msra.mxu0 %v12417_v39  ;;  %v12457_v39 = vcombine.low %v2437_v50, %v2441_v3  ;;  %v2477_v50 = vld [vmem:[%s18647_s4 + $0x1740] sm:$0xff] }
 0x369   :  { %8459 = vmatpush1.bf16.msra.mxu1 %v12419_v41  ;;  %8132 = vmatprep.subr.bf16.mxu0 %v12426_v42  ;;  %v12459_v41 = vcombine.low %v2438_v17, %v2442_v21  ;;  %v12466_v42 = vcombine.high %v2445_v30, %v2449_v32  ;;  %v2481_v3 = vld [vmem:[%s18647_s4 + $0x1760] sm:$0xff]  ;;  %v2478_v17 = vld [vmem:[%s18647_s4 + $0x1748] sm:$0xff] }
 0x36a   :  { %8460 = vmatprep.subr.bf16.mxu1 %v12428_v44  ;;  %v12468_v44 = vcombine.high %v2446_v36, %v2450_v13  ;;  %v2482_v21 = vld [vmem:[%s18647_s4 + $0x1768] sm:$0xff] }
 0x36c   :  { %8133 = vmatpush1.bf16.msra.mxu0 %v12425_v55  ;;  %v12465_v55 = vcombine.low %v2445_v30, %v2449_v32  ;;  %v2485_v30 = vld [vmem:[%s18647_s4 + $0x1780] sm:$0xff] }
 0x36d   :  { %8461 = vmatpush1.bf16.msra.mxu1 %v12427_v57  ;;  %8134 = vmatprep.subr.bf16.mxu0 %v12434_v58  ;;  %v12467_v57 = vcombine.low %v2446_v36, %v2450_v13  ;;  %v12474_v58 = vcombine.high %v2453_v23, %v2457_v35  ;;  %v2489_v32 = vld [vmem:[%s18647_s4 + $0x17a0] sm:$0xff]  ;;  %v2486_v36 = vld [vmem:[%s18647_s4 + $0x1788] sm:$0xff] }
 0x36e   :  { %8462 = vmatprep.subr.bf16.mxu1 %v12436_v25  ;;  %v12476_v25 = vcombine.high %v2454_v49, %v2458_v53  ;;  %v2490_v13 = vld [vmem:[%s18647_s4 + $0x17a8] sm:$0xff] }
 0x370   :  { %8135 = vmatpush1.bf16.msra.mxu0 %v12433_v61  ;;  %v12473_v61 = vcombine.low %v2453_v23, %v2457_v35  ;;  %v2493_v23 = vld [vmem:[%s18647_s4 + $0x17c0] sm:$0xff] }
 0x371   :  { %8463 = vmatpush1.bf16.msra.mxu1 %v12435_v11  ;;  %8136 = vmatprep.subr.bf16.mxu0 %v12442_v2  ;;  %v12475_v11 = vcombine.low %v2454_v49, %v2458_v53  ;;  %v12482_v2 = vcombine.high %v2461_v1, %v2465_v4  ;;  %v2497_v35 = vld [vmem:[%s18647_s4 + $0x17e0] sm:$0xff]  ;;  %v2494_v49 = vld [vmem:[%s18647_s4 + $0x17c8] sm:$0xff] }
 0x372   :  { %8464 = vmatprep.subr.bf16.mxu1 %v12444_v9  ;;  %v12484_v9 = vcombine.high %v2462_v48, %v2466_v59  ;;  %v2498_v53 = vld [vmem:[%s18647_s4 + $0x17e8] sm:$0xff] }
 0x374   :  { %8137 = vmatpush1.bf16.msra.mxu0 %v12441_v12  ;;  %v12481_v12 = vcombine.low %v2461_v1, %v2465_v4  ;;  %v2501_v1 = vld [vmem:[%s18647_s4 + $0x1800] sm:$0xff] }
 0x375   :  { %8465 = vmatpush1.bf16.msra.mxu1 %v12443_v14  ;;  %8138 = vmatprep.subr.bf16.mxu0 %v12450_v15  ;;  %v12483_v14 = vcombine.low %v2462_v48, %v2466_v59  ;;  %v12490_v15 = vcombine.high %v2469_v10, %v2473_v29  ;;  %v2505_v4 = vld [vmem:[%s18647_s4 + $0x1820] sm:$0xff]  ;;  %v2502_v48 = vld [vmem:[%s18647_s4 + $0x1808] sm:$0xff] }
 0x376   :  { %8466 = vmatprep.subr.bf16.mxu1 %v12452_v16  ;;  %v12492_v16 = vcombine.high %v2470_v40, %v2474_v5  ;;  %v2506_v59 = vld [vmem:[%s18647_s4 + $0x1828] sm:$0xff] }
 0x378   :  { %8139 = vmatpush1.bf16.msra.mxu0 %v12449_v20  ;;  %v12489_v20 = vcombine.low %v2469_v10, %v2473_v29  ;;  %v12524_v10 = vcombine.high %v2502_v48, %v2506_v59  ;;  %v1714_v29 = vmax.f32 %v14995_v6, 0.0  ;;  %v12523_v6 = vcombine.low %v2502_v48, %v2506_v59  ;;  %v2541_v48 = vld [vmem:[%s18647_s4 + $0x1940] sm:$0xff] }
 0x379   :  { %8467 = vmatpush1.bf16.msra.mxu1 %v12451_v22  ;;  %8140 = vmatprep.subr.bf16.mxu0 %v12458_v27  ;;  %v12491_v22 = vcombine.low %v2470_v40, %v2474_v5  ;;  %v12498_v27 = vcombine.high %v2477_v50, %v2481_v3  ;;  %v2509_v40 = vld [vmem:[%s18647_s4 + $0x1840] sm:$0xff] }
 0x37a   :  { %8468 = vmatprep.subr.bf16.mxu1 %v12460_v28  ;;  %v12500_v28 = vcombine.high %v2478_v17, %v2482_v21  ;;  %v2513_v5 = vld [vmem:[%s18647_s4 + $0x1860] sm:$0xff] }
 0x37b   :  { %v2545_v59 = vld [vmem:[%s18647_s4 + $0x1960] sm:$0xff] }
 0x37c   :  { %8141 = vmatpush1.bf16.msra.mxu0 %v12457_v39  ;;  %v12497_v39 = vcombine.low %v2477_v50, %v2481_v3  ;;  %v2517_v50 = vld [vmem:[%s18647_s4 + $0x1880] sm:$0xff] }
 0x37d   :  { %8469 = vmatpush1.bf16.msra.mxu1 %v12459_v41  ;;  %8142 = vmatprep.subr.bf16.mxu0 %v12466_v42  ;;  %v12499_v41 = vcombine.low %v2478_v17, %v2482_v21  ;;  %v12506_v42 = vcombine.high %v2485_v30, %v2489_v32  ;;  %v2521_v3 = vld [vmem:[%s18647_s4 + $0x18a0] sm:$0xff]  ;;  %v15749_v17 = vpack.c.bf16 %v1714_v29, %v1714_v29 }
 0x37e   :  { %8470 = vmatprep.subr.bf16.mxu1 %v12468_v44  ;;  %v12508_v44 = vcombine.high %v2486_v36, %v2490_v13 }
 0x380   :  { %8143 = vmatpush1.bf16.msra.mxu0 %v12465_v55  ;;  %v12505_v55 = vcombine.low %v2485_v30, %v2489_v32  ;;  %v12538_v30 = vcombine.high %v2517_v50, %v2521_v3 }
 0x381   :  { %8471 = vmatpush1.bf16.msra.mxu1 %v12467_v57  ;;  %8144 = vmatprep.subr.bf16.mxu0 %v12474_v58  ;;  %v12507_v57 = vcombine.low %v2486_v36, %v2490_v13  ;;  %v12514_v58 = vcombine.high %v2493_v23, %v2497_v35  ;;  %v2525_v36 = vld [vmem:[%s18647_s4 + $0x18c0] sm:$0xff] }
 0x382   :  { %8472 = vmatprep.subr.bf16.mxu1 %v12476_v25  ;;  %v12516_v25 = vcombine.high %v2494_v49, %v2498_v53  ;;  %v2529_v13 = vld [vmem:[%s18647_s4 + $0x18e0] sm:$0xff] }
 0x384   :  { %8145 = vmatpush1.bf16.msra.mxu0 %v12473_v61  ;;  %v12513_v61 = vcombine.low %v2493_v23, %v2497_v35  ;;  %v12546_v23 = vcombine.high %v2525_v36, %v2529_v13 }
 0x385   :  { %8473 = vmatpush1.bf16.msra.mxu1 %v12475_v11  ;;  %8146 = vmatprep.subr.bf16.mxu0 %v12482_v2  ;;  %v1711_v11 = vmax.f32 %v14928_v7, 0.0  ;;  %v12515_v2 = vcombine.low %v2494_v49, %v2498_v53  ;;  %v2510_v7 = vld [vmem:[%s18647_s4 + $0x1848] sm:$0xff]  ;;  %v2533_v49 = vld [vmem:[%s18647_s4 + $0x1900] sm:$0xff] }
 0x386   :  { %8474 = vmatprep.subr.bf16.mxu1 %v12484_v9  ;;  %v12522_v9 = vcombine.high %v2501_v1, %v2505_v4  ;;  %v2537_v53 = vld [vmem:[%s18647_s4 + $0x1920] sm:$0xff] }
 0x388   :  { %8147 = vmatpush1.bf16.msra.mxu0 %v12481_v12  ;;  %v12521_v12 = vcombine.low %v2501_v1, %v2505_v4  ;;  %v12554_v1 = vcombine.high %v2533_v49, %v2537_v53 }
 0x389   :  { %8475 = vmatpush1.bf16.msra.mxu1 %v12483_v14  ;;  %8148 = vmatprep.subr.bf16.mxu0 %v12490_v15  ;;  %v2514_v14 = vld [vmem:[%s18647_s4 + $0x1868] sm:$0xff]  ;;  %v15741_v15 = vpack.c.bf16 %v1711_v11, %v1711_v11 }
 0x38a   :  { %8476 = vmatprep.subr.bf16.mxu1 %v12492_v16  ;;  %v12530_v16 = vcombine.high %v2509_v40, %v2513_v5  ;;  %v12532_v21 = vcombine.high %v2510_v7, %v2514_v14  ;;  %v2546_v11 = vld [vmem:[%s18647_s4 + $0x1968] sm:$0xff] }
 0x38c   :  { %8149 = vmatpush1.bf16.msra.mxu0 %v12489_v20  ;;  %v2518_v20 = vld [vmem:[%s18647_s4 + $0x1888] sm:$0xff] }
 0x38d   :  { %8477 = vmatpush1.bf16.msra.mxu1 %v12491_v22  ;;  %8150 = vmatprep.subr.bf16.mxu0 %v12498_v27  ;;  %v2522_v22 = vld [vmem:[%s18647_s4 + $0x18a8] sm:$0xff]  ;;  %v12529_v27 = vcombine.low %v2509_v40, %v2513_v5  ;;  %v2549_v40 = vld [vmem:[%s18647_s4 + $0x1980] sm:$0xff] }
 0x38e   :  { %8478 = vmatprep.subr.bf16.mxu1 %v12500_v28  ;;  %v12531_v28 = vcombine.low %v2510_v7, %v2514_v14  ;;  %v12540_v32 = vcombine.high %v2518_v20, %v2522_v22  ;;  %v2553_v5 = vld [vmem:[%s18647_s4 + $0x19a0] sm:$0xff]  ;;  %v2554_v7 = vld [vmem:[%s18647_s4 + $0x19a8] sm:$0xff]  ;;  %v12561_v14 = vcombine.low %v2541_v48, %v2545_v59 }
 0x390   :  { %8151 = vmatpush1.bf16.msra.mxu0 %v12497_v39  ;;  %v2526_v39 = vld [vmem:[%s18647_s4 + $0x18c8] sm:$0xff] }
 0x391   :  { %8479 = vmatpush1.bf16.msra.mxu1 %v12499_v41  ;;  %8152 = vmatprep.subr.bf16.mxu0 %v12506_v42  ;;  %v2530_v41 = vld [vmem:[%s18647_s4 + $0x18e8] sm:$0xff]  ;;  %v12537_v42 = vcombine.low %v2517_v50, %v2521_v3  ;;  %v2557_v3 = vld [vmem:[%s18647_s4 + $0x19c0] sm:$0xff] }
 0x392   :  { %8480 = vmatprep.subr.bf16.mxu1 %v12508_v44  ;;  %v12539_v44 = vcombine.low %v2518_v20, %v2522_v22  ;;  %v12548_v35 = vcombine.high %v2526_v39, %v2530_v41  ;;  %v2558_v20 = vld [vmem:[%s18647_s4 + $0x19c8] sm:$0xff] }
 0x393   :  { %v2562_v22 = vld [vmem:[%s18647_s4 + $0x19e8] sm:$0xff] }
 0x394   :  { %8153 = vmatpush1.bf16.msra.mxu0 %v12505_v55  ;;  %v2534_v55 = vld [vmem:[%s18647_s4 + $0x1908] sm:$0xff] }
 0x395   :  { %8481 = vmatpush1.bf16.msra.mxu1 %v12507_v57  ;;  %8154 = vmatprep.subr.bf16.mxu0 %v12514_v58  ;;  %v2538_v57 = vld [vmem:[%s18647_s4 + $0x1928] sm:$0xff]  ;;  %v12545_v58 = vcombine.low %v2525_v36, %v2529_v13  ;;  %v2565_v36 = vld [vmem:[%s18647_s4 + $0x1a00] sm:$0xff] }
 0x396   :  { %8482 = vmatprep.subr.bf16.mxu1 %v12516_v25  ;;  %v12547_v25 = vcombine.low %v2526_v39, %v2530_v41  ;;  %v12556_v4 = vcombine.high %v2534_v55, %v2538_v57  ;;  %v2569_v13 = vld [vmem:[%s18647_s4 + $0x1a20] sm:$0xff]  ;;  %v2566_v39 = vld [vmem:[%s18647_s4 + $0x1a08] sm:$0xff] }
 0x397   :  { %v2570_v41 = vld [vmem:[%s18647_s4 + $0x1a28] sm:$0xff] }
 0x398   :  { %8155 = vmatpush1.bf16.msra.mxu0 %v12513_v61  ;;  %v2542_v61 = vld [vmem:[%s18647_s4 + $0x1948] sm:$0xff] }
 0x399   :  { %8483 = vmatpush1.bf16.msra.mxu1 %v12515_v2  ;;  %8165 = vmatprep.subr.bf16.mxu0 %v12522_v9  ;;  %v12553_v2 = vcombine.low %v2533_v49, %v2537_v53  ;;  %v12555_v9 = vcombine.low %v2534_v55, %v2538_v57  ;;  %v12564_v29 = vcombine.high %v2542_v61, %v2546_v11  ;;  %v2573_v49 = vld [vmem:[%s18647_s4 + $0x1a40] sm:$0xff]  ;;  %v2574_v55 = vld [vmem:[%s18647_s4 + $0x1a48] sm:$0xff] }
 0x39a   :  { %8493 = vmatprep.subr.bf16.mxu1 %v12524_v10  ;;  %v12562_v10 = vcombine.high %v2541_v48, %v2545_v59  ;;  %v2577_v53 = vld [vmem:[%s18647_s4 + $0x1a60] sm:$0xff]  ;;  %v2578_v57 = vld [vmem:[%s18647_s4 + $0x1a68] sm:$0xff] }
 0x39b   :  { %8157 = vmatmul.mubr.bf16.vlgmr.msra.gmra.mrb[64].mxu0 %v15741_v15  ;;  %v2581_v48 = vld [vmem:[%s18647_s4 + $0x1a80] sm:$0xff] }
 0x39c   :  { %8485 = vmatmul.mubr.bf16.vlgmr.msra.gmra.mrb[32].mxu1 %v15741_v15  ;;  %8166 = vmatpush1.bf16.msra.mxu0 %v12521_v12  ;;  %v2550_v12 = vld [vmem:[%s18647_s4 + $0x1988] sm:$0xff]  ;;  %v2585_v59 = vld [vmem:[%s18647_s4 + $0x1aa0] sm:$0xff] }
 0x39d   :  { %8197 = vmatprep.mubr.bf16.mxu0 %v15749_v17  ;;  %8494 = vmatpush1.bf16.msra.mxu1 %v12523_v6  ;;  %v12563_v6 = vcombine.low %v2542_v61, %v2546_v11  ;;  %v12572_v50 = vcombine.high %v2550_v12, %v2554_v7  ;;  %v2582_v61 = vld [vmem:[%s18647_s4 + $0x1a88] sm:$0xff] }
 0x39e   :  { %8525 = vmatprep.mubr.bf16.mxu1 %v15749_v17  ;;  %8167 = vmatprep.subr.bf16.mxu0 %v12530_v16  ;;  %v12570_v16 = vcombine.high %v2549_v40, %v2553_v5  ;;  %v2586_v11 = vld [vmem:[%s18647_s4 + $0x1aa8] sm:$0xff] }
 0x39f   :  { %8495 = vmatprep.subr.bf16.mxu1 %v12532_v21  ;;  %v2561_v21 = vld [vmem:[%s18647_s4 + $0x19e0] sm:$0xff] }
 0x3a0   :  { %8168 = vmatpush1.bf16.msra.mxu0 %v12529_v27  ;;  %v12569_v27 = vcombine.low %v2549_v40, %v2553_v5  ;;  %v2589_v40 = vld [vmem:[%s18647_s4 + $0x1ac0] sm:$0xff] }
 0x3a1   :  { %8496 = vmatpush1.bf16.msra.mxu1 %v12531_v28  ;;  %8169 = vmatprep.subr.bf16.mxu0 %v12538_v30  ;;  %v12571_v28 = vcombine.low %v2550_v12, %v2554_v7  ;;  %v12578_v30 = vcombine.high %v2557_v3, %v2561_v21  ;;  %v2593_v5 = vld [vmem:[%s18647_s4 + $0x1ae0] sm:$0xff]  ;;  %v2590_v12 = vld [vmem:[%s18647_s4 + $0x1ac8] sm:$0xff] }
 0x3a2   :  { %8497 = vmatprep.subr.bf16.mxu1 %v12540_v32  ;;  %v12580_v32 = vcombine.high %v2558_v20, %v2562_v22  ;;  %v2594_v7 = vld [vmem:[%s18647_s4 + $0x1ae8] sm:$0xff] }
 0x3a4   :  { %8170 = vmatpush1.bf16.msra.mxu0 %v12537_v42  ;;  %v12577_v42 = vcombine.low %v2557_v3, %v2561_v21  ;;  %v2597_v3 = vld [vmem:[%s18647_s4 + $0x1b00] sm:$0xff] }
 0x3a5   :  { %8498 = vmatpush1.bf16.msra.mxu1 %v12539_v44  ;;  %8171 = vmatprep.subr.bf16.mxu0 %v12546_v23  ;;  %v12579_v44 = vcombine.low %v2558_v20, %v2562_v22  ;;  %v12586_v23 = vcombine.high %v2565_v36, %v2569_v13  ;;  %v2601_v21 = vld [vmem:[%s18647_s4 + $0x1b20] sm:$0xff]  ;;  %v2598_v20 = vld [vmem:[%s18647_s4 + $0x1b08] sm:$0xff] }
 0x3a6   :  { %8499 = vmatprep.subr.bf16.mxu1 %v12548_v35  ;;  %v12588_v35 = vcombine.high %v2566_v39, %v2570_v41  ;;  %v2602_v22 = vld [vmem:[%s18647_s4 + $0x1b28] sm:$0xff] }
 0x3a8   :  { %8172 = vmatpush1.bf16.msra.mxu0 %v12545_v58  ;;  %v12585_v58 = vcombine.low %v2565_v36, %v2569_v13  ;;  %v2605_v36 = vld [vmem:[%s18647_s4 + $0x1b40] sm:$0xff] }
 0x3a9   :  { %8500 = vmatpush1.bf16.msra.mxu1 %v12547_v25  ;;  %8173 = vmatprep.subr.bf16.mxu0 %v12554_v1  ;;  %v12587_v25 = vcombine.low %v2566_v39, %v2570_v41  ;;  %v12594_v1 = vcombine.high %v2573_v49, %v2577_v53  ;;  %v2609_v13 = vld [vmem:[%s18647_s4 + $0x1b60] sm:$0xff]  ;;  %v2606_v39 = vld [vmem:[%s18647_s4 + $0x1b48] sm:$0xff] }
 0x3aa   :  { %8501 = vmatprep.subr.bf16.mxu1 %v12556_v4  ;;  %v12596_v4 = vcombine.high %v2574_v55, %v2578_v57  ;;  %v2610_v41 = vld [vmem:[%s18647_s4 + $0x1b68] sm:$0xff] }
 0x3ac   :  { %8174 = vmatpush1.bf16.msra.mxu0 %v12553_v2  ;;  %v12593_v2 = vcombine.low %v2573_v49, %v2577_v53  ;;  %v2613_v49 = vld [vmem:[%s18647_s4 + $0x1b80] sm:$0xff] }
 0x3ad   :  { %8502 = vmatpush1.bf16.msra.mxu1 %v12555_v9  ;;  %8175 = vmatprep.subr.bf16.mxu0 %v12562_v10  ;;  %v12595_v9 = vcombine.low %v2574_v55, %v2578_v57  ;;  %v12602_v10 = vcombine.high %v2581_v48, %v2585_v59  ;;  %v2617_v53 = vld [vmem:[%s18647_s4 + $0x1ba0] sm:$0xff]  ;;  %v2614_v55 = vld [vmem:[%s18647_s4 + $0x1b88] sm:$0xff] }
 0x3ae   :  { %8503 = vmatprep.subr.bf16.mxu1 %v12564_v29  ;;  %v12604_v29 = vcombine.high %v2582_v61, %v2586_v11  ;;  %v2618_v57 = vld [vmem:[%s18647_s4 + $0x1ba8] sm:$0xff] }
 0x3b0   :  { %8176 = vmatpush1.bf16.msra.mxu0 %v12561_v14  ;;  %v12601_v14 = vcombine.low %v2581_v48, %v2585_v59  ;;  %v2621_v48 = vld [vmem:[%s18647_s4 + $0x1bc0] sm:$0xff] }
 0x3b1   :  { %8504 = vmatpush1.bf16.msra.mxu1 %v12563_v6  ;;  %8177 = vmatprep.subr.bf16.mxu0 %v12570_v16  ;;  %v12603_v6 = vcombine.low %v2582_v61, %v2586_v11  ;;  %v12610_v16 = vcombine.high %v2589_v40, %v2593_v5  ;;  %v2625_v59 = vld [vmem:[%s18647_s4 + $0x1be0] sm:$0xff]  ;;  %v2622_v61 = vld [vmem:[%s18647_s4 + $0x1bc8] sm:$0xff] }
 0x3b2   :  { %8505 = vmatprep.subr.bf16.mxu1 %v12572_v50  ;;  %v12612_v50 = vcombine.high %v2590_v12, %v2594_v7  ;;  %v2626_v11 = vld [vmem:[%s18647_s4 + $0x1be8] sm:$0xff] }
 0x3b4   :  { %8178 = vmatpush1.bf16.msra.mxu0 %v12569_v27  ;;  %v12609_v27 = vcombine.low %v2589_v40, %v2593_v5  ;;  %v2629_v40 = vld [vmem:[%s18647_s4 + $0x1c00] sm:$0xff] }
 0x3b5   :  { %8506 = vmatpush1.bf16.msra.mxu1 %v12571_v28  ;;  %8179 = vmatprep.subr.bf16.mxu0 %v12578_v30  ;;  %v12611_v28 = vcombine.low %v2590_v12, %v2594_v7  ;;  %v12618_v30 = vcombine.high %v2597_v3, %v2601_v21  ;;  %v2633_v5 = vld [vmem:[%s18647_s4 + $0x1c20] sm:$0xff]  ;;  %v2630_v12 = vld [vmem:[%s18647_s4 + $0x1c08] sm:$0xff] }
 0x3b6   :  { %8507 = vmatprep.subr.bf16.mxu1 %v12580_v32  ;;  %v12620_v32 = vcombine.high %v2598_v20, %v2602_v22  ;;  %v2634_v7 = vld [vmem:[%s18647_s4 + $0x1c28] sm:$0xff] }
 0x3b8   :  { %8180 = vmatpush1.bf16.msra.mxu0 %v12577_v42  ;;  %v12617_v42 = vcombine.low %v2597_v3, %v2601_v21  ;;  %v12652_v3 = vcombine.high %v2630_v12, %v2634_v7  ;;  %v1716_v21 = vmax.f32 %v15057_v0, 0.0  ;;  %v12651_v0 = vcombine.low %v2630_v12, %v2634_v7  ;;  %v2669_v12 = vld [vmem:[%s18647_s4 + $0x1d40] sm:$0xff] }
 0x3b9   :  { %8508 = vmatpush1.bf16.msra.mxu1 %v12579_v44  ;;  %8181 = vmatprep.subr.bf16.mxu0 %v12586_v23  ;;  %v12619_v44 = vcombine.low %v2598_v20, %v2602_v22  ;;  %v12626_v23 = vcombine.high %v2605_v36, %v2609_v13  ;;  %v2637_v20 = vld [vmem:[%s18647_s4 + $0x1c40] sm:$0xff] }
 0x3ba   :  { %8509 = vmatprep.subr.bf16.mxu1 %v12588_v35  ;;  %v12628_v35 = vcombine.high %v2606_v39, %v2610_v41  ;;  %v2641_v22 = vld [vmem:[%s18647_s4 + $0x1c60] sm:$0xff] }
 0x3bb   :  { %v2673_v7 = vld [vmem:[%s18647_s4 + $0x1d60] sm:$0xff] }
 0x3bc   :  { %8182 = vmatpush1.bf16.msra.mxu0 %v12585_v58  ;;  %v12625_v58 = vcombine.low %v2605_v36, %v2609_v13  ;;  %v2645_v36 = vld [vmem:[%s18647_s4 + $0x1c80] sm:$0xff] }
 0x3bd   :  { %8510 = vmatpush1.bf16.msra.mxu1 %v12587_v25  ;;  %8183 = vmatprep.subr.bf16.mxu0 %v12594_v1  ;;  %v12627_v25 = vcombine.low %v2606_v39, %v2610_v41  ;;  %v12634_v1 = vcombine.high %v2613_v49, %v2617_v53  ;;  %v2649_v13 = vld [vmem:[%s18647_s4 + $0x1ca0] sm:$0xff]  ;;  %v15951_v39 = vpack.c.bf16 %v1716_v21, %v1716_v21 }
 0x3be   :  { %8511 = vmatprep.subr.bf16.mxu1 %v12596_v4  ;;  %v12636_v4 = vcombine.high %v2614_v55, %v2618_v57 }
 0x3c0   :  { %8184 = vmatpush1.bf16.msra.mxu0 %v12593_v2  ;;  %v12633_v2 = vcombine.low %v2613_v49, %v2617_v53  ;;  %v12666_v49 = vcombine.high %v2645_v36, %v2649_v13 }
 0x3c1   :  { %8512 = vmatpush1.bf16.msra.mxu1 %v12595_v9  ;;  %8185 = vmatprep.subr.bf16.mxu0 %v12602_v10  ;;  %v12635_v9 = vcombine.low %v2614_v55, %v2618_v57  ;;  %v12642_v10 = vcombine.high %v2621_v48, %v2625_v59  ;;  %v2653_v55 = vld [vmem:[%s18647_s4 + $0x1cc0] sm:$0xff] }
 0x3c2   :  { %8513 = vmatprep.subr.bf16.mxu1 %v12604_v29  ;;  %v12644_v29 = vcombine.high %v2622_v61, %v2626_v11  ;;  %v2657_v57 = vld [vmem:[%s18647_s4 + $0x1ce0] sm:$0xff] }
 0x3c4   :  { %8186 = vmatpush1.bf16.msra.mxu0 %v12601_v14  ;;  %v12641_v14 = vcombine.low %v2621_v48, %v2625_v59  ;;  %v12674_v48 = vcombine.high %v2653_v55, %v2657_v57 }
 0x3c5   :  { %8514 = vmatpush1.bf16.msra.mxu1 %v12603_v6  ;;  %8187 = vmatprep.subr.bf16.mxu0 %v12610_v16  ;;  %v1713_v6 = vmax.f32 %v14987_v60, 0.0  ;;  %v12643_v16 = vcombine.low %v2622_v61, %v2626_v11  ;;  %v2638_v60 = vld [vmem:[%s18647_s4 + $0x1c48] sm:$0xff]  ;;  %v2661_v61 = vld [vmem:[%s18647_s4 + $0x1d00] sm:$0xff] }
 0x3c6   :  { %8515 = vmatprep.subr.bf16.mxu1 %v12612_v50  ;;  %v12650_v50 = vcombine.high %v2629_v40, %v2633_v5  ;;  %v2665_v11 = vld [vmem:[%s18647_s4 + $0x1d20] sm:$0xff] }
 0x3c8   :  { %8188 = vmatpush1.bf16.msra.mxu0 %v12609_v27  ;;  %v12649_v27 = vcombine.low %v2629_v40, %v2633_v5  ;;  %v12682_v40 = vcombine.high %v2661_v61, %v2665_v11 }
 0x3c9   :  { %8516 = vmatpush1.bf16.msra.mxu1 %v12611_v28  ;;  %8189 = vmatprep.subr.bf16.mxu0 %v12618_v30  ;;  %v2642_v28 = vld [vmem:[%s18647_s4 + $0x1c68] sm:$0xff]  ;;  %v15943_v30 = vpack.c.bf16 %v1713_v6, %v1713_v6 }
 0x3ca   :  { %8517 = vmatprep.subr.bf16.mxu1 %v12620_v32  ;;  %v12658_v32 = vcombine.high %v2637_v20, %v2641_v22  ;;  %v12660_v41 = vcombine.high %v2638_v60, %v2642_v28  ;;  %v2674_v6 = vld [vmem:[%s18647_s4 + $0x1d68] sm:$0xff] }
 0x3cc   :  { %8190 = vmatpush1.bf16.msra.mxu0 %v12617_v42  ;;  %v2646_v42 = vld [vmem:[%s18647_s4 + $0x1c88] sm:$0xff] }
 0x3cd   :  { %8518 = vmatpush1.bf16.msra.mxu1 %v12619_v44  ;;  %8191 = vmatprep.subr.bf16.mxu0 %v12626_v23  ;;  %v2650_v44 = vld [vmem:[%s18647_s4 + $0x1ca8] sm:$0xff]  ;;  %v12657_v23 = vcombine.low %v2637_v20, %v2641_v22  ;;  %v2677_v20 = vld [vmem:[%s18647_s4 + $0x1d80] sm:$0xff] }
 0x3ce   :  { %8519 = vmatprep.subr.bf16.mxu1 %v12628_v35  ;;  %v12659_v35 = vcombine.low %v2638_v60, %v2642_v28  ;;  %v12668_v53 = vcombine.high %v2646_v42, %v2650_v44  ;;  %v2681_v22 = vld [vmem:[%s18647_s4 + $0x1da0] sm:$0xff]  ;;  %v2682_v60 = vld [vmem:[%s18647_s4 + $0x1da8] sm:$0xff]  ;;  %v12689_v28 = vcombine.low %v2669_v12, %v2673_v7 }
 0x3d0   :  { %8192 = vmatpush1.bf16.msra.mxu0 %v12625_v58  ;;  %v2654_v58 = vld [vmem:[%s18647_s4 + $0x1cc8] sm:$0xff] }
 0x3d1   :  { %8520 = vmatpush1.bf16.msra.mxu1 %v12627_v25  ;;  %8193 = vmatprep.subr.bf16.mxu0 %v12634_v1  ;;  %v2658_v25 = vld [vmem:[%s18647_s4 + $0x1ce8] sm:$0xff]  ;;  %v12665_v1 = vcombine.low %v2645_v36, %v2649_v13  ;;  %v2685_v13 = vld [vmem:[%s18647_s4 + $0x1dc0] sm:$0xff] }
 0x3d2   :  { %8521 = vmatprep.subr.bf16.mxu1 %v12636_v4  ;;  %v12667_v4 = vcombine.low %v2646_v42, %v2650_v44  ;;  %v12676_v59 = vcombine.high %v2654_v58, %v2658_v25  ;;  %v2686_v42 = vld [vmem:[%s18647_s4 + $0x1dc8] sm:$0xff] }
 0x3d3   :  { %v2690_v44 = vld [vmem:[%s18647_s4 + $0x1de8] sm:$0xff] }
 0x3d4   :  { %8194 = vmatpush1.bf16.msra.mxu0 %v12633_v2  ;;  %v2662_v2 = vld [vmem:[%s18647_s4 + $0x1d08] sm:$0xff] }
 0x3d5   :  { %8522 = vmatpush1.bf16.msra.mxu1 %v12635_v9  ;;  %8195 = vmatprep.subr.bf16.mxu0 %v12642_v10  ;;  %v2666_v9 = vld [vmem:[%s18647_s4 + $0x1d28] sm:$0xff]  ;;  %v12673_v10 = vcombine.low %v2653_v55, %v2657_v57  ;;  %v2693_v55 = vld [vmem:[%s18647_s4 + $0x1e00] sm:$0xff] }
 0x3d6   :  { %8523 = vmatprep.subr.bf16.mxu1 %v12644_v29  ;;  %v12675_v29 = vcombine.low %v2654_v58, %v2658_v25  ;;  %v12684_v5 = vcombine.high %v2662_v2, %v2666_v9  ;;  %v2697_v57 = vld [vmem:[%s18647_s4 + $0x1e20] sm:$0xff]  ;;  %v2694_v58 = vld [vmem:[%s18647_s4 + $0x1e08] sm:$0xff] }
 0x3d7   :  { %v2698_v25 = vld [vmem:[%s18647_s4 + $0x1e28] sm:$0xff] }
 0x3d8   :  { %8196 = vmatpush1.bf16.msra.mxu0 %v12641_v14  ;;  %v2670_v14 = vld [vmem:[%s18647_s4 + $0x1d48] sm:$0xff] }
 0x3d9   :  { %8524 = vmatpush1.bf16.msra.mxu1 %v12643_v16  ;;  %8206 = vmatprep.subr.bf16.mxu0 %v12650_v50  ;;  %v12681_v16 = vcombine.low %v2661_v61, %v2665_v11  ;;  %v12683_v50 = vcombine.low %v2662_v2, %v2666_v9  ;;  %v12692_v21 = vcombine.high %v2670_v14, %v2674_v6  ;;  %v2701_v61 = vld [vmem:[%s18647_s4 + $0x1e40] sm:$0xff]  ;;  %v2702_v2 = vld [vmem:[%s18647_s4 + $0x1e48] sm:$0xff] }
 0x3da   :  { %8534 = vmatprep.subr.bf16.mxu1 %v12652_v3  ;;  %v12690_v3 = vcombine.high %v2669_v12, %v2673_v7  ;;  %v2705_v11 = vld [vmem:[%s18647_s4 + $0x1e60] sm:$0xff]  ;;  %v2706_v9 = vld [vmem:[%s18647_s4 + $0x1e68] sm:$0xff] }
 0x3db   :  { %8198 = vmatmul.mubr.bf16.vlgmr.msra.gmra.mrb[64].mxu0 %v15943_v30  ;;  %v2709_v12 = vld [vmem:[%s18647_s4 + $0x1e80] sm:$0xff] }
 0x3dc   :  { %8526 = vmatmul.mubr.bf16.vlgmr.msra.gmra.mrb[32].mxu1 %v15943_v30  ;;  %8207 = vmatpush1.bf16.msra.mxu0 %v12649_v27  ;;  %v2678_v27 = vld [vmem:[%s18647_s4 + $0x1d88] sm:$0xff]  ;;  %v2713_v7 = vld [vmem:[%s18647_s4 + $0x1ea0] sm:$0xff] }
 0x3dd   :  { %8238 = vmatprep.mubr.bf16.mxu0 %v15951_v39  ;;  %8535 = vmatpush1.bf16.msra.mxu1 %v12651_v0  ;;  %v12691_v0 = vcombine.low %v2670_v14, %v2674_v6  ;;  %v12700_v36 = vcombine.high %v2678_v27, %v2682_v60  ;;  %v2710_v14 = vld [vmem:[%s18647_s4 + $0x1e88] sm:$0xff] }
 0x3de   :  { %8566 = vmatprep.mubr.bf16.mxu1 %v15951_v39  ;;  %8208 = vmatprep.subr.bf16.mxu0 %v12658_v32  ;;  %v12698_v32 = vcombine.high %v2677_v20, %v2681_v22  ;;  %v2714_v6 = vld [vmem:[%s18647_s4 + $0x1ea8] sm:$0xff] }
 0x3df   :  { %8536 = vmatprep.subr.bf16.mxu1 %v12660_v41  ;;  %v2689_v41 = vld [vmem:[%s18647_s4 + $0x1de0] sm:$0xff] }
 0x3e0   :  { %8209 = vmatpush1.bf16.msra.mxu0 %v12657_v23  ;;  %v12697_v23 = vcombine.low %v2677_v20, %v2681_v22  ;;  %v2717_v20 = vld [vmem:[%s18647_s4 + $0x1ec0] sm:$0xff] }
 0x3e1   :  { %8537 = vmatpush1.bf16.msra.mxu1 %v12659_v35  ;;  %8210 = vmatprep.subr.bf16.mxu0 %v12666_v49  ;;  %v12699_v35 = vcombine.low %v2678_v27, %v2682_v60  ;;  %v12706_v49 = vcombine.high %v2685_v13, %v2689_v41  ;;  %v2721_v22 = vld [vmem:[%s18647_s4 + $0x1ee0] sm:$0xff]  ;;  %v2718_v27 = vld [vmem:[%s18647_s4 + $0x1ec8] sm:$0xff] }
 0x3e2   :  { %8538 = vmatprep.subr.bf16.mxu1 %v12668_v53  ;;  %v12708_v53 = vcombine.high %v2686_v42, %v2690_v44  ;;  %v2722_v60 = vld [vmem:[%s18647_s4 + $0x1ee8] sm:$0xff] }
 0x3e4   :  { %8211 = vmatpush1.bf16.msra.mxu0 %v12665_v1  ;;  %v12705_v1 = vcombine.low %v2685_v13, %v2689_v41  ;;  %v2725_v13 = vld [vmem:[%s18647_s4 + $0x1f00] sm:$0xff] }
 0x3e5   :  { %8539 = vmatpush1.bf16.msra.mxu1 %v12667_v4  ;;  %8212 = vmatprep.subr.bf16.mxu0 %v12674_v48  ;;  %v12707_v4 = vcombine.low %v2686_v42, %v2690_v44  ;;  %v12714_v48 = vcombine.high %v2693_v55, %v2697_v57  ;;  %v2729_v41 = vld [vmem:[%s18647_s4 + $0x1f20] sm:$0xff]  ;;  %v2726_v42 = vld [vmem:[%s18647_s4 + $0x1f08] sm:$0xff] }
 0x3e6   :  { %8540 = vmatprep.subr.bf16.mxu1 %v12676_v59  ;;  %v12716_v59 = vcombine.high %v2694_v58, %v2698_v25  ;;  %v2730_v44 = vld [vmem:[%s18647_s4 + $0x1f28] sm:$0xff] }
 0x3e8   :  { %8213 = vmatpush1.bf16.msra.mxu0 %v12673_v10  ;;  %v12713_v10 = vcombine.low %v2693_v55, %v2697_v57  ;;  %v2733_v55 = vld [vmem:[%s18647_s4 + $0x1f40] sm:$0xff] }
 0x3e9   :  { %8541 = vmatpush1.bf16.msra.mxu1 %v12675_v29  ;;  %8214 = vmatprep.subr.bf16.mxu0 %v12682_v40  ;;  %v12715_v29 = vcombine.low %v2694_v58, %v2698_v25  ;;  %v12722_v40 = vcombine.high %v2701_v61, %v2705_v11  ;;  %v2737_v57 = vld [vmem:[%s18647_s4 + $0x1f60] sm:$0xff]  ;;  %v2734_v58 = vld [vmem:[%s18647_s4 + $0x1f48] sm:$0xff] }
 0x3ea   :  { %8542 = vmatprep.subr.bf16.mxu1 %v12684_v5  ;;  %v12724_v5 = vcombine.high %v2702_v2, %v2706_v9  ;;  %v2738_v25 = vld [vmem:[%s18647_s4 + $0x1f68] sm:$0xff] }
 0x3ec   :  { %8215 = vmatpush1.bf16.msra.mxu0 %v12681_v16  ;;  %v12721_v16 = vcombine.low %v2701_v61, %v2705_v11  ;;  %v2741_v61 = vld [vmem:[%s18647_s4 + $0x1f80] sm:$0xff] }
 0x3ed   :  { %8543 = vmatpush1.bf16.msra.mxu1 %v12683_v50  ;;  %8216 = vmatprep.subr.bf16.mxu0 %v12690_v3  ;;  %v12723_v50 = vcombine.low %v2702_v2, %v2706_v9  ;;  %v12730_v3 = vcombine.high %v2709_v12, %v2713_v7  ;;  %v2745_v11 = vld [vmem:[%s18647_s4 + $0x1fa0] sm:$0xff]  ;;  %v2742_v2 = vld [vmem:[%s18647_s4 + $0x1f88] sm:$0xff] }
 0x3ee   :  { %8544 = vmatprep.subr.bf16.mxu1 %v12692_v21  ;;  %v12732_v21 = vcombine.high %v2710_v14, %v2714_v6  ;;  %v2746_v9 = vld [vmem:[%s18647_s4 + $0x1fa8] sm:$0xff] }
 0x3f0   :  { %8217 = vmatpush1.bf16.msra.mxu0 %v12689_v28  ;;  %v12729_v28 = vcombine.low %v2709_v12, %v2713_v7  ;;  %v2749_v12 = vld [vmem:[%s18647_s4 + $0x1fc0] sm:$0xff] }
 0x3f1   :  { %8545 = vmatpush1.bf16.msra.mxu1 %v12691_v0  ;;  %8218 = vmatprep.subr.bf16.mxu0 %v12698_v32  ;;  %v12731_v0 = vcombine.low %v2710_v14, %v2714_v6  ;;  %v12738_v32 = vcombine.high %v2717_v20, %v2721_v22  ;;  %v2753_v7 = vld [vmem:[%s18647_s4 + $0x1fe0] sm:$0xff]  ;;  %v2750_v14 = vld [vmem:[%s18647_s4 + $0x1fc8] sm:$0xff] }
 0x3f2   :  { %8546 = vmatprep.subr.bf16.mxu1 %v12700_v36  ;;  %v12740_v36 = vcombine.high %v2718_v27, %v2722_v60  ;;  %v2754_v6 = vld [vmem:[%s18647_s4 + $0x1fe8] sm:$0xff] }
 0x3f4   :  { %8219 = vmatpush1.bf16.msra.mxu0 %v12697_v23  ;;  %v12737_v23 = vcombine.low %v2717_v20, %v2721_v22  ;;  %v1735_v20 = vld [vmem:[%s18647_s4 + $0x10] sm:$0xff] }
 0x3f5   :  { %8547 = vmatpush1.bf16.msra.mxu1 %v12699_v35  ;;  %8220 = vmatprep.subr.bf16.mxu0 %v12706_v49  ;;  %v12739_v35 = vcombine.low %v2718_v27, %v2722_v60  ;;  %v12746_v49 = vcombine.high %v2725_v13, %v2729_v41  ;;  %v1739_v22 = vld [vmem:[%s18647_s4 + $0x30] sm:$0xff]  ;;  %v1736_v27 = vld [vmem:[%s18647_s4 + $0x18] sm:$0xff] }
 0x3f6   :  { %8548 = vmatprep.subr.bf16.mxu1 %v12708_v53  ;;  %v12748_v53 = vcombine.high %v2726_v42, %v2730_v44  ;;  %v1740_v60 = vld [vmem:[%s18647_s4 + $0x38] sm:$0xff] }
 0x3f8   :  { %8221 = vmatpush1.bf16.msra.mxu0 %v12705_v1  ;;  %v12745_v1 = vcombine.low %v2725_v13, %v2729_v41  ;;  %v11760_v13 = vcombine.high %v1736_v27, %v1740_v60  ;;  %v1743_v41 = vld [vmem:[%s18647_s4 + $0x50] sm:$0xff] }
 0x3f9   :  { %8549 = vmatpush1.bf16.msra.mxu1 %v12707_v4  ;;  %8222 = vmatprep.subr.bf16.mxu0 %v12714_v48  ;;  %v12747_v4 = vcombine.low %v2726_v42, %v2730_v44  ;;  %v12754_v48 = vcombine.high %v2733_v55, %v2737_v57  ;;  %v1747_v42 = vld [vmem:[%s18647_s4 + $0x70] sm:$0xff]  ;;  %v11757_v44 = vcombine.low %v1735_v20, %v1739_v22 }
 0x3fa   :  { %8550 = vmatprep.subr.bf16.mxu1 %v12716_v59  ;;  %v12756_v59 = vcombine.high %v2734_v58, %v2738_v25 }
 0x3fc   :  { %8223 = vmatpush1.bf16.msra.mxu0 %v12713_v10  ;;  %v12753_v10 = vcombine.low %v2733_v55, %v2737_v57  ;;  %v1751_v55 = vld [vmem:[%s18647_s4 + $0x90] sm:$0xff] }
 0x3fd   :  { %8551 = vmatpush1.bf16.msra.mxu1 %v12715_v29  ;;  %8224 = vmatprep.subr.bf16.mxu0 %v12722_v40  ;;  %v12755_v29 = vcombine.low %v2734_v58, %v2738_v25  ;;  %v12762_v40 = vcombine.high %v2741_v61, %v2745_v11  ;;  %v1755_v57 = vld [vmem:[%s18647_s4 + $0xb0] sm:$0xff]  ;;  %v1752_v25 = vld [vmem:[%s18647_s4 + $0x98] sm:$0xff] }
 0x3fe   :  { %8552 = vmatprep.subr.bf16.mxu1 %v12724_v5  ;;  %v12764_v5 = vcombine.high %v2742_v2, %v2746_v9 }
 0x400   :  { %8225 = vmatpush1.bf16.msra.mxu0 %v12721_v16  ;;  %v12761_v16 = vcombine.low %v2741_v61, %v2745_v11  ;;  %v1759_v11 = vld [vmem:[%s18647_s4 + $0xd0] sm:$0xff] }
 0x401   :  { %8553 = vmatpush1.bf16.msra.mxu1 %v12723_v50  ;;  %8226 = vmatprep.subr.bf16.mxu0 %v12730_v3  ;;  %v12763_v50 = vcombine.low %v2742_v2, %v2746_v9  ;;  %v12770_v3 = vcombine.high %v2749_v12, %v2753_v7  ;;  %v1763_v2 = vld [vmem:[%s18647_s4 + $0xf0] sm:$0xff]  ;;  %v1760_v9 = vld [vmem:[%s18647_s4 + $0xd8] sm:$0xff] }
 0x402   :  { %8554 = vmatprep.subr.bf16.mxu1 %v12732_v21  ;;  %v12772_v21 = vcombine.high %v2750_v14, %v2754_v6 }
 0x404   :  { %8227 = vmatpush1.bf16.msra.mxu0 %v12729_v28  ;;  %v12769_v28 = vcombine.low %v2749_v12, %v2753_v7  ;;  %v1767_v12 = vld [vmem:[%s18647_s4 + $0x110] sm:$0xff] }
 0x405   :  { %8555 = vmatpush1.bf16.msra.mxu1 %v12731_v0  ;;  %8228 = vmatprep.subr.bf16.mxu0 %v12738_v32  ;;  %v1715_v0 = vmax.f32 %v15049_v8, 0.0  ;;  %v12771_v32 = vcombine.low %v2750_v14, %v2754_v6  ;;  %v1744_v8 = vld [vmem:[%s18647_s4 + $0x58] sm:$0xff]  ;;  %v1771_v7 = vld [vmem:[%s18647_s4 + $0x130] sm:$0xff] }
 0x406   :  { %8556 = vmatprep.subr.bf16.mxu1 %v12740_v36  ;;  %v11758_v36 = vcombine.high %v1735_v20, %v1739_v22  ;;  %v1768_v14 = vld [vmem:[%s18647_s4 + $0x118] sm:$0xff]  ;;  %v1775_v20 = vld [vmem:[%s18647_s4 + $0x150] sm:$0xff] }
 0x407   :  { %v1772_v6 = vld [vmem:[%s18647_s4 + $0x138] sm:$0xff]  ;;  %v1779_v22 = vld [vmem:[%s18647_s4 + $0x170] sm:$0xff] }
 0x408   :  { %8229 = vmatpush1.bf16.msra.mxu0 %v12737_v23  ;;  %v1748_v23 = vld [vmem:[%s18647_s4 + $0x78] sm:$0xff] }
 0x409   :  { %8557 = vmatpush1.bf16.msra.mxu1 %v12739_v35  ;;  %8230 = vmatprep.subr.bf16.mxu0 %v12746_v49  ;;  %v16144_v35 = vpack.c.bf16 %v1715_v0, %v1715_v0  ;;  %v11759_v49 = vcombine.low %v1736_v27, %v1740_v60  ;;  %v11768_v58 = vcombine.high %v1744_v8, %v1748_v23  ;;  %v1776_v27 = vld [vmem:[%s18647_s4 + $0x158] sm:$0xff] }
 0x40a   :  { %8558 = vmatprep.subr.bf16.mxu1 %v12748_v53  ;;  %v11766_v53 = vcombine.high %v1743_v41, %v1747_v42  ;;  %v1780_v60 = vld [vmem:[%s18647_s4 + $0x178] sm:$0xff]  ;;  %v11791_v0 = vcombine.low %v1768_v14, %v1772_v6 }
 0x40c   :  { %8231 = vmatpush1.bf16.msra.mxu0 %v12745_v1  ;;  %v1756_v1 = vld [vmem:[%s18647_s4 + $0xb8] sm:$0xff] }
 0x40d   :  { %8559 = vmatpush1.bf16.msra.mxu1 %v12747_v4  ;;  %8232 = vmatprep.subr.bf16.mxu0 %v12754_v48  ;;  %v11765_v4 = vcombine.low %v1743_v41, %v1747_v42  ;;  %v11767_v48 = vcombine.low %v1744_v8, %v1748_v23  ;;  %v11776_v61 = vcombine.high %v1752_v25, %v1756_v1  ;;  %v1787_v41 = vld [vmem:[%s18647_s4 + $0x1b0] sm:$0xff]  ;;  %v1784_v42 = vld [vmem:[%s18647_s4 + $0x198] sm:$0xff] }
 0x40e   :  { %8560 = vmatprep.subr.bf16.mxu1 %v12756_v59  ;;  %v11774_v59 = vcombine.high %v1751_v55, %v1755_v57  ;;  %v11797_v8 = vcombine.low %v1775_v20, %v1779_v22  ;;  %v11799_v23 = vcombine.low %v1776_v27, %v1780_v60 }
 0x410   :  { %8233 = vmatpush1.bf16.msra.mxu0 %v12753_v10  ;;  %v1764_v10 = vld [vmem:[%s18647_s4 + $0xf8] sm:$0xff] }
 0x411   :  { %8561 = vmatpush1.bf16.msra.mxu1 %v12755_v29  ;;  %8234 = vmatprep.subr.bf16.mxu0 %v12762_v40  ;;  %v11775_v29 = vcombine.low %v1752_v25, %v1756_v1  ;;  %v11782_v40 = vcombine.high %v1759_v11, %v1763_v2  ;;  %v1796_v25 = vld [vmem:[%s18647_s4 + $0x1f8] sm:$0xff] }
 0x412   :  { %8562 = vmatprep.subr.bf16.mxu1 %v12764_v5  ;;  %v11784_v5 = vcombine.high %v1760_v9, %v1764_v10 }
 0x414   :  { %8235 = vmatpush1.bf16.msra.mxu0 %v12761_v16  ;;  %v11781_v16 = vcombine.low %v1759_v11, %v1763_v2  ;;  %v1803_v11 = vld [vmem:[%s18647_s4 + $0x230] sm:$0xff]  ;;  %v1800_v2 = vld [vmem:[%s18647_s4 + $0x218] sm:$0xff] }
 0x415   :  { %8563 = vmatpush1.bf16.msra.mxu1 %v12763_v50  ;;  %8236 = vmatprep.subr.bf16.mxu0 %v12770_v3  ;;  %v11783_v50 = vcombine.low %v1760_v9, %v1764_v10  ;;  %v11790_v3 = vcombine.high %v1767_v12, %v1771_v7  ;;  %v1804_v9 = vld [vmem:[%s18647_s4 + $0x238] sm:$0xff] }
 0x416   :  { %8564 = vmatprep.subr.bf16.mxu1 %v12772_v21  ;;  %v11792_v21 = vcombine.high %v1768_v14, %v1772_v6  ;;  %v1812_v14 = vld [vmem:[%s18647_s4 + $0x278] sm:$0xff] }
 0x418   :  { %8237 = vmatpush1.bf16.msra.mxu0 %v12769_v28  ;;  %v11789_v28 = vcombine.low %v1767_v12, %v1771_v7  ;;  %v1811_v12 = vld [vmem:[%s18647_s4 + $0x270] sm:$0xff]  ;;  %v1808_v7 = vld [vmem:[%s18647_s4 + $0x258] sm:$0xff] }
 0x419   :  { %8565 = vmatpush1.bf16.msra.mxu1 %v12771_v32  ;;  %8575 = vmatprep.subr.bf16.mxu0 %v11758_v36  ;;  %v11798_v32 = vcombine.high %v1775_v20, %v1779_v22  ;;  %v11800_v36 = vcombine.high %v1776_v27, %v1780_v60  ;;  %v1819_v20 = vld [vmem:[%s18647_s4 + $0x2b0] sm:$0xff]  ;;  %v1816_v22 = vld [vmem:[%s18647_s4 + $0x298] sm:$0xff] }
 0x41a   :  { %8903 = vmatprep.subr.bf16.mxu1 %v11760_v13  ;;  %v1783_v13 = vld [vmem:[%s18647_s4 + $0x190] sm:$0xff]  ;;  %v1820_v27 = vld [vmem:[%s18647_s4 + $0x2b8] sm:$0xff] }
 0x41b   :  { %8239 = vmatmul.mubr.bf16.vlgmr.msra.gmra.mrb[64].mxu0 %v16144_v35  ;;  %v11805_v1 = vcombine.low %v1783_v13, %v1787_v41 }
 0x41c   :  { %8567 = vmatmul.mubr.bf16.vlgmr.msra.gmra.mrb[32].mxu1 %v16144_v35  ;;  %8576 = vmatpush1.bf16.msra.mxu0 %v11757_v44  ;;  %v1788_v44 = vld [vmem:[%s18647_s4 + $0x1b8] sm:$0xff] }
 0x41d   :  { %8607 = vmatprep.mubr.bf16.mxu0 %v14643_v43  ;;  %8904 = vmatpush1.bf16.msra.mxu1 %v11759_v49  ;;  %v11806_v49 = vcombine.high %v1783_v13, %v1787_v41  ;;  %v1827_v13 = vld [vmem:[%s18647_s4 + $0x2f0] sm:$0xff]  ;;  %v1824_v41 = vld [vmem:[%s18647_s4 + $0x2d8] sm:$0xff] }
 0x41e   :  { %8935 = vmatprep.mubr.bf16.mxu1 %v14643_v43  ;;  %8577 = vmatprep.subr.bf16.mxu0 %v11766_v53  ;;  %v11773_v43 = vcombine.low %v1751_v55, %v1755_v57  ;;  %v11808_v53 = vcombine.high %v1784_v42, %v1788_v44  ;;  %v1791_v55 = vld [vmem:[%s18647_s4 + $0x1d0] sm:$0xff] }
 0x41f   :  { %8905 = vmatprep.subr.bf16.mxu1 %v11768_v58  ;;  %v1795_v57 = vld [vmem:[%s18647_s4 + $0x1f0] sm:$0xff]  ;;  %v1792_v58 = vld [vmem:[%s18647_s4 + $0x1d8] sm:$0xff] }
 0x420   :  { %8578 = vmatpush1.bf16.msra.mxu0 %v11765_v4  ;;  %v11807_v4 = vcombine.low %v1784_v42, %v1788_v44  ;;  %v11813_v10 = vcombine.low %v1791_v55, %v1795_v57  ;;  %v1828_v42 = vld [vmem:[%s18647_s4 + $0x2f8] sm:$0xff] }
 0x421   :  { %8906 = vmatpush1.bf16.msra.mxu1 %v11767_v48  ;;  %8579 = vmatprep.subr.bf16.mxu0 %v11774_v59  ;;  %v11814_v48 = vcombine.high %v1791_v55, %v1795_v57  ;;  %v11816_v59 = vcombine.high %v1792_v58, %v1796_v25  ;;  %v1835_v55 = vld [vmem:[%s18647_s4 + $0x330] sm:$0xff]  ;;  %v1832_v57 = vld [vmem:[%s18647_s4 + $0x318] sm:$0xff] }
 0x422   :  { %8907 = vmatprep.subr.bf16.mxu1 %v11776_v61  ;;  %v1799_v61 = vld [vmem:[%s18647_s4 + $0x210] sm:$0xff] }
 0x423   :  { %v11821_v6 = vcombine.low %v1799_v61, %v1803_v11 }
 0x424   :  { %8580 = vmatpush1.bf16.msra.mxu0 %v11773_v43  ;;  %v11815_v43 = vcombine.low %v1792_v58, %v1796_v25  ;;  %v1836_v58 = vld [vmem:[%s18647_s4 + $0x338] sm:$0xff] }
 0x425   :  { %8908 = vmatpush1.bf16.msra.mxu1 %v11775_v29  ;;  %8581 = vmatprep.subr.bf16.mxu0 %v11782_v40  ;;  %v11822_v29 = vcombine.high %v1799_v61, %v1803_v11  ;;  %v11824_v40 = vcombine.high %v1800_v2, %v1804_v9  ;;  %v1843_v61 = vld [vmem:[%s18647_s4 + $0x370] sm:$0xff]  ;;  %v1840_v11 = vld [vmem:[%s18647_s4 + $0x358] sm:$0xff] }
 0x426   :  { %8909 = vmatprep.subr.bf16.mxu1 %v11784_v5  ;;  %v1807_v5 = vld [vmem:[%s18647_s4 + $0x250] sm:$0xff] }
 0x427   :  { %v11829_v60 = vcombine.low %v1807_v5, %v1811_v12 }
 0x428   :  { %8582 = vmatpush1.bf16.msra.mxu0 %v11781_v16  ;;  %v11823_v16 = vcombine.low %v1800_v2, %v1804_v9  ;;  %v1844_v2 = vld [vmem:[%s18647_s4 + $0x378] sm:$0xff] }
 0x429   :  { %8910 = vmatpush1.bf16.msra.mxu1 %v11783_v50  ;;  %8583 = vmatprep.subr.bf16.mxu0 %v11790_v3  ;;  %v11830_v50 = vcombine.high %v1807_v5, %v1811_v12  ;;  %v11832_v3 = vcombine.high %v1808_v7, %v1812_v14  ;;  %v1851_v5 = vld [vmem:[%s18647_s4 + $0x3b0] sm:$0xff]  ;;  %v1848_v12 = vld [vmem:[%s18647_s4 + $0x398] sm:$0xff] }
 0x42a   :  { %8911 = vmatprep.subr.bf16.mxu1 %v11792_v21  ;;  %v1815_v21 = vld [vmem:[%s18647_s4 + $0x290] sm:$0xff] }
 0x42b   :  { %v11837_v44 = vcombine.low %v1815_v21, %v1819_v20 }
 0x42c   :  { %8584 = vmatpush1.bf16.msra.mxu0 %v11789_v28  ;;  %v11831_v28 = vcombine.low %v1808_v7, %v1812_v14  ;;  %v1852_v7 = vld [vmem:[%s18647_s4 + $0x3b8] sm:$0xff] }
 0x42d   :  { %8912 = vmatpush1.bf16.msra.mxu1 %v11791_v0  ;;  %8585 = vmatprep.subr.bf16.mxu0 %v11798_v32  ;;  %v11838_v0 = vcombine.high %v1815_v21, %v1819_v20  ;;  %v11840_v32 = vcombine.high %v1816_v22, %v1820_v27  ;;  %v1859_v21 = vld [vmem:[%s18647_s4 + $0x3f0] sm:$0xff]  ;;  %v1856_v20 = vld [vmem:[%s18647_s4 + $0x3d8] sm:$0xff] }
 0x42e   :  { %8913 = vmatprep.subr.bf16.mxu1 %v11800_v36  ;;  %v1823_v36 = vld [vmem:[%s18647_s4 + $0x2d0] sm:$0xff] }
 0x42f   :  { %v11845_v25 = vcombine.low %v1823_v36, %v1827_v13 }
 0x430   :  { %8586 = vmatpush1.bf16.msra.mxu0 %v11797_v8  ;;  %v11839_v8 = vcombine.low %v1816_v22, %v1820_v27  ;;  %v1860_v22 = vld [vmem:[%s18647_s4 + $0x3f8] sm:$0xff] }
 0x431   :  { %8914 = vmatpush1.bf16.msra.mxu1 %v11799_v23  ;;  %8587 = vmatprep.subr.bf16.mxu0 %v11806_v49  ;;  %v11846_v23 = vcombine.high %v1823_v36, %v1827_v13  ;;  %v11848_v49 = vcombine.high %v1824_v41, %v1828_v42  ;;  %v1867_v36 = vld [vmem:[%s18647_s4 + $0x430] sm:$0xff]  ;;  %v1864_v13 = vld [vmem:[%s18647_s4 + $0x418] sm:$0xff] }
 0x432   :  { %8915 = vmatprep.subr.bf16.mxu1 %v11808_v53  ;;  %v1831_v53 = vld [vmem:[%s18647_s4 + $0x310] sm:$0xff] }
 0x433   :  { %v11853_v9 = vcombine.low %v1831_v53, %v1835_v55 }
 0x434   :  { %8588 = vmatpush1.bf16.msra.mxu0 %v11805_v1  ;;  %v11847_v1 = vcombine.low %v1824_v41, %v1828_v42  ;;  %v1868_v41 = vld [vmem:[%s18647_s4 + $0x438] sm:$0xff] }
 0x435   :  { %8916 = vmatpush1.bf16.msra.mxu1 %v11807_v4  ;;  %8589 = vmatprep.subr.bf16.mxu0 %v11814_v48  ;;  %v11854_v4 = vcombine.high %v1831_v53, %v1835_v55  ;;  %v11856_v48 = vcombine.high %v1832_v57, %v1836_v58  ;;  %v1875_v53 = vld [vmem:[%s18647_s4 + $0x470] sm:$0xff] }
 0x436   :  { %8917 = vmatprep.subr.bf16.mxu1 %v11816_v59  ;;  %v1839_v59 = vld [vmem:[%s18647_s4 + $0x350] sm:$0xff] }
 0x437   :  { %v11861_v14 = vcombine.low %v1839_v59, %v1843_v61 }
 0x438   :  { %8590 = vmatpush1.bf16.msra.mxu0 %v11813_v10  ;;  %v11855_v10 = vcombine.low %v1832_v57, %v1836_v58  ;;  %v1872_v57 = vld [vmem:[%s18647_s4 + $0x458] sm:$0xff] }
 0x439   :  { %8918 = vmatpush1.bf16.msra.mxu1 %v11815_v43  ;;  %8591 = vmatprep.subr.bf16.mxu0 %v11822_v29  ;;  %v11862_v43 = vcombine.high %v1839_v59, %v1843_v61  ;;  %v11864_v29 = vcombine.high %v1840_v11, %v1844_v2  ;;  %v1876_v58 = vld [vmem:[%s18647_s4 + $0x478] sm:$0xff] }
 0x43a   :  { %8919 = vmatprep.subr.bf16.mxu1 %v11824_v40  ;;  %v1847_v40 = vld [vmem:[%s18647_s4 + $0x390] sm:$0xff]  ;;  %v11896_v59 = vcombine.high %v1872_v57, %v1876_v58  ;;  %v1880_v61 = vld [vmem:[%s18647_s4 + $0x498] sm:$0xff] }
 0x43b   :  { %v11869_v27 = vcombine.low %v1847_v40, %v1851_v5 }
 0x43c   :  { %8592 = vmatpush1.bf16.msra.mxu0 %v11821_v6  ;;  %v11863_v6 = vcombine.low %v1840_v11, %v1844_v2  ;;  %v1884_v11 = vld [vmem:[%s18647_s4 + $0x4b8] sm:$0xff] }
 0x43d   :  { %8920 = vmatpush1.bf16.msra.mxu1 %v11823_v16  ;;  %8593 = vmatprep.subr.bf16.mxu0 %v11830_v50  ;;  %v11870_v16 = vcombine.high %v1847_v40, %v1851_v5  ;;  %v11872_v50 = vcombine.high %v1848_v12, %v1852_v7  ;;  %v1891_v40 = vld [vmem:[%s18647_s4 + $0x4f0] sm:$0xff]  ;;  %v1892_v5 = vld [vmem:[%s18647_s4 + $0x4f8] sm:$0xff] }
 0x43e   :  { %8921 = vmatprep.subr.bf16.mxu1 %v11832_v3  ;;  %v1855_v3 = vld [vmem:[%s18647_s4 + $0x3d0] sm:$0xff] }
 0x43f   :  { %v11877_v42 = vcombine.low %v1855_v3, %v1859_v21 }
 0x440   :  { %8594 = vmatpush1.bf16.msra.mxu0 %v11829_v60  ;;  %v11871_v60 = vcombine.low %v1848_v12, %v1852_v7  ;;  %v11903_v12 = vcombine.low %v1880_v61, %v1884_v11 }
 0x441   :  { %8922 = vmatpush1.bf16.msra.mxu1 %v11831_v28  ;;  %8595 = vmatprep.subr.bf16.mxu0 %v11838_v0  ;;  %v11878_v28 = vcombine.high %v1855_v3, %v1859_v21  ;;  %v11880_v0 = vcombine.high %v1856_v20, %v1860_v22  ;;  %v1900_v3 = vld [vmem:[%s18647_s4 + $0x538] sm:$0xff] }
 0x442   :  { %8923 = vmatprep.subr.bf16.mxu1 %v11840_v32  ;;  %v1863_v32 = vld [vmem:[%s18647_s4 + $0x410] sm:$0xff] }
 0x443   :  { %v11885_v55 = vcombine.low %v1863_v32, %v1867_v36 }
 0x444   :  { %8596 = vmatpush1.bf16.msra.mxu0 %v11837_v44  ;;  %v11879_v44 = vcombine.low %v1856_v20, %v1860_v22 }
 0x445   :  { %8924 = vmatpush1.bf16.msra.mxu1 %v11839_v8  ;;  %8597 = vmatprep.subr.bf16.mxu0 %v11846_v23  ;;  %v11886_v8 = vcombine.high %v1863_v32, %v1867_v36  ;;  %v11888_v23 = vcombine.high %v1864_v13, %v1868_v41  ;;  %v1908_v32 = vld [vmem:[%s18647_s4 + $0x578] sm:$0xff] }
 0x446   :  { %8925 = vmatprep.subr.bf16.mxu1 %v11848_v49  ;;  %v1871_v49 = vld [vmem:[%s18647_s4 + $0x450] sm:$0xff] }
 0x447   :  { %v11893_v2 = vcombine.low %v1871_v49, %v1875_v53 }
 0x448   :  { %8598 = vmatpush1.bf16.msra.mxu0 %v11845_v25  ;;  %v11887_v25 = vcombine.low %v1864_v13, %v1868_v41 }
 0x449   :  { %8926 = vmatpush1.bf16.msra.mxu1 %v11847_v1  ;;  %8599 = vmatprep.subr.bf16.mxu0 %v11854_v4  ;;  %v11894_v1 = vcombine.high %v1871_v49, %v1875_v53  ;;  %v1879_v4 = vld [vmem:[%s18647_s4 + $0x490] sm:$0xff]  ;;  %v1916_v49 = vld [vmem:[%s18647_s4 + $0x5b8] sm:$0xff] }
 0x44a   :  { %8927 = vmatprep.subr.bf16.mxu1 %v11856_v48  ;;  %v1883_v48 = vld [vmem:[%s18647_s4 + $0x4b0] sm:$0xff] }
 0x44c   :  { %8600 = vmatpush1.bf16.msra.mxu0 %v11853_v9  ;;  %v11895_v9 = vcombine.low %v1872_v57, %v1876_v58 }
 0x44d   :  { %8928 = vmatpush1.bf16.msra.mxu1 %v11855_v10  ;;  %8601 = vmatprep.subr.bf16.mxu0 %v11862_v43  ;;  %v11902_v10 = vcombine.high %v1879_v4, %v1883_v48  ;;  %v11904_v43 = vcombine.high %v1880_v61, %v1884_v11 }
 0x44e   :  { %8929 = vmatprep.subr.bf16.mxu1 %v11864_v29  ;;  %v1887_v29 = vld [vmem:[%s18647_s4 + $0x4d0] sm:$0xff] }
 0x44f   :  { %v11910_v7 = vcombine.high %v1887_v29, %v1891_v40  ;;  %v11909_v21 = vcombine.low %v1887_v29, %v1891_v40  ;;  %v1932_v29 = vld [vmem:[%s18647_s4 + $0x638] sm:$0xff] }
 0x450   :  { %8602 = vmatpush1.bf16.msra.mxu0 %v11861_v14 }
 0x451   :  { %8930 = vmatpush1.bf16.msra.mxu1 %v11863_v6  ;;  %8603 = vmatprep.subr.bf16.mxu0 %v11870_v16  ;;  %v1895_v6 = vld [vmem:[%s18647_s4 + $0x510] sm:$0xff] }
 0x452   :  { %8931 = vmatprep.subr.bf16.mxu1 %v11872_v50  ;;  %v1899_v16 = vld [vmem:[%s18647_s4 + $0x530] sm:$0xff]  ;;  %v1896_v50 = vld [vmem:[%s18647_s4 + $0x518] sm:$0xff] }
 0x453   :  { %v11918_v22 = vcombine.high %v1895_v6, %v1899_v16  ;;  %v11917_v36 = vcombine.low %v1895_v6, %v1899_v16  ;;  %v11919_v13 = vcombine.low %v1896_v50, %v1900_v3  ;;  %v1940_v6 = vld [vmem:[%s18647_s4 + $0x678] sm:$0xff] }
 0x454   :  { %8604 = vmatpush1.bf16.msra.mxu0 %v11869_v27  ;;  %v11920_v27 = vcombine.high %v1896_v50, %v1900_v3 }
 0x455   :  { %8932 = vmatpush1.bf16.msra.mxu1 %v11871_v60  ;;  %8605 = vmatprep.subr.bf16.mxu0 %v11878_v28  ;;  %v1903_v60 = vld [vmem:[%s18647_s4 + $0x550] sm:$0xff] }
 0x456   :  { %8933 = vmatprep.subr.bf16.mxu1 %v11880_v0  ;;  %v1907_v28 = vld [vmem:[%s18647_s4 + $0x570] sm:$0xff]  ;;  %v1904_v0 = vld [vmem:[%s18647_s4 + $0x558] sm:$0xff] }
 0x457   :  { %v11926_v41 = vcombine.high %v1903_v60, %v1907_v28  ;;  %v11925_v53 = vcombine.low %v1903_v60, %v1907_v28  ;;  %v1948_v60 = vld [vmem:[%s18647_s4 + $0x6b8] sm:$0xff] }
 0x458   :  { %8606 = vmatpush1.bf16.msra.mxu0 %v11877_v42  ;;  %v11928_v42 = vcombine.high %v1904_v0, %v1908_v32 }
 0x459   :  { %8934 = vmatpush1.bf16.msra.mxu1 %v11879_v44  ;;  %8616 = vmatprep.subr.bf16.mxu0 %v11886_v8  ;;  %v1911_v44 = vld [vmem:[%s18647_s4 + $0x590] sm:$0xff] }
 0x45a   :  { %8944 = vmatprep.subr.bf16.mxu1 %v11888_v23  ;;  %v1915_v8 = vld [vmem:[%s18647_s4 + $0x5b0] sm:$0xff]  ;;  %v1912_v23 = vld [vmem:[%s18647_s4 + $0x598] sm:$0xff] }
 0x45b   :  { %8608 = vmatmul.mubr.bf16.vlgmr.msra.gmra.mrb[68].mxu0 %v14645_v45  ;;  %v11934_v57 = vcombine.high %v1911_v44, %v1915_v8  ;;  %v11936_v58 = vcombine.high %v1912_v23, %v1916_v49  ;;  %v11935_v61 = vcombine.low %v1912_v23, %v1916_v49 }
 0x45c   :  { %8936 = vmatmul.mubr.bf16.vlgmr.msra.gmra.mrb[36].mxu1 %v14645_v45  ;;  %8617 = vmatpush1.bf16.msra.mxu0 %v11885_v55  ;;  %v1888_v45 = vld [vmem:[%s18647_s4 + $0x4d8] sm:$0xff]  ;;  %v11927_v55 = vcombine.low %v1904_v0, %v1908_v32 }
 0x45d   :  { %8648 = vmatprep.mubr.bf16.mxu0 %v14709_v18  ;;  %8945 = vmatpush1.bf16.msra.mxu1 %v11887_v25  ;;  %v11912_v14 = vcombine.high %v1888_v45, %v1892_v5  ;;  %v11911_v20 = vcombine.low %v1888_v45, %v1892_v5  ;;  %v1919_v25 = vld [vmem:[%s18647_s4 + $0x5d0] sm:$0xff] }
 0x45e   :  { %8976 = vmatprep.mubr.bf16.mxu1 %v14709_v18  ;;  %8618 = vmatprep.subr.bf16.mxu0 %v11894_v1  ;;  %v11901_v18 = vcombine.low %v1879_v4, %v1883_v48  ;;  %v1923_v1 = vld [vmem:[%s18647_s4 + $0x5f0] sm:$0xff]  ;;  %v1920_v4 = vld [vmem:[%s18647_s4 + $0x5d8] sm:$0xff] }
 0x45f   :  { %8946 = vmatprep.subr.bf16.mxu1 %v11896_v59  ;;  %v1924_v48 = vld [vmem:[%s18647_s4 + $0x5f8] sm:$0xff]  ;;  %v11933_v59 = vcombine.low %v1911_v44, %v1915_v8  ;;  %v11942_v11 = vcombine.high %v1919_v25, %v1923_v1  ;;  %v11941_v40 = vcombine.low %v1919_v25, %v1923_v1 }
 0x460   :  { %8619 = vmatpush1.bf16.msra.mxu0 %v11893_v2  ;;  %v11944_v2 = vcombine.high %v1920_v4, %v1924_v48  ;;  %v11943_v45 = vcombine.low %v1920_v4, %v1924_v48  ;;  %v1956_v44 = vld [vmem:[%s18647_s4 + $0x6f8] sm:$0xff] }
 0x461   :  { %8947 = vmatpush1.bf16.msra.mxu1 %v11895_v9  ;;  %8620 = vmatprep.subr.bf16.mxu0 %v11902_v10  ;;  %v1927_v9 = vld [vmem:[%s18647_s4 + $0x610] sm:$0xff]  ;;  %v1964_v25 = vld [vmem:[%s18647_s4 + $0x738] sm:$0xff] }
 0x462   :  { %8948 = vmatprep.subr.bf16.mxu1 %v11904_v43  ;;  %v1931_v10 = vld [vmem:[%s18647_s4 + $0x630] sm:$0xff]  ;;  %v1928_v43 = vld [vmem:[%s18647_s4 + $0x618] sm:$0xff] }
 0x463   :  { %v11950_v5 = vcombine.high %v1927_v9, %v1931_v10  ;;  %v11949_v16 = vcombine.low %v1927_v9, %v1931_v10  ;;  %v11951_v50 = vcombine.low %v1928_v43, %v1932_v29  ;;  %v1972_v9 = vld [vmem:[%s18647_s4 + $0x778] sm:$0xff] }
 0x464   :  { %8621 = vmatpush1.bf16.msra.mxu0 %v11901_v18  ;;  %v11952_v18 = vcombine.high %v1928_v43, %v1932_v29 }
 0x465   :  { %8949 = vmatpush1.bf16.msra.mxu1 %v11903_v12  ;;  %8622 = vmatprep.subr.bf16.mxu0 %v11910_v7  ;;  %v1935_v12 = vld [vmem:[%s18647_s4 + $0x650] sm:$0xff] }
 0x466   :  { %8950 = vmatprep.subr.bf16.mxu1 %v11912_v14  ;;  %v1939_v7 = vld [vmem:[%s18647_s4 + $0x670] sm:$0xff]  ;;  %v1936_v14 = vld [vmem:[%s18647_s4 + $0x658] sm:$0xff] }
 0x467   :  { %v11958_v3 = vcombine.high %v1935_v12, %v1939_v7  ;;  %v11957_v28 = vcombine.low %v1935_v12, %v1939_v7  ;;  %v11959_v0 = vcombine.low %v1936_v14, %v1940_v6  ;;  %v1980_v12 = vld [vmem:[%s18647_s4 + $0x7b8] sm:$0xff] }
 0x468   :  { %8623 = vmatpush1.bf16.msra.mxu0 %v11909_v21  ;;  %v11960_v21 = vcombine.high %v1936_v14, %v1940_v6 }
 0x469   :  { %8951 = vmatpush1.bf16.msra.mxu1 %v11911_v20  ;;  %8624 = vmatprep.subr.bf16.mxu0 %v11918_v22  ;;  %v1943_v20 = vld [vmem:[%s18647_s4 + $0x690] sm:$0xff] }
 0x46a   :  { %8952 = vmatprep.subr.bf16.mxu1 %v11920_v27  ;;  %v1947_v22 = vld [vmem:[%s18647_s4 + $0x6b0] sm:$0xff]  ;;  %v1944_v27 = vld [vmem:[%s18647_s4 + $0x698] sm:$0xff] }
 0x46b   :  { %v11966_v32 = vcombine.high %v1943_v20, %v1947_v22  ;;  %v11965_v8 = vcombine.low %v1943_v20, %v1947_v22  ;;  %v11967_v23 = vcombine.low %v1944_v27, %v1948_v60  ;;  %v1988_v20 = vld [vmem:[%s18647_s4 + $0x7f8] sm:$0xff] }
 0x46c   :  { %8625 = vmatpush1.bf16.msra.mxu0 %v11917_v36  ;;  %v11968_v36 = vcombine.high %v1944_v27, %v1948_v60 }
 0x46d   :  { %8953 = vmatpush1.bf16.msra.mxu1 %v11919_v13  ;;  %8626 = vmatprep.subr.bf16.mxu0 %v11926_v41  ;;  %v1951_v13 = vld [vmem:[%s18647_s4 + $0x6d0] sm:$0xff] }
 0x46e   :  { %8954 = vmatprep.subr.bf16.mxu1 %v11928_v42  ;;  %v1955_v41 = vld [vmem:[%s18647_s4 + $0x6f0] sm:$0xff]  ;;  %v1952_v42 = vld [vmem:[%s18647_s4 + $0x6d8] sm:$0xff] }
 0x46f   :  { %v11974_v49 = vcombine.high %v1951_v13, %v1955_v41  ;;  %v11973_v1 = vcombine.low %v1951_v13, %v1955_v41  ;;  %v11975_v4 = vcombine.low %v1952_v42, %v1956_v44  ;;  %v1996_v13 = vld [vmem:[%s18647_s4 + $0x838] sm:$0xff] }
 0x470   :  { %8627 = vmatpush1.bf16.msra.mxu0 %v11925_v53  ;;  %v11976_v53 = vcombine.high %v1952_v42, %v1956_v44 }
 0x471   :  { %8955 = vmatpush1.bf16.msra.mxu1 %v11927_v55  ;;  %8628 = vmatprep.subr.bf16.mxu0 %v11934_v57  ;;  %v1959_v55 = vld [vmem:[%s18647_s4 + $0x710] sm:$0xff] }
 0x472   :  { %8956 = vmatprep.subr.bf16.mxu1 %v11936_v58  ;;  %v1963_v57 = vld [vmem:[%s18647_s4 + $0x730] sm:$0xff]  ;;  %v1960_v58 = vld [vmem:[%s18647_s4 + $0x718] sm:$0xff] }
 0x473   :  { %v11982_v48 = vcombine.high %v1959_v55, %v1963_v57  ;;  %v11981_v10 = vcombine.low %v1959_v55, %v1963_v57  ;;  %v11983_v43 = vcombine.low %v1960_v58, %v1964_v25  ;;  %v2000_v55 = vld [vmem:[%s18647_s4 + $0x858] sm:$0xff] }
 0x474   :  { %8629 = vmatpush1.bf16.msra.mxu0 %v11933_v59  ;;  %v11984_v59 = vcombine.high %v1960_v58, %v1964_v25  ;;  %v2004_v57 = vld [vmem:[%s18647_s4 + $0x878] sm:$0xff] }
 0x475   :  { %8957 = vmatpush1.bf16.msra.mxu1 %v11935_v61  ;;  %8630 = vmatprep.subr.bf16.mxu0 %v11942_v11  ;;  %v1967_v61 = vld [vmem:[%s18647_s4 + $0x750] sm:$0xff] }
 0x476   :  { %8958 = vmatprep.subr.bf16.mxu1 %v11944_v2  ;;  %v1971_v11 = vld [vmem:[%s18647_s4 + $0x770] sm:$0xff]  ;;  %v1968_v2 = vld [vmem:[%s18647_s4 + $0x758] sm:$0xff] }
 0x477   :  { %v11990_v29 = vcombine.high %v1967_v61, %v1971_v11  ;;  %v11989_v7 = vcombine.low %v1967_v61, %v1971_v11  ;;  %v11991_v14 = vcombine.low %v1968_v2, %v1972_v9  ;;  %v2012_v61 = vld [vmem:[%s18647_s4 + $0x8b8] sm:$0xff] }
 0x478   :  { %8631 = vmatpush1.bf16.msra.mxu0 %v11941_v40  ;;  %v11992_v40 = vcombine.high %v1968_v2, %v1972_v9  ;;  %v12023_v2 = vcombine.low %v2000_v55, %v2004_v57 }
 0x479   :  { %8959 = vmatpush1.bf16.msra.mxu1 %v11943_v45  ;;  %8632 = vmatprep.subr.bf16.mxu0 %v11950_v5  ;;  %v1975_v45 = vld [vmem:[%s18647_s4 + $0x790] sm:$0xff] }
 0x47a   :  { %8960 = vmatprep.subr.bf16.mxu1 %v11952_v18  ;;  %v1979_v5 = vld [vmem:[%s18647_s4 + $0x7b0] sm:$0xff]  ;;  %v1976_v18 = vld [vmem:[%s18647_s4 + $0x798] sm:$0xff] }
 0x47b   :  { %v11998_v6 = vcombine.high %v1975_v45, %v1979_v5  ;;  %v11997_v22 = vcombine.low %v1975_v45, %v1979_v5  ;;  %v11999_v27 = vcombine.low %v1976_v18, %v1980_v12 }
 0x47c   :  { %8633 = vmatpush1.bf16.msra.mxu0 %v11949_v16  ;;  %v12000_v16 = vcombine.high %v1976_v18, %v1980_v12  ;;  %v2023_v12 = vld [vmem:[%s18647_s4 + $0x910] sm:$0xff] }
 0x47d   :  { %8961 = vmatpush1.bf16.msra.mxu1 %v11951_v50  ;;  %8634 = vmatprep.subr.bf16.mxu0 %v11958_v3  ;;  %v1983_v50 = vld [vmem:[%s18647_s4 + $0x7d0] sm:$0xff] }
 0x47e   :  { %8962 = vmatprep.subr.bf16.mxu1 %v11960_v21  ;;  %v1987_v3 = vld [vmem:[%s18647_s4 + $0x7f0] sm:$0xff]  ;;  %v1984_v21 = vld [vmem:[%s18647_s4 + $0x7d8] sm:$0xff] }
 0x47f   :  { %v12006_v60 = vcombine.high %v1983_v50, %v1987_v3  ;;  %v12005_v41 = vcombine.low %v1983_v50, %v1987_v3  ;;  %v12007_v42 = vcombine.low %v1984_v21, %v1988_v20 }
 0x480   :  { %8635 = vmatpush1.bf16.msra.mxu0 %v11957_v28  ;;  %v12008_v28 = vcombine.high %v1984_v21, %v1988_v20  ;;  %v2031_v20 = vld [vmem:[%s18647_s4 + $0x950] sm:$0xff] }
 0x481   :  { %8963 = vmatpush1.bf16.msra.mxu1 %v11959_v0  ;;  %8636 = vmatprep.subr.bf16.mxu0 %v11966_v32  ;;  %v1991_v0 = vld [vmem:[%s18647_s4 + $0x810] sm:$0xff] }
 0x482   :  { %8964 = vmatprep.subr.bf16.mxu1 %v11968_v36  ;;  %v1995_v32 = vld [vmem:[%s18647_s4 + $0x830] sm:$0xff]  ;;  %v1992_v36 = vld [vmem:[%s18647_s4 + $0x818] sm:$0xff] }
 0x483   :  { %v12014_v44 = vcombine.high %v1991_v0, %v1995_v32  ;;  %v12015_v58 = vcombine.low %v1992_v36, %v1996_v13 }
 0x484   :  { %8637 = vmatpush1.bf16.msra.mxu0 %v11965_v8  ;;  %v12016_v8 = vcombine.high %v1992_v36, %v1996_v13  ;;  %v2039_v13 = vld [vmem:[%s18647_s4 + $0x990] sm:$0xff] }
 0x485   :  { %8965 = vmatpush1.bf16.msra.mxu1 %v11967_v23  ;;  %8638 = vmatprep.subr.bf16.mxu0 %v11974_v49  ;;  %v1999_v23 = vld [vmem:[%s18647_s4 + $0x850] sm:$0xff] }
 0x486   :  { %8966 = vmatprep.subr.bf16.mxu1 %v11976_v53  ;;  %v2003_v49 = vld [vmem:[%s18647_s4 + $0x870] sm:$0xff]  ;;  %v12013_v53 = vcombine.low %v1991_v0, %v1995_v32 }
 0x487   :  { %v12022_v25 = vcombine.high %v1999_v23, %v2003_v49  ;;  %v12021_v11 = vcombine.low %v1999_v23, %v2003_v49 }
 0x488   :  { %8639 = vmatpush1.bf16.msra.mxu0 %v11973_v1  ;;  %v2007_v1 = vld [vmem:[%s18647_s4 + $0x890] sm:$0xff] }
 0x489   :  { %8967 = vmatpush1.bf16.msra.mxu1 %v11975_v4  ;;  %8640 = vmatprep.subr.bf16.mxu0 %v11982_v48  ;;  %v2011_v4 = vld [vmem:[%s18647_s4 + $0x8b0] sm:$0xff]  ;;  %v12024_v48 = vcombine.high %v2000_v55, %v2004_v57 }
 0x48a   :  { %8968 = vmatprep.subr.bf16.mxu1 %v11984_v59  ;;  %v2008_v59 = vld [vmem:[%s18647_s4 + $0x898] sm:$0xff]  ;;  %v12030_v9 = vcombine.high %v2007_v1, %v2011_v4  ;;  %v2047_v55 = vld [vmem:[%s18647_s4 + $0x9d0] sm:$0xff] }
 0x48b   :  { %v12031_v45 = vcombine.low %v2008_v59, %v2012_v61  ;;  %v2051_v57 = vld [vmem:[%s18647_s4 + $0x9f0] sm:$0xff] }
 0x48c   :  { %8641 = vmatpush1.bf16.msra.mxu0 %v11981_v10  ;;  %v12032_v10 = vcombine.high %v2008_v59, %v2012_v61  ;;  %v2055_v61 = vld [vmem:[%s18647_s4 + $0xa10] sm:$0xff] }
 0x48d   :  { %8969 = vmatpush1.bf16.msra.mxu1 %v11983_v43  ;;  %8642 = vmatprep.subr.bf16.mxu0 %v11990_v29  ;;  %v2015_v43 = vld [vmem:[%s18647_s4 + $0x8d0] sm:$0xff] }
 0x48e   :  { %8970 = vmatprep.subr.bf16.mxu1 %v11992_v40  ;;  %v2019_v29 = vld [vmem:[%s18647_s4 + $0x8f0] sm:$0xff]  ;;  %v2020_v40 = vld [vmem:[%s18647_s4 + $0x8f8] sm:$0xff] }
 0x48f   :  { %v12038_v5 = vcombine.high %v2015_v43, %v2019_v29 }
 0x490   :  { %8643 = vmatpush1.bf16.msra.mxu0 %v11989_v7  ;;  %v2027_v7 = vld [vmem:[%s18647_s4 + $0x930] sm:$0xff] }
 0x491   :  { %8971 = vmatpush1.bf16.msra.mxu1 %v11991_v14  ;;  %8644 = vmatprep.subr.bf16.mxu0 %v11998_v6  ;;  %v2024_v14 = vld [vmem:[%s18647_s4 + $0x918] sm:$0xff]  ;;  %v12046_v3 = vcombine.high %v2023_v12, %v2027_v7 }
 0x492   :  { %8972 = vmatprep.subr.bf16.mxu1 %v12000_v16  ;;  %v2028_v6 = vld [vmem:[%s18647_s4 + $0x938] sm:$0xff]  ;;  %v12037_v16 = vcombine.low %v2015_v43, %v2019_v29 }
 0x493   :  { %v12048_v21 = vcombine.high %v2024_v14, %v2028_v6  ;;  %v12047_v0 = vcombine.low %v2024_v14, %v2028_v6  ;;  %v2071_v6 = vld [vmem:[%s18647_s4 + $0xa90] sm:$0xff] }
 0x494   :  { %8645 = vmatpush1.bf16.msra.mxu0 %v11997_v22  ;;  %v2035_v22 = vld [vmem:[%s18647_s4 + $0x970] sm:$0xff] }
 0x495   :  { %8973 = vmatpush1.bf16.msra.mxu1 %v11999_v27  ;;  %8646 = vmatprep.subr.bf16.mxu0 %v12006_v60  ;;  %v2032_v27 = vld [vmem:[%s18647_s4 + $0x958] sm:$0xff]  ;;  %v12054_v32 = vcombine.high %v2031_v20, %v2035_v22 }
 0x496   :  { %8974 = vmatprep.subr.bf16.mxu1 %v12008_v28  ;;  %v2036_v60 = vld [vmem:[%s18647_s4 + $0x978] sm:$0xff]  ;;  %v12045_v28 = vcombine.low %v2023_v12, %v2027_v7 }
 0x497   :  { %v12056_v36 = vcombine.high %v2032_v27, %v2036_v60  ;;  %v12055_v23 = vcombine.low %v2032_v27, %v2036_v60  ;;  %v2079_v60 = vld [vmem:[%s18647_s4 + $0xad0] sm:$0xff] }
 0x498   :  { %8647 = vmatpush1.bf16.msra.mxu0 %v12005_v41  ;;  %v2043_v41 = vld [vmem:[%s18647_s4 + $0x9b0] sm:$0xff] }
 0x499   :  { %8975 = vmatpush1.bf16.msra.mxu1 %v12007_v42  ;;  %8657 = vmatprep.subr.bf16.mxu0 %v12014_v44  ;;  %v2040_v42 = vld [vmem:[%s18647_s4 + $0x998] sm:$0xff]  ;;  %v12062_v49 = vcombine.high %v2039_v13, %v2043_v41 }
 0x49a   :  { %8985 = vmatprep.subr.bf16.mxu1 %v12016_v8  ;;  %v2044_v44 = vld [vmem:[%s18647_s4 + $0x9b8] sm:$0xff]  ;;  %v12053_v8 = vcombine.low %v2031_v20, %v2035_v22 }
 0x49b   :  { %8649 = vmatmul.mubr.bf16.vlgmr.msra.gmra.mrb[68].mxu0 %v14881_v31 }
 0x49c   :  { %8977 = vmatmul.mubr.bf16.vlgmr.msra.gmra.mrb[36].mxu1 %v14881_v31  ;;  %8658 = vmatpush1.bf16.msra.mxu0 %v12013_v53  ;;  %v2016_v31 = vld [vmem:[%s18647_s4 + $0x8d8] sm:$0xff]  ;;  %v12064_v53 = vcombine.high %v2040_v42, %v2044_v44 }
 0x49d   :  { %8689 = vmatprep.mubr.bf16.mxu0 %v14883_v33  ;;  %8986 = vmatpush1.bf16.msra.mxu1 %v12015_v58  ;;  %v12040_v18 = vcombine.high %v2016_v31, %v2020_v40  ;;  %v12039_v50 = vcombine.low %v2016_v31, %v2020_v40  ;;  %v2048_v58 = vld [vmem:[%s18647_s4 + $0x9d8] sm:$0xff]  ;;  %v2063_v40 = vld [vmem:[%s18647_s4 + $0xa50] sm:$0xff] }
 0x49e   :  { %9017 = vmatprep.mubr.bf16.mxu1 %v14883_v33  ;;  %8659 = vmatprep.subr.bf16.mxu0 %v12022_v25  ;;  %v12029_v33 = vcombine.low %v2007_v1, %v2011_v4  ;;  %v2052_v25 = vld [vmem:[%s18647_s4 + $0x9f8] sm:$0xff]  ;;  %v12061_v1 = vcombine.low %v2039_v13, %v2043_v41  ;;  %v12063_v4 = vcombine.low %v2040_v42, %v2044_v44  ;;  %v2087_v44 = vld [vmem:[%s18647_s4 + $0xb10] sm:$0xff] }
 0x49f   :  { %8987 = vmatprep.subr.bf16.mxu1 %v12024_v48  ;;  %v12070_v48 = vcombine.high %v2047_v55, %v2051_v57  ;;  %v12072_v59 = vcombine.high %v2048_v58, %v2052_v25  ;;  %v12071_v43 = vcombine.low %v2048_v58, %v2052_v25  ;;  %v2095_v25 = vld [vmem:[%s18647_s4 + $0xb50] sm:$0xff] }
 0x4a0   :  { %8660 = vmatpush1.bf16.msra.mxu0 %v12021_v11  ;;  %v2059_v11 = vld [vmem:[%s18647_s4 + $0xa30] sm:$0xff] }
 0x4a1   :  { %8988 = vmatpush1.bf16.msra.mxu1 %v12023_v2  ;;  %8661 = vmatprep.subr.bf16.mxu0 %v12030_v9  ;;  %v2056_v2 = vld [vmem:[%s18647_s4 + $0xa18] sm:$0xff]  ;;  %v12078_v29 = vcombine.high %v2055_v61, %v2059_v11 }
 0x4a2   :  { %8989 = vmatprep.subr.bf16.mxu1 %v12032_v10  ;;  %v2060_v9 = vld [vmem:[%s18647_s4 + $0xa38] sm:$0xff]  ;;  %v12069_v10 = vcombine.low %v2047_v55, %v2051_v57 }
 0x4a3   :  { %v12080_v31 = vcombine.high %v2056_v2, %v2060_v9  ;;  %v12079_v12 = vcombine.low %v2056_v2, %v2060_v9  ;;  %v2103_v9 = vld [vmem:[%s18647_s4 + $0xb90] sm:$0xff] }
 0x4a4   :  { %8662 = vmatpush1.bf16.msra.mxu0 %v12029_v33  ;;  %v2067_v33 = vld [vmem:[%s18647_s4 + $0xa70] sm:$0xff] }
 0x4a5   :  { %8990 = vmatpush1.bf16.msra.mxu1 %v12031_v45  ;;  %8663 = vmatprep.subr.bf16.mxu0 %v12038_v5  ;;  %v2064_v45 = vld [vmem:[%s18647_s4 + $0xa58] sm:$0xff]  ;;  %v12086_v7 = vcombine.high %v2063_v40, %v2067_v33 }
 0x4a6   :  { %8991 = vmatprep.subr.bf16.mxu1 %v12040_v18  ;;  %v2068_v5 = vld [vmem:[%s18647_s4 + $0xa78] sm:$0xff]  ;;  %v12077_v18 = vcombine.low %v2055_v61, %v2059_v11 }
 0x4a7   :  { %v12088_v14 = vcombine.high %v2064_v45, %v2068_v5  ;;  %v12087_v20 = vcombine.low %v2064_v45, %v2068_v5  ;;  %v2111_v5 = vld [vmem:[%s18647_s4 + $0xbd0] sm:$0xff] }
 0x4a8   :  { %8664 = vmatpush1.bf16.msra.mxu0 %v12037_v16  ;;  %v2075_v16 = vld [vmem:[%s18647_s4 + $0xab0] sm:$0xff] }
 0x4a9   :  { %8992 = vmatpush1.bf16.msra.mxu1 %v12039_v50  ;;  %8665 = vmatprep.subr.bf16.mxu0 %v12046_v3  ;;  %v2072_v50 = vld [vmem:[%s18647_s4 + $0xa98] sm:$0xff]  ;;  %v12094_v22 = vcombine.high %v2071_v6, %v2075_v16 }
 0x4aa   :  { %8993 = vmatprep.subr.bf16.mxu1 %v12048_v21  ;;  %v2076_v3 = vld [vmem:[%s18647_s4 + $0xab8] sm:$0xff]  ;;  %v12085_v21 = vcombine.low %v2063_v40, %v2067_v33 }
 0x4ab   :  { %v12096_v27 = vcombine.high %v2072_v50, %v2076_v3  ;;  %v12095_v13 = vcombine.low %v2072_v50, %v2076_v3  ;;  %v2119_v3 = vld [vmem:[%s18647_s4 + $0xc10] sm:$0xff] }
 0x4ac   :  { %8666 = vmatpush1.bf16.msra.mxu0 %v12045_v28  ;;  %v2083_v28 = vld [vmem:[%s18647_s4 + $0xaf0] sm:$0xff] }
 0x4ad   :  { %8994 = vmatpush1.bf16.msra.mxu1 %v12047_v0  ;;  %8667 = vmatprep.subr.bf16.mxu0 %v12054_v32  ;;  %v2080_v0 = vld [vmem:[%s18647_s4 + $0xad8] sm:$0xff]  ;;  %v12102_v41 = vcombine.high %v2079_v60, %v2083_v28 }
 0x4ae   :  { %8995 = vmatprep.subr.bf16.mxu1 %v12056_v36  ;;  %v2084_v32 = vld [vmem:[%s18647_s4 + $0xaf8] sm:$0xff]  ;;  %v12093_v36 = vcombine.low %v2071_v6, %v2075_v16 }
 0x4af   :  { %v12104_v42 = vcombine.high %v2080_v0, %v2084_v32  ;;  %v12103_v55 = vcombine.low %v2080_v0, %v2084_v32  ;;  %v2127_v32 = vld [vmem:[%s18647_s4 + $0xc50] sm:$0xff] }
 0x4b0   :  { %8668 = vmatpush1.bf16.msra.mxu0 %v12053_v8  ;;  %v2091_v8 = vld [vmem:[%s18647_s4 + $0xb30] sm:$0xff] }
 0x4b1   :  { %8996 = vmatpush1.bf16.msra.mxu1 %v12055_v23  ;;  %8669 = vmatprep.subr.bf16.mxu0 %v12062_v49  ;;  %v2088_v23 = vld [vmem:[%s18647_s4 + $0xb18] sm:$0xff]  ;;  %v12110_v57 = vcombine.high %v2087_v44, %v2091_v8 }
 0x4b2   :  { %8997 = vmatprep.subr.bf16.mxu1 %v12064_v53  ;;  %v2092_v49 = vld [vmem:[%s18647_s4 + $0xb38] sm:$0xff]  ;;  %v12101_v53 = vcombine.low %v2079_v60, %v2083_v28 }
 0x4b3   :  { %v12112_v58 = vcombine.high %v2088_v23, %v2092_v49  ;;  %v12111_v61 = vcombine.low %v2088_v23, %v2092_v49  ;;  %v2135_v23 = vld [vmem:[%s18647_s4 + $0xc90] sm:$0xff] }
 0x4b4   :  { %8670 = vmatpush1.bf16.msra.mxu0 %v12061_v1  ;;  %v2099_v1 = vld [vmem:[%s18647_s4 + $0xb70] sm:$0xff] }
 0x4b5   :  { %8998 = vmatpush1.bf16.msra.mxu1 %v12063_v4  ;;  %8671 = vmatprep.subr.bf16.mxu0 %v12070_v48  ;;  %v2096_v4 = vld [vmem:[%s18647_s4 + $0xb58] sm:$0xff]  ;;  %v12118_v11 = vcombine.high %v2095_v25, %v2099_v1  ;;  %v2139_v49 = vld [vmem:[%s18647_s4 + $0xcb0] sm:$0xff] }
 0x4b6   :  { %8999 = vmatprep.subr.bf16.mxu1 %v12072_v59  ;;  %v2100_v48 = vld [vmem:[%s18647_s4 + $0xb78] sm:$0xff]  ;;  %v12109_v59 = vcombine.low %v2087_v44, %v2091_v8 }
 0x4b7   :  { %v12120_v2 = vcombine.high %v2096_v4, %v2100_v48  ;;  %v12119_v40 = vcombine.low %v2096_v4, %v2100_v48  ;;  %v2143_v48 = vld [vmem:[%s18647_s4 + $0xcd0] sm:$0xff] }
 0x4b8   :  { %8672 = vmatpush1.bf16.msra.mxu0 %v12069_v10  ;;  %v2107_v10 = vld [vmem:[%s18647_s4 + $0xbb0] sm:$0xff] }
 0x4b9   :  { %9000 = vmatpush1.bf16.msra.mxu1 %v12071_v43  ;;  %8673 = vmatprep.subr.bf16.mxu0 %v12078_v29  ;;  %v2104_v43 = vld [vmem:[%s18647_s4 + $0xb98] sm:$0xff]  ;;  %v12126_v33 = vcombine.high %v2103_v9, %v2107_v10 }
 0x4ba   :  { %9001 = vmatprep.subr.bf16.mxu1 %v12080_v31  ;;  %v2108_v29 = vld [vmem:[%s18647_s4 + $0xbb8] sm:$0xff]  ;;  %v12117_v31 = vcombine.low %v2095_v25, %v2099_v1  ;;  %v12158_v1 = vcombine.high %v2135_v23, %v2139_v49 }
 0x4bb   :  { %v12128_v45 = vcombine.high %v2104_v43, %v2108_v29  ;;  %v12127_v6 = vcombine.low %v2104_v43, %v2108_v29  ;;  %v2155_v43 = vld [vmem:[%s18647_s4 + $0xd30] sm:$0xff]  ;;  %v2152_v29 = vld [vmem:[%s18647_s4 + $0xd18] sm:$0xff] }
 0x4bc   :  { %8674 = vmatpush1.bf16.msra.mxu0 %v12077_v18  ;;  %v2115_v18 = vld [vmem:[%s18647_s4 + $0xbf0] sm:$0xff] }
 0x4bd   :  { %9002 = vmatpush1.bf16.msra.mxu1 %v12079_v12  ;;  %8675 = vmatprep.subr.bf16.mxu0 %v12086_v7  ;;  %v2112_v12 = vld [vmem:[%s18647_s4 + $0xbd8] sm:$0xff]  ;;  %v12134_v16 = vcombine.high %v2111_v5, %v2115_v18 }
 0x4be   :  { %9003 = vmatprep.subr.bf16.mxu1 %v12088_v14  ;;  %v2116_v7 = vld [vmem:[%s18647_s4 + $0xbf8] sm:$0xff]  ;;  %v12125_v14 = vcombine.low %v2103_v9, %v2107_v10  ;;  %v2151_v10 = vld [vmem:[%s18647_s4 + $0xd10] sm:$0xff] }
 0x4bf   :  { %v12136_v50 = vcombine.high %v2112_v12, %v2116_v7  ;;  %v12135_v60 = vcombine.low %v2112_v12, %v2116_v7  ;;  %v2163_v12 = vld [vmem:[%s18647_s4 + $0xd70] sm:$0xff]  ;;  %v2160_v7 = vld [vmem:[%s18647_s4 + $0xd58] sm:$0xff] }
 0x4c0   :  { %8676 = vmatpush1.bf16.msra.mxu0 %v12085_v21  ;;  %v2123_v21 = vld [vmem:[%s18647_s4 + $0xc30] sm:$0xff] }
 0x4c1   :  { %9004 = vmatpush1.bf16.msra.mxu1 %v12087_v20  ;;  %8677 = vmatprep.subr.bf16.mxu0 %v12094_v22  ;;  %v2120_v20 = vld [vmem:[%s18647_s4 + $0xc18] sm:$0xff]  ;;  %v12142_v28 = vcombine.high %v2119_v3, %v2123_v21 }
 0x4c2   :  { %9005 = vmatprep.subr.bf16.mxu1 %v12096_v27  ;;  %v2124_v22 = vld [vmem:[%s18647_s4 + $0xc38] sm:$0xff]  ;;  %v12133_v27 = vcombine.low %v2111_v5, %v2115_v18  ;;  %v2159_v18 = vld [vmem:[%s18647_s4 + $0xd50] sm:$0xff] }
 0x4c3   :  { %v12144_v0 = vcombine.high %v2120_v20, %v2124_v22  ;;  %v12143_v44 = vcombine.low %v2120_v20, %v2124_v22  ;;  %v2171_v20 = vld [vmem:[%s18647_s4 + $0xdb0] sm:$0xff]  ;;  %v2168_v22 = vld [vmem:[%s18647_s4 + $0xd98] sm:$0xff] }
 0x4c4   :  { %8678 = vmatpush1.bf16.msra.mxu0 %v12093_v36  ;;  %v2131_v36 = vld [vmem:[%s18647_s4 + $0xc70] sm:$0xff] }
 0x4c5   :  { %9006 = vmatpush1.bf16.msra.mxu1 %v12095_v13  ;;  %8679 = vmatprep.subr.bf16.mxu0 %v12102_v41  ;;  %v12141_v13 = vcombine.low %v2119_v3, %v2123_v21  ;;  %v2128_v41 = vld [vmem:[%s18647_s4 + $0xc58] sm:$0xff]  ;;  %v12150_v8 = vcombine.high %v2127_v32, %v2131_v36  ;;  %v2167_v21 = vld [vmem:[%s18647_s4 + $0xd90] sm:$0xff] }
 0x4c6   :  { %9007 = vmatprep.subr.bf16.mxu1 %v12104_v42  ;;  %v2132_v42 = vld [vmem:[%s18647_s4 + $0xc78] sm:$0xff] }
 0x4c7   :  { %v12151_v25 = vcombine.low %v2128_v41, %v2132_v42 }
 0x4c8   :  { %8680 = vmatpush1.bf16.msra.mxu0 %v12101_v53  ;;  %v12152_v53 = vcombine.high %v2128_v41, %v2132_v42  ;;  %v2179_v41 = vld [vmem:[%s18647_s4 + $0xdf0] sm:$0xff] }
 0x4c9   :  { %9008 = vmatpush1.bf16.msra.mxu1 %v12103_v55  ;;  %8681 = vmatprep.subr.bf16.mxu0 %v12110_v57  ;;  %v2136_v55 = vld [vmem:[%s18647_s4 + $0xc98] sm:$0xff] }
 0x4ca   :  { %9009 = vmatprep.subr.bf16.mxu1 %v12112_v58  ;;  %v2140_v57 = vld [vmem:[%s18647_s4 + $0xcb8] sm:$0xff]  ;;  %v12149_v58 = vcombine.low %v2127_v32, %v2131_v36 }
 0x4cb   :  { %v12160_v4 = vcombine.high %v2136_v55, %v2140_v57 }
 0x4cc   :  { %8682 = vmatpush1.bf16.msra.mxu0 %v12109_v59  ;;  %v2147_v59 = vld [vmem:[%s18647_s4 + $0xcf0] sm:$0xff] }
 0x4cd   :  { %9010 = vmatpush1.bf16.msra.mxu1 %v12111_v61  ;;  %8683 = vmatprep.subr.bf16.mxu0 %v12118_v11  ;;  %v2148_v61 = vld [vmem:[%s18647_s4 + $0xcf8] sm:$0xff]  ;;  %v12159_v11 = vcombine.low %v2136_v55, %v2140_v57  ;;  %v12189_v55 = vcombine.low %v2167_v21, %v2171_v20 }
 0x4ce   :  { %9011 = vmatprep.subr.bf16.mxu1 %v12120_v2  ;;  %v12166_v2 = vcombine.high %v2143_v48, %v2147_v59 }
 0x4d0   :  { %8684 = vmatpush1.bf16.msra.mxu0 %v12117_v31  ;;  %v2156_v31 = vld [vmem:[%s18647_s4 + $0xd38] sm:$0xff] }
 0x4d1   :  { %9012 = vmatpush1.bf16.msra.mxu1 %v12119_v40  ;;  %8685 = vmatprep.subr.bf16.mxu0 %v12126_v33  ;;  %v12165_v40 = vcombine.low %v2143_v48, %v2147_v59  ;;  %v12176_v5 = vcombine.high %v2152_v29, %v2156_v31  ;;  %v2183_v59 = vld [vmem:[%s18647_s4 + $0xe10] sm:$0xff] }
 0x4d2   :  { %9013 = vmatprep.subr.bf16.mxu1 %v12128_v45  ;;  %v12174_v45 = vcombine.high %v2151_v10, %v2155_v43 }
 0x4d4   :  { %8686 = vmatpush1.bf16.msra.mxu0 %v12125_v14  ;;  %v2164_v14 = vld [vmem:[%s18647_s4 + $0xd78] sm:$0xff] }
 0x4d5   :  { %9014 = vmatpush1.bf16.msra.mxu1 %v12127_v6  ;;  %8687 = vmatprep.subr.bf16.mxu0 %v12134_v16  ;;  %v12173_v6 = vcombine.low %v2151_v10, %v2155_v43  ;;  %v12175_v16 = vcombine.low %v2152_v29, %v2156_v31  ;;  %v12184_v3 = vcombine.high %v2160_v7, %v2164_v14  ;;  %v2191_v43 = vld [vmem:[%s18647_s4 + $0xe50] sm:$0xff]  ;;  %v2192_v31 = vld [vmem:[%s18647_s4 + $0xe58] sm:$0xff] }
 0x4d6   :  { %9015 = vmatprep.subr.bf16.mxu1 %v12136_v50  ;;  %v12182_v50 = vcombine.high %v2159_v18, %v2163_v12  ;;  %v2195_v29 = vld [vmem:[%s18647_s4 + $0xe70] sm:$0xff] }
 0x4d8   :  { %8688 = vmatpush1.bf16.msra.mxu0 %v12133_v27  ;;  %v2172_v27 = vld [vmem:[%s18647_s4 + $0xdb8] sm:$0xff] }
 0x4d9   :  { %9016 = vmatpush1.bf16.msra.mxu1 %v12135_v60  ;;  %8698 = vmatprep.subr.bf16.mxu0 %v12142_v28  ;;  %v12181_v60 = vcombine.low %v2159_v18, %v2163_v12  ;;  %v12183_v28 = vcombine.low %v2160_v7, %v2164_v14  ;;  %v12192_v36 = vcombine.high %v2168_v22, %v2172_v27  ;;  %v2199_v12 = vld [vmem:[%s18647_s4 + $0xe90] sm:$0xff]  ;;  %v2200_v14 = vld [vmem:[%s18647_s4 + $0xe98] sm:$0xff] }
 0x4da   :  { %9026 = vmatprep.subr.bf16.mxu1 %v12144_v0  ;;  %v12190_v0 = vcombine.high %v2167_v21, %v2171_v20  ;;  %v2203_v7 = vld [vmem:[%s18647_s4 + $0xeb0] sm:$0xff] }
 0x4db   :  { %8690 = vmatmul.mubr.bf16.vlgmr.msra.gmra.mrb[68].mxu0 %v15125_v52  ;;  %v2207_v20 = vld [vmem:[%s18647_s4 + $0xed0] sm:$0xff] }
 0x4dc   :  { %9018 = vmatmul.mubr.bf16.vlgmr.msra.gmra.mrb[36].mxu1 %v15125_v52  ;;  %8699 = vmatpush1.bf16.msra.mxu0 %v12141_v13  ;;  %v2144_v52 = vld [vmem:[%s18647_s4 + $0xcd8] sm:$0xff]  ;;  %v2175_v13 = vld [vmem:[%s18647_s4 + $0xdd0] sm:$0xff] }
 0x4dd   :  { %8730 = vmatprep.mubr.bf16.mxu0 %v15133_v19  ;;  %9027 = vmatpush1.bf16.msra.mxu1 %v12143_v44  ;;  %v12168_v9 = vcombine.high %v2144_v52, %v2148_v61  ;;  %v12167_v33 = vcombine.low %v2144_v52, %v2148_v61  ;;  %v2187_v52 = vld [vmem:[%s18647_s4 + $0xe30] sm:$0xff]  ;;  %v2184_v61 = vld [vmem:[%s18647_s4 + $0xe18] sm:$0xff] }
 0x4de   :  { %9058 = vmatprep.mubr.bf16.mxu1 %v15133_v19  ;;  %8700 = vmatprep.subr.bf16.mxu0 %v12150_v8  ;;  %v12157_v19 = vcombine.low %v2135_v23, %v2139_v49  ;;  %v2176_v8 = vld [vmem:[%s18647_s4 + $0xdd8] sm:$0xff] }
 0x4df   :  { %9028 = vmatprep.subr.bf16.mxu1 %v12152_v53  ;;  %v2180_v23 = vld [vmem:[%s18647_s4 + $0xdf8] sm:$0xff] }
 0x4e0   :  { %8701 = vmatpush1.bf16.msra.mxu0 %v12149_v58  ;;  %v12200_v48 = vcombine.high %v2176_v8, %v2180_v23 }
 0x4e1   :  { %9029 = vmatpush1.bf16.msra.mxu1 %v12151_v25  ;;  %8702 = vmatprep.subr.bf16.mxu0 %v12158_v1  ;;  %v12191_v25 = vcombine.low %v2168_v22, %v2172_v27  ;;  %v12198_v1 = vcombine.high %v2175_v13, %v2179_v41  ;;  %v2211_v22 = vld [vmem:[%s18647_s4 + $0xef0] sm:$0xff]  ;;  %v2208_v27 = vld [vmem:[%s18647_s4 + $0xed8] sm:$0xff] }
 0x4e2   :  { %9030 = vmatprep.subr.bf16.mxu1 %v12160_v4 }
 0x4e4   :  { %8703 = vmatpush1.bf16.msra.mxu0 %v12157_v19  ;;  %v2188_v19 = vld [vmem:[%s18647_s4 + $0xe38] sm:$0xff] }
 0x4e5   :  { %9031 = vmatpush1.bf16.msra.mxu1 %v12159_v11  ;;  %8704 = vmatprep.subr.bf16.mxu0 %v12166_v2  ;;  %v12197_v11 = vcombine.low %v2175_v13, %v2179_v41  ;;  %v12199_v2 = vcombine.low %v2176_v8, %v2180_v23  ;;  %v12208_v10 = vcombine.high %v2184_v61, %v2188_v19  ;;  %v2215_v41 = vld [vmem:[%s18647_s4 + $0xf10] sm:$0xff]  ;;  %v2216_v23 = vld [vmem:[%s18647_s4 + $0xf18] sm:$0xff] }
 0x4e6   :  { %9032 = vmatprep.subr.bf16.mxu1 %v12168_v9  ;;  %v12206_v9 = vcombine.high %v2183_v59, %v2187_v52  ;;  %v2219_v8 = vld [vmem:[%s18647_s4 + $0xf30] sm:$0xff] }
 0x4e8   :  { %8705 = vmatpush1.bf16.msra.mxu0 %v12165_v40  ;;  %v2196_v40 = vld [vmem:[%s18647_s4 + $0xe78] sm:$0xff] }
 0x4e9   :  { %9033 = vmatpush1.bf16.msra.mxu1 %v12167_v33  ;;  %8706 = vmatprep.subr.bf16.mxu0 %v12174_v45  ;;  %v12205_v33 = vcombine.low %v2183_v59, %v2187_v52  ;;  %v12207_v45 = vcombine.low %v2184_v61, %v2188_v19  ;;  %v12216_v18 = vcombine.high %v2192_v31, %v2196_v40  ;;  %v2228_v59 = vld [vmem:[%s18647_s4 + $0xf78] sm:$0xff] }
 0x4ea   :  { %9034 = vmatprep.subr.bf16.mxu1 %v12176_v5  ;;  %v12214_v5 = vcombine.high %v2191_v43, %v2195_v29  ;;  %v12237_v52 = vcombine.low %v2215_v41, %v2219_v8 }
 0x4ec   :  { %8707 = vmatpush1.bf16.msra.mxu0 %v12173_v6  ;;  %v2204_v6 = vld [vmem:[%s18647_s4 + $0xeb8] sm:$0xff] }
 0x4ed   :  { %9035 = vmatpush1.bf16.msra.mxu1 %v12175_v16  ;;  %8708 = vmatprep.subr.bf16.mxu0 %v12182_v50  ;;  %v12213_v16 = vcombine.low %v2191_v43, %v2195_v29  ;;  %v12215_v50 = vcombine.low %v2192_v31, %v2196_v40  ;;  %v12224_v21 = vcombine.high %v2200_v14, %v2204_v6  ;;  %v2236_v43 = vld [vmem:[%s18647_s4 + $0xfb8] sm:$0xff] }
 0x4ee   :  { %v16798_v32 = vpop.f32.mrb[64].mxu0  ;;  %9036 = vmatprep.subr.bf16.mxu1 %v12184_v3  ;;  %v12222_v3 = vcombine.high %v2199_v12, %v2203_v7 }
 0x4ef   :  { %v16806_v42 = vpop.f32.mrb[32].mxu1  ;;  %v16808_v44 = vpop.f32.mrb[65].mxu0 }
 0x4f0   :  { %v16816_v49 = vpop.f32.mrb[33].mxu1  ;;  %v8244_v53 = vpop.f32.mrb[66].mxu0  ;;  %8709 = vmatpush1.bf16.msra.mxu0 %v12181_v60  ;;  %v2212_v60 = vld [vmem:[%s18647_s4 + $0xef8] sm:$0xff] }
 0x4f1   :  { %v8572_v57 = vpop.f32.mrb[34].mxu1  ;;  %9037 = vmatpush1.bf16.msra.mxu1 %v12183_v28  ;;  %v8245_v58 = vpop.f32.mrb[67].mxu0  ;;  %8710 = vmatprep.subr.bf16.mxu0 %v12190_v0  ;;  %v12221_v28 = vcombine.low %v2199_v12, %v2203_v7  ;;  %v12223_v0 = vcombine.low %v2200_v14, %v2204_v6  ;;  %v12232_v13 = vcombine.high %v2208_v27, %v2212_v60  ;;  %v2220_v53 = vld [vmem:[%s18647_s4 + $0xf38] sm:$0xff] }
 0x4f2   :  { %v8573_v4 = vpop.f32.mrb[35].mxu1  ;;  %9038 = vmatprep.subr.bf16.mxu1 %v12192_v36  ;;  %v12230_v36 = vcombine.high %v2207_v20, %v2211_v22  ;;  %v12231_v57 = vcombine.low %v2208_v27, %v2212_v60  ;;  %v12238_v58 = vcombine.high %v2215_v41, %v2219_v8  ;;  %v12239_v61 = vcombine.low %v2216_v23, %v2220_v53  ;;  %v2244_v12 = vld [vmem:[%s18647_s4 + $0xff8] sm:$0xff] }
 0x4f3   :  { %v2227_v4 = vld [vmem:[%s18647_s4 + $0xf70] sm:$0xff]  ;;  %v2256_v41 = vld [vmem:[%s18647_s4 + $0x1058] sm:$0xff] }
 0x4f4   :  { %8711 = vmatpush1.bf16.msra.mxu0 %v12189_v55  ;;  %v12229_v55 = vcombine.low %v2207_v20, %v2211_v22  ;;  %v2252_v20 = vld [vmem:[%s18647_s4 + $0x1038] sm:$0xff] }
 0x4f5   :  { %9039 = vmatpush1.bf16.msra.mxu1 %v12191_v25  ;;  %8712 = vmatprep.subr.bf16.mxu0 %v12198_v1  ;;  %v12240_v25 = vcombine.high %v2216_v23, %v2220_v53  ;;  %v2223_v1 = vld [vmem:[%s18647_s4 + $0xf50] sm:$0xff]  ;;  %v2260_v8 = vld [vmem:[%s18647_s4 + $0x1078] sm:$0xff] }
 0x4f6   :  { %9040 = vmatprep.subr.bf16.mxu1 %v12200_v48  ;;  %v2224_v48 = vld [vmem:[%s18647_s4 + $0xf58] sm:$0xff]  ;;  %v12246_v19 = vcombine.high %v2223_v1, %v2227_v4  ;;  %v12245_v29 = vcombine.low %v2223_v1, %v2227_v4 }
 0x4f7   :  { %v12247_v31 = vcombine.low %v2224_v48, %v2228_v59  ;;  %v2268_v1 = vld [vmem:[%s18647_s4 + $0x10b8] sm:$0xff] }
 0x4f8   :  { %8713 = vmatpush1.bf16.msra.mxu0 %v12197_v11  ;;  %v12248_v11 = vcombine.high %v2224_v48, %v2228_v59  ;;  %v12279_v48 = vcombine.low %v2256_v41, %v2260_v8 }
 0x4f9   :  { %9041 = vmatpush1.bf16.msra.mxu1 %v12199_v2  ;;  %8714 = vmatprep.subr.bf16.mxu0 %v12206_v9  ;;  %v2231_v2 = vld [vmem:[%s18647_s4 + $0xf90] sm:$0xff] }
 0x4fa   :  { %9042 = vmatprep.subr.bf16.mxu1 %v12208_v10  ;;  %v2235_v9 = vld [vmem:[%s18647_s4 + $0xfb0] sm:$0xff]  ;;  %v2232_v10 = vld [vmem:[%s18647_s4 + $0xf98] sm:$0xff] }
 0x4fb   :  { %v12254_v40 = vcombine.high %v2231_v2, %v2235_v9  ;;  %v12253_v7 = vcombine.low %v2231_v2, %v2235_v9  ;;  %v12255_v14 = vcombine.low %v2232_v10, %v2236_v43 }
 0x4fc   :  { %8715 = vmatpush1.bf16.msra.mxu0 %v12205_v33  ;;  %v12256_v33 = vcombine.high %v2232_v10, %v2236_v43  ;;  %v2279_v43 = vld [vmem:[%s18647_s4 + $0x1110] sm:$0xff] }
 0x4fd   :  { %9043 = vmatpush1.bf16.msra.mxu1 %v12207_v45  ;;  %8716 = vmatprep.subr.bf16.mxu0 %v12214_v5  ;;  %v2239_v45 = vld [vmem:[%s18647_s4 + $0xfd0] sm:$0xff] }
 0x4fe   :  { %9044 = vmatprep.subr.bf16.mxu1 %v12216_v18  ;;  %v2243_v5 = vld [vmem:[%s18647_s4 + $0xff0] sm:$0xff]  ;;  %v2240_v18 = vld [vmem:[%s18647_s4 + $0xfd8] sm:$0xff] }
 0x4ff   :  { %v12262_v6 = vcombine.high %v2239_v45, %v2243_v5  ;;  %v12261_v22 = vcombine.low %v2239_v45, %v2243_v5  ;;  %v12263_v27 = vcombine.low %v2240_v18, %v2244_v12 }
 0x500   :  { %8717 = vmatpush1.bf16.msra.mxu0 %v12213_v16  ;;  %v12264_v16 = vcombine.high %v2240_v18, %v2244_v12  ;;  %v2287_v12 = vld [vmem:[%s18647_s4 + $0x1150] sm:$0xff] }
 0x501   :  { %9045 = vmatpush1.bf16.msra.mxu1 %v12215_v50  ;;  %8718 = vmatprep.subr.bf16.mxu0 %v12222_v3  ;;  %v2247_v50 = vld [vmem:[%s18647_s4 + $0x1010] sm:$0xff] }
 0x502   :  { %9046 = vmatprep.subr.bf16.mxu1 %v12224_v21  ;;  %v2251_v3 = vld [vmem:[%s18647_s4 + $0x1030] sm:$0xff]  ;;  %v2248_v21 = vld [vmem:[%s18647_s4 + $0x1018] sm:$0xff] }
 0x503   :  { %v12270_v60 = vcombine.high %v2247_v50, %v2251_v3  ;;  %v12271_v23 = vcombine.low %v2248_v21, %v2252_v20 }
 0x504   :  { %8719 = vmatpush1.bf16.msra.mxu0 %v12221_v28  ;;  %v12272_v28 = vcombine.high %v2248_v21, %v2252_v20  ;;  %v2295_v20 = vld [vmem:[%s18647_s4 + $0x1190] sm:$0xff] }
 0x505   :  { %9047 = vmatpush1.bf16.msra.mxu1 %v12223_v0  ;;  %8720 = vmatprep.subr.bf16.mxu0 %v12230_v36  ;;  %v2255_v0 = vld [vmem:[%s18647_s4 + $0x1050] sm:$0xff] }
 0x506   :  { %9048 = vmatprep.subr.bf16.mxu1 %v12232_v13  ;;  %v2259_v36 = vld [vmem:[%s18647_s4 + $0x1070] sm:$0xff]  ;;  %v12269_v13 = vcombine.low %v2247_v50, %v2251_v3 }
 0x507   :  { %v12278_v53 = vcombine.high %v2255_v0, %v2259_v36  ;;  %v12277_v4 = vcombine.low %v2255_v0, %v2259_v36 }
 0x508   :  { %8721 = vmatpush1.bf16.msra.mxu0 %v12229_v55  ;;  %v2263_v55 = vld [vmem:[%s18647_s4 + $0x1090] sm:$0xff] }
 0x509   :  { %9049 = vmatpush1.bf16.msra.mxu1 %v12231_v57  ;;  %8722 = vmatprep.subr.bf16.mxu0 %v12238_v58  ;;  %v2267_v57 = vld [vmem:[%s18647_s4 + $0x10b0] sm:$0xff]  ;;  %v12280_v58 = vcombine.high %v2256_v41, %v2260_v8 }
 0x50a   :  { %9050 = vmatprep.subr.bf16.mxu1 %v12240_v25  ;;  %v2264_v25 = vld [vmem:[%s18647_s4 + $0x1098] sm:$0xff]  ;;  %v12286_v59 = vcombine.high %v2263_v55, %v2267_v57  ;;  %v2303_v41 = vld [vmem:[%s18647_s4 + $0x11d0] sm:$0xff] }
 0x50b   :  { %v12287_v2 = vcombine.low %v2264_v25, %v2268_v1  ;;  %v2307_v8 = vld [vmem:[%s18647_s4 + $0x11f0] sm:$0xff] }
 0x50c   :  { %8723 = vmatpush1.bf16.msra.mxu0 %v12237_v52  ;;  %v12288_v52 = vcombine.high %v2264_v25, %v2268_v1  ;;  %v2311_v1 = vld [vmem:[%s18647_s4 + $0x1210] sm:$0xff] }
 0x50d   :  { %9051 = vmatpush1.bf16.msra.mxu1 %v12239_v61  ;;  %8724 = vmatprep.subr.bf16.mxu0 %v12246_v19  ;;  %v2271_v61 = vld [vmem:[%s18647_s4 + $0x10d0] sm:$0xff] }
 0x50e   :  { %9052 = vmatprep.subr.bf16.mxu1 %v12248_v11  ;;  %v2275_v19 = vld [vmem:[%s18647_s4 + $0x10f0] sm:$0xff]  ;;  %v2276_v11 = vld [vmem:[%s18647_s4 + $0x10f8] sm:$0xff] }
 0x50f   :  { %v12294_v9 = vcombine.high %v2271_v61, %v2275_v19 }
 0x510   :  { %8725 = vmatpush1.bf16.msra.mxu0 %v12245_v29  ;;  %v2283_v29 = vld [vmem:[%s18647_s4 + $0x1130] sm:$0xff] }
 0x511   :  { %9053 = vmatpush1.bf16.msra.mxu1 %v12247_v31  ;;  %8726 = vmatprep.subr.bf16.mxu0 %v12254_v40  ;;  %v2280_v31 = vld [vmem:[%s18647_s4 + $0x1118] sm:$0xff]  ;;  %v12302_v5 = vcombine.high %v2279_v43, %v2283_v29 }
 0x512   :  { %9054 = vmatprep.subr.bf16.mxu1 %v12256_v33  ;;  %v2284_v40 = vld [vmem:[%s18647_s4 + $0x1138] sm:$0xff]  ;;  %v12293_v33 = vcombine.low %v2271_v61, %v2275_v19 }
 0x513   :  { %v12304_v18 = vcombine.high %v2280_v31, %v2284_v40  ;;  %v12303_v50 = vcombine.low %v2280_v31, %v2284_v40  ;;  %v2327_v40 = vld [vmem:[%s18647_s4 + $0x1290] sm:$0xff] }
 0x514   :  { %8727 = vmatpush1.bf16.msra.mxu0 %v12253_v7  ;;  %v2291_v7 = vld [vmem:[%s18647_s4 + $0x1170] sm:$0xff] }
 0x515   :  { %9055 = vmatpush1.bf16.msra.mxu1 %v12255_v14  ;;  %8728 = vmatprep.subr.bf16.mxu0 %v12262_v6  ;;  %v2288_v14 = vld [vmem:[%s18647_s4 + $0x1158] sm:$0xff]  ;;  %v12310_v3 = vcombine.high %v2287_v12, %v2291_v7 }
 0x516   :  { %9056 = vmatprep.subr.bf16.mxu1 %v12264_v16  ;;  %v2292_v6 = vld [vmem:[%s18647_s4 + $0x1178] sm:$0xff]  ;;  %v12301_v16 = vcombine.low %v2279_v43, %v2283_v29 }
 0x517   :  { %v12312_v21 = vcombine.high %v2288_v14, %v2292_v6  ;;  %v12311_v0 = vcombine.low %v2288_v14, %v2292_v6  ;;  %v2335_v6 = vld [vmem:[%s18647_s4 + $0x12d0] sm:$0xff] }
 0x518   :  { %8729 = vmatpush1.bf16.msra.mxu0 %v12261_v22  ;;  %v2299_v22 = vld [vmem:[%s18647_s4 + $0x11b0] sm:$0xff] }
 0x519   :  { %9057 = vmatpush1.bf16.msra.mxu1 %v12263_v27  ;;  %8739 = vmatprep.subr.bf16.mxu0 %v12270_v60  ;;  %v2296_v27 = vld [vmem:[%s18647_s4 + $0x1198] sm:$0xff]  ;;  %v12318_v36 = vcombine.high %v2295_v20, %v2299_v22 }
 0x51a   :  { %9067 = vmatprep.subr.bf16.mxu1 %v12272_v28  ;;  %v2300_v60 = vld [vmem:[%s18647_s4 + $0x11b8] sm:$0xff]  ;;  %v12309_v28 = vcombine.low %v2287_v12, %v2291_v7 }
 0x51b   :  { %8731 = vmatmul.mubr.bf16.vlgmr.msra.gmra.mrb[68].mxu0 %v15333_v47 }
 0x51c   :  { %9059 = vmatmul.mubr.bf16.vlgmr.msra.gmra.mrb[36].mxu1 %v15333_v47  ;;  %8740 = vmatpush1.bf16.msra.mxu0 %v12269_v13  ;;  %v2272_v47 = vld [vmem:[%s18647_s4 + $0x10d8] sm:$0xff]  ;;  %v12320_v13 = vcombine.high %v2296_v27, %v2300_v60 }
 0x51d   :  { %8771 = vmatprep.mubr.bf16.mxu0 %v15341_v56  ;;  %9068 = vmatpush1.bf16.msra.mxu1 %v12271_v23  ;;  %v12296_v10 = vcombine.high %v2272_v47, %v2276_v11  ;;  %v12295_v45 = vcombine.low %v2272_v47, %v2276_v11  ;;  %v2304_v23 = vld [vmem:[%s18647_s4 + $0x11d8] sm:$0xff]  ;;  %v2319_v11 = vld [vmem:[%s18647_s4 + $0x1250] sm:$0xff] }
 0x51e   :  { %9099 = vmatprep.mubr.bf16.mxu1 %v15341_v56  ;;  %8741 = vmatprep.subr.bf16.mxu0 %v12278_v53  ;;  %v12285_v56 = vcombine.low %v2263_v55, %v2267_v57  ;;  %v2308_v53 = vld [vmem:[%s18647_s4 + $0x11f8] sm:$0xff]  ;;  %v12317_v55 = vcombine.low %v2295_v20, %v2299_v22  ;;  %v12319_v57 = vcombine.low %v2296_v27, %v2300_v60  ;;  %v2343_v60 = vld [vmem:[%s18647_s4 + $0x1310] sm:$0xff] }
 0x51f   :  { %9069 = vmatprep.subr.bf16.mxu1 %v12280_v58  ;;  %v12326_v58 = vcombine.high %v2303_v41, %v2307_v8  ;;  %v12328_v25 = vcombine.high %v2304_v23, %v2308_v53  ;;  %v12327_v61 = vcombine.low %v2304_v23, %v2308_v53  ;;  %v2351_v53 = vld [vmem:[%s18647_s4 + $0x1350] sm:$0xff] }
 0x520   :  { %8742 = vmatpush1.bf16.msra.mxu0 %v12277_v4  ;;  %v2315_v4 = vld [vmem:[%s18647_s4 + $0x1230] sm:$0xff] }
 0x521   :  { %9070 = vmatpush1.bf16.msra.mxu1 %v12279_v48  ;;  %8743 = vmatprep.subr.bf16.mxu0 %v12286_v59  ;;  %v2312_v48 = vld [vmem:[%s18647_s4 + $0x1218] sm:$0xff]  ;;  %v12334_v19 = vcombine.high %v2311_v1, %v2315_v4 }
 0x522   :  { %9071 = vmatprep.subr.bf16.mxu1 %v12288_v52  ;;  %v2316_v59 = vld [vmem:[%s18647_s4 + $0x1238] sm:$0xff]  ;;  %v12325_v52 = vcombine.low %v2303_v41, %v2307_v8 }
 0x523   :  { %v12336_v47 = vcombine.high %v2312_v48, %v2316_v59  ;;  %v12335_v43 = vcombine.low %v2312_v48, %v2316_v59  ;;  %v2359_v59 = vld [vmem:[%s18647_s4 + $0x1390] sm:$0xff] }
 0x524   :  { %8744 = vmatpush1.bf16.msra.mxu0 %v12285_v56  ;;  %v2323_v56 = vld [vmem:[%s18647_s4 + $0x1270] sm:$0xff] }
 0x525   :  { %9072 = vmatpush1.bf16.msra.mxu1 %v12287_v2  ;;  %8745 = vmatprep.subr.bf16.mxu0 %v12294_v9  ;;  %v2320_v2 = vld [vmem:[%s18647_s4 + $0x1258] sm:$0xff]  ;;  %v12342_v29 = vcombine.high %v2319_v11, %v2323_v56 }
 0x526   :  { %9073 = vmatprep.subr.bf16.mxu1 %v12296_v10  ;;  %v2324_v9 = vld [vmem:[%s18647_s4 + $0x1278] sm:$0xff]  ;;  %v12333_v10 = vcombine.low %v2311_v1, %v2315_v4 }
 0x527   :  { %v12344_v31 = vcombine.high %v2320_v2, %v2324_v9  ;;  %v12343_v12 = vcombine.low %v2320_v2, %v2324_v9  ;;  %v2367_v9 = vld [vmem:[%s18647_s4 + $0x13d0] sm:$0xff] }
 0x528   :  { %8746 = vmatpush1.bf16.msra.mxu0 %v12293_v33  ;;  %v2331_v33 = vld [vmem:[%s18647_s4 + $0x12b0] sm:$0xff] }
 0x529   :  { %9074 = vmatpush1.bf16.msra.mxu1 %v12295_v45  ;;  %8747 = vmatprep.subr.bf16.mxu0 %v12302_v5  ;;  %v2328_v45 = vld [vmem:[%s18647_s4 + $0x1298] sm:$0xff]  ;;  %v12350_v7 = vcombine.high %v2327_v40, %v2331_v33 }
 0x52a   :  { %9075 = vmatprep.subr.bf16.mxu1 %v12304_v18  ;;  %v2332_v5 = vld [vmem:[%s18647_s4 + $0x12b8] sm:$0xff]  ;;  %v12341_v18 = vcombine.low %v2319_v11, %v2323_v56 }
 0x52b   :  { %v12352_v14 = vcombine.high %v2328_v45, %v2332_v5  ;;  %v12351_v20 = vcombine.low %v2328_v45, %v2332_v5  ;;  %v2375_v5 = vld [vmem:[%s18647_s4 + $0x1410] sm:$0xff] }
 0x52c   :  { %8748 = vmatpush1.bf16.msra.mxu0 %v12301_v16  ;;  %v2339_v16 = vld [vmem:[%s18647_s4 + $0x12f0] sm:$0xff] }
 0x52d   :  { %9076 = vmatpush1.bf16.msra.mxu1 %v12303_v50  ;;  %8749 = vmatprep.subr.bf16.mxu0 %v12310_v3  ;;  %v2336_v50 = vld [vmem:[%s18647_s4 + $0x12d8] sm:$0xff]  ;;  %v12358_v22 = vcombine.high %v2335_v6, %v2339_v16 }
 0x52e   :  { %9077 = vmatprep.subr.bf16.mxu1 %v12312_v21  ;;  %v2340_v3 = vld [vmem:[%s18647_s4 + $0x12f8] sm:$0xff]  ;;  %v12349_v21 = vcombine.low %v2327_v40, %v2331_v33 }
 0x52f   :  { %v12360_v27 = vcombine.high %v2336_v50, %v2340_v3  ;;  %v12359_v41 = vcombine.low %v2336_v50, %v2340_v3  ;;  %v2383_v3 = vld [vmem:[%s18647_s4 + $0x1450] sm:$0xff] }
 0x530   :  { %8750 = vmatpush1.bf16.msra.mxu0 %v12309_v28  ;;  %v2347_v28 = vld [vmem:[%s18647_s4 + $0x1330] sm:$0xff] }
 0x531   :  { %9078 = vmatpush1.bf16.msra.mxu1 %v12311_v0  ;;  %8751 = vmatprep.subr.bf16.mxu0 %v12318_v36  ;;  %v2344_v0 = vld [vmem:[%s18647_s4 + $0x1318] sm:$0xff]  ;;  %v12366_v8 = vcombine.high %v2343_v60, %v2347_v28 }
 0x532   :  { %9079 = vmatprep.subr.bf16.mxu1 %v12320_v13  ;;  %v2348_v36 = vld [vmem:[%s18647_s4 + $0x1338] sm:$0xff]  ;;  %v12357_v13 = vcombine.low %v2335_v6, %v2339_v16 }
 0x533   :  { %v12368_v23 = vcombine.high %v2344_v0, %v2348_v36  ;;  %v12367_v1 = vcombine.low %v2344_v0, %v2348_v36  ;;  %v2391_v0 = vld [vmem:[%s18647_s4 + $0x1490] sm:$0xff] }
 0x534   :  { %8752 = vmatpush1.bf16.msra.mxu0 %v12317_v55  ;;  %v2355_v55 = vld [vmem:[%s18647_s4 + $0x1370] sm:$0xff] }
 0x535   :  { %9080 = vmatpush1.bf16.msra.mxu1 %v12319_v57  ;;  %8753 = vmatprep.subr.bf16.mxu0 %v12326_v58  ;;  %v2352_v57 = vld [vmem:[%s18647_s4 + $0x1358] sm:$0xff]  ;;  %v12374_v4 = vcombine.high %v2351_v53, %v2355_v55  ;;  %v2395_v36 = vld [vmem:[%s18647_s4 + $0x14b0] sm:$0xff] }
 0x536   :  { %9081 = vmatprep.subr.bf16.mxu1 %v12328_v25  ;;  %v2356_v58 = vld [vmem:[%s18647_s4 + $0x1378] sm:$0xff]  ;;  %v12365_v25 = vcombine.low %v2343_v60, %v2347_v28 }
 0x537   :  { %v12376_v48 = vcombine.high %v2352_v57, %v2356_v58  ;;  %v12375_v11 = vcombine.low %v2352_v57, %v2356_v58  ;;  %v2399_v58 = vld [vmem:[%s18647_s4 + $0x14d0] sm:$0xff] }
 0x538   :  { %8754 = vmatpush1.bf16.msra.mxu0 %v12325_v52  ;;  %v2363_v52 = vld [vmem:[%s18647_s4 + $0x13b0] sm:$0xff] }
 0x539   :  { %9082 = vmatpush1.bf16.msra.mxu1 %v12327_v61  ;;  %8755 = vmatprep.subr.bf16.mxu0 %v12334_v19  ;;  %v2360_v61 = vld [vmem:[%s18647_s4 + $0x1398] sm:$0xff]  ;;  %v12382_v56 = vcombine.high %v2359_v59, %v2363_v52 }
 0x53a   :  { %9083 = vmatprep.subr.bf16.mxu1 %v12336_v47  ;;  %v2364_v19 = vld [vmem:[%s18647_s4 + $0x13b8] sm:$0xff]  ;;  %v12373_v47 = vcombine.low %v2351_v53, %v2355_v55  ;;  %v12414_v55 = vcombine.high %v2391_v0, %v2395_v36 }
 0x53b   :  { %v12384_v2 = vcombine.high %v2360_v61, %v2364_v19  ;;  %v12383_v40 = vcombine.low %v2360_v61, %v2364_v19  ;;  %v2411_v61 = vld [vmem:[%s18647_s4 + $0x1530] sm:$0xff]  ;;  %v2408_v19 = vld [vmem:[%s18647_s4 + $0x1518] sm:$0xff] }
 0x53c   :  { %8756 = vmatpush1.bf16.msra.mxu0 %v12333_v10  ;;  %v2371_v10 = vld [vmem:[%s18647_s4 + $0x13f0] sm:$0xff] }
 0x53d   :  { %9084 = vmatpush1.bf16.msra.mxu1 %v12335_v43  ;;  %8757 = vmatprep.subr.bf16.mxu0 %v12342_v29  ;;  %v2368_v43 = vld [vmem:[%s18647_s4 + $0x13d8] sm:$0xff]  ;;  %v12390_v33 = vcombine.high %v2367_v9, %v2371_v10 }
 0x53e   :  { %9085 = vmatprep.subr.bf16.mxu1 %v12344_v31  ;;  %v2372_v29 = vld [vmem:[%s18647_s4 + $0x13f8] sm:$0xff]  ;;  %v12381_v31 = vcombine.low %v2359_v59, %v2363_v52  ;;  %v2407_v52 = vld [vmem:[%s18647_s4 + $0x1510] sm:$0xff] }
 0x53f   :  { %v12392_v45 = vcombine.high %v2368_v43, %v2372_v29  ;;  %v12391_v6 = vcombine.low %v2368_v43, %v2372_v29  ;;  %v2419_v43 = vld [vmem:[%s18647_s4 + $0x1570] sm:$0xff]  ;;  %v2416_v29 = vld [vmem:[%s18647_s4 + $0x1558] sm:$0xff] }
 0x540   :  { %8758 = vmatpush1.bf16.msra.mxu0 %v12341_v18  ;;  %v2379_v18 = vld [vmem:[%s18647_s4 + $0x1430] sm:$0xff] }
 0x541   :  { %9086 = vmatpush1.bf16.msra.mxu1 %v12343_v12  ;;  %8759 = vmatprep.subr.bf16.mxu0 %v12350_v7  ;;  %v2376_v12 = vld [vmem:[%s18647_s4 + $0x1418] sm:$0xff]  ;;  %v12398_v16 = vcombine.high %v2375_v5, %v2379_v18 }
 0x542   :  { %9087 = vmatprep.subr.bf16.mxu1 %v12352_v14  ;;  %v2380_v7 = vld [vmem:[%s18647_s4 + $0x1438] sm:$0xff]  ;;  %v12389_v14 = vcombine.low %v2367_v9, %v2371_v10  ;;  %v2415_v10 = vld [vmem:[%s18647_s4 + $0x1550] sm:$0xff] }
 0x543   :  { %v12400_v50 = vcombine.high %v2376_v12, %v2380_v7  ;;  %v12399_v60 = vcombine.low %v2376_v12, %v2380_v7  ;;  %v2427_v12 = vld [vmem:[%s18647_s4 + $0x15b0] sm:$0xff]  ;;  %v2424_v7 = vld [vmem:[%s18647_s4 + $0x1598] sm:$0xff] }
 0x544   :  { %8760 = vmatpush1.bf16.msra.mxu0 %v12349_v21  ;;  %v2387_v21 = vld [vmem:[%s18647_s4 + $0x1470] sm:$0xff] }
 0x545   :  { %9088 = vmatpush1.bf16.msra.mxu1 %v12351_v20  ;;  %8761 = vmatprep.subr.bf16.mxu0 %v12358_v22  ;;  %v12397_v20 = vcombine.low %v2375_v5, %v2379_v18  ;;  %v2384_v22 = vld [vmem:[%s18647_s4 + $0x1458] sm:$0xff]  ;;  %v12406_v28 = vcombine.high %v2383_v3, %v2387_v21  ;;  %v2423_v18 = vld [vmem:[%s18647_s4 + $0x1590] sm:$0xff] }
 0x546   :  { %9089 = vmatprep.subr.bf16.mxu1 %v12360_v27  ;;  %v2388_v27 = vld [vmem:[%s18647_s4 + $0x1478] sm:$0xff] }
 0x547   :  { %v12407_v53 = vcombine.low %v2384_v22, %v2388_v27 }
 0x548   :  { %8762 = vmatpush1.bf16.msra.mxu0 %v12357_v13  ;;  %v12408_v13 = vcombine.high %v2384_v22, %v2388_v27  ;;  %v2432_v22 = vld [vmem:[%s18647_s4 + $0x15d8] sm:$0xff] }
 0x549   :  { %9090 = vmatpush1.bf16.msra.mxu1 %v12359_v41  ;;  %8763 = vmatprep.subr.bf16.mxu0 %v12366_v8  ;;  %v2392_v41 = vld [vmem:[%s18647_s4 + $0x1498] sm:$0xff] }
 0x54a   :  { %9091 = vmatprep.subr.bf16.mxu1 %v12368_v23  ;;  %v2396_v8 = vld [vmem:[%s18647_s4 + $0x14b8] sm:$0xff]  ;;  %v12405_v23 = vcombine.low %v2383_v3, %v2387_v21  ;;  %v2431_v21 = vld [vmem:[%s18647_s4 + $0x15d0] sm:$0xff] }
 0x54b   :  { %v12416_v57 = vcombine.high %v2392_v41, %v2396_v8  ;;  %v2436_v27 = vld [vmem:[%s18647_s4 + $0x15f8] sm:$0xff] }
 0x54c   :  { %8764 = vmatpush1.bf16.msra.mxu0 %v12365_v25  ;;  %v2403_v25 = vld [vmem:[%s18647_s4 + $0x14f0] sm:$0xff] }
 0x54d   :  { %9092 = vmatpush1.bf16.msra.mxu1 %v12367_v1  ;;  %8765 = vmatprep.subr.bf16.mxu0 %v12374_v4  ;;  %v2404_v1 = vld [vmem:[%s18647_s4 + $0x14f8] sm:$0xff]  ;;  %v12415_v4 = vcombine.low %v2392_v41, %v2396_v8  ;;  %v2443_v41 = vld [vmem:[%s18647_s4 + $0x1630] sm:$0xff] }
 0x54e   :  { %9093 = vmatprep.subr.bf16.mxu1 %v12376_v48  ;;  %v12422_v48 = vcombine.high %v2399_v58, %v2403_v25  ;;  %v2440_v8 = vld [vmem:[%s18647_s4 + $0x1618] sm:$0xff] }
 0x550   :  { %8766 = vmatpush1.bf16.msra.mxu0 %v12373_v47  ;;  %v2412_v47 = vld [vmem:[%s18647_s4 + $0x1538] sm:$0xff] }
 0x551   :  { %9094 = vmatpush1.bf16.msra.mxu1 %v12375_v11  ;;  %8767 = vmatprep.subr.bf16.mxu0 %v12382_v56  ;;  %v12421_v11 = vcombine.low %v2399_v58, %v2403_v25  ;;  %v12432_v9 = vcombine.high %v2408_v19, %v2412_v47  ;;  %v2447_v25 = vld [vmem:[%s18647_s4 + $0x1650] sm:$0xff] }
 0x552   :  { %9095 = vmatprep.subr.bf16.mxu1 %v12384_v2  ;;  %v12430_v2 = vcombine.high %v2407_v52, %v2411_v61 }
 0x554   :  { %8768 = vmatpush1.bf16.msra.mxu0 %v12381_v31  ;;  %v2420_v31 = vld [vmem:[%s18647_s4 + $0x1578] sm:$0xff] }
 0x555   :  { %9096 = vmatpush1.bf16.msra.mxu1 %v12383_v40  ;;  %8769 = vmatprep.subr.bf16.mxu0 %v12390_v33  ;;  %v12429_v40 = vcombine.low %v2407_v52, %v2411_v61  ;;  %v12431_v33 = vcombine.low %v2408_v19, %v2412_v47  ;;  %v12440_v5 = vcombine.high %v2416_v29, %v2420_v31  ;;  %v2455_v61 = vld [vmem:[%s18647_s4 + $0x1690] sm:$0xff]  ;;  %v2456_v47 = vld [vmem:[%s18647_s4 + $0x1698] sm:$0xff] }
 0x556   :  { %9097 = vmatprep.subr.bf16.mxu1 %v12392_v45  ;;  %v12438_v45 = vcombine.high %v2415_v10, %v2419_v43  ;;  %v2459_v19 = vld [vmem:[%s18647_s4 + $0x16b0] sm:$0xff] }
 0x558   :  { %8770 = vmatpush1.bf16.msra.mxu0 %v12389_v14  ;;  %v2428_v14 = vld [vmem:[%s18647_s4 + $0x15b8] sm:$0xff] }
 0x559   :  { %9098 = vmatpush1.bf16.msra.mxu1 %v12391_v6  ;;  %8780 = vmatprep.subr.bf16.mxu0 %v12398_v16  ;;  %v12437_v6 = vcombine.low %v2415_v10, %v2419_v43  ;;  %v12439_v16 = vcombine.low %v2416_v29, %v2420_v31  ;;  %v12448_v3 = vcombine.high %v2424_v7, %v2428_v14  ;;  %v2463_v43 = vld [vmem:[%s18647_s4 + $0x16d0] sm:$0xff]  ;;  %v2464_v31 = vld [vmem:[%s18647_s4 + $0x16d8] sm:$0xff] }
 0x55a   :  { %9108 = vmatprep.subr.bf16.mxu1 %v12400_v50  ;;  %v12446_v50 = vcombine.high %v2423_v18, %v2427_v12  ;;  %v2467_v29 = vld [vmem:[%s18647_s4 + $0x16f0] sm:$0xff] }
 0x55b   :  { %8772 = vmatmul.mubr.bf16.vlgmr.msra.gmra.mrb[68].mxu0 %v15539_v63 }
 0x55c   :  { %9100 = vmatmul.mubr.bf16.vlgmr.msra.gmra.mrb[36].mxu1 %v15539_v63  ;;  %8781 = vmatpush1.bf16.msra.mxu0 %v12397_v20  ;;  %v2400_v63 = vld [vmem:[%s18647_s4 + $0x14d8] sm:$0xff]  ;;  %v2435_v20 = vld [vmem:[%s18647_s4 + $0x15f0] sm:$0xff] }
 0x55d   :  { %8812 = vmatprep.mubr.bf16.mxu0 %v15547_v34  ;;  %9109 = vmatpush1.bf16.msra.mxu1 %v12399_v60  ;;  %v12424_v59 = vcombine.high %v2400_v63, %v2404_v1  ;;  %v12423_v56 = vcombine.low %v2400_v63, %v2404_v1  ;;  %v12445_v60 = vcombine.low %v2423_v18, %v2427_v12  ;;  %v2451_v63 = vld [vmem:[%s18647_s4 + $0x1670] sm:$0xff]  ;;  %v2448_v1 = vld [vmem:[%s18647_s4 + $0x1658] sm:$0xff] }
 0x55e   :  { %9140 = vmatprep.mubr.bf16.mxu1 %v15547_v34  ;;  %8782 = vmatprep.subr.bf16.mxu0 %v12406_v28  ;;  %v12413_v34 = vcombine.low %v2391_v0, %v2395_v36  ;;  %v12447_v28 = vcombine.low %v2424_v7, %v2428_v14  ;;  %v12454_v0 = vcombine.high %v2431_v21, %v2435_v20  ;;  %v2471_v12 = vld [vmem:[%s18647_s4 + $0x1710] sm:$0xff]  ;;  %v2472_v14 = vld [vmem:[%s18647_s4 + $0x1718] sm:$0xff] }
 0x55f   :  { %9110 = vmatprep.subr.bf16.mxu1 %v12408_v13  ;;  %v12456_v36 = vcombine.high %v2432_v22, %v2436_v27  ;;  %v2439_v13 = vld [vmem:[%s18647_s4 + $0x1610] sm:$0xff] }
 0x560   :  { %8783 = vmatpush1.bf16.msra.mxu0 %v12405_v23  ;;  %v2444_v23 = vld [vmem:[%s18647_s4 + $0x1638] sm:$0xff]  ;;  %v2475_v7 = vld [vmem:[%s18647_s4 + $0x1730] sm:$0xff] }
 0x561   :  { %9111 = vmatpush1.bf16.msra.mxu1 %v12407_v53  ;;  %8784 = vmatprep.subr.bf16.mxu0 %v12414_v55  ;;  %v12453_v53 = vcombine.low %v2431_v21, %v2435_v20  ;;  %v12455_v55 = vcombine.low %v2432_v22, %v2436_v27  ;;  %v12464_v58 = vcombine.high %v2440_v8, %v2444_v23  ;;  %v2479_v20 = vld [vmem:[%s18647_s4 + $0x1750] sm:$0xff]  ;;  %v2480_v27 = vld [vmem:[%s18647_s4 + $0x1758] sm:$0xff] }
 0x562   :  { %9112 = vmatprep.subr.bf16.mxu1 %v12416_v57  ;;  %v12462_v57 = vcombine.high %v2439_v13, %v2443_v41  ;;  %v2483_v22 = vld [vmem:[%s18647_s4 + $0x1770] sm:$0xff] }
 0x564   :  { %8785 = vmatpush1.bf16.msra.mxu0 %v12413_v34  ;;  %v2452_v34 = vld [vmem:[%s18647_s4 + $0x1678] sm:$0xff] }
 0x565   :  { %9113 = vmatpush1.bf16.msra.mxu1 %v12415_v4  ;;  %8786 = vmatprep.subr.bf16.mxu0 %v12422_v48  ;;  %v12461_v4 = vcombine.low %v2439_v13, %v2443_v41  ;;  %v12463_v48 = vcombine.low %v2440_v8, %v2444_v23  ;;  %v12472_v52 = vcombine.high %v2448_v1, %v2452_v34  ;;  %v2487_v41 = vld [vmem:[%s18647_s4 + $0x1790] sm:$0xff]  ;;  %v2488_v23 = vld [vmem:[%s18647_s4 + $0x1798] sm:$0xff] }
 0x566   :  { %9114 = vmatprep.subr.bf16.mxu1 %v12424_v59  ;;  %v12470_v59 = vcombine.high %v2447_v25, %v2451_v63  ;;  %v2491_v8 = vld [vmem:[%s18647_s4 + $0x17b0] sm:$0xff] }
 0x568   :  { %8787 = vmatpush1.bf16.msra.mxu0 %v12421_v11  ;;  %v2460_v11 = vld [vmem:[%s18647_s4 + $0x16b8] sm:$0xff] }
 0x569   :  { %9115 = vmatpush1.bf16.msra.mxu1 %v12423_v56  ;;  %8788 = vmatprep.subr.bf16.mxu0 %v12430_v2  ;;  %v12469_v56 = vcombine.low %v2447_v25, %v2451_v63  ;;  %v12471_v2 = vcombine.low %v2448_v1, %v2452_v34  ;;  %v12480_v10 = vcombine.high %v2456_v47, %v2460_v11  ;;  %v2495_v63 = vld [vmem:[%s18647_s4 + $0x17d0] sm:$0xff]  ;;  %v2496_v34 = vld [vmem:[%s18647_s4 + $0x17d8] sm:$0xff] }
 0x56a   :  { %9116 = vmatprep.subr.bf16.mxu1 %v12432_v9  ;;  %v12478_v9 = vcombine.high %v2455_v61, %v2459_v19  ;;  %v2499_v1 = vld [vmem:[%s18647_s4 + $0x17f0] sm:$0xff] }
 0x56c   :  { %8789 = vmatpush1.bf16.msra.mxu0 %v12429_v40  ;;  %v2468_v40 = vld [vmem:[%s18647_s4 + $0x16f8] sm:$0xff] }
 0x56d   :  { %9117 = vmatpush1.bf16.msra.mxu1 %v12431_v33  ;;  %8790 = vmatprep.subr.bf16.mxu0 %v12438_v45  ;;  %v12477_v33 = vcombine.low %v2455_v61, %v2459_v19  ;;  %v12479_v45 = vcombine.low %v2456_v47, %v2460_v11  ;;  %v12488_v18 = vcombine.high %v2464_v31, %v2468_v40  ;;  %v2503_v19 = vld [vmem:[%s18647_s4 + $0x1810] sm:$0xff]  ;;  %v2504_v11 = vld [vmem:[%s18647_s4 + $0x1818] sm:$0xff] }
 0x56e   :  { %9118 = vmatprep.subr.bf16.mxu1 %v12440_v5  ;;  %v12486_v5 = vcombine.high %v2463_v43, %v2467_v29  ;;  %v2507_v47 = vld [vmem:[%s18647_s4 + $0x1830] sm:$0xff] }
 0x570   :  { %8791 = vmatpush1.bf16.msra.mxu0 %v12437_v6  ;;  %v2476_v6 = vld [vmem:[%s18647_s4 + $0x1738] sm:$0xff] }
 0x571   :  { %9119 = vmatpush1.bf16.msra.mxu1 %v12439_v16  ;;  %8792 = vmatprep.subr.bf16.mxu0 %v12446_v50  ;;  %v12485_v16 = vcombine.low %v2463_v43, %v2467_v29  ;;  %v12487_v50 = vcombine.low %v2464_v31, %v2468_v40  ;;  %v12496_v21 = vcombine.high %v2472_v14, %v2476_v6  ;;  %v2511_v29 = vld [vmem:[%s18647_s4 + $0x1850] sm:$0xff] }
 0x572   :  { %9120 = vmatprep.subr.bf16.mxu1 %v12448_v3  ;;  %v12494_v3 = vcombine.high %v2471_v12, %v2475_v7  ;;  %v2515_v31 = vld [vmem:[%s18647_s4 + $0x1870] sm:$0xff]  ;;  %v12525_v40 = vcombine.low %v2503_v19, %v2507_v47 }
 0x574   :  { %8793 = vmatpush1.bf16.msra.mxu0 %v12445_v60  ;;  %v2484_v60 = vld [vmem:[%s18647_s4 + $0x1778] sm:$0xff] }
 0x575   :  { %9121 = vmatpush1.bf16.msra.mxu1 %v12447_v28  ;;  %8794 = vmatprep.subr.bf16.mxu0 %v12454_v0  ;;  %v12493_v28 = vcombine.low %v2471_v12, %v2475_v7  ;;  %v12495_v0 = vcombine.low %v2472_v14, %v2476_v6  ;;  %v12504_v13 = vcombine.high %v2480_v27, %v2484_v60  ;;  %v2519_v12 = vld [vmem:[%s18647_s4 + $0x1890] sm:$0xff]  ;;  %v2520_v6 = vld [vmem:[%s18647_s4 + $0x1898] sm:$0xff] }
 0x576   :  { %9122 = vmatprep.subr.bf16.mxu1 %v12456_v36  ;;  %v12502_v36 = vcombine.high %v2479_v20, %v2483_v22  ;;  %v2523_v7 = vld [vmem:[%s18647_s4 + $0x18b0] sm:$0xff] }
 0x578   :  { %8795 = vmatpush1.bf16.msra.mxu0 %v12453_v53  ;;  %v2492_v53 = vld [vmem:[%s18647_s4 + $0x17b8] sm:$0xff] }
 0x579   :  { %9123 = vmatpush1.bf16.msra.mxu1 %v12455_v55  ;;  %8796 = vmatprep.subr.bf16.mxu0 %v12462_v57  ;;  %v12501_v55 = vcombine.low %v2479_v20, %v2483_v22  ;;  %v12503_v57 = vcombine.low %v2480_v27, %v2484_v60  ;;  %v12512_v25 = vcombine.high %v2488_v23, %v2492_v53  ;;  %v2527_v22 = vld [vmem:[%s18647_s4 + $0x18d0] sm:$0xff]  ;;  %v2532_v60 = vld [vmem:[%s18647_s4 + $0x18f8] sm:$0xff] }
 0x57a   :  { %9124 = vmatprep.subr.bf16.mxu1 %v12464_v58  ;;  %v12510_v58 = vcombine.high %v2487_v41, %v2491_v8  ;;  %v2531_v27 = vld [vmem:[%s18647_s4 + $0x18f0] sm:$0xff] }
 0x57c   :  { %8797 = vmatpush1.bf16.msra.mxu0 %v12461_v4  ;;  %v2500_v4 = vld [vmem:[%s18647_s4 + $0x17f8] sm:$0xff] }
 0x57d   :  { %9125 = vmatpush1.bf16.msra.mxu1 %v12463_v48  ;;  %8798 = vmatprep.subr.bf16.mxu0 %v12470_v59  ;;  %v12509_v48 = vcombine.low %v2487_v41, %v2491_v8  ;;  %v12511_v59 = vcombine.low %v2488_v23, %v2492_v53  ;;  %v12520_v61 = vcombine.high %v2496_v34, %v2500_v4  ;;  %v2539_v41 = vld [vmem:[%s18647_s4 + $0x1930] sm:$0xff]  ;;  %v2536_v8 = vld [vmem:[%s18647_s4 + $0x1918] sm:$0xff] }
 0x57e   :  { %9126 = vmatprep.subr.bf16.mxu1 %v12472_v52  ;;  %v12518_v52 = vcombine.high %v2495_v63, %v2499_v1  ;;  %v2540_v23 = vld [vmem:[%s18647_s4 + $0x1938] sm:$0xff]  ;;  %v12549_v53 = vcombine.low %v2527_v22, %v2531_v27 }
 0x580   :  { %8799 = vmatpush1.bf16.msra.mxu0 %v12469_v56  ;;  %v2508_v56 = vld [vmem:[%s18647_s4 + $0x1838] sm:$0xff] }
 0x581   :  { %9127 = vmatpush1.bf16.msra.mxu1 %v12471_v2  ;;  %8800 = vmatprep.subr.bf16.mxu0 %v12478_v9  ;;  %v12517_v2 = vcombine.low %v2495_v63, %v2499_v1  ;;  %v12519_v9 = vcombine.low %v2496_v34, %v2500_v4  ;;  %v12528_v43 = vcombine.high %v2504_v11, %v2508_v56  ;;  %v2547_v63 = vld [vmem:[%s18647_s4 + $0x1970] sm:$0xff]  ;;  %v2544_v1 = vld [vmem:[%s18647_s4 + $0x1958] sm:$0xff] }
 0x582   :  { %9128 = vmatprep.subr.bf16.mxu1 %v12480_v10  ;;  %v12526_v10 = vcombine.high %v2503_v19, %v2507_v47  ;;  %v2548_v34 = vld [vmem:[%s18647_s4 + $0x1978] sm:$0xff]  ;;  %v2555_v19 = vld [vmem:[%s18647_s4 + $0x19b0] sm:$0xff] }
 0x583   :  { %v2552_v47 = vld [vmem:[%s18647_s4 + $0x1998] sm:$0xff] }
 0x584   :  { %8801 = vmatpush1.bf16.msra.mxu0 %v12477_v33  ;;  %v2512_v33 = vld [vmem:[%s18647_s4 + $0x1858] sm:$0xff] }
 0x585   :  { %9129 = vmatpush1.bf16.msra.mxu1 %v12479_v45  ;;  %8802 = vmatprep.subr.bf16.mxu0 %v12486_v5  ;;  %v2516_v45 = vld [vmem:[%s18647_s4 + $0x1878] sm:$0xff]  ;;  %v12527_v5 = vcombine.low %v2504_v11, %v2508_v56 }
 0x586   :  { %9130 = vmatprep.subr.bf16.mxu1 %v12488_v18  ;;  %v12534_v18 = vcombine.high %v2511_v29, %v2515_v31  ;;  %v12536_v14 = vcombine.high %v2512_v33, %v2516_v45  ;;  %v2556_v11 = vld [vmem:[%s18647_s4 + $0x19b8] sm:$0xff] }
 0x588   :  { %8803 = vmatpush1.bf16.msra.mxu0 %v12485_v16  ;;  %v2524_v16 = vld [vmem:[%s18647_s4 + $0x18b8] sm:$0xff] }
 0x589   :  { %9131 = vmatpush1.bf16.msra.mxu1 %v12487_v50  ;;  %8804 = vmatprep.subr.bf16.mxu0 %v12494_v3  ;;  %v12533_v50 = vcombine.low %v2511_v29, %v2515_v31  ;;  %v12535_v3 = vcombine.low %v2512_v33, %v2516_v45  ;;  %v12544_v20 = vcombine.high %v2520_v6, %v2524_v16  ;;  %v2563_v29 = vld [vmem:[%s18647_s4 + $0x19f0] sm:$0xff]  ;;  %v2560_v31 = vld [vmem:[%s18647_s4 + $0x19d8] sm:$0xff] }
 0x58a   :  { %9132 = vmatprep.subr.bf16.mxu1 %v12496_v21  ;;  %v12542_v21 = vcombine.high %v2519_v12, %v2523_v7  ;;  %v12575_v45 = vcombine.low %v2552_v47, %v2556_v11 }
 0x58c   :  { %8805 = vmatpush1.bf16.msra.mxu0 %v12493_v28  ;;  %v12543_v28 = vcombine.low %v2520_v6, %v2524_v16  ;;  %v2572_v6 = vld [vmem:[%s18647_s4 + $0x1a38] sm:$0xff] }
 0x58d   :  { %9133 = vmatpush1.bf16.msra.mxu1 %v12495_v0  ;;  %8806 = vmatprep.subr.bf16.mxu0 %v12502_v36  ;;  %v12550_v0 = vcombine.high %v2527_v22, %v2531_v27  ;;  %v2579_v22 = vld [vmem:[%s18647_s4 + $0x1a70] sm:$0xff]  ;;  %v2576_v27 = vld [vmem:[%s18647_s4 + $0x1a58] sm:$0xff] }
 0x58e   :  { %9134 = vmatprep.subr.bf16.mxu1 %v12504_v13  ;;  %v2535_v13 = vld [vmem:[%s18647_s4 + $0x1910] sm:$0xff] }
 0x58f   :  { %v12557_v4 = vcombine.low %v2535_v13, %v2539_v41 }
 0x590   :  { %8807 = vmatpush1.bf16.msra.mxu0 %v12501_v55 }
 0x591   :  { %9135 = vmatpush1.bf16.msra.mxu1 %v12503_v57  ;;  %8808 = vmatprep.subr.bf16.mxu0 %v12510_v58  ;;  %v12558_v57 = vcombine.high %v2535_v13, %v2539_v41  ;;  %v12560_v58 = vcombine.high %v2536_v8, %v2540_v23  ;;  %v2587_v13 = vld [vmem:[%s18647_s4 + $0x1ab0] sm:$0xff]  ;;  %v2584_v41 = vld [vmem:[%s18647_s4 + $0x1a98] sm:$0xff] }
 0x592   :  { %9136 = vmatprep.subr.bf16.mxu1 %v12512_v25  ;;  %v2543_v25 = vld [vmem:[%s18647_s4 + $0x1950] sm:$0xff] }
 0x593   :  { %v12565_v56 = vcombine.low %v2543_v25, %v2547_v63 }
 0x594   :  { %8809 = vmatpush1.bf16.msra.mxu0 %v12509_v48  ;;  %v12559_v48 = vcombine.low %v2536_v8, %v2540_v23  ;;  %v2588_v8 = vld [vmem:[%s18647_s4 + $0x1ab8] sm:$0xff] }
 0x595   :  { %9137 = vmatpush1.bf16.msra.mxu1 %v12511_v59  ;;  %8810 = vmatprep.subr.bf16.mxu0 %v12518_v52  ;;  %v12566_v59 = vcombine.high %v2543_v25, %v2547_v63  ;;  %v12568_v52 = vcombine.high %v2544_v1, %v2548_v34  ;;  %v2595_v25 = vld [vmem:[%s18647_s4 + $0x1af0] sm:$0xff]  ;;  %v2592_v63 = vld [vmem:[%s18647_s4 + $0x1ad8] sm:$0xff] }
 0x596   :  { %9138 = vmatprep.subr.bf16.mxu1 %v12520_v61  ;;  %v2551_v61 = vld [vmem:[%s18647_s4 + $0x1990] sm:$0xff] }
 0x597   :  { %v12573_v33 = vcombine.low %v2551_v61, %v2555_v19 }
 0x598   :  { %8811 = vmatpush1.bf16.msra.mxu0 %v12517_v2  ;;  %v12567_v2 = vcombine.low %v2544_v1, %v2548_v34  ;;  %v2596_v1 = vld [vmem:[%s18647_s4 + $0x1af8] sm:$0xff] }
 0x599   :  { %9139 = vmatpush1.bf16.msra.mxu1 %v12519_v9  ;;  %8821 = vmatprep.subr.bf16.mxu0 %v12526_v10  ;;  %v12574_v9 = vcombine.high %v2551_v61, %v2555_v19  ;;  %v12576_v10 = vcombine.high %v2552_v47, %v2556_v11  ;;  %v2603_v61 = vld [vmem:[%s18647_s4 + $0x1b30] sm:$0xff]  ;;  %v2600_v19 = vld [vmem:[%s18647_s4 + $0x1b18] sm:$0xff] }
 0x59a   :  { %9149 = vmatprep.subr.bf16.mxu1 %v12528_v43  ;;  %v2559_v43 = vld [vmem:[%s18647_s4 + $0x19d0] sm:$0xff]  ;;  %v2604_v47 = vld [vmem:[%s18647_s4 + $0x1b38] sm:$0xff] }
 0x59b   :  { %8813 = vmatmul.mubr.bf16.vlgmr.msra.gmra.mrb[68].mxu0 %v15741_v15  ;;  %v12581_v16 = vcombine.low %v2559_v43, %v2563_v29 }
 0x59c   :  { %9141 = vmatmul.mubr.bf16.vlgmr.msra.gmra.mrb[36].mxu1 %v15741_v15  ;;  %8822 = vmatpush1.bf16.msra.mxu0 %v12525_v40  ;;  %v2528_v15 = vld [vmem:[%s18647_s4 + $0x18d8] sm:$0xff] }
 0x59d   :  { %8853 = vmatprep.mubr.bf16.mxu0 %v15749_v17  ;;  %9150 = vmatpush1.bf16.msra.mxu1 %v12527_v5  ;;  %v12552_v36 = vcombine.high %v2528_v15, %v2532_v60  ;;  %v12551_v55 = vcombine.low %v2528_v15, %v2532_v60  ;;  %v2564_v40 = vld [vmem:[%s18647_s4 + $0x19f8] sm:$0xff]  ;;  %v12582_v5 = vcombine.high %v2559_v43, %v2563_v29  ;;  %v2611_v43 = vld [vmem:[%s18647_s4 + $0x1b70] sm:$0xff] }
 0x59e   :  { %9181 = vmatprep.mubr.bf16.mxu1 %v15749_v17  ;;  %8823 = vmatprep.subr.bf16.mxu0 %v12534_v18  ;;  %v12541_v17 = vcombine.low %v2519_v12, %v2523_v7  ;;  %v12584_v18 = vcombine.high %v2560_v31, %v2564_v40  ;;  %v2567_v12 = vld [vmem:[%s18647_s4 + $0x1a10] sm:$0xff]  ;;  %v2580_v15 = vld [vmem:[%s18647_s4 + $0x1a78] sm:$0xff] }
 0x59f   :  { %9151 = vmatprep.subr.bf16.mxu1 %v12536_v14  ;;  %v2571_v7 = vld [vmem:[%s18647_s4 + $0x1a30] sm:$0xff]  ;;  %v2568_v14 = vld [vmem:[%s18647_s4 + $0x1a18] sm:$0xff] }
 0x5a0   :  { %8824 = vmatpush1.bf16.msra.mxu0 %v12533_v50  ;;  %v12583_v50 = vcombine.low %v2560_v31, %v2564_v40  ;;  %v12589_v60 = vcombine.low %v2567_v12, %v2571_v7  ;;  %v2608_v29 = vld [vmem:[%s18647_s4 + $0x1b58] sm:$0xff] }
 0x5a1   :  { %9152 = vmatpush1.bf16.msra.mxu1 %v12535_v3  ;;  %8825 = vmatprep.subr.bf16.mxu0 %v12542_v21  ;;  %v12590_v3 = vcombine.high %v2567_v12, %v2571_v7  ;;  %v12592_v21 = vcombine.high %v2568_v14, %v2572_v6  ;;  %v2612_v31 = vld [vmem:[%s18647_s4 + $0x1b78] sm:$0xff]  ;;  %v2619_v12 = vld [vmem:[%s18647_s4 + $0x1bb0] sm:$0xff] }
 0x5a2   :  { %9153 = vmatprep.subr.bf16.mxu1 %v12544_v20  ;;  %v2575_v20 = vld [vmem:[%s18647_s4 + $0x1a50] sm:$0xff]  ;;  %v2616_v7 = vld [vmem:[%s18647_s4 + $0x1b98] sm:$0xff] }
 0x5a3   :  { %v12597_v23 = vcombine.low %v2575_v20, %v2579_v22 }
 0x5a4   :  { %8826 = vmatpush1.bf16.msra.mxu0 %v12541_v17  ;;  %v12591_v17 = vcombine.low %v2568_v14, %v2572_v6  ;;  %v2620_v14 = vld [vmem:[%s18647_s4 + $0x1bb8] sm:$0xff] }
 0x5a5   :  { %9154 = vmatpush1.bf16.msra.mxu1 %v12543_v28  ;;  %8827 = vmatprep.subr.bf16.mxu0 %v12550_v0  ;;  %v12598_v28 = vcombine.high %v2575_v20, %v2579_v22  ;;  %v12600_v0 = vcombine.high %v2576_v27, %v2580_v15  ;;  %v2627_v20 = vld [vmem:[%s18647_s4 + $0x1bf0] sm:$0xff]  ;;  %v2624_v22 = vld [vmem:[%s18647_s4 + $0x1bd8] sm:$0xff] }
 0x5a6   :  { %9155 = vmatprep.subr.bf16.mxu1 %v12552_v36  ;;  %v2583_v36 = vld [vmem:[%s18647_s4 + $0x1a90] sm:$0xff] }
 0x5a7   :  { %v12605_v34 = vcombine.low %v2583_v36, %v2587_v13 }
 0x5a8   :  { %8828 = vmatpush1.bf16.msra.mxu0 %v12549_v53  ;;  %v12599_v53 = vcombine.low %v2576_v27, %v2580_v15  ;;  %v2628_v27 = vld [vmem:[%s18647_s4 + $0x1bf8] sm:$0xff] }
 0x5a9   :  { %9156 = vmatpush1.bf16.msra.mxu1 %v12551_v55  ;;  %8829 = vmatprep.subr.bf16.mxu0 %v12558_v57  ;;  %v12606_v55 = vcombine.high %v2583_v36, %v2587_v13  ;;  %v12608_v57 = vcombine.high %v2584_v41, %v2588_v8  ;;  %v2635_v36 = vld [vmem:[%s18647_s4 + $0x1c30] sm:$0xff]  ;;  %v2632_v13 = vld [vmem:[%s18647_s4 + $0x1c18] sm:$0xff] }
 0x5aa   :  { %9157 = vmatprep.subr.bf16.mxu1 %v12560_v58  ;;  %v2591_v58 = vld [vmem:[%s18647_s4 + $0x1ad0] sm:$0xff] }
 0x5ab   :  { %v12613_v11 = vcombine.low %v2591_v58, %v2595_v25 }
 0x5ac   :  { %8830 = vmatpush1.bf16.msra.mxu0 %v12557_v4  ;;  %v12607_v4 = vcombine.low %v2584_v41, %v2588_v8  ;;  %v2636_v41 = vld [vmem:[%s18647_s4 + $0x1c38] sm:$0xff] }
 0x5ad   :  { %9158 = vmatpush1.bf16.msra.mxu1 %v12559_v48  ;;  %8831 = vmatprep.subr.bf16.mxu0 %v12566_v59  ;;  %v12614_v48 = vcombine.high %v2591_v58, %v2595_v25  ;;  %v12616_v59 = vcombine.high %v2592_v63, %v2596_v1  ;;  %v2643_v58 = vld [vmem:[%s18647_s4 + $0x1c70] sm:$0xff] }
 0x5ae   :  { %9159 = vmatprep.subr.bf16.mxu1 %v12568_v52  ;;  %v2599_v52 = vld [vmem:[%s18647_s4 + $0x1b10] sm:$0xff] }
 0x5af   :  { %v12621_v40 = vcombine.low %v2599_v52, %v2603_v61 }
 0x5b0   :  { %8832 = vmatpush1.bf16.msra.mxu0 %v12565_v56  ;;  %v12615_v56 = vcombine.low %v2592_v63, %v2596_v1  ;;  %v2640_v63 = vld [vmem:[%s18647_s4 + $0x1c58] sm:$0xff] }
 0x5b1   :  { %9160 = vmatpush1.bf16.msra.mxu1 %v12567_v2  ;;  %8833 = vmatprep.subr.bf16.mxu0 %v12574_v9  ;;  %v12622_v2 = vcombine.high %v2599_v52, %v2603_v61  ;;  %v12624_v9 = vcombine.high %v2600_v19, %v2604_v47  ;;  %v2644_v1 = vld [vmem:[%s18647_s4 + $0x1c78] sm:$0xff] }
 0x5b2   :  { %9161 = vmatprep.subr.bf16.mxu1 %v12576_v10  ;;  %v2607_v10 = vld [vmem:[%s18647_s4 + $0x1b50] sm:$0xff]  ;;  %v12664_v52 = vcombine.high %v2640_v63, %v2644_v1  ;;  %v2648_v61 = vld [vmem:[%s18647_s4 + $0x1c98] sm:$0xff] }
 0x5b3   :  { %v12629_v6 = vcombine.low %v2607_v10, %v2611_v43 }
 0x5b4   :  { %8834 = vmatpush1.bf16.msra.mxu0 %v12573_v33  ;;  %v12623_v33 = vcombine.low %v2600_v19, %v2604_v47  ;;  %v2652_v19 = vld [vmem:[%s18647_s4 + $0x1cb8] sm:$0xff] }
 0x5b5   :  { %9162 = vmatpush1.bf16.msra.mxu1 %v12575_v45  ;;  %8835 = vmatprep.subr.bf16.mxu0 %v12582_v5  ;;  %v12630_v45 = vcombine.high %v2607_v10, %v2611_v43  ;;  %v12632_v5 = vcombine.high %v2608_v29, %v2612_v31  ;;  %v2659_v10 = vld [vmem:[%s18647_s4 + $0x1cf0] sm:$0xff]  ;;  %v2660_v43 = vld [vmem:[%s18647_s4 + $0x1cf8] sm:$0xff] }
 0x5b6   :  { %9163 = vmatprep.subr.bf16.mxu1 %v12584_v18  ;;  %v2615_v18 = vld [vmem:[%s18647_s4 + $0x1b90] sm:$0xff] }
 0x5b7   :  { %v12637_v15 = vcombine.low %v2615_v18, %v2619_v12 }
 0x5b8   :  { %8836 = vmatpush1.bf16.msra.mxu0 %v12581_v16  ;;  %v12631_v16 = vcombine.low %v2608_v29, %v2612_v31  ;;  %v12671_v29 = vcombine.low %v2648_v61, %v2652_v19 }
 0x5b9   :  { %9164 = vmatpush1.bf16.msra.mxu1 %v12583_v50  ;;  %8837 = vmatprep.subr.bf16.mxu0 %v12590_v3  ;;  %v12638_v50 = vcombine.high %v2615_v18, %v2619_v12  ;;  %v12640_v3 = vcombine.high %v2616_v7, %v2620_v14  ;;  %v2668_v18 = vld [vmem:[%s18647_s4 + $0x1d38] sm:$0xff] }
 0x5ba   :  { %9165 = vmatprep.subr.bf16.mxu1 %v12592_v21  ;;  %v2623_v21 = vld [vmem:[%s18647_s4 + $0x1bd0] sm:$0xff] }
 0x5bb   :  { %v12645_v8 = vcombine.low %v2623_v21, %v2627_v20 }
 0x5bc   :  { %8838 = vmatpush1.bf16.msra.mxu0 %v12589_v60  ;;  %v12639_v60 = vcombine.low %v2616_v7, %v2620_v14 }
 0x5bd   :  { %9166 = vmatpush1.bf16.msra.mxu1 %v12591_v17  ;;  %8839 = vmatprep.subr.bf16.mxu0 %v12598_v28  ;;  %v12646_v17 = vcombine.high %v2623_v21, %v2627_v20  ;;  %v12648_v28 = vcombine.high %v2624_v22, %v2628_v27  ;;  %v2676_v21 = vld [vmem:[%s18647_s4 + $0x1d78] sm:$0xff] }
 0x5be   :  { %9167 = vmatprep.subr.bf16.mxu1 %v12600_v0  ;;  %v2631_v0 = vld [vmem:[%s18647_s4 + $0x1c10] sm:$0xff] }
 0x5bf   :  { %v12653_v25 = vcombine.low %v2631_v0, %v2635_v36 }
 0x5c0   :  { %8840 = vmatpush1.bf16.msra.mxu0 %v12597_v23  ;;  %v12647_v23 = vcombine.low %v2624_v22, %v2628_v27 }
 0x5c1   :  { %9168 = vmatpush1.bf16.msra.mxu1 %v12599_v53  ;;  %8841 = vmatprep.subr.bf16.mxu0 %v12606_v55  ;;  %v12654_v53 = vcombine.high %v2631_v0, %v2635_v36  ;;  %v12656_v55 = vcombine.high %v2632_v13, %v2636_v41  ;;  %v2684_v0 = vld [vmem:[%s18647_s4 + $0x1db8] sm:$0xff] }
 0x5c2   :  { %9169 = vmatprep.subr.bf16.mxu1 %v12608_v57  ;;  %v2639_v57 = vld [vmem:[%s18647_s4 + $0x1c50] sm:$0xff] }
 0x5c3   :  { %v12661_v47 = vcombine.low %v2639_v57, %v2643_v58 }
 0x5c4   :  { %8842 = vmatpush1.bf16.msra.mxu0 %v12605_v34  ;;  %v12655_v34 = vcombine.low %v2632_v13, %v2636_v41 }
 0x5c5   :  { %9170 = vmatpush1.bf16.msra.mxu1 %v12607_v4  ;;  %8843 = vmatprep.subr.bf16.mxu0 %v12614_v48  ;;  %v12662_v4 = vcombine.high %v2639_v57, %v2643_v58  ;;  %v2647_v48 = vld [vmem:[%s18647_s4 + $0x1c90] sm:$0xff]  ;;  %v2692_v57 = vld [vmem:[%s18647_s4 + $0x1df8] sm:$0xff] }
 0x5c6   :  { %9171 = vmatprep.subr.bf16.mxu1 %v12616_v59  ;;  %v2651_v59 = vld [vmem:[%s18647_s4 + $0x1cb0] sm:$0xff] }
 0x5c8   :  { %8844 = vmatpush1.bf16.msra.mxu0 %v12613_v11  ;;  %v12663_v11 = vcombine.low %v2640_v63, %v2644_v1 }
 0x5c9   :  { %9172 = vmatpush1.bf16.msra.mxu1 %v12615_v56  ;;  %8845 = vmatprep.subr.bf16.mxu0 %v12622_v2  ;;  %v12670_v56 = vcombine.high %v2647_v48, %v2651_v59  ;;  %v12672_v2 = vcombine.high %v2648_v61, %v2652_v19 }
 0x5ca   :  { %9173 = vmatprep.subr.bf16.mxu1 %v12624_v9  ;;  %v2655_v9 = vld [vmem:[%s18647_s4 + $0x1cd0] sm:$0xff] }
 0x5cb   :  { %v12678_v31 = vcombine.high %v2655_v9, %v2659_v10  ;;  %v12677_v12 = vcombine.low %v2655_v9, %v2659_v10  ;;  %v2708_v9 = vld [vmem:[%s18647_s4 + $0x1e78] sm:$0xff] }
 0x5cc   :  { %8846 = vmatpush1.bf16.msra.mxu0 %v12621_v40 }
 0x5cd   :  { %9174 = vmatpush1.bf16.msra.mxu1 %v12623_v33  ;;  %8847 = vmatprep.subr.bf16.mxu0 %v12630_v45  ;;  %v2663_v33 = vld [vmem:[%s18647_s4 + $0x1d10] sm:$0xff] }
 0x5ce   :  { %9175 = vmatprep.subr.bf16.mxu1 %v12632_v5  ;;  %v2667_v45 = vld [vmem:[%s18647_s4 + $0x1d30] sm:$0xff]  ;;  %v2664_v5 = vld [vmem:[%s18647_s4 + $0x1d18] sm:$0xff] }
 0x5cf   :  { %v12686_v14 = vcombine.high %v2663_v33, %v2667_v45  ;;  %v12685_v20 = vcombine.low %v2663_v33, %v2667_v45  ;;  %v12687_v22 = vcombine.low %v2664_v5, %v2668_v18  ;;  %v2716_v33 = vld [vmem:[%s18647_s4 + $0x1eb8] sm:$0xff] }
 0x5d0   :  { %8848 = vmatpush1.bf16.msra.mxu0 %v12629_v6  ;;  %v12688_v6 = vcombine.high %v2664_v5, %v2668_v18 }
 0x5d1   :  { %9176 = vmatpush1.bf16.msra.mxu1 %v12631_v16  ;;  %8849 = vmatprep.subr.bf16.mxu0 %v12638_v50  ;;  %v2671_v16 = vld [vmem:[%s18647_s4 + $0x1d50] sm:$0xff] }
 0x5d2   :  { %9177 = vmatprep.subr.bf16.mxu1 %v12640_v3  ;;  %v2675_v50 = vld [vmem:[%s18647_s4 + $0x1d70] sm:$0xff]  ;;  %v2672_v3 = vld [vmem:[%s18647_s4 + $0x1d58] sm:$0xff] }
 0x5d3   :  { %v12694_v27 = vcombine.high %v2671_v16, %v2675_v50  ;;  %v12693_v36 = vcombine.low %v2671_v16, %v2675_v50  ;;  %v12695_v13 = vcombine.low %v2672_v3, %v2676_v21  ;;  %v2724_v16 = vld [vmem:[%s18647_s4 + $0x1ef8] sm:$0xff] }
 0x5d4   :  { %8850 = vmatpush1.bf16.msra.mxu0 %v12637_v15  ;;  %v12696_v15 = vcombine.high %v2672_v3, %v2676_v21 }
 0x5d5   :  { %9178 = vmatpush1.bf16.msra.mxu1 %v12639_v60  ;;  %8851 = vmatprep.subr.bf16.mxu0 %v12646_v17  ;;  %v2679_v60 = vld [vmem:[%s18647_s4 + $0x1d90] sm:$0xff] }
 0x5d6   :  { %9179 = vmatprep.subr.bf16.mxu1 %v12648_v28  ;;  %v2683_v17 = vld [vmem:[%s18647_s4 + $0x1db0] sm:$0xff]  ;;  %v2680_v28 = vld [vmem:[%s18647_s4 + $0x1d98] sm:$0xff] }
 0x5d7   :  { %v12702_v41 = vcombine.high %v2679_v60, %v2683_v17  ;;  %v12701_v58 = vcombine.low %v2679_v60, %v2683_v17  ;;  %v2732_v60 = vld [vmem:[%s18647_s4 + $0x1f38] sm:$0xff] }
 0x5d8   :  { %8852 = vmatpush1.bf16.msra.mxu0 %v12645_v8  ;;  %v12704_v8 = vcombine.high %v2680_v28, %v2684_v0 }
 0x5d9   :  { %9180 = vmatpush1.bf16.msra.mxu1 %v12647_v23  ;;  %8862 = vmatprep.subr.bf16.mxu0 %v12654_v53  ;;  %v2687_v23 = vld [vmem:[%s18647_s4 + $0x1dd0] sm:$0xff] }
 0x5da   :  { %9190 = vmatprep.subr.bf16.mxu1 %v12656_v55  ;;  %v2691_v53 = vld [vmem:[%s18647_s4 + $0x1df0] sm:$0xff]  ;;  %v2688_v55 = vld [vmem:[%s18647_s4 + $0x1dd8] sm:$0xff] }
 0x5db   :  { %8854 = vmatmul.mubr.bf16.vlgmr.msra.gmra.mrb[68].mxu0 %v15943_v30  ;;  %v12710_v63 = vcombine.high %v2687_v23, %v2691_v53  ;;  %v12712_v1 = vcombine.high %v2688_v55, %v2692_v57  ;;  %v12711_v61 = vcombine.low %v2688_v55, %v2692_v57 }
 0x5dc   :  { %9182 = vmatmul.mubr.bf16.vlgmr.msra.gmra.mrb[36].mxu1 %v15943_v30  ;;  %8863 = vmatpush1.bf16.msra.mxu0 %v12653_v25  ;;  %v2656_v30 = vld [vmem:[%s18647_s4 + $0x1cd8] sm:$0xff]  ;;  %v12703_v25 = vcombine.low %v2680_v28, %v2684_v0 }
 0x5dd   :  { %8894 = vmatprep.mubr.bf16.mxu0 %v15951_v39  ;;  %9191 = vmatpush1.bf16.msra.mxu1 %v12655_v34  ;;  %v12680_v40 = vcombine.high %v2656_v30, %v2660_v43  ;;  %v12679_v7 = vcombine.low %v2656_v30, %v2660_v43  ;;  %v2695_v34 = vld [vmem:[%s18647_s4 + $0x1e10] sm:$0xff] }
 0x5de   :  { %9222 = vmatprep.mubr.bf16.mxu1 %v15951_v39  ;;  %8864 = vmatprep.subr.bf16.mxu0 %v12662_v4  ;;  %v12669_v39 = vcombine.low %v2647_v48, %v2651_v59  ;;  %v2699_v4 = vld [vmem:[%s18647_s4 + $0x1e30] sm:$0xff]  ;;  %v2696_v48 = vld [vmem:[%s18647_s4 + $0x1e18] sm:$0xff] }
 0x5df   :  { %9192 = vmatprep.subr.bf16.mxu1 %v12664_v52  ;;  %v2700_v59 = vld [vmem:[%s18647_s4 + $0x1e38] sm:$0xff]  ;;  %v12709_v52 = vcombine.low %v2687_v23, %v2691_v53  ;;  %v12718_v19 = vcombine.high %v2695_v34, %v2699_v4  ;;  %v12717_v10 = vcombine.low %v2695_v34, %v2699_v4  ;;  %v17689_v4 = vld [vmem:[%s18648_s5] sm:$0xff] }
 0x5e0   :  { %8865 = vmatpush1.bf16.msra.mxu0 %v12661_v47  ;;  %v12720_v47 = vcombine.high %v2696_v48, %v2700_v59  ;;  %v12719_v30 = vcombine.low %v2696_v48, %v2700_v59  ;;  %v2740_v23 = vld [vmem:[%s18647_s4 + $0x1f78] sm:$0xff] }
 0x5e1   :  { %9193 = vmatpush1.bf16.msra.mxu1 %v12663_v11  ;;  %8866 = vmatprep.subr.bf16.mxu0 %v12670_v56  ;;  %v2703_v11 = vld [vmem:[%s18647_s4 + $0x1e50] sm:$0xff]  ;;  %v2748_v34 = vld [vmem:[%s18647_s4 + $0x1fb8] sm:$0xff] }
 0x5e2   :  { %9194 = vmatprep.subr.bf16.mxu1 %v12672_v2  ;;  %v2707_v56 = vld [vmem:[%s18647_s4 + $0x1e70] sm:$0xff]  ;;  %v2704_v2 = vld [vmem:[%s18647_s4 + $0x1e58] sm:$0xff] }
 0x5e3   :  { %v12726_v43 = vcombine.high %v2703_v11, %v2707_v56  ;;  %v12725_v45 = vcombine.low %v2703_v11, %v2707_v56  ;;  %v12727_v5 = vcombine.low %v2704_v2, %v2708_v9  ;;  %v2766_v11 = vrot.slane %v17689_v4, %v14625_v26  ;;  %v2752_v56 = vld [vmem:[%s18647_s4 + $0x1fd8] sm:$0xff] }
 0x5e4   :  { %8867 = vmatpush1.bf16.msra.mxu0 %v12669_v39  ;;  %v12728_v39 = vcombine.high %v2704_v2, %v2708_v9  ;;  %v2756_v2 = vld [vmem:[%s18647_s4 + $0x1ff8] sm:$0xff] }
 0x5e5   :  { %9195 = vmatpush1.bf16.msra.mxu1 %v12671_v29  ;;  %8868 = vmatprep.subr.bf16.mxu0 %v12678_v31  ;;  %v2711_v29 = vld [vmem:[%s18647_s4 + $0x1e90] sm:$0xff] }
 0x5e6   :  { %9196 = vmatprep.subr.bf16.mxu1 %v12680_v40  ;;  %v2715_v31 = vld [vmem:[%s18647_s4 + $0x1eb0] sm:$0xff]  ;;  %v2712_v40 = vld [vmem:[%s18647_s4 + $0x1e98] sm:$0xff] }
 0x5e7   :  { %v12734_v18 = vcombine.high %v2711_v29, %v2715_v31  ;;  %v12733_v50 = vcombine.low %v2711_v29, %v2715_v31  ;;  %v12735_v3 = vcombine.low %v2712_v40, %v2716_v33  ;;  %v12775_v31 = vcombine.low %v2752_v56, %v2756_v2 }
 0x5e8   :  { %8869 = vmatpush1.bf16.msra.mxu0 %v12677_v12  ;;  %v12736_v12 = vcombine.high %v2712_v40, %v2716_v33  ;;  %v13446_v40 = vld [vmem:[%s18649_s6 + $0x4] ss:$16 sps:$4 sm:$0xff]   ;;  %v13449_v33 = vld [vmem:[%s18649_s6 + $0xc] ss:$16 sps:$4 sm:$0xff]  }
 0x5e9   :  { %9197 = vmatpush1.bf16.msra.mxu1 %v12679_v7  ;;  %8870 = vmatprep.subr.bf16.mxu0 %v12686_v14  ;;  %v2719_v7 = vld [vmem:[%s18647_s4 + $0x1ed0] sm:$0xff] }
 0x5ea   :  { %9198 = vmatprep.subr.bf16.mxu1 %v12688_v6  ;;  %v2723_v14 = vld [vmem:[%s18647_s4 + $0x1ef0] sm:$0xff]  ;;  %v2720_v6 = vld [vmem:[%s18647_s4 + $0x1ed8] sm:$0xff] }
 0x5eb   :  { %v12742_v21 = vcombine.high %v2719_v7, %v2723_v14  ;;  %v12741_v17 = vcombine.low %v2719_v7, %v2723_v14  ;;  %v12743_v28 = vcombine.low %v2720_v6, %v2724_v16  ;;  %v13455_v7 = vld [vmem:[%s18649_s6 + $0x2c] ss:$16 sps:$4 sm:$0xff]   ;;  %v13450_v14 = vld [vmem:[%s18649_s6 + $0x20] ss:$16 sps:$4 sm:$0xff]  }
 0x5ec   :  { %8871 = vmatpush1.bf16.msra.mxu0 %v12685_v20  ;;  %v12744_v20 = vcombine.high %v2720_v6, %v2724_v16  ;;  %v13453_v6 = vld [vmem:[%s18649_s6 + $0x28] ss:$16 sps:$4 sm:$0xff]   ;;  %v13458_v16 = vld [vmem:[%s18649_s6 + $0x44] ss:$16 sps:$4 sm:$0xff]  }
 0x5ed   :  { %9199 = vmatpush1.bf16.msra.mxu1 %v12687_v22  ;;  %8872 = vmatprep.subr.bf16.mxu0 %v12694_v27  ;;  %v2727_v22 = vld [vmem:[%s18647_s4 + $0x1f10] sm:$0xff] }
 0x5ee   :  { %9200 = vmatprep.subr.bf16.mxu1 %v12696_v15  ;;  %v2731_v27 = vld [vmem:[%s18647_s4 + $0x1f30] sm:$0xff]  ;;  %v2728_v15 = vld [vmem:[%s18647_s4 + $0x1f18] sm:$0xff] }
 0x5ef   :  { %v12750_v0 = vcombine.high %v2727_v22, %v2731_v27  ;;  %v12749_v53 = vcombine.low %v2727_v22, %v2731_v27  ;;  %v12751_v55 = vcombine.low %v2728_v15, %v2732_v60  ;;  %v13462_v22 = vld [vmem:[%s18649_s6 + $0x60] ss:$16 sps:$4 sm:$0xff]   ;;  %v13465_v27 = vld [vmem:[%s18649_s6 + $0x68] ss:$16 sps:$4 sm:$0xff]  }
 0x5f0   :  { %8873 = vmatpush1.bf16.msra.mxu0 %v12693_v36  ;;  %v12752_v36 = vcombine.high %v2728_v15, %v2732_v60  ;;  %v13470_v15 = vld [vmem:[%s18649_s6 + $0x84] ss:$16 sps:$4 sm:$0xff]   ;;  %v13473_v60 = vld [vmem:[%s18649_s6 + $0x8c] ss:$16 sps:$4 sm:$0xff]  }
 0x5f1   :  { %9201 = vmatpush1.bf16.msra.mxu1 %v12695_v13  ;;  %8874 = vmatprep.subr.bf16.mxu0 %v12702_v41  ;;  %v2735_v13 = vld [vmem:[%s18647_s4 + $0x1f50] sm:$0xff] }
 0x5f2   :  { %9202 = vmatprep.subr.bf16.mxu1 %v12704_v8  ;;  %v2739_v41 = vld [vmem:[%s18647_s4 + $0x1f70] sm:$0xff]  ;;  %v2736_v8 = vld [vmem:[%s18647_s4 + $0x1f58] sm:$0xff] }
 0x5f3   :  { %v12758_v57 = vcombine.high %v2735_v13, %v2739_v41  ;;  %v12757_v48 = vcombine.low %v2735_v13, %v2739_v41  ;;  %v12759_v59 = vcombine.low %v2736_v8, %v2740_v23  ;;  %v13474_v13 = vld [vmem:[%s18649_s6 + $0xa0] ss:$16 sps:$4 sm:$0xff]   ;;  %v13477_v41 = vld [vmem:[%s18649_s6 + $0xa8] ss:$16 sps:$4 sm:$0xff]  }
 0x5f4   :  { %8875 = vmatpush1.bf16.msra.mxu0 %v12701_v58  ;;  %v12760_v58 = vcombine.high %v2736_v8, %v2740_v23  ;;  %v13482_v8 = vld [vmem:[%s18649_s6 + $0xc4] ss:$16 sps:$4 sm:$0xff]   ;;  %v13485_v23 = vld [vmem:[%s18649_s6 + $0xcc] ss:$16 sps:$4 sm:$0xff]  }
 0x5f5   :  { %9203 = vmatpush1.bf16.msra.mxu1 %v12703_v25  ;;  %8876 = vmatprep.subr.bf16.mxu0 %v12710_v63  ;;  %v2743_v25 = vld [vmem:[%s18647_s4 + $0x1f90] sm:$0xff] }
 0x5f6   :  { %9204 = vmatprep.subr.bf16.mxu1 %v12712_v1  ;;  %v2747_v63 = vld [vmem:[%s18647_s4 + $0x1fb0] sm:$0xff]  ;;  %v2744_v1 = vld [vmem:[%s18647_s4 + $0x1f98] sm:$0xff] }
 0x5f7   :  { %v12765_v9 = vcombine.low %v2743_v25, %v2747_v63 }
 0x5f8   :  { %8877 = vmatpush1.bf16.msra.mxu0 %v12709_v52  ;;  %v12766_v52 = vcombine.high %v2743_v25, %v2747_v63  ;;  %v13486_v25 = vld [vmem:[%s18649_s6 + $0xe0] ss:$16 sps:$4 sm:$0xff]   ;;  %v13489_v63 = vld [vmem:[%s18649_s6 + $0xe8] ss:$16 sps:$4 sm:$0xff]  }
 0x5f9   :  { %9205 = vmatpush1.bf16.msra.mxu1 %v12711_v61  ;;  %8878 = vmatprep.subr.bf16.mxu0 %v12718_v19  ;;  %v12768_v61 = vcombine.high %v2744_v1, %v2748_v34  ;;  %v2751_v19 = vld [vmem:[%s18647_s4 + $0x1fd0] sm:$0xff] }
 0x5fa   :  { %9206 = vmatprep.subr.bf16.mxu1 %v12720_v47  ;;  %v2755_v47 = vld [vmem:[%s18647_s4 + $0x1ff0] sm:$0xff] }
 0x5fb   :  { %v12773_v29 = vcombine.low %v2751_v19, %v2755_v47 }
 0x5fc   :  { %8879 = vmatpush1.bf16.msra.mxu0 %v12717_v10  ;;  %v12767_v10 = vcombine.low %v2744_v1, %v2748_v34  ;;  %v13494_v1 = vld [vmem:[%s18649_s6 + $0x104] ss:$16 sps:$4 sm:$0xff]   ;;  %v13497_v34 = vld [vmem:[%s18649_s6 + $0x10c] ss:$16 sps:$4 sm:$0xff]  }
 0x5fd   :  { %9207 = vmatpush1.bf16.msra.mxu1 %v12719_v30  ;;  %8880 = vmatprep.subr.bf16.mxu0 %v12726_v43  ;;  %v12774_v30 = vcombine.high %v2751_v19, %v2755_v47  ;;  %v12776_v43 = vcombine.high %v2752_v56, %v2756_v2  ;;  %v13498_v19 = vld [vmem:[%s18649_s6 + $0x120] ss:$16 sps:$4 sm:$0xff]   ;;  %v13501_v47 = vld [vmem:[%s18649_s6 + $0x128] ss:$16 sps:$4 sm:$0xff]   ;;  %v13509_v56 = vld [vmem:[%s18649_s6 + $0x14c] ss:$16 sps:$4 sm:$0xff]  }
 0x5fe   :  { %9208 = vmatprep.subr.bf16.mxu1 %v12728_v39  ;;  %v13257_v39 = vadd.f32 %v16808_v44, %v2766_v11  ;;  %v13444_v44 = vld [vmem:[%s18649_s6] ss:$16 sps:$4 sm:$0xff]   ;;  %v13506_v11 = vld [vmem:[%s18649_s6 + $0x144] ss:$16 sps:$4 sm:$0xff]  }
 0x5ff   :  { %v13504_v2 = vld [vmem:[%s18649_s6 + $0x140] ss:$16 sps:$4 sm:$0xff]  }
 0x600   :  { %8881 = vmatpush1.bf16.msra.mxu0 %v12725_v45  ;;  %v9232_v45 = vmax.f32 %v13257_v39, 0.0  ;;  %v13513_v39 = vld [vmem:[%s18649_s6 + $0x168] ss:$16 sps:$4 sm:$0xff]  }
 0x601   :  { %9209 = vmatpush1.bf16.msra.mxu1 %v12727_v5  ;;  %8882 = vmatprep.subr.bf16.mxu0 %v12734_v18  ;;  %v13447_v5 = vld [vmem:[%s18649_s6 + $0x8] ss:$16 sps:$4 sm:$0xff]   ;;  %v13452_v18 = vld [vmem:[%s18649_s6 + $0x24] ss:$16 sps:$4 sm:$0xff]  }
 0x602   :  { %9210 = vmatprep.subr.bf16.mxu1 %v12736_v12  ;;  %v9240_v12 = vpack.c.bf16 %v9232_v45, %v9232_v45  ;;  %v13524_v45 = vld [vmem:[%s18649_s6 + $0x1a4] ss:$16 sps:$4 sm:$0xff]  }
 0x604   :  { %8883 = vmatpush1.bf16.msra.mxu0 %v12733_v50  ;;  %v13456_v50 = vld [vmem:[%s18649_s6 + $0x40] ss:$16 sps:$4 sm:$0xff]  }
 0x605   :  { %9211 = vmatpush1.bf16.msra.mxu1 %v12735_v3  ;;  %8884 = vmatprep.subr.bf16.mxu0 %v12742_v21  ;;  %v13459_v3 = vld [vmem:[%s18649_s6 + $0x48] ss:$16 sps:$4 sm:$0xff]   ;;  %v13464_v21 = vld [vmem:[%s18649_s6 + $0x64] ss:$16 sps:$4 sm:$0xff]  }
 0x606   :  { %9212 = vmatprep.subr.bf16.mxu1 %v12744_v20  ;;  %v13467_v20 = vld [vmem:[%s18649_s6 + $0x6c] ss:$16 sps:$4 sm:$0xff]  }
 0x608   :  { %8885 = vmatpush1.bf16.msra.mxu0 %v12741_v17  ;;  %v13468_v17 = vld [vmem:[%s18649_s6 + $0x80] ss:$16 sps:$4 sm:$0xff]  }
 0x609   :  { %9213 = vmatpush1.bf16.msra.mxu1 %v12743_v28  ;;  %8886 = vmatprep.subr.bf16.mxu0 %v12750_v0  ;;  %v13471_v28 = vld [vmem:[%s18649_s6 + $0x88] ss:$16 sps:$4 sm:$0xff]   ;;  %v13476_v0 = vld [vmem:[%s18649_s6 + $0xa4] ss:$16 sps:$4 sm:$0xff]  }
 0x60a   :  { %9214 = vmatprep.subr.bf16.mxu1 %v12752_v36  ;;  %v13479_v36 = vld [vmem:[%s18649_s6 + $0xac] ss:$16 sps:$4 sm:$0xff]  }
 0x60c   :  { %8887 = vmatpush1.bf16.msra.mxu0 %v12749_v53  ;;  %v13480_v53 = vld [vmem:[%s18649_s6 + $0xc0] ss:$16 sps:$4 sm:$0xff]  }
 0x60d   :  { %9215 = vmatpush1.bf16.msra.mxu1 %v12751_v55  ;;  %8888 = vmatprep.subr.bf16.mxu0 %v12758_v57  ;;  %v13483_v55 = vld [vmem:[%s18649_s6 + $0xc8] ss:$16 sps:$4 sm:$0xff]   ;;  %v13488_v57 = vld [vmem:[%s18649_s6 + $0xe4] ss:$16 sps:$4 sm:$0xff]  }
 0x60e   :  { %9216 = vmatprep.subr.bf16.mxu1 %v12760_v58  ;;  %v13491_v58 = vld [vmem:[%s18649_s6 + $0xec] ss:$16 sps:$4 sm:$0xff]  }
 0x610   :  { %8889 = vmatpush1.bf16.msra.mxu0 %v12757_v48  ;;  %v13492_v48 = vld [vmem:[%s18649_s6 + $0x100] ss:$16 sps:$4 sm:$0xff]  }
 0x611   :  { %9217 = vmatpush1.bf16.msra.mxu1 %v12759_v59  ;;  %8890 = vmatprep.subr.bf16.mxu0 %v12766_v52  ;;  %v13495_v59 = vld [vmem:[%s18649_s6 + $0x108] ss:$16 sps:$4 sm:$0xff]   ;;  %v13500_v52 = vld [vmem:[%s18649_s6 + $0x124] ss:$16 sps:$4 sm:$0xff]  }
 0x612   :  { %9218 = vmatprep.subr.bf16.mxu1 %v12768_v61  ;;  %v13503_v61 = vld [vmem:[%s18649_s6 + $0x12c] ss:$16 sps:$4 sm:$0xff]  }
 0x614   :  { %8891 = vmatpush1.bf16.msra.mxu0 %v12765_v9  ;;  %v13507_v9 = vld [vmem:[%s18649_s6 + $0x148] ss:$16 sps:$4 sm:$0xff]  }
 0x615   :  { %9219 = vmatpush1.bf16.msra.mxu1 %v12767_v10  ;;  %8892 = vmatprep.subr.bf16.mxu0 %v12774_v30  ;;  %v13512_v10 = vld [vmem:[%s18649_s6 + $0x164] ss:$16 sps:$4 sm:$0xff]   ;;  %v13515_v30 = vld [vmem:[%s18649_s6 + $0x16c] ss:$16 sps:$4 sm:$0xff]  }
 0x616   :  { %9220 = vmatprep.subr.bf16.mxu1 %v12776_v43  ;;  %v13510_v43 = vld [vmem:[%s18649_s6 + $0x160] ss:$16 sps:$4 sm:$0xff]  }
 0x618   :  { %8893 = vmatpush1.bf16.msra.mxu0 %v12773_v29  ;;  %v13518_v29 = vld [vmem:[%s18649_s6 + $0x184] ss:$16 sps:$4 sm:$0xff]  }
 0x619   :  { %9221 = vmatpush1.bf16.msra.mxu1 %v12775_v31  ;;  %10805 = vmatprep.subr.bf16.mxu0 %v13446_v40  ;;  %v13521_v31 = vld [vmem:[%s18649_s6 + $0x18c] ss:$16 sps:$4 sm:$0xff]   ;;  %v13516_v40 = vld [vmem:[%s18649_s6 + $0x180] ss:$16 sps:$4 sm:$0xff]  }
 0x61a   :  { %10969 = vmatprep.subr.bf16.mxu1 %v13449_v33  ;;  %v13519_v33 = vld [vmem:[%s18649_s6 + $0x188] ss:$16 sps:$4 sm:$0xff]  }
 0x61b   :  { %8895 = vmatmul.mubr.bf16.vlgmr.msra.gmra.mrb[68].mxu0 %v16144_v35 }
 0x61c   :  { %9223 = vmatmul.mubr.bf16.vlgmr.msra.gmra.mrb[36].mxu1 %v16144_v35  ;;  %10806 = vmatpush1.bf16.msra.mxu0 %v13444_v44  ;;  %v13461_v35 = vld [vmem:[%s18649_s6 + $0x4c] ss:$16 sps:$4 sm:$0xff]  }
 0x61d   :  { %10837 = vmatprep.mubr.bf16.mxu0 %v9240_v12  ;;  %10970 = vmatpush1.bf16.msra.mxu1 %v13447_v5  ;;  %v13527_v44 = vld [vmem:[%s18649_s6 + $0x1ac] ss:$16 sps:$4 sm:$0xff]   ;;  %v13522_v5 = vld [vmem:[%s18649_s6 + $0x1a0] ss:$16 sps:$4 sm:$0xff]  }
 0x61e   :  { %11001 = vmatprep.mubr.bf16.mxu1 %v9240_v12  ;;  %10807 = vmatprep.subr.bf16.mxu0 %v13452_v18  ;;  %v2762_v18 = vrot.slane %v17689_v4, %v14617_v24  ;;  %v13525_v12 = vld [vmem:[%s18649_s6 + $0x1a8] ss:$16 sps:$4 sm:$0xff]  }
 0x61f   :  { %10971 = vmatprep.subr.bf16.mxu1 %v13455_v7  ;;  %v13530_v7 = vld [vmem:[%s18649_s6 + $0x1c4] ss:$16 sps:$4 sm:$0xff]  }
 0x620   :  { %10808 = vmatpush1.bf16.msra.mxu0 %v13450_v14  ;;  %v13533_v14 = vld [vmem:[%s18649_s6 + $0x1cc] ss:$16 sps:$4 sm:$0xff]  }
 0x621   :  { %10972 = vmatpush1.bf16.msra.mxu1 %v13453_v6  ;;  %10809 = vmatprep.subr.bf16.mxu0 %v13458_v16  ;;  %v2774_v6 = vrot.slane %v17689_v4, %v14667_v54  ;;  %v13528_v16 = vld [vmem:[%s18649_s6 + $0x1c0] ss:$16 sps:$4 sm:$0xff]  }
 0x622   :  { %10973 = vmatprep.subr.bf16.mxu1 %v13461_v35  ;;  %v13256_v35 = vadd.f32 %v16798_v32, %v2762_v18  ;;  %v13534_v32 = vld [vmem:[%s18649_s6 + $0x1e0] ss:$16 sps:$4 sm:$0xff]   ;;  %v13599_v18 = vld [vmem:[%s18649_s6 + $0x32c] ss:$16 sps:$4 sm:$0xff]  }
 0x624   :  { %10810 = vmatpush1.bf16.msra.mxu0 %v13456_v50  ;;  %v13531_v50 = vld [vmem:[%s18649_s6 + $0x1c8] ss:$16 sps:$4 sm:$0xff]  }
 0x625   :  { %10974 = vmatpush1.bf16.msra.mxu1 %v13459_v3  ;;  %10811 = vmatprep.subr.bf16.mxu0 %v13464_v21  ;;  %v13536_v3 = vld [vmem:[%s18649_s6 + $0x1e4] ss:$16 sps:$4 sm:$0xff]   ;;  %v13539_v21 = vld [vmem:[%s18649_s6 + $0x1ec] ss:$16 sps:$4 sm:$0xff]  }
 0x626   :  { %10975 = vmatprep.subr.bf16.mxu1 %v13467_v20  ;;  %v13259_v20 = vadd.f32 %v16816_v49, %v2774_v6  ;;  %v13545_v49 = vld [vmem:[%s18649_s6 + $0x20c] ss:$16 sps:$4 sm:$0xff]  }
 0x627   :  { %v13605_v6 = vld [vmem:[%s18649_s6 + $0x34c] ss:$16 sps:$4 sm:$0xff]  }
 0x628   :  { %10812 = vmatpush1.bf16.msra.mxu0 %v13462_v22  ;;  %v9231_v22 = vmax.f32 %v13256_v35, 0.0  ;;  %v13603_v35 = vld [vmem:[%s18649_s6 + $0x348] ss:$16 sps:$4 sm:$0xff]  }
 0x629   :  { %10976 = vmatpush1.bf16.msra.mxu1 %v13465_v27  ;;  %10813 = vmatprep.subr.bf16.mxu0 %v13470_v15  ;;  %v13537_v27 = vld [vmem:[%s18649_s6 + $0x1e8] ss:$16 sps:$4 sm:$0xff]   ;;  %v13542_v15 = vld [vmem:[%s18649_s6 + $0x204] ss:$16 sps:$4 sm:$0xff]  }
 0x62a   :  { %10977 = vmatprep.subr.bf16.mxu1 %v13473_v60  ;;  %v9234_v60 = vmax.f32 %v13259_v20, 0.0  ;;  %v13609_v20 = vld [vmem:[%s18649_s6 + $0x368] ss:$16 sps:$4 sm:$0xff]  }
 0x62c   :  { %10814 = vmatpush1.bf16.msra.mxu0 %v13468_v17  ;;  %v13540_v17 = vld [vmem:[%s18649_s6 + $0x200] ss:$16 sps:$4 sm:$0xff]  }
 0x62d   :  { %10978 = vmatpush1.bf16.msra.mxu1 %v13471_v28  ;;  %10815 = vmatprep.subr.bf16.mxu0 %v13476_v0  ;;  %v9239_v28 = vpack.c.bf16 %v9231_v22, %v9231_v22  ;;  %v13543_v0 = vld [vmem:[%s18649_s6 + $0x208] ss:$16 sps:$4 sm:$0xff]   ;;  %v13617_v22 = vld [vmem:[%s18649_s6 + $0x38c] ss:$16 sps:$4 sm:$0xff]  }
 0x62e   :  { %10979 = vmatprep.subr.bf16.mxu1 %v13479_v36  ;;  %v13548_v36 = vld [vmem:[%s18649_s6 + $0x224] ss:$16 sps:$4 sm:$0xff]  }
 0x630   :  { %10816 = vmatpush1.bf16.msra.mxu0 %v13474_v13  ;;  %v9242_v13 = vpack.c.bf16 %v9234_v60, %v9234_v60  ;;  %v13623_v60 = vld [vmem:[%s18649_s6 + $0x3ac] ss:$16 sps:$4 sm:$0xff]  }
 0x631   :  { %10980 = vmatpush1.bf16.msra.mxu1 %v13477_v41  ;;  %10817 = vmatprep.subr.bf16.mxu0 %v13482_v8  ;;  %v13551_v41 = vld [vmem:[%s18649_s6 + $0x22c] ss:$16 sps:$4 sm:$0xff]   ;;  %v13546_v8 = vld [vmem:[%s18649_s6 + $0x220] ss:$16 sps:$4 sm:$0xff]  }
 0x632   :  { %10981 = vmatprep.subr.bf16.mxu1 %v13485_v23  ;;  %v13549_v23 = vld [vmem:[%s18649_s6 + $0x228] ss:$16 sps:$4 sm:$0xff]  }
 0x634   :  { %10818 = vmatpush1.bf16.msra.mxu0 %v13480_v53  ;;  %v13554_v53 = vld [vmem:[%s18649_s6 + $0x244] ss:$16 sps:$4 sm:$0xff]  }
 0x635   :  { %10982 = vmatpush1.bf16.msra.mxu1 %v13483_v55  ;;  %10819 = vmatprep.subr.bf16.mxu0 %v13488_v57  ;;  %v13557_v55 = vld [vmem:[%s18649_s6 + $0x24c] ss:$16 sps:$4 sm:$0xff]   ;;  %v13552_v57 = vld [vmem:[%s18649_s6 + $0x240] ss:$16 sps:$4 sm:$0xff]  }
 0x636   :  { %10983 = vmatprep.subr.bf16.mxu1 %v13491_v58  ;;  %v13555_v58 = vld [vmem:[%s18649_s6 + $0x248] ss:$16 sps:$4 sm:$0xff]  }
 0x638   :  { %10820 = vmatpush1.bf16.msra.mxu0 %v13486_v25  ;;  %v13560_v25 = vld [vmem:[%s18649_s6 + $0x264] ss:$16 sps:$4 sm:$0xff]  }
 0x639   :  { %10984 = vmatpush1.bf16.msra.mxu1 %v13489_v63  ;;  %10821 = vmatprep.subr.bf16.mxu0 %v13494_v1  ;;  %v13563_v63 = vld [vmem:[%s18649_s6 + $0x26c] ss:$16 sps:$4 sm:$0xff]   ;;  %v13558_v1 = vld [vmem:[%s18649_s6 + $0x260] ss:$16 sps:$4 sm:$0xff]  }
 0x63a   :  { %10985 = vmatprep.subr.bf16.mxu1 %v13497_v34  ;;  %v13561_v34 = vld [vmem:[%s18649_s6 + $0x268] ss:$16 sps:$4 sm:$0xff]  }
 0x63c   :  { %10822 = vmatpush1.bf16.msra.mxu0 %v13492_v48  ;;  %v13566_v48 = vld [vmem:[%s18649_s6 + $0x284] ss:$16 sps:$4 sm:$0xff]  }
 0x63d   :  { %10986 = vmatpush1.bf16.msra.mxu1 %v13495_v59  ;;  %10823 = vmatprep.subr.bf16.mxu0 %v13500_v52  ;;  %v13569_v59 = vld [vmem:[%s18649_s6 + $0x28c] ss:$16 sps:$4 sm:$0xff]   ;;  %v13564_v52 = vld [vmem:[%s18649_s6 + $0x280] ss:$16 sps:$4 sm:$0xff]  }
 0x63e   :  { %10987 = vmatprep.subr.bf16.mxu1 %v13503_v61  ;;  %v13567_v61 = vld [vmem:[%s18649_s6 + $0x288] ss:$16 sps:$4 sm:$0xff]  }
 0x640   :  { %10824 = vmatpush1.bf16.msra.mxu0 %v13498_v19  ;;  %v13572_v19 = vld [vmem:[%s18649_s6 + $0x2a4] ss:$16 sps:$4 sm:$0xff]  }
 0x641   :  { %10988 = vmatpush1.bf16.msra.mxu1 %v13501_v47  ;;  %10825 = vmatprep.subr.bf16.mxu0 %v13506_v11  ;;  %v13575_v47 = vld [vmem:[%s18649_s6 + $0x2ac] ss:$16 sps:$4 sm:$0xff]   ;;  %v13570_v11 = vld [vmem:[%s18649_s6 + $0x2a0] ss:$16 sps:$4 sm:$0xff]  }
 0x642   :  { %10989 = vmatprep.subr.bf16.mxu1 %v13509_v56  ;;  %v13573_v56 = vld [vmem:[%s18649_s6 + $0x2a8] ss:$16 sps:$4 sm:$0xff]  }
 0x644   :  { %10826 = vmatpush1.bf16.msra.mxu0 %v13504_v2  ;;  %v13578_v2 = vld [vmem:[%s18649_s6 + $0x2c4] ss:$16 sps:$4 sm:$0xff]  }
 0x645   :  { %10990 = vmatpush1.bf16.msra.mxu1 %v13507_v9  ;;  %10827 = vmatprep.subr.bf16.mxu0 %v13512_v10  ;;  %v13581_v9 = vld [vmem:[%s18649_s6 + $0x2cc] ss:$16 sps:$4 sm:$0xff]   ;;  %v13576_v10 = vld [vmem:[%s18649_s6 + $0x2c0] ss:$16 sps:$4 sm:$0xff]  }
 0x646   :  { %10991 = vmatprep.subr.bf16.mxu1 %v13515_v30  ;;  %v13579_v30 = vld [vmem:[%s18649_s6 + $0x2c8] ss:$16 sps:$4 sm:$0xff]  }
 0x648   :  { %10828 = vmatpush1.bf16.msra.mxu0 %v13510_v43  ;;  %v13584_v43 = vld [vmem:[%s18649_s6 + $0x2e4] ss:$16 sps:$4 sm:$0xff]  }
 0x649   :  { %10992 = vmatpush1.bf16.msra.mxu1 %v13513_v39  ;;  %10829 = vmatprep.subr.bf16.mxu0 %v13518_v29  ;;  %v13587_v39 = vld [vmem:[%s18649_s6 + $0x2ec] ss:$16 sps:$4 sm:$0xff]   ;;  %v13582_v29 = vld [vmem:[%s18649_s6 + $0x2e0] ss:$16 sps:$4 sm:$0xff]  }
 0x64a   :  { %10993 = vmatprep.subr.bf16.mxu1 %v13521_v31  ;;  %v13585_v31 = vld [vmem:[%s18649_s6 + $0x2e8] ss:$16 sps:$4 sm:$0xff]  }
 0x64c   :  { %10830 = vmatpush1.bf16.msra.mxu0 %v13516_v40  ;;  %v13590_v40 = vld [vmem:[%s18649_s6 + $0x304] ss:$16 sps:$4 sm:$0xff]  }
 0x64d   :  { %10994 = vmatpush1.bf16.msra.mxu1 %v13519_v33  ;;  %10831 = vmatprep.subr.bf16.mxu0 %v13524_v45  ;;  %v13593_v33 = vld [vmem:[%s18649_s6 + $0x30c] ss:$16 sps:$4 sm:$0xff]   ;;  %v13588_v45 = vld [vmem:[%s18649_s6 + $0x300] ss:$16 sps:$4 sm:$0xff]  }
 0x64e   :  { %10995 = vmatprep.subr.bf16.mxu1 %v13527_v44  ;;  %v13591_v44 = vld [vmem:[%s18649_s6 + $0x308] ss:$16 sps:$4 sm:$0xff]  }
 0x650   :  { %10832 = vmatpush1.bf16.msra.mxu0 %v13522_v5  ;;  %v13596_v5 = vld [vmem:[%s18649_s6 + $0x324] ss:$16 sps:$4 sm:$0xff]  }
 0x651   :  { %10996 = vmatpush1.bf16.msra.mxu1 %v13525_v12  ;;  %10833 = vmatprep.subr.bf16.mxu0 %v13530_v7  ;;  %v13594_v12 = vld [vmem:[%s18649_s6 + $0x320] ss:$16 sps:$4 sm:$0xff]   ;;  %v13597_v7 = vld [vmem:[%s18649_s6 + $0x328] ss:$16 sps:$4 sm:$0xff]  }
 0x652   :  { %10997 = vmatprep.subr.bf16.mxu1 %v13533_v14  ;;  %v13602_v14 = vld [vmem:[%s18649_s6 + $0x344] ss:$16 sps:$4 sm:$0xff]  }
 0x654   :  { %10834 = vmatpush1.bf16.msra.mxu0 %v13528_v16  ;;  %v13600_v16 = vld [vmem:[%s18649_s6 + $0x340] ss:$16 sps:$4 sm:$0xff]  }
 0x655   :  { %10998 = vmatpush1.bf16.msra.mxu1 %v13531_v50  ;;  %10835 = vmatprep.subr.bf16.mxu0 %v13536_v3  ;;  %v13608_v50 = vld [vmem:[%s18649_s6 + $0x364] ss:$16 sps:$4 sm:$0xff]   ;;  %v13611_v3 = vld [vmem:[%s18649_s6 + $0x36c] ss:$16 sps:$4 sm:$0xff]  }
 0x656   :  { %10999 = vmatprep.subr.bf16.mxu1 %v13539_v21  ;;  %v13606_v21 = vld [vmem:[%s18649_s6 + $0x360] ss:$16 sps:$4 sm:$0xff]  }
 0x658   :  { %10836 = vmatpush1.bf16.msra.mxu0 %v13534_v32  ;;  %v13614_v32 = vld [vmem:[%s18649_s6 + $0x384] ss:$16 sps:$4 sm:$0xff]  }
 0x659   :  { %11000 = vmatpush1.bf16.msra.mxu1 %v13537_v27  ;;  %10846 = vmatprep.subr.bf16.mxu0 %v13542_v15  ;;  %v13612_v27 = vld [vmem:[%s18649_s6 + $0x380] ss:$16 sps:$4 sm:$0xff]   ;;  %v13615_v15 = vld [vmem:[%s18649_s6 + $0x388] ss:$16 sps:$4 sm:$0xff]  }
 0x65a   :  { %11010 = vmatprep.subr.bf16.mxu1 %v13545_v49  ;;  %v13620_v49 = vld [vmem:[%s18649_s6 + $0x3a4] ss:$16 sps:$4 sm:$0xff]  }
 0x65b   :  { %10838 = vmatmul.mubr.bf16.vlgmr.msra.gmra.mrb[72].mxu0 %v9239_v28 }
 0x65c   :  { %11002 = vmatmul.mubr.bf16.vlgmr.msra.gmra.mrb[40].mxu1 %v9239_v28  ;;  %10847 = vmatpush1.bf16.msra.mxu0 %v13540_v17  ;;  %v13618_v17 = vld [vmem:[%s18649_s6 + $0x3a0] ss:$16 sps:$4 sm:$0xff]   ;;  %v2770_v28 = vrot.slane %v17689_v4, %v14818_v46 }
 0x65d   :  { %10878 = vmatprep.mubr.bf16.mxu0 %v9242_v13  ;;  %11011 = vmatpush1.bf16.msra.mxu1 %v13543_v0  ;;  %v13621_v0 = vld [vmem:[%s18649_s6 + $0x3a8] ss:$16 sps:$4 sm:$0xff]  }
 0x65e   :  { %11042 = vmatprep.mubr.bf16.mxu1 %v9242_v13  ;;  %10848 = vmatprep.subr.bf16.mxu0 %v13548_v36  ;;  %v13626_v36 = vld [vmem:[%s18649_s6 + $0x3c4] ss:$16 sps:$4 sm:$0xff]   ;;  %v13629_v13 = vld [vmem:[%s18649_s6 + $0x3cc] ss:$16 sps:$4 sm:$0xff]  }
 0x65f   :  { %11012 = vmatprep.subr.bf16.mxu1 %v13551_v41  ;;  %v13624_v41 = vld [vmem:[%s18649_s6 + $0x3c0] ss:$16 sps:$4 sm:$0xff]  }
 0x660   :  { %10849 = vmatpush1.bf16.msra.mxu0 %v13546_v8  ;;  %v13258_v8 = vadd.f32 %v16806_v42, %v2770_v28  ;;  %v13630_v42 = vld [vmem:[%s18649_s6 + $0x3e0] ss:$16 sps:$4 sm:$0xff]  }
 0x661   :  { %11013 = vmatpush1.bf16.msra.mxu1 %v13549_v23  ;;  %10850 = vmatprep.subr.bf16.mxu0 %v13554_v53  ;;  %v13627_v23 = vld [vmem:[%s18649_s6 + $0x3c8] ss:$16 sps:$4 sm:$0xff]   ;;  %v13632_v53 = vld [vmem:[%s18649_s6 + $0x3e4] ss:$16 sps:$4 sm:$0xff]   ;;  %v13696_v28 = vld [vmem:[%s18649_s6 + $0x540] ss:$16 sps:$4 sm:$0xff]  }
 0x662   :  { %11014 = vmatprep.subr.bf16.mxu1 %v13557_v55  ;;  %v13635_v55 = vld [vmem:[%s18649_s6 + $0x3ec] ss:$16 sps:$4 sm:$0xff]  }
 0x664   :  { %10851 = vmatpush1.bf16.msra.mxu0 %v13552_v57  ;;  %v9233_v57 = vmax.f32 %v13258_v8, 0.0  ;;  %v13705_v8 = vld [vmem:[%s18649_s6 + $0x568] ss:$16 sps:$4 sm:$0xff]  }
 0x665   :  { %11015 = vmatpush1.bf16.msra.mxu1 %v13555_v58  ;;  %10852 = vmatprep.subr.bf16.mxu0 %v13560_v25  ;;  %v13633_v58 = vld [vmem:[%s18649_s6 + $0x3e8] ss:$16 sps:$4 sm:$0xff]   ;;  %v13638_v25 = vld [vmem:[%s18649_s6 + $0x404] ss:$16 sps:$4 sm:$0xff]  }
 0x666   :  { %11016 = vmatprep.subr.bf16.mxu1 %v13563_v63  ;;  %v13641_v63 = vld [vmem:[%s18649_s6 + $0x40c] ss:$16 sps:$4 sm:$0xff]  }
 0x668   :  { %10853 = vmatpush1.bf16.msra.mxu0 %v13558_v1  ;;  %v13636_v1 = vld [vmem:[%s18649_s6 + $0x400] ss:$16 sps:$4 sm:$0xff]  }
 0x669   :  { %11017 = vmatpush1.bf16.msra.mxu1 %v13561_v34  ;;  %10854 = vmatprep.subr.bf16.mxu0 %v13566_v48  ;;  %v9241_v34 = vpack.c.bf16 %v9233_v57, %v9233_v57  ;;  %v13639_v48 = vld [vmem:[%s18649_s6 + $0x408] ss:$16 sps:$4 sm:$0xff]   ;;  %v13716_v57 = vld [vmem:[%s18649_s6 + $0x5a4] ss:$16 sps:$4 sm:$0xff]  }
 0x66a   :  { %11018 = vmatprep.subr.bf16.mxu1 %v13569_v59  ;;  %v13644_v59 = vld [vmem:[%s18649_s6 + $0x424] ss:$16 sps:$4 sm:$0xff]  }
 0x66c   :  { %10855 = vmatpush1.bf16.msra.mxu0 %v13564_v52  ;;  %v13647_v52 = vld [vmem:[%s18649_s6 + $0x42c] ss:$16 sps:$4 sm:$0xff]  }
 0x66d   :  { %11019 = vmatpush1.bf16.msra.mxu1 %v13567_v61  ;;  %10856 = vmatprep.subr.bf16.mxu0 %v13572_v19  ;;  %v13642_v61 = vld [vmem:[%s18649_s6 + $0x420] ss:$16 sps:$4 sm:$0xff]   ;;  %v13645_v19 = vld [vmem:[%s18649_s6 + $0x428] ss:$16 sps:$4 sm:$0xff]  }
 0x66e   :  { %11020 = vmatprep.subr.bf16.mxu1 %v13575_v47  ;;  %v13650_v47 = vld [vmem:[%s18649_s6 + $0x444] ss:$16 sps:$4 sm:$0xff]  }
 0x670   :  { %10857 = vmatpush1.bf16.msra.mxu0 %v13570_v11  ;;  %v13653_v11 = vld [vmem:[%s18649_s6 + $0x44c] ss:$16 sps:$4 sm:$0xff]  }
 0x671   :  { %11021 = vmatpush1.bf16.msra.mxu1 %v13573_v56  ;;  %10858 = vmatprep.subr.bf16.mxu0 %v13578_v2  ;;  %v13648_v56 = vld [vmem:[%s18649_s6 + $0x440] ss:$16 sps:$4 sm:$0xff]   ;;  %v13651_v2 = vld [vmem:[%s18649_s6 + $0x448] ss:$16 sps:$4 sm:$0xff]  }
 0x672   :  { %11022 = vmatprep.subr.bf16.mxu1 %v13581_v9  ;;  %v13656_v9 = vld [vmem:[%s18649_s6 + $0x464] ss:$16 sps:$4 sm:$0xff]  }
 0x674   :  { %10859 = vmatpush1.bf16.msra.mxu0 %v13576_v10  ;;  %v13659_v10 = vld [vmem:[%s18649_s6 + $0x46c] ss:$16 sps:$4 sm:$0xff]  }
 0x675   :  { %11023 = vmatpush1.bf16.msra.mxu1 %v13579_v30  ;;  %10860 = vmatprep.subr.bf16.mxu0 %v13584_v43  ;;  %v13654_v30 = vld [vmem:[%s18649_s6 + $0x460] ss:$16 sps:$4 sm:$0xff]   ;;  %v13657_v43 = vld [vmem:[%s18649_s6 + $0x468] ss:$16 sps:$4 sm:$0xff]  }
 0x676   :  { %11024 = vmatprep.subr.bf16.mxu1 %v13587_v39  ;;  %v13662_v39 = vld [vmem:[%s18649_s6 + $0x484] ss:$16 sps:$4 sm:$0xff]  }
 0x678   :  { %10861 = vmatpush1.bf16.msra.mxu0 %v13582_v29  ;;  %v13665_v29 = vld [vmem:[%s18649_s6 + $0x48c] ss:$16 sps:$4 sm:$0xff]  }
 0x679   :  { %11025 = vmatpush1.bf16.msra.mxu1 %v13585_v31  ;;  %10862 = vmatprep.subr.bf16.mxu0 %v13590_v40  ;;  %v13660_v31 = vld [vmem:[%s18649_s6 + $0x480] ss:$16 sps:$4 sm:$0xff]   ;;  %v13663_v40 = vld [vmem:[%s18649_s6 + $0x488] ss:$16 sps:$4 sm:$0xff]  }
 0x67a   :  { %11026 = vmatprep.subr.bf16.mxu1 %v13593_v33  ;;  %v13668_v33 = vld [vmem:[%s18649_s6 + $0x4a4] ss:$16 sps:$4 sm:$0xff]  }
 0x67c   :  { %10863 = vmatpush1.bf16.msra.mxu0 %v13588_v45  ;;  %v13671_v45 = vld [vmem:[%s18649_s6 + $0x4ac] ss:$16 sps:$4 sm:$0xff]  }
 0x67d   :  { %11027 = vmatpush1.bf16.msra.mxu1 %v13591_v44  ;;  %10864 = vmatprep.subr.bf16.mxu0 %v13596_v5  ;;  %v13666_v44 = vld [vmem:[%s18649_s6 + $0x4a0] ss:$16 sps:$4 sm:$0xff]   ;;  %v13669_v5 = vld [vmem:[%s18649_s6 + $0x4a8] ss:$16 sps:$4 sm:$0xff]  }
 0x67e   :  { %11028 = vmatprep.subr.bf16.mxu1 %v13599_v18  ;;  %v13674_v18 = vld [vmem:[%s18649_s6 + $0x4c4] ss:$16 sps:$4 sm:$0xff]  }
 0x680   :  { %10865 = vmatpush1.bf16.msra.mxu0 %v13594_v12  ;;  %v13677_v12 = vld [vmem:[%s18649_s6 + $0x4cc] ss:$16 sps:$4 sm:$0xff]  }
 0x681   :  { %11029 = vmatpush1.bf16.msra.mxu1 %v13597_v7  ;;  %10866 = vmatprep.subr.bf16.mxu0 %v13602_v14  ;;  %v13672_v7 = vld [vmem:[%s18649_s6 + $0x4c0] ss:$16 sps:$4 sm:$0xff]   ;;  %v13675_v14 = vld [vmem:[%s18649_s6 + $0x4c8] ss:$16 sps:$4 sm:$0xff]  }
 0x682   :  { %11030 = vmatprep.subr.bf16.mxu1 %v13605_v6  ;;  %v13680_v6 = vld [vmem:[%s18649_s6 + $0x4e4] ss:$16 sps:$4 sm:$0xff]  }
 0x684   :  { %10867 = vmatpush1.bf16.msra.mxu0 %v13600_v16  ;;  %v13683_v16 = vld [vmem:[%s18649_s6 + $0x4ec] ss:$16 sps:$4 sm:$0xff]  }
 0x685   :  { %11031 = vmatpush1.bf16.msra.mxu1 %v13603_v35  ;;  %10868 = vmatprep.subr.bf16.mxu0 %v13608_v50  ;;  %v13678_v35 = vld [vmem:[%s18649_s6 + $0x4e0] ss:$16 sps:$4 sm:$0xff]   ;;  %v13681_v50 = vld [vmem:[%s18649_s6 + $0x4e8] ss:$16 sps:$4 sm:$0xff]  }
 0x686   :  { %11032 = vmatprep.subr.bf16.mxu1 %v13611_v3  ;;  %v13686_v3 = vld [vmem:[%s18649_s6 + $0x504] ss:$16 sps:$4 sm:$0xff]  }
 0x688   :  { %10869 = vmatpush1.bf16.msra.mxu0 %v13606_v21  ;;  %v13689_v21 = vld [vmem:[%s18649_s6 + $0x50c] ss:$16 sps:$4 sm:$0xff]  }
 0x689   :  { %11033 = vmatpush1.bf16.msra.mxu1 %v13609_v20  ;;  %10870 = vmatprep.subr.bf16.mxu0 %v13614_v32  ;;  %v13684_v20 = vld [vmem:[%s18649_s6 + $0x500] ss:$16 sps:$4 sm:$0xff]   ;;  %v13687_v32 = vld [vmem:[%s18649_s6 + $0x508] ss:$16 sps:$4 sm:$0xff]  }
 0x68a   :  { %11034 = vmatprep.subr.bf16.mxu1 %v13617_v22  ;;  %v13692_v22 = vld [vmem:[%s18649_s6 + $0x524] ss:$16 sps:$4 sm:$0xff]  }
 0x68c   :  { %10871 = vmatpush1.bf16.msra.mxu0 %v13612_v27  ;;  %v13695_v27 = vld [vmem:[%s18649_s6 + $0x52c] ss:$16 sps:$4 sm:$0xff]  }
 0x68d   :  { %11035 = vmatpush1.bf16.msra.mxu1 %v13615_v15  ;;  %10872 = vmatprep.subr.bf16.mxu0 %v13620_v49  ;;  %v13690_v15 = vld [vmem:[%s18649_s6 + $0x520] ss:$16 sps:$4 sm:$0xff]   ;;  %v13693_v49 = vld [vmem:[%s18649_s6 + $0x528] ss:$16 sps:$4 sm:$0xff]  }
 0x68e   :  { %11036 = vmatprep.subr.bf16.mxu1 %v13623_v60  ;;  %v13698_v60 = vld [vmem:[%s18649_s6 + $0x544] ss:$16 sps:$4 sm:$0xff]  }
 0x690   :  { %10873 = vmatpush1.bf16.msra.mxu0 %v13618_v17  ;;  %v13701_v17 = vld [vmem:[%s18649_s6 + $0x54c] ss:$16 sps:$4 sm:$0xff]  }
 0x691   :  { %11037 = vmatpush1.bf16.msra.mxu1 %v13621_v0  ;;  %10874 = vmatprep.subr.bf16.mxu0 %v13626_v36  ;;  %v13699_v0 = vld [vmem:[%s18649_s6 + $0x548] ss:$16 sps:$4 sm:$0xff]   ;;  %v13704_v36 = vld [vmem:[%s18649_s6 + $0x564] ss:$16 sps:$4 sm:$0xff]  }
 0x692   :  { %11038 = vmatprep.subr.bf16.mxu1 %v13629_v13  ;;  %v13707_v13 = vld [vmem:[%s18649_s6 + $0x56c] ss:$16 sps:$4 sm:$0xff]  }
 0x694   :  { %10875 = vmatpush1.bf16.msra.mxu0 %v13624_v41  ;;  %v13702_v41 = vld [vmem:[%s18649_s6 + $0x560] ss:$16 sps:$4 sm:$0xff]  }
 0x695   :  { %11039 = vmatpush1.bf16.msra.mxu1 %v13627_v23  ;;  %10876 = vmatprep.subr.bf16.mxu0 %v13632_v53  ;;  %v13710_v23 = vld [vmem:[%s18649_s6 + $0x584] ss:$16 sps:$4 sm:$0xff]   ;;  %v13713_v53 = vld [vmem:[%s18649_s6 + $0x58c] ss:$16 sps:$4 sm:$0xff]  }
 0x696   :  { %11040 = vmatprep.subr.bf16.mxu1 %v13635_v55  ;;  %v13708_v55 = vld [vmem:[%s18649_s6 + $0x580] ss:$16 sps:$4 sm:$0xff]  }
 0x698   :  { %10877 = vmatpush1.bf16.msra.mxu0 %v13630_v42  ;;  %v13711_v42 = vld [vmem:[%s18649_s6 + $0x588] ss:$16 sps:$4 sm:$0xff]  }
 0x699   :  { %11041 = vmatpush1.bf16.msra.mxu1 %v13633_v58  ;;  %10887 = vmatprep.subr.bf16.mxu0 %v13638_v25  ;;  %v13719_v58 = vld [vmem:[%s18649_s6 + $0x5ac] ss:$16 sps:$4 sm:$0xff]   ;;  %v13714_v25 = vld [vmem:[%s18649_s6 + $0x5a0] ss:$16 sps:$4 sm:$0xff]  }
 0x69a   :  { %11051 = vmatprep.subr.bf16.mxu1 %v13641_v63  ;;  %v13717_v63 = vld [vmem:[%s18649_s6 + $0x5a8] ss:$16 sps:$4 sm:$0xff]  }
 0x69b   :  { %10879 = vmatmul.mubr.bf16.vlgmr.msra.gmra.mrb[72].mxu0 %v9241_v34 }
 0x69c   :  { %11043 = vmatmul.mubr.bf16.vlgmr.msra.gmra.mrb[40].mxu1 %v9241_v34  ;;  %10888 = vmatpush1.bf16.msra.mxu0 %v13636_v1  ;;  %v13722_v1 = vld [vmem:[%s18649_s6 + $0x5c4] ss:$16 sps:$4 sm:$0xff]   ;;  %v13725_v34 = vld [vmem:[%s18649_s6 + $0x5cc] ss:$16 sps:$4 sm:$0xff]  }
 0x69d   :  { %11052 = vmatpush1.bf16.msra.mxu1 %v13639_v48  ;;  %10889 = vmatprep.subr.bf16.mxu0 %v13644_v59  ;;  %v13720_v48 = vld [vmem:[%s18649_s6 + $0x5c0] ss:$16 sps:$4 sm:$0xff]   ;;  %v13723_v59 = vld [vmem:[%s18649_s6 + $0x5c8] ss:$16 sps:$4 sm:$0xff]  }
 0x69e   :  { %11053 = vmatprep.subr.bf16.mxu1 %v13647_v52  ;;  %v13728_v52 = vld [vmem:[%s18649_s6 + $0x5e4] ss:$16 sps:$4 sm:$0xff]  }
 0x6a0   :  { %10890 = vmatpush1.bf16.msra.mxu0 %v13642_v61  ;;  %v13731_v61 = vld [vmem:[%s18649_s6 + $0x5ec] ss:$16 sps:$4 sm:$0xff]  }
 0x6a1   :  { %11054 = vmatpush1.bf16.msra.mxu1 %v13645_v19  ;;  %10891 = vmatprep.subr.bf16.mxu0 %v13650_v47  ;;  %v13726_v19 = vld [vmem:[%s18649_s6 + $0x5e0] ss:$16 sps:$4 sm:$0xff]   ;;  %v13729_v47 = vld [vmem:[%s18649_s6 + $0x5e8] ss:$16 sps:$4 sm:$0xff]  }
 0x6a2   :  { %11055 = vmatprep.subr.bf16.mxu1 %v13653_v11  ;;  %v13734_v11 = vld [vmem:[%s18649_s6 + $0x604] ss:$16 sps:$4 sm:$0xff]  }
 0x6a4   :  { %10892 = vmatpush1.bf16.msra.mxu0 %v13648_v56  ;;  %v13737_v56 = vld [vmem:[%s18649_s6 + $0x60c] ss:$16 sps:$4 sm:$0xff]  }
 0x6a5   :  { %11056 = vmatpush1.bf16.msra.mxu1 %v13651_v2  ;;  %10893 = vmatprep.subr.bf16.mxu0 %v13656_v9  ;;  %v2778_v2 = vrot.slane %v17689_v4, %v14963_v37  ;;  %v2782_v9 = vrot.slane %v17689_v4, %v14824_v51  ;;  %v13732_v51 = vld [vmem:[%s18649_s6 + $0x600] ss:$16 sps:$4 sm:$0xff]  }
 0x6a6   :  { %11057 = vmatprep.subr.bf16.mxu1 %v13659_v10  ;;  %v2790_v10 = vrot.slane %v17689_v4, %v15025_v38  ;;  %v13735_v38 = vld [vmem:[%s18649_s6 + $0x608] ss:$16 sps:$4 sm:$0xff]  }
 0x6a8   :  { %10894 = vmatpush1.bf16.msra.mxu0 %v13654_v30 }
 0x6a9   :  { %11058 = vmatpush1.bf16.msra.mxu1 %v13657_v43  ;;  %10895 = vmatprep.subr.bf16.mxu0 %v13662_v39 }
 0x6aa   :  { %11059 = vmatprep.subr.bf16.mxu1 %v13665_v29 }
 0x6ac   :  { %10896 = vmatpush1.bf16.msra.mxu0 %v13660_v31 }
 0x6ad   :  { %11060 = vmatpush1.bf16.msra.mxu1 %v13663_v40  ;;  %10897 = vmatprep.subr.bf16.mxu0 %v13668_v33 }
 0x6ae   :  { %11061 = vmatprep.subr.bf16.mxu1 %v13671_v45 }
 0x6b0   :  { %10898 = vmatpush1.bf16.msra.mxu0 %v13666_v44 }
 0x6b1   :  { %11062 = vmatpush1.bf16.msra.mxu1 %v13669_v5  ;;  %10899 = vmatprep.subr.bf16.mxu0 %v13674_v18 }
 0x6b2   :  { %11063 = vmatprep.subr.bf16.mxu1 %v13677_v12 }
 0x6b4   :  { %10900 = vmatpush1.bf16.msra.mxu0 %v13672_v7 }
 0x6b5   :  { %11064 = vmatpush1.bf16.msra.mxu1 %v13675_v14  ;;  %10901 = vmatprep.subr.bf16.mxu0 %v13680_v6  ;;  %v13740_v6 = vld [vmem:[%s18649_s6 + $0x624] ss:$16 sps:$4 sm:$0xff]  }
 0x6b6   :  { %11065 = vmatprep.subr.bf16.mxu1 %v13683_v16  ;;  %v13743_v16 = vld [vmem:[%s18649_s6 + $0x62c] ss:$16 sps:$4 sm:$0xff]  }
 0x6b8   :  { %10902 = vmatpush1.bf16.msra.mxu0 %v13678_v35 }
 0x6b9   :  { %11066 = vmatpush1.bf16.msra.mxu1 %v13681_v50  ;;  %10903 = vmatprep.subr.bf16.mxu0 %v13686_v3  ;;  %v13738_v50 = vld [vmem:[%s18649_s6 + $0x620] ss:$16 sps:$4 sm:$0xff]   ;;  %v13741_v3 = vld [vmem:[%s18649_s6 + $0x628] ss:$16 sps:$4 sm:$0xff]  }
 0x6ba   :  { %11067 = vmatprep.subr.bf16.mxu1 %v13689_v21  ;;  %v13746_v21 = vld [vmem:[%s18649_s6 + $0x644] ss:$16 sps:$4 sm:$0xff]  }
 0x6bc   :  { %10904 = vmatpush1.bf16.msra.mxu0 %v13684_v20  ;;  %v13749_v20 = vld [vmem:[%s18649_s6 + $0x64c] ss:$16 sps:$4 sm:$0xff]  }
 0x6bd   :  { %11068 = vmatpush1.bf16.msra.mxu1 %v13687_v32  ;;  %10905 = vmatprep.subr.bf16.mxu0 %v13692_v22  ;;  %v13744_v32 = vld [vmem:[%s18649_s6 + $0x640] ss:$16 sps:$4 sm:$0xff]   ;;  %v13747_v22 = vld [vmem:[%s18649_s6 + $0x648] ss:$16 sps:$4 sm:$0xff]  }
 0x6be   :  { %11069 = vmatprep.subr.bf16.mxu1 %v13695_v27  ;;  %v13752_v27 = vld [vmem:[%s18649_s6 + $0x664] ss:$16 sps:$4 sm:$0xff]  }
 0x6c0   :  { %10906 = vmatpush1.bf16.msra.mxu0 %v13690_v15  ;;  %v13755_v15 = vld [vmem:[%s18649_s6 + $0x66c] ss:$16 sps:$4 sm:$0xff]  }
 0x6c1   :  { %11070 = vmatpush1.bf16.msra.mxu1 %v13693_v49  ;;  %10907 = vmatprep.subr.bf16.mxu0 %v13698_v60  ;;  %v13750_v49 = vld [vmem:[%s18649_s6 + $0x660] ss:$16 sps:$4 sm:$0xff]   ;;  %v13753_v60 = vld [vmem:[%s18649_s6 + $0x668] ss:$16 sps:$4 sm:$0xff]  }
 0x6c2   :  { %11071 = vmatprep.subr.bf16.mxu1 %v13701_v17  ;;  %v13758_v17 = vld [vmem:[%s18649_s6 + $0x684] ss:$16 sps:$4 sm:$0xff]  }
 0x6c4   :  { %10908 = vmatpush1.bf16.msra.mxu0 %v13696_v28  ;;  %v13761_v28 = vld [vmem:[%s18649_s6 + $0x68c] ss:$16 sps:$4 sm:$0xff]  }
 0x6c5   :  { %11072 = vmatpush1.bf16.msra.mxu1 %v13699_v0  ;;  %10909 = vmatprep.subr.bf16.mxu0 %v13704_v36  ;;  %v13756_v0 = vld [vmem:[%s18649_s6 + $0x680] ss:$16 sps:$4 sm:$0xff]   ;;  %v13759_v36 = vld [vmem:[%s18649_s6 + $0x688] ss:$16 sps:$4 sm:$0xff]  }
 0x6c6   :  { %11073 = vmatprep.subr.bf16.mxu1 %v13707_v13  ;;  %v13764_v13 = vld [vmem:[%s18649_s6 + $0x6a4] ss:$16 sps:$4 sm:$0xff]  }
 0x6c8   :  { %10910 = vmatpush1.bf16.msra.mxu0 %v13702_v41  ;;  %v13767_v41 = vld [vmem:[%s18649_s6 + $0x6ac] ss:$16 sps:$4 sm:$0xff]  }
 0x6c9   :  { %11074 = vmatpush1.bf16.msra.mxu1 %v13705_v8  ;;  %10911 = vmatprep.subr.bf16.mxu0 %v13710_v23  ;;  %v13762_v8 = vld [vmem:[%s18649_s6 + $0x6a0] ss:$16 sps:$4 sm:$0xff]   ;;  %v13765_v23 = vld [vmem:[%s18649_s6 + $0x6a8] ss:$16 sps:$4 sm:$0xff]  }
 0x6ca   :  { %11075 = vmatprep.subr.bf16.mxu1 %v13713_v53  ;;  %v13770_v53 = vld [vmem:[%s18649_s6 + $0x6c4] ss:$16 sps:$4 sm:$0xff]  }
 0x6cc   :  { %10912 = vmatpush1.bf16.msra.mxu0 %v13708_v55  ;;  %v13773_v55 = vld [vmem:[%s18649_s6 + $0x6cc] ss:$16 sps:$4 sm:$0xff]  }
 0x6cd   :  { %11076 = vmatpush1.bf16.msra.mxu1 %v13711_v42  ;;  %10913 = vmatprep.subr.bf16.mxu0 %v13716_v57  ;;  %v13768_v42 = vld [vmem:[%s18649_s6 + $0x6c0] ss:$16 sps:$4 sm:$0xff]   ;;  %v13771_v57 = vld [vmem:[%s18649_s6 + $0x6c8] ss:$16 sps:$4 sm:$0xff]  }
 0x6ce   :  { %11077 = vmatprep.subr.bf16.mxu1 %v13719_v58  ;;  %v13776_v58 = vld [vmem:[%s18649_s6 + $0x6e4] ss:$16 sps:$4 sm:$0xff]  }
 0x6d0   :  { %10914 = vmatpush1.bf16.msra.mxu0 %v13714_v25  ;;  %v13779_v25 = vld [vmem:[%s18649_s6 + $0x6ec] ss:$16 sps:$4 sm:$0xff]  }
 0x6d1   :  { %11078 = vmatpush1.bf16.msra.mxu1 %v13717_v63  ;;  %10915 = vmatprep.subr.bf16.mxu0 %v13722_v1  ;;  %v13774_v63 = vld [vmem:[%s18649_s6 + $0x6e0] ss:$16 sps:$4 sm:$0xff]   ;;  %v13777_v1 = vld [vmem:[%s18649_s6 + $0x6e8] ss:$16 sps:$4 sm:$0xff]  }
 0x6d2   :  { %11079 = vmatprep.subr.bf16.mxu1 %v13725_v34  ;;  %v13782_v34 = vld [vmem:[%s18649_s6 + $0x704] ss:$16 sps:$4 sm:$0xff]  }
 0x6d4   :  { %10916 = vmatpush1.bf16.msra.mxu0 %v13720_v48  ;;  %v13785_v48 = vld [vmem:[%s18649_s6 + $0x70c] ss:$16 sps:$4 sm:$0xff]  }
 0x6d5   :  { %11080 = vmatpush1.bf16.msra.mxu1 %v13723_v59  ;;  %10917 = vmatprep.subr.bf16.mxu0 %v13728_v52  ;;  %v13780_v59 = vld [vmem:[%s18649_s6 + $0x700] ss:$16 sps:$4 sm:$0xff]   ;;  %v13783_v52 = vld [vmem:[%s18649_s6 + $0x708] ss:$16 sps:$4 sm:$0xff]  }
 0x6d6   :  { %11081 = vmatprep.subr.bf16.mxu1 %v13731_v61  ;;  %v13788_v61 = vld [vmem:[%s18649_s6 + $0x724] ss:$16 sps:$4 sm:$0xff]  }
 0x6d8   :  { %10918 = vmatpush1.bf16.msra.mxu0 %v13726_v19  ;;  %v13791_v19 = vld [vmem:[%s18649_s6 + $0x72c] ss:$16 sps:$4 sm:$0xff]  }
 0x6d9   :  { %11082 = vmatpush1.bf16.msra.mxu1 %v13729_v47  ;;  %10928 = vmatprep.subr.bf16.mxu0 %v13734_v11  ;;  %v13786_v47 = vld [vmem:[%s18649_s6 + $0x720] ss:$16 sps:$4 sm:$0xff]   ;;  %v13789_v11 = vld [vmem:[%s18649_s6 + $0x728] ss:$16 sps:$4 sm:$0xff]  }
 0x6da   :  { %11092 = vmatprep.subr.bf16.mxu1 %v13737_v56  ;;  %v13794_v56 = vld [vmem:[%s18649_s6 + $0x744] ss:$16 sps:$4 sm:$0xff]  }
 0x6ee   :  { %v8896_v30 = vpop.f32.mrb[68].mxu0 }
 0x6ef   :  { %v13260_v43 = vadd.f32 %v8896_v30, %v2778_v2  ;;  %v18305_v39 = vpop.f32.mrb[36].mxu1  ;;  %v8898_v29 = vpop.f32.mrb[69].mxu0  ;;  %v13797_v2 = vld [vmem:[%s18649_s6 + $0x74c] ss:$16 sps:$4 sm:$0xff]   ;;  %v13800_v30 = vld [vmem:[%s18649_s6 + $0x764] ss:$16 sps:$4 sm:$0xff]  }
 0x6f0   :  { %v13261_v31 = vadd.f32 %v8898_v29, %v2782_v9  ;;  %v9226_v40 = vpop.f32.mrb[37].mxu1  ;;  %v8900_v33 = vpop.f32.mrb[70].mxu0  ;;  %v13792_v9 = vld [vmem:[%s18649_s6 + $0x740] ss:$16 sps:$4 sm:$0xff]  }
 0x6f1   :  { %v9235_v45 = vmax.f32 %v13260_v43, 0.0  ;;  %v13263_v44 = vadd.f32 %v9226_v40, %v2790_v10  ;;  %v9228_v5 = vpop.f32.mrb[38].mxu1  ;;  %v8901_v18 = vpop.f32.mrb[71].mxu0  ;;  %v13795_v10 = vld [vmem:[%s18649_s6 + $0x748] ss:$16 sps:$4 sm:$0xff]  }
 0x6f2   :  { %v9236_v12 = vmax.f32 %v13261_v31, 0.0  ;;  %v9229_v37 = vpop.f32.mrb[39].mxu1  ;;  %v13803_v43 = vld [vmem:[%s18649_s6 + $0x76c] ss:$16 sps:$4 sm:$0xff]   ;;  %v13798_v29 = vld [vmem:[%s18649_s6 + $0x760] ss:$16 sps:$4 sm:$0xff]  }
 0x6f3   :  { %v9238_v7 = vmax.f32 %v13263_v44, 0.0  ;;  %v9243_v4 = vpack.c.bf16 %v9235_v45, %v9235_v45  ;;  %v13801_v31 = vld [vmem:[%s18649_s6 + $0x768] ss:$16 sps:$4 sm:$0xff]   ;;  %v13806_v40 = vld [vmem:[%s18649_s6 + $0x784] ss:$16 sps:$4 sm:$0xff]  }
 0x6f4   :  { %v9244_v14 = vpack.c.bf16 %v9236_v12, %v9236_v12  ;;  %v13809_v33 = vld [vmem:[%s18649_s6 + $0x78c] ss:$16 sps:$4 sm:$0xff]   ;;  %v13804_v45 = vld [vmem:[%s18649_s6 + $0x780] ss:$16 sps:$4 sm:$0xff]   ;;  %v13807_v44 = vld [vmem:[%s18649_s6 + $0x788] ss:$16 sps:$4 sm:$0xff]  }
 0x6f5   :  { %v9246_v35 = vpack.c.bf16 %v9238_v7, %v9238_v7  ;;  %v13812_v5 = vld [vmem:[%s18649_s6 + $0x7a4] ss:$16 sps:$4 sm:$0xff]   ;;  %v13815_v18 = vld [vmem:[%s18649_s6 + $0x7ac] ss:$16 sps:$4 sm:$0xff]   ;;  %v13810_v12 = vld [vmem:[%s18649_s6 + $0x7a0] ss:$16 sps:$4 sm:$0xff]  }
 0x6f6   :  { %10919 = vmatprep.mubr.bf16.mxu0 %v9244_v14  ;;  %11083 = vmatprep.mubr.bf16.mxu1 %v9244_v14  ;;  %v13813_v37 = vld [vmem:[%s18649_s6 + $0x7a8] ss:$16 sps:$4 sm:$0xff]   ;;  %v13870_v7 = vld [vmem:[%s18648_s5] sm:$0xff] }
 0x6f7   :  { %10920 = vmatmul.mubr.bf16.vlgmr.msra.gmra.mrb[72].mxu0 %v9243_v4  ;;  %11084 = vmatmul.mubr.bf16.vlgmr.msra.gmra.mrb[40].mxu1 %v9243_v4  ;;  %v2786_v14 = vrot.slane %v13870_v7, %v15022_v62  ;;  %v13816_v4 = vld [vmem:[%s18649_s6 + $0x7c0] ss:$16 sps:$4 sm:$0xff]   ;;  %v13819_v62 = vld [vmem:[%s18649_s6 + $0x7c8] ss:$16 sps:$4 sm:$0xff]  }
 0x6f8   :  { %10929 = vmatpush1.bf16.msra.mxu0 %v13732_v51  ;;  %11093 = vmatpush1.bf16.msra.mxu1 %v13735_v38  ;;  %v13818_v51 = vld [vmem:[%s18649_s6 + $0x7c4] ss:$16 sps:$4 sm:$0xff]   ;;  %v13821_v38 = vld [vmem:[%s18649_s6 + $0x7cc] ss:$16 sps:$4 sm:$0xff]  }
 0x6f9   :  { %10960 = vmatprep.mubr.bf16.mxu0 %v9246_v35  ;;  %11124 = vmatprep.mubr.bf16.mxu1 %v9246_v35  ;;  %v13827_v35 = vld [vmem:[%s18649_s6 + $0x7ec] ss:$16 sps:$4 sm:$0xff]   ;;  %v13856_v7 = vld [vmem:[%s18651_s8 + $0xf0] sm:$0xff]  }
 0x6fa   :  { %10930 = vmatprep.subr.bf16.mxu0 %v13740_v6  ;;  %11094 = vmatprep.subr.bf16.mxu1 %v13743_v16  ;;  %v13262_v6 = vadd.f32 %v18305_v39, %v2786_v14  ;;  %v13824_v16 = vld [vmem:[%s18649_s6 + $0x7e4] ss:$16 sps:$4 sm:$0xff]   ;;  %v13825_v39 = vld [vmem:[%s18649_s6 + $0x7e8] ss:$16 sps:$4 sm:$0xff]  }
 0x6fb   :  { %v13857_v14 = vld [vmem:[%s18651_s8 + $0xb0] sm:$0xff]  }
 0x6fc   :  { %10931 = vmatpush1.bf16.msra.mxu0 %v13738_v50  ;;  %11095 = vmatpush1.bf16.msra.mxu1 %v13741_v3  ;;  %v13822_v50 = vld [vmem:[%s18649_s6 + $0x7e0] ss:$16 sps:$4 sm:$0xff]   ;;  %v9237_v3 = vmax.f32 %v13262_v6, 0.0 }
 0x6fd   :  { %10932 = vmatprep.subr.bf16.mxu0 %v13746_v21  ;;  %11096 = vmatprep.subr.bf16.mxu1 %v13749_v20  ;;  %v13828_v21 = vld [vmem:[%s18651_s8 + $0x40] sm:$0xff]  }
 0x6fe   :  { %v13829_v20 = vld [vmem:[%s18651_s8] sm:$0xff]  }
 0x6ff   :  { %v13860_v6 = vld [vmem:[%s18653_s10] sm:$0xff]  }
 0x700   :  { %10933 = vmatpush1.bf16.msra.mxu0 %v13744_v32  ;;  %11097 = vmatpush1.bf16.msra.mxu1 %v13747_v22  ;;  %v9245_v32 = vpack.c.bf16 %v9237_v3, %v9237_v3  ;;  %v13830_v22 = vld [vmem:[%s18651_s8 + $0x48] sm:$0xff]   ;;  %v13864_v3 = vld [vmem:[%s18653_s10 + $0x20] sm:$0xff]  }
 0x701   :  { %10934 = vmatprep.subr.bf16.mxu0 %v13752_v27  ;;  %11098 = vmatprep.subr.bf16.mxu1 %v13755_v15  ;;  %v13831_v27 = vld [vmem:[%s18651_s8 + $0x8] sm:$0xff]   ;;  %v13832_v15 = vld [vmem:[%s18651_s8 + $0x50] sm:$0xff]  }
 0x704   :  { %10935 = vmatpush1.bf16.msra.mxu0 %v13750_v49  ;;  %11099 = vmatpush1.bf16.msra.mxu1 %v13753_v60  ;;  %v13833_v49 = vld [vmem:[%s18651_s8 + $0x10] sm:$0xff]   ;;  %v13834_v60 = vld [vmem:[%s18651_s8 + $0x58] sm:$0xff]  }
 0x705   :  { %10936 = vmatprep.subr.bf16.mxu0 %v13758_v17  ;;  %11100 = vmatprep.subr.bf16.mxu1 %v13761_v28  ;;  %v13835_v17 = vld [vmem:[%s18651_s8 + $0x18] sm:$0xff]   ;;  %v13836_v28 = vld [vmem:[%s18651_s8 + $0x60] sm:$0xff]  }
 0x708   :  { %10937 = vmatpush1.bf16.msra.mxu0 %v13756_v0  ;;  %11101 = vmatpush1.bf16.msra.mxu1 %v13759_v36  ;;  %v13837_v0 = vld [vmem:[%s18651_s8 + $0x20] sm:$0xff]   ;;  %v13838_v36 = vld [vmem:[%s18651_s8 + $0x68] sm:$0xff]  }
 0x709   :  { %10938 = vmatprep.subr.bf16.mxu0 %v13764_v13  ;;  %11102 = vmatprep.subr.bf16.mxu1 %v13767_v41  ;;  %v13839_v13 = vld [vmem:[%s18651_s8 + $0x28] sm:$0xff]   ;;  %v13840_v41 = vld [vmem:[%s18651_s8 + $0x70] sm:$0xff]  }
 0x70c   :  { %10939 = vmatpush1.bf16.msra.mxu0 %v13762_v8  ;;  %11103 = vmatpush1.bf16.msra.mxu1 %v13765_v23  ;;  %v13841_v8 = vld [vmem:[%s18651_s8 + $0x30] sm:$0xff]   ;;  %v13842_v23 = vld [vmem:[%s18651_s8 + $0x78] sm:$0xff]  }
 0x70d   :  { %10940 = vmatprep.subr.bf16.mxu0 %v13770_v53  ;;  %11104 = vmatprep.subr.bf16.mxu1 %v13773_v55  ;;  %v13843_v53 = vld [vmem:[%s18651_s8 + $0x38] sm:$0xff]   ;;  %v13844_v55 = vld [vmem:[%s18651_s8 + $0xc0] sm:$0xff]  }
 0x710   :  { %10941 = vmatpush1.bf16.msra.mxu0 %v13768_v42  ;;  %11105 = vmatpush1.bf16.msra.mxu1 %v13771_v57  ;;  %v9503_v42 = vld [vmem:[%s18650_s7] sm:$0xf] }
 0x711   :  { %10942 = vmatprep.subr.bf16.mxu0 %v13776_v58  ;;  %11106 = vmatprep.subr.bf16.mxu1 %v13779_v25  ;;  %v9508_v57 = vrot.slane %v9503_v42, %v14617_v24  ;;  %v9512_v58 = vrot.slane %v9503_v42, %v14625_v26  ;;  %v9520_v25 = vrot.slane %v9503_v42, %v14667_v54  ;;  %v13845_v24 = vld [vmem:[%s18651_s8 + $0x80] sm:$0xff]   ;;  %v13846_v54 = vld [vmem:[%s18651_s8 + $0xc8] sm:$0xff]  }
 0x714   :  { %10943 = vmatpush1.bf16.msra.mxu0 %v13774_v63  ;;  %11107 = vmatpush1.bf16.msra.mxu1 %v13777_v1 }
 0x715   :  { %10944 = vmatprep.subr.bf16.mxu0 %v13782_v34  ;;  %11108 = vmatprep.subr.bf16.mxu1 %v13785_v48 }
 0x718   :  { %10945 = vmatpush1.bf16.msra.mxu0 %v13780_v59  ;;  %11109 = vmatpush1.bf16.msra.mxu1 %v13783_v52 }
 0x719   :  { %10946 = vmatprep.subr.bf16.mxu0 %v13788_v61  ;;  %11110 = vmatprep.subr.bf16.mxu1 %v13791_v19 }
 0x71c   :  { %10947 = vmatpush1.bf16.msra.mxu0 %v13786_v47  ;;  %11111 = vmatpush1.bf16.msra.mxu1 %v13789_v11 }
 0x71d   :  { %10948 = vmatprep.subr.bf16.mxu0 %v13794_v56  ;;  %11112 = vmatprep.subr.bf16.mxu1 %v13797_v2 }
 0x720   :  { %10949 = vmatpush1.bf16.msra.mxu0 %v13792_v9  ;;  %11113 = vmatpush1.bf16.msra.mxu1 %v13795_v10 }
 0x721   :  { %10950 = vmatprep.subr.bf16.mxu0 %v13800_v30  ;;  %11114 = vmatprep.subr.bf16.mxu1 %v13803_v43 }
 0x724   :  { %10951 = vmatpush1.bf16.msra.mxu0 %v13798_v29  ;;  %11115 = vmatpush1.bf16.msra.mxu1 %v13801_v31  ;;  %v13847_v29 = vld [vmem:[%s18651_s8 + $0x88] sm:$0xff]   ;;  %v13848_v31 = vld [vmem:[%s18651_s8 + $0xd0] sm:$0xff]  }
 0x725   :  { %10952 = vmatprep.subr.bf16.mxu0 %v13806_v40  ;;  %11116 = vmatprep.subr.bf16.mxu1 %v13809_v33  ;;  %v13849_v40 = vld [vmem:[%s18651_s8 + $0x90] sm:$0xff]   ;;  %v13850_v33 = vld [vmem:[%s18651_s8 + $0xd8] sm:$0xff]  }
 0x728   :  { %10953 = vmatpush1.bf16.msra.mxu0 %v13804_v45  ;;  %11117 = vmatpush1.bf16.msra.mxu1 %v13807_v44  ;;  %v13851_v45 = vld [vmem:[%s18651_s8 + $0x98] sm:$0xff]   ;;  %v13852_v44 = vld [vmem:[%s18651_s8 + $0xe0] sm:$0xff]  }
 0x729   :  { %10954 = vmatprep.subr.bf16.mxu0 %v13812_v5  ;;  %11118 = vmatprep.subr.bf16.mxu1 %v13815_v18  ;;  %v13853_v5 = vld [vmem:[%s18651_s8 + $0xa0] sm:$0xff]   ;;  %v13854_v18 = vld [vmem:[%s18651_s8 + $0xe8] sm:$0xff]  }
 0x72c   :  { %10955 = vmatpush1.bf16.msra.mxu0 %v13810_v12  ;;  %11119 = vmatpush1.bf16.msra.mxu1 %v13813_v37  ;;  %v13855_v12 = vld [vmem:[%s18651_s8 + $0xa8] sm:$0xff]   ;;  %v9516_v37 = vrot.slane %v9503_v42, %v14818_v46  ;;  %v13859_v46 = vld [vmem:[%s18651_s8 + $0xb8] sm:$0xff]   ;;  %v13066_v42 = vld [vmem:[%s18654_s11] ss:$0 sm:$0xff] }
 0x72d   :  { %10956 = vmatprep.subr.bf16.mxu0 %v13818_v51  ;;  %11120 = vmatprep.subr.bf16.mxu1 %v13821_v38  ;;  %v13858_v38 = vld [vmem:[%s18651_s8 + $0xf8] sm:$0xff]  }
 0x730   :  { %10957 = vmatpush1.bf16.msra.mxu0 %v13816_v4  ;;  %11121 = vmatpush1.bf16.msra.mxu1 %v13819_v62 }
 0x731   :  { %10958 = vmatprep.subr.bf16.mxu0 %v13824_v16  ;;  %11122 = vmatprep.subr.bf16.mxu1 %v13827_v35  ;;  %v13896_v16 = vmov 0.0   ;;  %v13861_v35 = vld [vmem:[%s18653_s10 + $0x8] sm:$0xff]  }
 0x734   :  { %10959 = vmatpush1.bf16.msra.mxu0 %v13822_v50  ;;  %11123 = vmatpush1.bf16.msra.mxu1 %v13825_v39  ;;  %v13862_v50 = vld [vmem:[%s18653_s10 + $0x10] sm:$0xff]   ;;  %v13863_v39 = vld [vmem:[%s18653_s10 + $0x18] sm:$0xff]  }
 0x735   :  { %13111 = vmatprep.subr.bf16.mxu0 %v13828_v21  ;;  %13236 = vmatprep.subr.bf16.mxu1 %v13896_v16  ;;  %v13865_v21 = vld [vmem:[%s18653_s10 + $0x28] sm:$0xff]  }
 0x737   :  { %10961 = vmatmul.mubr.bf16.vlgmr.msra.gmra.mrb[72].mxu0 %v9245_v32  ;;  %11125 = vmatmul.mubr.bf16.vlgmr.msra.gmra.mrb[40].mxu1 %v9245_v32  ;;  %v13867_v32 = vld [vmem:[%s18653_s10 + $0x38] sm:$0xff]  }
 0x738   :  { %13112 = vmatpush3.bf16.msra.mxu0 %v13829_v20  ;;  %13237 = vmatpush3.bf16.msra.mxu1 %v13860_v6  ;;  %v13866_v20 = vld [vmem:[%s18653_s10 + $0x30] sm:$0xff]  }
 0x739   :  { %13113 = vmatprep.subr.bf16.mxu0 %v13830_v22  ;;  %13238 = vmatprep.subr.bf16.mxu1 %v13896_v16 }
 0x73a   :  { %13252 = vmatprep.mubr.msk.bf16.mxu1 %vm13897_vm4, %v13896_v16 }
 0x73c   :  { %13114 = vmatpush3.bf16.msra.mxu0 %v13831_v27  ;;  %13239 = vmatpush3.bf16.msra.mxu1 %v13861_v35 }
 0x73d   :  { %13115 = vmatprep.subr.bf16.mxu0 %v13832_v15  ;;  %13240 = vmatprep.subr.bf16.mxu1 %v13896_v16 }
 0x740   :  { %13116 = vmatpush3.bf16.msra.mxu0 %v13833_v49  ;;  %13241 = vmatpush3.bf16.msra.mxu1 %v13862_v50 }
 0x741   :  { %13117 = vmatprep.subr.bf16.mxu0 %v13834_v60  ;;  %13242 = vmatprep.subr.bf16.mxu1 %v13896_v16 }
 0x744   :  { %13118 = vmatpush3.bf16.msra.mxu0 %v13835_v17  ;;  %13243 = vmatpush3.bf16.msra.mxu1 %v13863_v39  ;;  %v13033_v17 = vld [vmem:[%s18652_s9] ss:$0 sm:$0xff]  ;;  %s13871_s9 = scalar_lea.vmem %s11606_s2, 32 }
 0x745   :  { %13119 = vmatprep.subr.bf16.mxu0 %v13836_v28  ;;  %13244 = vmatprep.subr.bf16.mxu1 %v13896_v16  ;;  %p13872_p0 = scmp.ne.s32.totalorder %s11606_s2, %s13871_s9  ;;  %p13877_p2 = scmp.lt.s32.totalorder %s13871_s9, %s13871_s9 }
 0x747   :  { %p13878_p3 = por %p13877_p2, %p13876_p1 }
 0x748   :  { %13120 = vmatpush3.bf16.msra.mxu0 %v13837_v0  ;;  %13245 = vmatpush3.bf16.msra.mxu1 %v13864_v3 }
 0x749   :  { %13121 = vmatprep.subr.bf16.mxu0 %v13838_v36  ;;  %13246 = vmatprep.subr.bf16.mxu1 %v13896_v16  ;;  %p13879_p4 = pnand %p13878_p3, %p13872_p0 }
 0x74c   :  { %13122 = vmatpush3.bf16.msra.mxu0 %v13839_v13  ;;  %13247 = vmatpush3.bf16.msra.mxu1 %v13865_v21 }
 0x74d   :  { %13123 = vmatprep.subr.bf16.mxu0 %v13840_v41  ;;  %13248 = vmatprep.subr.bf16.mxu1 %v13896_v16 }
 0x750   :  { %13124 = vmatpush3.bf16.msra.mxu0 %v13841_v8  ;;  %13249 = vmatpush3.bf16.msra.mxu1 %v13866_v20 }
 0x751   :  { %13125 = vmatprep.subr.bf16.mxu0 %v13842_v23  ;;  %13250 = vmatprep.subr.bf16.mxu1 %v13896_v16 }
 0x754   :  { %13126 = vmatpush3.bf16.msra.mxu0 %v13843_v53  ;;  %13251 = vmatpush3.bf16.msra.mxu1 %v13867_v32 }
 0x755   :  { %13133 = vmatprep.subr.bf16.mxu0 %v13844_v55 }
 0x80a   :  { %v10962_v63 = vpop.f32.mrb[72].mxu0  ;;  %v11126_v1 = vpop.f32.mrb[40].mxu1 }
 0x80b   :  { %v13264_v34 = vadd.f32 %v10962_v63, %v9508_v57  ;;  %v10964_v48 = vpop.f32.mrb[73].mxu0  ;;  %v11128_v59 = vpop.f32.mrb[41].mxu1  ;;  %v13266_v51 = vadd.f32 %v11126_v1, %v9516_v37 }
 0x80c   :  { %v13265_v52 = vadd.f32 %v10964_v48, %v9512_v58  ;;  %v13267_v61 = vadd.f32 %v11128_v59, %v9520_v25  ;;  %v10966_v19 = vpop.f32.mrb[74].mxu0  ;;  %v11130_v47 = vpop.f32.mrb[42].mxu1 }
 0x80d   :  { %v11133_v11 = vmax.f32 %v13264_v34, 0.0  ;;  %v10967_v56 = vpop.f32.mrb[75].mxu0  ;;  %v11131_v2 = vpop.f32.mrb[43].mxu1  ;;  %v11135_v4 = vmax.f32 %v13266_v51, 0.0 }
 0x80e   :  { %v11134_v9 = vmax.f32 %v13265_v52, 0.0  ;;  %v11136_v10 = vmax.f32 %v13267_v61, 0.0 }
 0x80f   :  { %v11137_v26 = vpack.c.bf16 %v11133_v11, %v11133_v11  ;;  %v11139_v62 = vpack.c.bf16 %v11135_v4, %v11135_v4 }
 0x810   :  { %v11138_v30 = vpack.c.bf16 %v11134_v9, %v11134_v9  ;;  %v11140_v43 = vpack.c.bf16 %v11136_v10, %v11136_v10 }
 0x812   :  { %11436 = vmatprep.mubr.bf16.mxu0 %v11138_v30 }
 0x813   :  { %11437 = vmatmul.mubr.bf16.vlgmr.msra.gmra.mrb[76].mxu0 %v11137_v26 }
 0x814   :  { %13134 = vmatpush3.bf16.msra.mxu0 %v13845_v24  ;;  %11476 = vmatprep.mubr.bf16.mxu0 %v11140_v43 }
 0x815   :  { %13135 = vmatprep.subr.bf16.mxu0 %v13846_v54 }
 0x818   :  { %13136 = vmatpush3.bf16.msra.mxu0 %v13847_v29 }
 0x819   :  { %13137 = vmatprep.subr.bf16.mxu0 %v13848_v31 }
 0x81c   :  { %13138 = vmatpush3.bf16.msra.mxu0 %v13849_v40 }
 0x81d   :  { %13139 = vmatprep.subr.bf16.mxu0 %v13850_v33 }
 0x820   :  { %13140 = vmatpush3.bf16.msra.mxu0 %v13851_v45 }
 0x821   :  { %13141 = vmatprep.subr.bf16.mxu0 %v13852_v44 }
 0x824   :  { %13142 = vmatpush3.bf16.msra.mxu0 %v13853_v5 }
 0x825   :  { %13143 = vmatprep.subr.bf16.mxu0 %v13854_v18 }
 0x828   :  { %13144 = vmatpush3.bf16.msra.mxu0 %v13855_v12 }
 0x829   :  { %13145 = vmatprep.subr.bf16.mxu0 %v13856_v7 }
 0x82c   :  { %13146 = vmatpush3.bf16.msra.mxu0 %v13857_v14 }
 0x82d   :  { %13147 = vmatprep.subr.bf16.mxu0 %v13858_v38 }
 0x830   :  { %13148 = vmatpush3.bf16.msra.mxu0 %v13859_v46 }
 0x833   :  { %11477 = vmatmul.mubr.bf16.vlgmr.msra.gmra.mrb[80].mxu0 %v11139_v62 }
 0x8e6   :  { %v13127_v22 = vpop.f32.mrb[76].mxu0 }
 0x8e7   :  { %v13128_v27 = vpop.f32.mrb[77].mxu0 }
 0x8e8   :  { %v13129_v15 = vadd.f32 %v13128_v27, %v13127_v22  ;;  %v13130_v49 = vpop.f32.mrb[78].mxu0 }
 0x8e9   :  { %v13131_v60 = vpop.f32.mrb[79].mxu0 }
 0x8ea   :  { %v11439_v36 = vadd.f32 %v13129_v15, %v13033_v17 }
 0x906   :  { %v13149_v28 = vpop.f32.mrb[80].mxu0 }
 0x907   :  { %v13150_v0 = vpop.f32.mrb[81].mxu0 }
 0x908   :  { %v13151_v13 = vadd.f32 %v13150_v0, %v13149_v28  ;;  %v13152_v41 = vpop.f32.mrb[82].mxu0 }
 0x909   :  { %v13153_v8 = vpop.f32.mrb[83].mxu0 }
 0x90a   :  { %v11479_v23 = vadd.f32 %v13151_v13, %v11439_v36 }
 0x90c   :  { %v11484_v53 = vmax.f32 %v11479_v23, 0.0 }
 0x90e   :  { %v11485_v55 = vpack.c.bf16 %v11484_v53, %v11484_v53 }
 0x910   :  { %13253 = vmatmul.mubr.bf16.vlgmr.msra.gmra.mrb[44].mxu1 %v11485_v55 }
 0x9e3   :  { %v11591_v57 = vpop.f32.mrb[44].mxu1 }
 0x9e4   :  { %v11592_v58 = vadd.f32 %v13066_v42, %v11591_v57  ;;  %v13254_v25 = vpop.f32.mrb[45].mxu1 }
 0x9e5   :  { %v11594_v63 = vpop.f32.mrb[46].mxu1 }
 0x9e6   :  { %v13255_v1 = vpop.f32.mrb[47].mxu1  ;;  %11598 = vst.msk [vmem:[#allocation2] sm:$0x3] %vm11597_vm5, %v11592_v58 }
 0x9e7   :  { %13882 = shalt.err (!%p13879_p4)
}
 0x9e8   :  { %s13883_s11 = scalar_lea.hbm %s18655_s12, 32 }
 0x9e9   :  { %p13884_p5 = scmp.ne.s32.totalorder %s18655_s12, %s13883_s11  ;;  %p13887_p6 = scmp.lt.u32.totalorder %s13883_s11, %s18655_s12 }
 0x9eb   :  { %p13889_p7 = pnand %p13887_p6, %p13884_p5 }
 0x9ed   :  { %13892 = shalt.err (!%p13889_p7)
}
 0x9ee   :  { %11608 = dma.vmem_to_hbm [thread:$0]  %s11606_s2, 32, %s18655_s12, [#allocation3]  }
 0x9ef   :  { %13893 = dma.done.wait [#allocation3], 32  }
 0x9f0   :  { %13894 = vsyncadd [#allocation3], 4294967264 }
 0x9f1   :  { %11612 = vsyncpa [#allocation3], 1 }

</bundles_post_ra>
